<compile_context>
chip_gen: v6e
topology: v6e:2x2x1
jax: 0.10.0
libtpu: 0.0.40
codegen_flags: <defaults>
</compile_context>

<pallas_src>
import functools

import jax
import jax.numpy as jnp
from jax.experimental import pallas as pl
from jax.experimental.pallas import tpu as pltpu


def _make_divisible(v, divisor, min_value=None):
    if min_value is None:
        min_value = divisor
    new_v = max(min_value, int(v + divisor / 2) // divisor * divisor)
    if new_v < 0.9 * v:
        new_v += divisor
    return new_v


def _hardswish(x):
    return x * jnp.clip(x + 3.0, 0.0, 6.0) * (1.0 / 6.0)


def _rup8(x):
    return (x + 7) // 8 * 8


# ---------------------------------------------------------------------------
# Packed-weight layout (shared by host packer and in-kernel unpacker)
# ---------------------------------------------------------------------------

def _pack_layout(Cin, Cexp, Cout, mip, K):
    # (rows, cols) of each packed operand, in order.
    return [
        (Cexp, Cin),       # w_exp^T
        (Cexp, 1),         # b_exp
        (Cexp, K * K),     # w_dw
        (Cexp, 1),         # b_dw
        (mip, Cexp),       # w_ca1^T
        (mip, 1),          # b_ca1
        (2 * Cexp, mip),   # [w_ca_h^T ; w_ca_w^T]
        (2 * Cexp, 1),     # [b_ca_h ; b_ca_w]
        (Cout, Cexp),      # w_proj^T
        (Cout, 1),         # b_proj
    ]


def _pack_weights(tensors, layout):
    maxc = max(c for _, c in layout)
    blocks = []
    for t, (r, c) in zip(tensors, layout):
        t = jnp.asarray(t, jnp.float32).reshape(r, c)
        blocks.append(jnp.pad(t, ((0, _rup8(r) - r), (0, maxc - c))))
    return jnp.concatenate(blocks, axis=0)          # (sum rup8(rows), maxc)


def _unpack_weights(ref, layout):
    outs, off = [], 0
    for r, c in layout:
        outs.append(ref[off:off + r, 0:c])
        off += _rup8(r)
    return outs


# ---------------------------------------------------------------------------
# Fused Pallas kernel: one grid step == B batch images, layout (C, B*H*W)
# ---------------------------------------------------------------------------

def _fused_block_kernel(x_ref, wpk_ref, mask_ref, pexp_ref, o_ref, *,
                        H, W, K, B, Cin, Cexp, Cout, mip, use_res):
    f32, bf16 = jnp.float32, jnp.bfloat16
    HW = H * W
    L = B * HW
    pad = (K - 1) // 2

    (w_exp, b_exp, w_dw, b_dw, w_ca1, b_ca1, w_hw, b_hw, w_proj,
     b_proj) = _unpack_weights(wpk_ref, _pack_layout(Cin, Cexp, Cout, mip, K))

    def mm(a, b):        # MXU matmul: bf16 operands, f32 accumulation
        return jnp.dot(a.astype(bf16), b.astype(bf16),
                       preferred_element_type=f32)

    x = x_ref[0]                                              # (Cin, L) f32

    # ---- 1) expand 1x1 conv + BN(folded) + Hardswish ------------------------
    y = _hardswish(mm(w_exp, x) + b_exp)                      # (Cexp, L)

    # ---- 2) depthwise KxK, stride 1, SAME: lane rolls + hoisted masks -------
    acc = None
    for dy in range(K):
        for dx in range(K):
            tap = dy * K + dx
            off = (dy - pad) * W + (dx - pad)
            shifted = y if off == 0 else pltpu.roll(y, (-off) % L, 1)
            w_tap = w_dw[:, tap:tap + 1]                      # (Cexp, 1)
            if dy == pad and dx == pad:                       # interior-safe tap
                contrib = shifted * w_tap
            else:                                             # host-precomputed mask
                contrib = shifted * (w_tap * mask_ref[tap:tap + 1, :])
            acc = contrib if acc is None else acc + contrib
    y = _hardswish(acc + b_dw)                                # (Cexp, L)

    # ---- 3) Coordinate Attention (per-image, lane-aligned HW slices) --------
    pexp_b = pexp_ref[...].astype(bf16)                       # (H+W, HW) 0/1
    w_ca1_b = w_ca1.astype(bf16)
    w_hw_b = w_hw.astype(bf16)
    col = jax.lax.broadcasted_iota(jnp.int32, (1, H + W), 1)
    colscale = jnp.where(col < H, 1.0 / W, 1.0 / H)           # sums -> means
    r2 = jax.lax.broadcasted_iota(jnp.int32, (2 * Cexp, H + W), 0)
    c2 = jax.lax.broadcasted_iota(jnp.int32, (2 * Cexp, H + W), 1)
    keep = ((r2 < Cexp) == (c2 < H)).astype(f32)              # block-diag mask

    parts = []
    for b in range(B):
        yb = y[:, b * HW:(b + 1) * HW]                        # (Cexp, HW)
        # pooling: contract both operands over their lane (HW) dim
        pools = jax.lax.dot_general(
            yb.astype(bf16), pexp_b, (((1,), (1,)), ((), ())),
            preferred_element_type=f32)                       # (Cexp, H+W) sums
        t = _hardswish(jnp.dot(w_ca1_b, pools.astype(bf16),
                               preferred_element_type=f32) * colscale + b_ca1)
        z = jax.nn.sigmoid(jnp.dot(w_hw_b, t.astype(bf16),
                                   preferred_element_type=f32) + b_hw) * keep
        # fused conv_h/conv_w expansion: one (2Cexp, H+W) @ (H+W, HW) matmul
        a_full = jnp.dot(z.astype(bf16), pexp_b,
                         preferred_element_type=f32)          # (2Cexp, HW)
        parts.append(yb * a_full[:Cexp, :] * a_full[Cexp:, :])
    y = parts[0] if B == 1 else jnp.concatenate(parts, axis=1)   # (Cexp, L)

    # ---- 4) project 1x1 conv + BN(folded) + residual add --------------------
    out = mm(w_proj, y) + b_proj
    if use_res:
        out = out + x
    o_ref[0] = out                                            # lane-dense store


# ---------------------------------------------------------------------------
# Wrapper: NCHW in / NCHW out
# ---------------------------------------------------------------------------

def _pick_batch_tile(N, cap):
    if N <= 1:
        return 1
    best = 1
    for b in range(1, min(N, cap) + 1):
        # keep the grid length >= 2 so the "parallel" axis still splits across
        # both TensorCores on v7x
        if N % b == 0 and N // b >= 2:
            best = b
    return best


def _inverted_res_block_impl(x_nchw, p, max_images_per_step=16):
    N, Cin, H, W = x_nchw.shape
    HW = H * W
    Cexp = p["w_exp"].shape[1]
    Cout = p["w_proj"].shape[1]
    mip = p["w_ca1"].shape[1]
    K = p["w_dw"].shape[0]
    pad = (K - 1) // 2
    use_res = (Cin == Cout)

    # Per-image live activations ~200 KB; cap B so we stay well under the
    # default scoped VMEM on all generations (16 MiB v5e / 32 MiB v6e,v7x).
    B = _pick_batch_tile(N, max_images_per_step)
    G = N // B
    L = B * HW

    # channels-major with B images flattened into the lane dimension
    x = x_nchw.astype(jnp.float32).reshape(G, B, Cin, HW)
    x = jnp.transpose(x, (0, 2, 1, 3)).reshape(G, Cin, L)

    layout = _pack_layout(Cin, Cexp, Cout, mip, K)
    wpack = _pack_weights([
        p["w_exp"].T, p["b_exp"],
        p["w_dw"].reshape(K * K, Cexp).T, p["b_dw"],
        p["w_ca1"].T, p["b_ca1"],
        jnp.concatenate([p["w_ca_h"].T, p["w_ca_w"].T], axis=0),
        jnp.concatenate([p["b_ca_h"], p["b_ca_w"]]),
        p["w_proj"].T, p["b_proj"],
    ], layout)
    Rp, Cp = wpack.shape

    # depthwise border-validity masks (K*K, B*HW); pos % HW so pltpu.roll
    # wrap-around across image boundaries is always zeroed
    lane = jnp.arange(L)
    q = lane % HW
    hq, wq = q // W, q % W
    rows = []
    for dy in range(K):
        for dx in range(K):
            hh, ww = hq + dy - pad, wq + dx - pad
            rows.append((hh >= 0) & (hh < H) & (ww >= 0) & (ww < W))
    masks = jnp.stack(rows, axis=0).astype(jnp.float32)

    # CA pooling / expansion indicator matrix (H+W, HW), unscaled 0/1
    qidx = jnp.arange(HW)
    ph = (jnp.arange(H)[:, None] == (qidx // W)[None, :])
    pw = (jnp.arange(W)[:, None] == (qidx % W)[None, :])
    pexp = jnp.concatenate([ph, pw], axis=0).astype(jnp.float32)

    kernel = functools.partial(
        _fused_block_kernel, H=H, W=W, K=K, B=B, Cin=Cin, Cexp=Cexp,
        Cout=Cout, mip=mip, use_res=use_res)

    out = pl.pallas_call(
        kernel,
        out_shape=jax.ShapeDtypeStruct((G, Cout, L), jnp.float32),
        grid=(G,),
        in_specs=[
            pl.BlockSpec((1, Cin, L), lambda g: (g, 0, 0)),
            pl.BlockSpec((Rp, Cp), lambda g: (0, 0)),
            pl.BlockSpec((K * K, L), lambda g: (0, 0)),
            pl.BlockSpec((H + W, HW), lambda g: (0, 0)),
        ],
        out_specs=pl.BlockSpec((1, Cout, L), lambda g: (g, 0, 0)),
        compiler_params=pltpu.CompilerParams(
            dimension_semantics=("parallel",)),
    )(x, wpack, masks, pexp)

    out = out.reshape(G, Cout, B, HW)
    out = jnp.transpose(out, (0, 2, 1, 3)).reshape(N, Cout, H, W)
    return out


inverted_res_block = jax.jit(_inverted_res_block_impl,
                             static_argnames=("max_images_per_step",))


# ---------------------------------------------------------------------------
# Pure-JAX reference (independent of the Pallas kernel) for a sanity check
# ---------------------------------------------------------------------------

def ref_forward(x_nchw, p):
    x = jnp.transpose(x_nchw, (0, 2, 3, 1)).astype(jnp.float32)
    N, H, W, Cin = x.shape
    y = _hardswish(jnp.einsum("nhwi,io->nhwo", x, p["w_exp"]) + p["b_exp"])
    Cexp = y.shape[-1]
    w_dw = p["w_dw"].reshape(3, 3, 1, Cexp)
    y = jax.lax.conv_general_dilated(
        y, w_dw, (1, 1), "SAME",
        dimension_numbers=("NHWC", "HWIO", "NHWC"),
        feature_group_count=Cexp)
    y = _hardswish(y + p["b_dw"])
    ph = jnp.mean(y, axis=2)                       # (N, H, C)
    pw = jnp.mean(y, axis=1)                       # (N, W, C)
    z = jnp.concatenate([ph, pw], axis=1)          # (N, H+W, C)
    z = _hardswish(jnp.einsum("nlc,cm->nlm", z, p["w_ca1"]) + p["b_ca1"])
    a_h = jax.nn.sigmoid(jnp.einsum("nhm,mc->nhc", z[:, :H], p["w_ca_h"])
                         + p["b_ca_h"])
    a_w = jax.nn.sigmoid(jnp.einsum("nwm,mc->nwc", z[:, H:], p["w_ca_w"])
                         + p["b_ca_w"])
    y = y * a_h[:, :, None, :] * a_w[:, None, :, :]
    out = jnp.einsum("nhwc,co->nhwo", y, p["w_proj"]) + p["b_proj"] + x
    return jnp.transpose(out, (0, 3, 1, 2))


# ---------------------------------------------------------------------------
# Deterministic parameter construction (BN folded into conv weights/bias)
# ---------------------------------------------------------------------------

def build_params(Cin, Cexp, Cout, K=3, reduction=16):
    mip = _make_divisible(Cexp // reduction, 8)
    key = jax.random.PRNGKey(0)
    ks = jax.random.split(key, 24)
    nrm = lambda k, s, sc=0.1: sc * jax.random.normal(k, s, dtype=jnp.float32)

    def bn(k0, k1, k2, k3, c):
        gamma = 1.0 + nrm(k0, (c,))
        beta = nrm(k1, (c,))
        mean = nrm(k2, (c,))
        var = jnp.abs(nrm(k3, (c,))) + 1.0
        return gamma, beta, mean, var

    def fold(w, b, g, be, mu, var, eps, out_axis=-1):
        s = g / jnp.sqrt(var + eps)
        shape = [1] * w.ndim
        shape[out_axis] = w.shape[out_axis]
        return w * s.reshape(shape), (b - mu) * s + be

    p = {}
    # expand 1x1 conv (no bias) + BN(eps=0.01)
    w = nrm(ks[0], (Cin, Cexp))
    p["w_exp"], p["b_exp"] = fold(w, 0.0, *bn(ks[1], ks[2], ks[3], ks[4], Cexp), 0.01)
    # depthwise KxK conv (no bias) + BN(eps=0.01)
    w = nrm(ks[5], (K, K, Cexp))
    p["w_dw"], p["b_dw"] = fold(w, 0.0, *bn(ks[6], ks[7], ks[8], ks[9], Cexp), 0.01)
    # CA: conv1 (bias) + BN(eps=1e-5), conv_h / conv_w (bias)
    w = nrm(ks[10], (Cexp, mip))
    b = nrm(ks[11], (mip,))
    p["w_ca1"], p["b_ca1"] = fold(w, b, *bn(ks[12], ks[13], ks[14], ks[15], mip), 1e-5)
    p["w_ca_h"] = nrm(ks[16], (mip, Cexp))
    p["b_ca_h"] = nrm(ks[17], (Cexp,))
    p["w_ca_w"] = nrm(ks[18], (mip, Cexp))
    p["b_ca_w"] = nrm(ks[19], (Cexp,))
    # project 1x1 conv (no bias) + BN(eps=0.01), no activation
    w = nrm(ks[20], (Cexp, Cout))
    p["w_proj"], p["b_proj"] = fold(w, 0.0, *bn(ks[21], ks[22], ks[23], ks[0], Cout), 0.01)
    return p


if __name__ == "__main__":
    N, Cin, H, W = 8, 16, 16, 16
    Cexp, Cout = 32, 16

    params = build_params(Cin, Cexp, Cout)
    x = jax.random.normal(jax.random.PRNGKey(0), (N, Cin, H, W), dtype=jnp.float32)

    out = jax.block_until_ready(inverted_res_block(x, params))
    ref = jax.block_until_ready(ref_forward(x, params))

    assert out.shape == (N, Cout, H, W), out.shape
    max_err = float(jnp.max(jnp.abs(out - ref)))
    assert jnp.allclose(out, ref, atol=5e-2, rtol=5e-2), max_err

    print("KERNEL_OK")
</pallas_src>

<mosaic_0001>
module attributes {stable_mosaic.version = 11 : i64} {
  func.func @_fused_block_kernel(%arg0: i32, %arg1: memref<1x16x1024xf32, #tpu.memory_space<vmem>>, %arg2: memref<304x32xf32, #tpu.memory_space<vmem>>, %arg3: memref<9x1024xf32, #tpu.memory_space<vmem>>, %arg4: memref<32x256xf32, #tpu.memory_space<vmem>>, %arg5: memref<1x16x1024xf32, #tpu.memory_space<vmem>>) attributes {dimension_semantics = [#tpu.dimension_semantics<parallel>], iteration_bounds = array<i64: 2>, scalar_prefetch = 0 : i64, scratch_operands = 0 : i64, tpu.core_type = #tpu.core_type<tc>, window_params = [{transform_indices = @transform_0, window_bounds = array<i64: 1, 16, 1024>}, {pipeline_mode = #tpu.pipeline_mode<synchronous>, transform_indices = @transform_1, window_bounds = array<i64: 304, 32>}, {pipeline_mode = #tpu.pipeline_mode<synchronous>, transform_indices = @transform_2, window_bounds = array<i64: 9, 1024>}, {pipeline_mode = #tpu.pipeline_mode<synchronous>, transform_indices = @transform_3, window_bounds = array<i64: 32, 256>}, {transform_indices = @transform_4, window_bounds = array<i64: 1, 16, 1024>}]} {
    %c0 = arith.constant 0 : index
    %c0_0 = arith.constant 0 : index
    %0 = vector.load %arg2[%c0, %c0_0] : memref<304x32xf32, #tpu.memory_space<vmem>>, vector<32x16xf32>
    %c32 = arith.constant 32 : index
    %c0_1 = arith.constant 0 : index
    %1 = vector.load %arg2[%c32, %c0_1] : memref<304x32xf32, #tpu.memory_space<vmem>>, vector<32x1xf32>
    %c64 = arith.constant 64 : index
    %c0_2 = arith.constant 0 : index
    %2 = vector.load %arg2[%c64, %c0_2] : memref<304x32xf32, #tpu.memory_space<vmem>>, vector<32x9xf32>
    %c96 = arith.constant 96 : index
    %c0_3 = arith.constant 0 : index
    %3 = vector.load %arg2[%c96, %c0_3] : memref<304x32xf32, #tpu.memory_space<vmem>>, vector<32x1xf32>
    %c128 = arith.constant 128 : index
    %c0_4 = arith.constant 0 : index
    %4 = vector.load %arg2[%c128, %c0_4] : memref<304x32xf32, #tpu.memory_space<vmem>>, vector<8x32xf32>
    %c136 = arith.constant 136 : index
    %c0_5 = arith.constant 0 : index
    %5 = vector.load %arg2[%c136, %c0_5] : memref<304x32xf32, #tpu.memory_space<vmem>>, vector<8x1xf32>
    %c144 = arith.constant 144 : index
    %c0_6 = arith.constant 0 : index
    %6 = vector.load %arg2[%c144, %c0_6] : memref<304x32xf32, #tpu.memory_space<vmem>>, vector<64x8xf32>
    %c208 = arith.constant 208 : index
    %c0_7 = arith.constant 0 : index
    %7 = vector.load %arg2[%c208, %c0_7] : memref<304x32xf32, #tpu.memory_space<vmem>>, vector<64x1xf32>
    %c272 = arith.constant 272 : index
    %c0_8 = arith.constant 0 : index
    %8 = vector.load %arg2[%c272, %c0_8] : memref<304x32xf32, #tpu.memory_space<vmem>>, vector<16x32xf32>
    %c288 = arith.constant 288 : index
    %c0_9 = arith.constant 0 : index
    %9 = vector.load %arg2[%c288, %c0_9] : memref<304x32xf32, #tpu.memory_space<vmem>>, vector<16x1xf32>
    %c0_10 = arith.constant 0 : index
    %c0_11 = arith.constant 0 : index
    %c0_12 = arith.constant 0 : index
    %10 = vector.load %arg1[%c0_10, %c0_11, %c0_12] : memref<1x16x1024xf32, #tpu.memory_space<vmem>>, vector<1x16x1024xf32>
    %11 = vector.shape_cast %10 : vector<1x16x1024xf32> to vector<16x1024xf32>
    %12 = arith.truncf %0 : vector<32x16xf32> to vector<32x16xbf16>
    %13 = arith.truncf %11 : vector<16x1024xf32> to vector<16x1024xbf16>
    %cst = arith.constant dense<0.000000e+00> : vector<32x1024xf32>
    %14 = tpu.matmul %12, %13, %cst {dimension_numbers = #tpu.dot_dimension_numbers<[1], [0], [0], [1], [0, 0, 1, 1], [], []>} : vector<32x16xbf16>, vector<16x1024xbf16>, vector<32x1024xf32> -> vector<32x1024xf32>
    %15 = vector.broadcast %1 : vector<32x1xf32> to vector<32x1024xf32>
    %16 = arith.addf %14, %15 : vector<32x1024xf32>
    %cst_13 = arith.constant 3.000000e+00 : f32
    %17 = vector.broadcast %cst_13 : f32 to vector<32x1024xf32>
    %18 = arith.addf %16, %17 : vector<32x1024xf32>
    %cst_14 = arith.constant 0.000000e+00 : f32
    %cst_15 = arith.constant 6.000000e+00 : f32
    %19 = vector.broadcast %cst_14 : f32 to vector<32x1024xf32>
    %20 = arith.maximumf %19, %18 : vector<32x1024xf32>
    %21 = vector.broadcast %cst_15 : f32 to vector<32x1024xf32>
    %22 = arith.minimumf %21, %20 : vector<32x1024xf32>
    %23 = arith.mulf %16, %22 : vector<32x1024xf32>
    %cst_16 = arith.constant 0.166666672 : f32
    %24 = vector.broadcast %cst_16 : f32 to vector<32x1024xf32>
    %25 = arith.mulf %23, %24 : vector<32x1024xf32>
    %c17_i32 = arith.constant 17 : i32
    %26 = tpu.dynamic_rotate %25 by %c17_i32 dim 1 : vector<32x1024xf32>, i32 -> vector<32x1024xf32>
    %27 = vector.extract_strided_slice %2 {offsets = [0, 0], sizes = [32, 1], strides = [1, 1]} : vector<32x9xf32> to vector<32x1xf32>
    %c0_17 = arith.constant 0 : index
    %c0_18 = arith.constant 0 : index
    %28 = vector.load %arg3[%c0_17, %c0_18] : memref<9x1024xf32, #tpu.memory_space<vmem>>, vector<1x1024xf32>
    %29 = vector.broadcast %27 : vector<32x1xf32> to vector<32x1024xf32>
    %30 = vector.broadcast %28 : vector<1x1024xf32> to vector<32x1024xf32>
    %31 = arith.mulf %29, %30 : vector<32x1024xf32>
    %32 = arith.mulf %26, %31 : vector<32x1024xf32>
    %c16_i32 = arith.constant 16 : i32
    %33 = tpu.dynamic_rotate %25 by %c16_i32 dim 1 : vector<32x1024xf32>, i32 -> vector<32x1024xf32>
    %34 = vector.extract_strided_slice %2 {offsets = [0, 1], sizes = [32, 1], strides = [1, 1]} : vector<32x9xf32> to vector<32x1xf32>
    %c1 = arith.constant 1 : index
    %c0_19 = arith.constant 0 : index
    %35 = vector.load %arg3[%c1, %c0_19] : memref<9x1024xf32, #tpu.memory_space<vmem>>, vector<1x1024xf32>
    %36 = vector.broadcast %34 : vector<32x1xf32> to vector<32x1024xf32>
    %37 = vector.broadcast %35 : vector<1x1024xf32> to vector<32x1024xf32>
    %38 = arith.mulf %36, %37 : vector<32x1024xf32>
    %39 = arith.mulf %33, %38 : vector<32x1024xf32>
    %40 = arith.addf %32, %39 : vector<32x1024xf32>
    %c15_i32 = arith.constant 15 : i32
    %41 = tpu.dynamic_rotate %25 by %c15_i32 dim 1 : vector<32x1024xf32>, i32 -> vector<32x1024xf32>
    %42 = vector.extract_strided_slice %2 {offsets = [0, 2], sizes = [32, 1], strides = [1, 1]} : vector<32x9xf32> to vector<32x1xf32>
    %c2 = arith.constant 2 : index
    %c0_20 = arith.constant 0 : index
    %43 = vector.load %arg3[%c2, %c0_20] : memref<9x1024xf32, #tpu.memory_space<vmem>>, vector<1x1024xf32>
    %44 = vector.broadcast %42 : vector<32x1xf32> to vector<32x1024xf32>
    %45 = vector.broadcast %43 : vector<1x1024xf32> to vector<32x1024xf32>
    %46 = arith.mulf %44, %45 : vector<32x1024xf32>
    %47 = arith.mulf %41, %46 : vector<32x1024xf32>
    %48 = arith.addf %40, %47 : vector<32x1024xf32>
    %c1_i32 = arith.constant 1 : i32
    %49 = tpu.dynamic_rotate %25 by %c1_i32 dim 1 : vector<32x1024xf32>, i32 -> vector<32x1024xf32>
    %50 = vector.extract_strided_slice %2 {offsets = [0, 3], sizes = [32, 1], strides = [1, 1]} : vector<32x9xf32> to vector<32x1xf32>
    %c3 = arith.constant 3 : index
    %c0_21 = arith.constant 0 : index
    %51 = vector.load %arg3[%c3, %c0_21] : memref<9x1024xf32, #tpu.memory_space<vmem>>, vector<1x1024xf32>
    %52 = vector.broadcast %50 : vector<32x1xf32> to vector<32x1024xf32>
    %53 = vector.broadcast %51 : vector<1x1024xf32> to vector<32x1024xf32>
    %54 = arith.mulf %52, %53 : vector<32x1024xf32>
    %55 = arith.mulf %49, %54 : vector<32x1024xf32>
    %56 = arith.addf %48, %55 : vector<32x1024xf32>
    %57 = vector.extract_strided_slice %2 {offsets = [0, 4], sizes = [32, 1], strides = [1, 1]} : vector<32x9xf32> to vector<32x1xf32>
    %58 = vector.broadcast %57 : vector<32x1xf32> to vector<32x1024xf32>
    %59 = arith.mulf %25, %58 : vector<32x1024xf32>
    %60 = arith.addf %56, %59 : vector<32x1024xf32>
    %c1023_i32 = arith.constant 1023 : i32
    %61 = tpu.dynamic_rotate %25 by %c1023_i32 dim 1 : vector<32x1024xf32>, i32 -> vector<32x1024xf32>
    %62 = vector.extract_strided_slice %2 {offsets = [0, 5], sizes = [32, 1], strides = [1, 1]} : vector<32x9xf32> to vector<32x1xf32>
    %c5 = arith.constant 5 : index
    %c0_22 = arith.constant 0 : index
    %63 = vector.load %arg3[%c5, %c0_22] : memref<9x1024xf32, #tpu.memory_space<vmem>>, vector<1x1024xf32>
    %64 = vector.broadcast %62 : vector<32x1xf32> to vector<32x1024xf32>
    %65 = vector.broadcast %63 : vector<1x1024xf32> to vector<32x1024xf32>
    %66 = arith.mulf %64, %65 : vector<32x1024xf32>
    %67 = arith.mulf %61, %66 : vector<32x1024xf32>
    %68 = arith.addf %60, %67 : vector<32x1024xf32>
    %c1009_i32 = arith.constant 1009 : i32
    %69 = tpu.dynamic_rotate %25 by %c1009_i32 dim 1 : vector<32x1024xf32>, i32 -> vector<32x1024xf32>
    %70 = vector.extract_strided_slice %2 {offsets = [0, 6], sizes = [32, 1], strides = [1, 1]} : vector<32x9xf32> to vector<32x1xf32>
    %c6 = arith.constant 6 : index
    %c0_23 = arith.constant 0 : index
    %71 = vector.load %arg3[%c6, %c0_23] : memref<9x1024xf32, #tpu.memory_space<vmem>>, vector<1x1024xf32>
    %72 = vector.broadcast %70 : vector<32x1xf32> to vector<32x1024xf32>
    %73 = vector.broadcast %71 : vector<1x1024xf32> to vector<32x1024xf32>
    %74 = arith.mulf %72, %73 : vector<32x1024xf32>
    %75 = arith.mulf %69, %74 : vector<32x1024xf32>
    %76 = arith.addf %68, %75 : vector<32x1024xf32>
    %c1008_i32 = arith.constant 1008 : i32
    %77 = tpu.dynamic_rotate %25 by %c1008_i32 dim 1 : vector<32x1024xf32>, i32 -> vector<32x1024xf32>
    %78 = vector.extract_strided_slice %2 {offsets = [0, 7], sizes = [32, 1], strides = [1, 1]} : vector<32x9xf32> to vector<32x1xf32>
    %c7 = arith.constant 7 : index
    %c0_24 = arith.constant 0 : index
    %79 = vector.load %arg3[%c7, %c0_24] : memref<9x1024xf32, #tpu.memory_space<vmem>>, vector<1x1024xf32>
    %80 = vector.broadcast %78 : vector<32x1xf32> to vector<32x1024xf32>
    %81 = vector.broadcast %79 : vector<1x1024xf32> to vector<32x1024xf32>
    %82 = arith.mulf %80, %81 : vector<32x1024xf32>
    %83 = arith.mulf %77, %82 : vector<32x1024xf32>
    %84 = arith.addf %76, %83 : vector<32x1024xf32>
    %c1007_i32 = arith.constant 1007 : i32
    %85 = tpu.dynamic_rotate %25 by %c1007_i32 dim 1 : vector<32x1024xf32>, i32 -> vector<32x1024xf32>
    %86 = vector.extract_strided_slice %2 {offsets = [0, 8], sizes = [32, 1], strides = [1, 1]} : vector<32x9xf32> to vector<32x1xf32>
    %c8 = arith.constant 8 : index
    %c0_25 = arith.constant 0 : index
    %87 = vector.load %arg3[%c8, %c0_25] : memref<9x1024xf32, #tpu.memory_space<vmem>>, vector<1x1024xf32>
    %88 = vector.broadcast %86 : vector<32x1xf32> to vector<32x1024xf32>
    %89 = vector.broadcast %87 : vector<1x1024xf32> to vector<32x1024xf32>
    %90 = arith.mulf %88, %89 : vector<32x1024xf32>
    %91 = arith.mulf %85, %90 : vector<32x1024xf32>
    %92 = arith.addf %84, %91 : vector<32x1024xf32>
    %93 = vector.broadcast %3 : vector<32x1xf32> to vector<32x1024xf32>
    %94 = arith.addf %92, %93 : vector<32x1024xf32>
    %cst_26 = arith.constant 3.000000e+00 : f32
    %95 = vector.broadcast %cst_26 : f32 to vector<32x1024xf32>
    %96 = arith.addf %94, %95 : vector<32x1024xf32>
    %cst_27 = arith.constant 0.000000e+00 : f32
    %cst_28 = arith.constant 6.000000e+00 : f32
    %97 = vector.broadcast %cst_27 : f32 to vector<32x1024xf32>
    %98 = arith.maximumf %97, %96 : vector<32x1024xf32>
    %99 = vector.broadcast %cst_28 : f32 to vector<32x1024xf32>
    %100 = arith.minimumf %99, %98 : vector<32x1024xf32>
    %101 = arith.mulf %94, %100 : vector<32x1024xf32>
    %cst_29 = arith.constant 0.166666672 : f32
    %102 = vector.broadcast %cst_29 : f32 to vector<32x1024xf32>
    %103 = arith.mulf %101, %102 : vector<32x1024xf32>
    %c0_30 = arith.constant 0 : index
    %c0_31 = arith.constant 0 : index
    %104 = vector.load %arg4[%c0_30, %c0_31] : memref<32x256xf32, #tpu.memory_space<vmem>>, vector<32x256xf32>
    %105 = arith.truncf %104 : vector<32x256xf32> to vector<32x256xbf16>
    %106 = arith.truncf %4 : vector<8x32xf32> to vector<8x32xbf16>
    %107 = arith.truncf %6 : vector<64x8xf32> to vector<64x8xbf16>
    %108 = tpu.iota {dimensions = array<i32: 1>} : vector<1x32xi32>
    %c16_i32_32 = arith.constant 16 : i32
    %109 = vector.broadcast %c16_i32_32 : i32 to vector<1x32xi32>
    %110 = arith.cmpi slt, %108, %109 : vector<1x32xi32>
    %cst_33 = arith.constant 6.250000e-02 : f32
    %cst_34 = arith.constant 6.250000e-02 : f32
    %111 = vector.broadcast %cst_33 : f32 to vector<1x32xf32>
    %112 = vector.broadcast %cst_34 : f32 to vector<1x32xf32>
    %113 = arith.select %110, %111, %112 : vector<1x32xi1>, vector<1x32xf32>
    %114 = tpu.iota {dimensions = array<i32: 0>} : vector<64x32xi32>
    %115 = tpu.iota {dimensions = array<i32: 1>} : vector<64x32xi32>
    %c32_i32 = arith.constant 32 : i32
    %116 = vector.broadcast %c32_i32 : i32 to vector<64x32xi32>
    %117 = arith.cmpi slt, %114, %116 : vector<64x32xi32>
    %c16_i32_35 = arith.constant 16 : i32
    %118 = vector.broadcast %c16_i32_35 : i32 to vector<64x32xi32>
    %119 = arith.cmpi slt, %115, %118 : vector<64x32xi32>
    %120 = arith.xori %117, %119 : vector<64x32xi1>
    %cst_36 = arith.constant dense<true> : vector<64x32xi1>
    %121 = arith.xori %120, %cst_36 : vector<64x32xi1>
    %122 = arith.extui %121 : vector<64x32xi1> to vector<64x32xi32>
    %123 = arith.sitofp %122 : vector<64x32xi32> to vector<64x32xf32>
    %124 = vector.extract_strided_slice %103 {offsets = [0, 0], sizes = [32, 256], strides = [1, 1]} : vector<32x1024xf32> to vector<32x256xf32>
    %125 = arith.truncf %124 : vector<32x256xf32> to vector<32x256xbf16>
    %cst_37 = arith.constant dense<0.000000e+00> : vector<32x32xf32>
    %126 = tpu.matmul %125, %105, %cst_37 {dimension_numbers = #tpu.dot_dimension_numbers<[1], [1], [0], [0], [0, 0, 1, 0], [], []>} : vector<32x256xbf16>, vector<32x256xbf16>, vector<32x32xf32> -> vector<32x32xf32>
    %127 = arith.truncf %126 : vector<32x32xf32> to vector<32x32xbf16>
    %cst_38 = arith.constant dense<0.000000e+00> : vector<8x32xf32>
    %128 = tpu.matmul %106, %127, %cst_38 {dimension_numbers = #tpu.dot_dimension_numbers<[1], [0], [0], [1], [0, 0, 1, 1], [], []>} : vector<8x32xbf16>, vector<32x32xbf16>, vector<8x32xf32> -> vector<8x32xf32>
    %129 = vector.broadcast %113 : vector<1x32xf32> to vector<8x32xf32>
    %130 = arith.mulf %128, %129 : vector<8x32xf32>
    %131 = vector.broadcast %5 : vector<8x1xf32> to vector<8x32xf32>
    %132 = arith.addf %130, %131 : vector<8x32xf32>
    %cst_39 = arith.constant 3.000000e+00 : f32
    %133 = vector.broadcast %cst_39 : f32 to vector<8x32xf32>
    %134 = arith.addf %132, %133 : vector<8x32xf32>
    %cst_40 = arith.constant 0.000000e+00 : f32
    %cst_41 = arith.constant 6.000000e+00 : f32
    %135 = vector.broadcast %cst_40 : f32 to vector<8x32xf32>
    %136 = arith.maximumf %135, %134 : vector<8x32xf32>
    %137 = vector.broadcast %cst_41 : f32 to vector<8x32xf32>
    %138 = arith.minimumf %137, %136 : vector<8x32xf32>
    %139 = arith.mulf %132, %138 : vector<8x32xf32>
    %cst_42 = arith.constant 0.166666672 : f32
    %140 = vector.broadcast %cst_42 : f32 to vector<8x32xf32>
    %141 = arith.mulf %139, %140 : vector<8x32xf32>
    %142 = arith.truncf %141 : vector<8x32xf32> to vector<8x32xbf16>
    %cst_43 = arith.constant dense<0.000000e+00> : vector<64x32xf32>
    %143 = tpu.matmul %107, %142, %cst_43 {dimension_numbers = #tpu.dot_dimension_numbers<[1], [0], [0], [1], [0, 0, 1, 1], [], []>} : vector<64x8xbf16>, vector<8x32xbf16>, vector<64x32xf32> -> vector<64x32xf32>
    %144 = vector.broadcast %7 : vector<64x1xf32> to vector<64x32xf32>
    %145 = arith.addf %143, %144 : vector<64x32xf32>
    %146 = arith.negf %145 : vector<64x32xf32>
    %147 = math.exp %146 : vector<64x32xf32>
    %cst_44 = arith.constant 1.000000e+00 : f32
    %148 = vector.broadcast %cst_44 : f32 to vector<64x32xf32>
    %149 = arith.addf %148, %147 : vector<64x32xf32>
    %150 = arith.divf %148, %149 : vector<64x32xf32>
    %151 = arith.mulf %150, %123 : vector<64x32xf32>
    %152 = arith.truncf %151 : vector<64x32xf32> to vector<64x32xbf16>
    %cst_45 = arith.constant dense<0.000000e+00> : vector<64x256xf32>
    %153 = tpu.matmul %152, %105, %cst_45 {dimension_numbers = #tpu.dot_dimension_numbers<[1], [0], [0], [1], [0, 0, 1, 1], [], []>} : vector<64x32xbf16>, vector<32x256xbf16>, vector<64x256xf32> -> vector<64x256xf32>
    %154 = vector.extract_strided_slice %153 {offsets = [0, 0], sizes = [32, 256], strides = [1, 1]} : vector<64x256xf32> to vector<32x256xf32>
    %155 = arith.mulf %124, %154 : vector<32x256xf32>
    %156 = vector.extract_strided_slice %153 {offsets = [32, 0], sizes = [32, 256], strides = [1, 1]} : vector<64x256xf32> to vector<32x256xf32>
    %157 = arith.mulf %155, %156 : vector<32x256xf32>
    %158 = vector.extract_strided_slice %103 {offsets = [0, 256], sizes = [32, 256], strides = [1, 1]} : vector<32x1024xf32> to vector<32x256xf32>
    %159 = arith.truncf %158 : vector<32x256xf32> to vector<32x256xbf16>
    %cst_46 = arith.constant dense<0.000000e+00> : vector<32x32xf32>
    %160 = tpu.matmul %159, %105, %cst_46 {dimension_numbers = #tpu.dot_dimension_numbers<[1], [1], [0], [0], [0, 0, 1, 0], [], []>} : vector<32x256xbf16>, vector<32x256xbf16>, vector<32x32xf32> -> vector<32x32xf32>
    %161 = arith.truncf %160 : vector<32x32xf32> to vector<32x32xbf16>
    %cst_47 = arith.constant dense<0.000000e+00> : vector<8x32xf32>
    %162 = tpu.matmul %106, %161, %cst_47 {dimension_numbers = #tpu.dot_dimension_numbers<[1], [0], [0], [1], [0, 0, 1, 1], [], []>} : vector<8x32xbf16>, vector<32x32xbf16>, vector<8x32xf32> -> vector<8x32xf32>
    %163 = vector.broadcast %113 : vector<1x32xf32> to vector<8x32xf32>
    %164 = arith.mulf %162, %163 : vector<8x32xf32>
    %165 = vector.broadcast %5 : vector<8x1xf32> to vector<8x32xf32>
    %166 = arith.addf %164, %165 : vector<8x32xf32>
    %cst_48 = arith.constant 3.000000e+00 : f32
    %167 = vector.broadcast %cst_48 : f32 to vector<8x32xf32>
    %168 = arith.addf %166, %167 : vector<8x32xf32>
    %cst_49 = arith.constant 0.000000e+00 : f32
    %cst_50 = arith.constant 6.000000e+00 : f32
    %169 = vector.broadcast %cst_49 : f32 to vector<8x32xf32>
    %170 = arith.maximumf %169, %168 : vector<8x32xf32>
    %171 = vector.broadcast %cst_50 : f32 to vector<8x32xf32>
    %172 = arith.minimumf %171, %170 : vector<8x32xf32>
    %173 = arith.mulf %166, %172 : vector<8x32xf32>
    %cst_51 = arith.constant 0.166666672 : f32
    %174 = vector.broadcast %cst_51 : f32 to vector<8x32xf32>
    %175 = arith.mulf %173, %174 : vector<8x32xf32>
    %176 = arith.truncf %175 : vector<8x32xf32> to vector<8x32xbf16>
    %cst_52 = arith.constant dense<0.000000e+00> : vector<64x32xf32>
    %177 = tpu.matmul %107, %176, %cst_52 {dimension_numbers = #tpu.dot_dimension_numbers<[1], [0], [0], [1], [0, 0, 1, 1], [], []>} : vector<64x8xbf16>, vector<8x32xbf16>, vector<64x32xf32> -> vector<64x32xf32>
    %178 = vector.broadcast %7 : vector<64x1xf32> to vector<64x32xf32>
    %179 = arith.addf %177, %178 : vector<64x32xf32>
    %180 = arith.negf %179 : vector<64x32xf32>
    %181 = math.exp %180 : vector<64x32xf32>
    %cst_53 = arith.constant 1.000000e+00 : f32
    %182 = vector.broadcast %cst_53 : f32 to vector<64x32xf32>
    %183 = arith.addf %182, %181 : vector<64x32xf32>
    %184 = arith.divf %182, %183 : vector<64x32xf32>
    %185 = arith.mulf %184, %123 : vector<64x32xf32>
    %186 = arith.truncf %185 : vector<64x32xf32> to vector<64x32xbf16>
    %cst_54 = arith.constant dense<0.000000e+00> : vector<64x256xf32>
    %187 = tpu.matmul %186, %105, %cst_54 {dimension_numbers = #tpu.dot_dimension_numbers<[1], [0], [0], [1], [0, 0, 1, 1], [], []>} : vector<64x32xbf16>, vector<32x256xbf16>, vector<64x256xf32> -> vector<64x256xf32>
    %188 = vector.extract_strided_slice %187 {offsets = [0, 0], sizes = [32, 256], strides = [1, 1]} : vector<64x256xf32> to vector<32x256xf32>
    %189 = arith.mulf %158, %188 : vector<32x256xf32>
    %190 = vector.extract_strided_slice %187 {offsets = [32, 0], sizes = [32, 256], strides = [1, 1]} : vector<64x256xf32> to vector<32x256xf32>
    %191 = arith.mulf %189, %190 : vector<32x256xf32>
    %192 = vector.extract_strided_slice %103 {offsets = [0, 512], sizes = [32, 256], strides = [1, 1]} : vector<32x1024xf32> to vector<32x256xf32>
    %193 = arith.truncf %192 : vector<32x256xf32> to vector<32x256xbf16>
    %cst_55 = arith.constant dense<0.000000e+00> : vector<32x32xf32>
    %194 = tpu.matmul %193, %105, %cst_55 {dimension_numbers = #tpu.dot_dimension_numbers<[1], [1], [0], [0], [0, 0, 1, 0], [], []>} : vector<32x256xbf16>, vector<32x256xbf16>, vector<32x32xf32> -> vector<32x32xf32>
    %195 = arith.truncf %194 : vector<32x32xf32> to vector<32x32xbf16>
    %cst_56 = arith.constant dense<0.000000e+00> : vector<8x32xf32>
    %196 = tpu.matmul %106, %195, %cst_56 {dimension_numbers = #tpu.dot_dimension_numbers<[1], [0], [0], [1], [0, 0, 1, 1], [], []>} : vector<8x32xbf16>, vector<32x32xbf16>, vector<8x32xf32> -> vector<8x32xf32>
    %197 = vector.broadcast %113 : vector<1x32xf32> to vector<8x32xf32>
    %198 = arith.mulf %196, %197 : vector<8x32xf32>
    %199 = vector.broadcast %5 : vector<8x1xf32> to vector<8x32xf32>
    %200 = arith.addf %198, %199 : vector<8x32xf32>
    %cst_57 = arith.constant 3.000000e+00 : f32
    %201 = vector.broadcast %cst_57 : f32 to vector<8x32xf32>
    %202 = arith.addf %200, %201 : vector<8x32xf32>
    %cst_58 = arith.constant 0.000000e+00 : f32
    %cst_59 = arith.constant 6.000000e+00 : f32
    %203 = vector.broadcast %cst_58 : f32 to vector<8x32xf32>
    %204 = arith.maximumf %203, %202 : vector<8x32xf32>
    %205 = vector.broadcast %cst_59 : f32 to vector<8x32xf32>
    %206 = arith.minimumf %205, %204 : vector<8x32xf32>
    %207 = arith.mulf %200, %206 : vector<8x32xf32>
    %cst_60 = arith.constant 0.166666672 : f32
    %208 = vector.broadcast %cst_60 : f32 to vector<8x32xf32>
    %209 = arith.mulf %207, %208 : vector<8x32xf32>
    %210 = arith.truncf %209 : vector<8x32xf32> to vector<8x32xbf16>
    %cst_61 = arith.constant dense<0.000000e+00> : vector<64x32xf32>
    %211 = tpu.matmul %107, %210, %cst_61 {dimension_numbers = #tpu.dot_dimension_numbers<[1], [0], [0], [1], [0, 0, 1, 1], [], []>} : vector<64x8xbf16>, vector<8x32xbf16>, vector<64x32xf32> -> vector<64x32xf32>
    %212 = vector.broadcast %7 : vector<64x1xf32> to vector<64x32xf32>
    %213 = arith.addf %211, %212 : vector<64x32xf32>
    %214 = arith.negf %213 : vector<64x32xf32>
    %215 = math.exp %214 : vector<64x32xf32>
    %cst_62 = arith.constant 1.000000e+00 : f32
    %216 = vector.broadcast %cst_62 : f32 to vector<64x32xf32>
    %217 = arith.addf %216, %215 : vector<64x32xf32>
    %218 = arith.divf %216, %217 : vector<64x32xf32>
    %219 = arith.mulf %218, %123 : vector<64x32xf32>
    %220 = arith.truncf %219 : vector<64x32xf32> to vector<64x32xbf16>
    %cst_63 = arith.constant dense<0.000000e+00> : vector<64x256xf32>
    %221 = tpu.matmul %220, %105, %cst_63 {dimension_numbers = #tpu.dot_dimension_numbers<[1], [0], [0], [1], [0, 0, 1, 1], [], []>} : vector<64x32xbf16>, vector<32x256xbf16>, vector<64x256xf32> -> vector<64x256xf32>
    %222 = vector.extract_strided_slice %221 {offsets = [0, 0], sizes = [32, 256], strides = [1, 1]} : vector<64x256xf32> to vector<32x256xf32>
    %223 = arith.mulf %192, %222 : vector<32x256xf32>
    %224 = vector.extract_strided_slice %221 {offsets = [32, 0], sizes = [32, 256], strides = [1, 1]} : vector<64x256xf32> to vector<32x256xf32>
    %225 = arith.mulf %223, %224 : vector<32x256xf32>
    %226 = vector.extract_strided_slice %103 {offsets = [0, 768], sizes = [32, 256], strides = [1, 1]} : vector<32x1024xf32> to vector<32x256xf32>
    %227 = arith.truncf %226 : vector<32x256xf32> to vector<32x256xbf16>
    %cst_64 = arith.constant dense<0.000000e+00> : vector<32x32xf32>
    %228 = tpu.matmul %227, %105, %cst_64 {dimension_numbers = #tpu.dot_dimension_numbers<[1], [1], [0], [0], [0, 0, 1, 0], [], []>} : vector<32x256xbf16>, vector<32x256xbf16>, vector<32x32xf32> -> vector<32x32xf32>
    %229 = arith.truncf %228 : vector<32x32xf32> to vector<32x32xbf16>
    %cst_65 = arith.constant dense<0.000000e+00> : vector<8x32xf32>
    %230 = tpu.matmul %106, %229, %cst_65 {dimension_numbers = #tpu.dot_dimension_numbers<[1], [0], [0], [1], [0, 0, 1, 1], [], []>} : vector<8x32xbf16>, vector<32x32xbf16>, vector<8x32xf32> -> vector<8x32xf32>
    %231 = vector.broadcast %113 : vector<1x32xf32> to vector<8x32xf32>
    %232 = arith.mulf %230, %231 : vector<8x32xf32>
    %233 = vector.broadcast %5 : vector<8x1xf32> to vector<8x32xf32>
    %234 = arith.addf %232, %233 : vector<8x32xf32>
    %cst_66 = arith.constant 3.000000e+00 : f32
    %235 = vector.broadcast %cst_66 : f32 to vector<8x32xf32>
    %236 = arith.addf %234, %235 : vector<8x32xf32>
    %cst_67 = arith.constant 0.000000e+00 : f32
    %cst_68 = arith.constant 6.000000e+00 : f32
    %237 = vector.broadcast %cst_67 : f32 to vector<8x32xf32>
    %238 = arith.maximumf %237, %236 : vector<8x32xf32>
    %239 = vector.broadcast %cst_68 : f32 to vector<8x32xf32>
    %240 = arith.minimumf %239, %238 : vector<8x32xf32>
    %241 = arith.mulf %234, %240 : vector<8x32xf32>
    %cst_69 = arith.constant 0.166666672 : f32
    %242 = vector.broadcast %cst_69 : f32 to vector<8x32xf32>
    %243 = arith.mulf %241, %242 : vector<8x32xf32>
    %244 = arith.truncf %243 : vector<8x32xf32> to vector<8x32xbf16>
    %cst_70 = arith.constant dense<0.000000e+00> : vector<64x32xf32>
    %245 = tpu.matmul %107, %244, %cst_70 {dimension_numbers = #tpu.dot_dimension_numbers<[1], [0], [0], [1], [0, 0, 1, 1], [], []>} : vector<64x8xbf16>, vector<8x32xbf16>, vector<64x32xf32> -> vector<64x32xf32>
    %246 = vector.broadcast %7 : vector<64x1xf32> to vector<64x32xf32>
    %247 = arith.addf %245, %246 : vector<64x32xf32>
    %248 = arith.negf %247 : vector<64x32xf32>
    %249 = math.exp %248 : vector<64x32xf32>
    %cst_71 = arith.constant 1.000000e+00 : f32
    %250 = vector.broadcast %cst_71 : f32 to vector<64x32xf32>
    %251 = arith.addf %250, %249 : vector<64x32xf32>
    %252 = arith.divf %250, %251 : vector<64x32xf32>
    %253 = arith.mulf %252, %123 : vector<64x32xf32>
    %254 = arith.truncf %253 : vector<64x32xf32> to vector<64x32xbf16>
    %cst_72 = arith.constant dense<0.000000e+00> : vector<64x256xf32>
    %255 = tpu.matmul %254, %105, %cst_72 {dimension_numbers = #tpu.dot_dimension_numbers<[1], [0], [0], [1], [0, 0, 1, 1], [], []>} : vector<64x32xbf16>, vector<32x256xbf16>, vector<64x256xf32> -> vector<64x256xf32>
    %256 = vector.extract_strided_slice %255 {offsets = [0, 0], sizes = [32, 256], strides = [1, 1]} : vector<64x256xf32> to vector<32x256xf32>
    %257 = arith.mulf %226, %256 : vector<32x256xf32>
    %258 = vector.extract_strided_slice %255 {offsets = [32, 0], sizes = [32, 256], strides = [1, 1]} : vector<64x256xf32> to vector<32x256xf32>
    %259 = arith.mulf %257, %258 : vector<32x256xf32>
    %260 = tpu.concatenate %157, %191, %225, %259 in 1 : vector<32x256xf32>, vector<32x256xf32>, vector<32x256xf32>, vector<32x256xf32> -> vector<32x1024xf32>
    %261 = arith.truncf %8 : vector<16x32xf32> to vector<16x32xbf16>
    %262 = arith.truncf %260 : vector<32x1024xf32> to vector<32x1024xbf16>
    %cst_73 = arith.constant dense<0.000000e+00> : vector<16x1024xf32>
    %263 = tpu.matmul %261, %262, %cst_73 {dimension_numbers = #tpu.dot_dimension_numbers<[1], [0], [0], [1], [0, 0, 1, 1], [], []>} : vector<16x32xbf16>, vector<32x1024xbf16>, vector<16x1024xf32> -> vector<16x1024xf32>
    %264 = vector.broadcast %9 : vector<16x1xf32> to vector<16x1024xf32>
    %265 = arith.addf %263, %264 : vector<16x1024xf32>
    %266 = arith.addf %265, %11 : vector<16x1024xf32>
    %c0_74 = arith.constant 0 : index
    %c0_75 = arith.constant 0 : index
    %c0_76 = arith.constant 0 : index
    %267 = vector.load %arg5[%c0_74, %c0_75, %c0_76] : memref<1x16x1024xf32, #tpu.memory_space<vmem>>, vector<1x16x1024xf32>
    %268 = vector.shape_cast %267 : vector<1x16x1024xf32> to vector<16x1024xf32>
    %269 = vector.shape_cast %266 : vector<16x1024xf32> to vector<1x16x1024xf32>
    tpu.vector_store %arg5[%c0_74, %c0_75, %c0_76], %269 {strides = array<i32>} : memref<1x16x1024xf32, #tpu.memory_space<vmem>>, vector<1x16x1024xf32>,
    return
  }
  func.func @transform_0(%arg0: i32) -> (i32, i32, i32) {
    %c0_i32 = arith.constant 0 : i32
    %c0_i32_0 = arith.constant 0 : i32
    %c0_i32_1 = arith.constant 0 : i32
    return %arg0, %c0_i32, %c0_i32_0 : i32, i32, i32
  }
  func.func @transform_1(%arg0: i32) -> (i32, i32) {
    %c0_i32 = arith.constant 0 : i32
    %c0_i32_0 = arith.constant 0 : i32
    %c0_i32_1 = arith.constant 0 : i32
    return %c0_i32, %c0_i32_0 : i32, i32
  }
  func.func @transform_2(%arg0: i32) -> (i32, i32) {
    %c0_i32 = arith.constant 0 : i32
    %c0_i32_0 = arith.constant 0 : i32
    %c0_i32_1 = arith.constant 0 : i32
    return %c0_i32, %c0_i32_0 : i32, i32
  }
  func.func @transform_3(%arg0: i32) -> (i32, i32) {
    %c0_i32 = arith.constant 0 : i32
    %c0_i32_0 = arith.constant 0 : i32
    %c0_i32_1 = arith.constant 0 : i32
    return %c0_i32, %c0_i32_0 : i32, i32
  }
  func.func @transform_4(%arg0: i32) -> (i32, i32, i32) {
    %c0_i32 = arith.constant 0 : i32
    %c0_i32_0 = arith.constant 0 : i32
    %c0_i32_1 = arith.constant 0 : i32
    return %arg0, %c0_i32, %c0_i32_0 : i32, i32, i32
  }
}

</mosaic_0001>

<bundles_post_ra>
// kernel: _inverted_res_block_impl.1
= control target key start
LH: loop header
LB: loop body
LE: loop exit
PB: predicated region body
PF: predicated region fallthrough
CT: control target
= control target key end

     0   :  { %s5183_s15 = smov 0   ;;  %s9060_s0 = inlined_call_operand.vmem [shape: f32[2,16,1024], index: 0, kind: input, shape index: {}]   ;;  %s9061_s1 = inlined_call_operand.vmem [shape: f32[304,32], index: 1, kind: input, shape index: {}]   ;;  %s9062_s2 = inlined_call_operand.vmem [shape: f32[9,1024], index: 2, kind: input, shape index: {}]   ;;  %s9063_s3 = inlined_call_operand.vmem [shape: f32[32,256], index: 3, kind: input, shape index: {}]   ;;  %s9064_s4 = inlined_call_operand.vmem [shape: f32[2,16,1024], index: 4, kind: output, shape index: {}]  }
   0x1 LB: > { %s4705_s16 = sadd.s32 4294967295, %s5136_s15   ;;  %p4709_p0 = scmp.ge.s32.totalorder %s5136_s15, 1  ;;  %s5136_s15 = sphi %s5183_s15, %s14_s15  }
   0x2   : > { %p162_p1 = scmp.lt.s32.totalorder %s5136_s15, 3 }
   0x4   : > { %p163_p2 = pnand %p4709_p0, %p162_p1 }
   0x6   : > { %166 = sbr.rel (%p163_p2) target bundleno = 3016 (0xbc8), region = 36 }
   0xb   : > { %p188_p3 = scmp.lt.s32.totalorder %s4705_s16, 1  ;;  %v9066_v0 = vmov 0   ;;  %v205_v1 = vld [vmem:[%s9061_s1 + $0x30] sm:$0xff]  ;;  %v203_v2 = vld [vmem:[%s9061_s1 + $0x20] sm:$0xff]  ;;  %v206_v3 = vld [vmem:[%s9061_s1 + $0x38] sm:$0xff]  ;;  %vm283_vm0 = vcmask 130048   ;;  %v9065_v48 = vlaneseq }
   0xc   : > { %322 = vmatprep.mubr.bf16.mxu0 %v9066_v0  ;;  %375 = vmatprep.mubr.bf16.mxu1 %v9066_v0  ;;  %v204_v4 = vld [vmem:[%s9061_s1 + $0x28] sm:$0xff]  ;;  %v199_v5 = vld [vmem:[%s9061_s1] sm:$0xff]  ;;  %v5139_v33 = vmov 1   ;;  %v201_v34 = vld [vmem:[%s9061_s1 + $0x10] sm:$0xff]  ;;  %v5140_v38 = vmov 2   ;;  %v5141_v40 = vmov 3  }
   0xd   : > { %s10296_s16 = smov (!%p188_p3, %s4705_s16), 1  ;;  %4957 = vset.pattern.permute.xlu1 %v9066_v0  ;;  %4956 = vset.pattern.permute.xlu0 %v9066_v0  ;;  %v200_v6 = vld [vmem:[%s9061_s1 + $0x8] sm:$0xff]  ;;  %v202_v35 = vld [vmem:[%s9061_s1 + $0x18] sm:$0xff]  ;;  %v5258_v36 = vld [vmem:[%s9061_s1 + $0x40] sm:$0xff]  ;;  %v5142_v41 = vmov 5   ;;  %v5143_v43 = vmov 4  }
   0xe   : > { %275 = vperm.xlu1 %4957, %v205_v1   ;;  %265 = vperm.xlu0 %4956, %v203_v2   ;;  %s4818_s21 = sshll.u32 %s10296_s16, 7  ;;  %v5229_v10 = vld [vmem:[%s9061_s1 + $0x48] sm:$0xff]  ;;  %v253_v21 = vpack.c.bf16 %v200_v6, %v199_v5  ;;  %v254_v37 = vpack.c.bf16 %v202_v35, %v201_v34  ;;  %v5266_v39 = vld [vmem:[%s9061_s1 + $0x58] sm:$0xff]  ;;  %v5287_v42 = vld [vmem:[%s9061_s1 + $0x50] sm:$0xff]  ;;  %v5144_v44 = vmov 6   ;;  %v5145_v45 = vmov 7  }
   0xf   : > { %s5215_s28 = scalar_lea.vmem %s9060_s0, %s4818_s21  ;;  %v5146_v46 = vmov 8   ;;  %v212_v47 = vld [vmem:[%s9061_s1 + $0x68] sm:$0xff]  ;;  %v5323_v51 = vshrl.u32 %v9065_v48, 7  ;;  %s5147_s17 = smov 15   ;;  %vm5156_vm9 = vmmov 0   ;;  %vm3080_vm10 = vcmask 261120  }
  0x10   : > { %v238_v7 = vld [vmem:[%s5215_s28 + $0x8] sm:$0xff]  ;;  %v240_v9 = vld [vmem:[%s5215_s28 + $0x18] sm:$0xff]  ;;  %v237_v13 = vld [vmem:[%s5215_s28] sm:$0xff]  ;;  %s5148_s18 = smov 17   ;;  %s5149_s19 = smov 1   ;;  %vm3177_vm11 = vcmask 64512  }
  0x11   : > { %v246_v8 = vld [vmem:[%s5215_s28 + $0x48] sm:$0xff]  ;;  %v248_v12 = vld [vmem:[%s5215_s28 + $0x58] sm:$0xff]  ;;  %v245_v14 = vld [vmem:[%s5215_s28 + $0x40] sm:$0xff]  ;;  %v5328_v53 = vsub.s32 2, %v5323_v51  ;;  %v5331_v54 = vsub.s32 3, %v5323_v51  ;;  %v5342_v57 = vsub.s32 4, %v5323_v51 }
  0x12   : > { %v256_v11 = vpack.c.bf16 %v246_v8, %v238_v7  ;;  %280 = vperm.xlu1 %4957, %v206_v3   ;;  %270 = vperm.xlu0 %4956, %v204_v4   ;;  %v258_v15 = vpack.c.bf16 %v248_v12, %v240_v9  ;;  %v255_v16 = vpack.c.bf16 %v245_v14, %v237_v13  ;;  %v239_v17 = vld [vmem:[%s5215_s28 + $0x10] sm:$0xff]  ;;  %v242_v19 = vld [vmem:[%s5215_s28 + $0x28] sm:$0xff]  ;;  %v244_v23 = vld [vmem:[%s5215_s28 + $0x38] sm:$0xff]  ;;  %v5345_v58 = vsub.s32 5, %v5323_v51  ;;  %s5150_s20 = smov 16   ;;  %s5151_s22 = smov 127  }
  0x13   : > { %v247_v18 = vld [vmem:[%s5215_s28 + $0x50] sm:$0xff]  ;;  %v250_v22 = vld [vmem:[%s5215_s28 + $0x68] sm:$0xff]  ;;  %v252_v24 = vld [vmem:[%s5215_s28 + $0x78] sm:$0xff]  ;;  %9502 = vst [vmem:[#allocation2_spill] sm:$0xff] %v5328_v53  ;;  %v5348_v59 = vsub.s32 6, %v5323_v51  ;;  %v5351_v60 = vsub.s32 7, %v5323_v51 }
  0x14   : > { %304 = vmatprep.subr.bf16.mxu0 %v256_v11  ;;  %v257_v20 = vpack.c.bf16 %v247_v18, %v239_v17  ;;  %357 = vmatprep.subr.bf16.mxu1 %v258_v15  ;;  %v260_v25 = vpack.c.bf16 %v250_v22, %v242_v19  ;;  %v262_v26 = vpack.c.bf16 %v252_v24, %v244_v23  ;;  %v241_v27 = vld [vmem:[%s5215_s28 + $0x20] sm:$0xff]  ;;  %v243_v29 = vld [vmem:[%s5215_s28 + $0x30] sm:$0xff]  ;;  %s5152_s23 = smov 112   ;;  %s5153_s24 = smov 113   ;;  %vm3190_vm12 = vcmask 1043456  }
  0x15   : > { %305 = vmatpush1.bf16.msra.mxu0 %v255_v16  ;;  %v249_v28 = vld [vmem:[%s5215_s28 + $0x60] sm:$0xff]  ;;  %v251_v31 = vld [vmem:[%s5215_s28 + $0x70] sm:$0xff]  ;;  %9503 = vst [vmem:[#allocation3_spill] sm:$0xff] %v5331_v54  ;;  %9506 = vst [vmem:[#allocation6_spill] sm:$0xff] %v5342_v57  ;;  %s5154_s25 = smov 111   ;;  %vm5157_vm13 = vmmov 1  }
  0x16   : > { %358 = vmatpush1.bf16.msra.mxu1 %v257_v20  ;;  %v259_v30 = vpack.c.bf16 %v249_v28, %v241_v27  ;;  %771 = vperm.xlu1 %4957, %v5229_v10   ;;  %v261_v32 = vpack.c.bf16 %v251_v31, %v243_v29  ;;  %v761_v49 = vld [vmem:[%s9062_s2] ss:$8 sm:$0xf]  ;;  %9507 = vst [vmem:[#allocation7_spill] sm:$0xff] %v5345_v58  ;;  %9508 = vst [vmem:[#allocation8_spill] sm:$0xff] %v5348_v59 }
  0x17   : > { %410 = vmatprep.subr.bf16.mxu0 %v260_v25  ;;  %463 = vmatprep.subr.bf16.mxu1 %v262_v26  ;;  %v762_v50 = vld [vmem:[%s9062_s2] ss:$8 sm:$0xf0]  ;;  %9509 = vst [vmem:[#allocation9_spill] sm:$0xff] %v5351_v60 }
  0x18   : > { %4714 = vmatmul.mubr.msk.bf16.vlgmr.msra.gmra.mxu0 %vm283_vm0, %v253_v21  ;;  %4958 = vset.pattern.permute.xlu0 %v5139_v33  ;;  %v5325_v52 = vor.u32 %v762_v50, %v761_v49  ;;  %v4722_v63 = vld [vmem:[%s9062_s2 + $0x1] ss:$8 sm:$0xf]  ;;  %v4724_v5 = vld [vmem:[%s9062_s2 + $0x2] ss:$8 sm:$0xf] }
  0x19   : > { %4716 = vmatmul.mubr.msk.bf16.vlgmr.msra.gmra.mxu1 %vm283_vm0, %v253_v21  ;;  %332 = vmatprep.mubr.bf16.mxu0 %v9066_v0  ;;  %v4723_v1 = vld [vmem:[%s9062_s2 + $0x1] ss:$8 sm:$0xf0]  ;;  %v4725_v6 = vld [vmem:[%s9062_s2 + $0x2] ss:$8 sm:$0xf0] }
  0x1a   : > { %385 = vmatprep.mubr.bf16.mxu1 %v9066_v0  ;;  %411 = vmatpush1.bf16.msra.mxu0 %v259_v30  ;;  %v5335_v55 = vrot.slane %v5325_v52, %v5328_v53  ;;  %v5339_v56 = vrot.slane %v5325_v52, %v5331_v54  ;;  %v5355_v61 = vrot.slane %v5325_v52, %v5342_v57  ;;  %v4727_v11 = vld [vmem:[%s9062_s2 + $0x3] ss:$8 sm:$0xf0] }
  0x1b   : > { %464 = vmatpush1.bf16.msra.mxu1 %v261_v32  ;;  %4959 = vset.pattern.permute.xlu1 %v5139_v33  ;;  %v5359_v62 = vrot.slane %v5325_v52, %v5345_v58  ;;  %v5369_v2 = vrot.slane %v5325_v52, %v5348_v59  ;;  %v5373_v3 = vrot.slane %v5325_v52, %v5351_v60 }
  0x1c   : > { %995 = vperm.xlu1 %4959, %v5229_v10   ;;  %991 = vperm.xlu0 %4958, %v5258_v36   ;;  %9504 = vst [vmem:[#allocation4_spill] sm:$0xff] %v5335_v55  ;;  %9505 = vst [vmem:[#allocation5_spill] sm:$0xff] %v5339_v56  ;;  %v5375_v4 = vor.u32 %v4723_v1, %v4722_v63  ;;  %v5391_v9 = vor.u32 %v4725_v6, %v4724_v5 }
  0x1d   : > { %9510 = vst [vmem:[#allocation10_spill] sm:$0xff] %v5355_v61  ;;  %9511 = vst [vmem:[#allocation11_spill] sm:$0xff] %v5359_v62 }
  0x1e   : > { %9512 = vst [vmem:[#allocation12_spill] sm:$0xff] %v5369_v2  ;;  %9513 = vst [vmem:[#allocation13_spill] sm:$0xff] %v5373_v3  ;;  %v5385_v7 = vrot.slane %v5375_v4, %v5328_v53  ;;  %v5389_v8 = vrot.slane %v5375_v4, %v5331_v54  ;;  %v5401_v12 = vrot.slane %v5391_v9, %v5328_v53 }
  0x1f   : > { %v5405_v13 = vrot.slane %v5391_v9, %v5331_v54  ;;  %v5409_v14 = vrot.slane %v5375_v4, %v5342_v57  ;;  %v5413_v15 = vrot.slane %v5375_v4, %v5345_v58  ;;  %v5419_v17 = vrot.slane %v5375_v4, %v5348_v59 }
  0x20   : > { %4715 = vmatmul.mubr.msk.bf16.gmra.mxu0 %vm283_vm0, %v254_v37  ;;  %4960 = vset.pattern.permute.xlu1 %v5140_v38  ;;  %9514 = vst [vmem:[#allocation14_spill] sm:$0xff] %v5385_v7  ;;  %9515 = vst [vmem:[#allocation15_spill] sm:$0xff] %v5389_v8  ;;  %v5423_v18 = vrot.slane %v5375_v4, %v5351_v60  ;;  %v5439_v22 = vrot.slane %v5391_v9, %v5345_v58 }
  0x21   : > { %4717 = vmatmul.mubr.msk.bf16.gmra.mxu1 %vm283_vm0, %v254_v37  ;;  %428 = vmatprep.mubr.bf16.mxu0 %v9066_v0  ;;  %9516 = vst [vmem:[#allocation16_spill] sm:$0xff] %v5401_v12  ;;  %9517 = vst [vmem:[#allocation17_spill] sm:$0xff] %v5405_v13  ;;  %v5443_v23 = vrot.slane %v5391_v9, %v5348_v59  ;;  %v5447_v24 = vrot.slane %v5391_v9, %v5351_v60 }
  0x22   : > { %481 = vmatprep.mubr.bf16.mxu1 %v9066_v0  ;;  %1245 = vperm.xlu1 %4960, %v5258_v36   ;;  %9518 = vst [vmem:[#allocation18_spill] sm:$0xff] %v5409_v14  ;;  %9519 = vst [vmem:[#allocation19_spill] sm:$0xff] %v5413_v15 }
  0x23   : > { %1003 = vperm.xlu0 %4958, %v5266_v39   ;;  %9520 = vst [vmem:[#allocation20_spill] sm:$0xff] %v5419_v17  ;;  %9521 = vst [vmem:[#allocation21_spill] sm:$0xff] %v5423_v18 }
  0x24   : > { %9525 = vst [vmem:[#allocation25_spill] sm:$0xff] %v5439_v22  ;;  %9526 = vst [vmem:[#allocation26_spill] sm:$0xff] %v5443_v23 }
  0x25   : > { %9527 = vst [vmem:[#allocation27_spill] sm:$0xff] %v5447_v24 }
  0x26   : > { %4961 = vset.pattern.permute.xlu1 %v5141_v40 }
  0x27   : > { %1499 = vperm.xlu1 %4961, %v5258_v36   ;;  %4966 = vset.pattern.permute.xlu0 %v5142_v41 }
  0x28   : > { %4718 = vmatmul.mubr.msk.bf16.vlgmr.msra.gmra.mxu0 %vm283_vm0, %v253_v21  ;;  %1837 = vperm.xlu0 %4966, %v5229_v10  }
  0x29   : > { %4720 = vmatmul.mubr.msk.bf16.vlgmr.msra.gmra.mxu1 %vm283_vm0, %v253_v21  ;;  %438 = vmatprep.mubr.bf16.mxu0 %v9066_v0  ;;  %v5435_v21 = vrot.slane %v5391_v9, %v5342_v57 }
  0x2a   : > { %491 = vmatprep.mubr.bf16.mxu1 %v9066_v0 }
  0x2b   : > { %1503 = vperm.xlu1 %4961, %v5229_v10   ;;  %9524 = vst [vmem:[#allocation24_spill] sm:$0xff] %v5435_v21 }
  0x2c   : > { %4967 = vset.pattern.permute.xlu0 %v5140_v38 }
  0x2d   : > { %1249 = vperm.xlu0 %4967, %v5229_v10  }
  0x2f   : > { %4962 = vset.pattern.permute.xlu1 %v9066_v0 }
  0x30   : > { %4719 = vmatmul.mubr.msk.bf16.gmra.mxu0 %vm283_vm0, %v254_v37  ;;  %781 = vperm.xlu1 %4962, %v5266_v39  }
  0x31   : > { %4721 = vmatmul.mubr.msk.bf16.gmra.mxu1 %vm283_vm0, %v254_v37  ;;  %1253 = vperm.xlu0 %4967, %v5287_v42  }
  0x34   : > { %4963 = vset.pattern.permute.xlu1 %v5139_v33 }
  0x35   : > { %999 = vperm.xlu1 %4963, %v5287_v42   ;;  %4970 = vset.pattern.permute.xlu0 %v5141_v40 }
  0x36   : > { %1507 = vperm.xlu0 %4970, %v5287_v42  }
  0x39   : > { %4964 = vset.pattern.permute.xlu1 %v5143_v43 }
  0x3a   : > { %1656 = vperm.xlu1 %4964, %v5229_v10   ;;  %4971 = vset.pattern.permute.xlu0 %v5143_v43 }
  0x3b   : > { %1652 = vperm.xlu0 %4971, %v5258_v36  }
  0x3e   : > { %4965 = vset.pattern.permute.xlu1 %v5142_v41 }
  0x3f   : > { %1833 = vperm.xlu1 %4965, %v5258_v36   ;;  %1664 = vperm.xlu0 %4971, %v5266_v39  }
  0x43   : > { %4968 = vset.pattern.permute.xlu1 %v5140_v38  ;;  %4976 = vset.pattern.permute.xlu0 %v5144_v44 }
  0x44   : > { %1257 = vperm.xlu1 %4968, %v5266_v39   ;;  %2091 = vperm.xlu0 %4976, %v5229_v10  }
  0x48   : > { %4969 = vset.pattern.permute.xlu1 %v5144_v44  ;;  %2095 = vperm.xlu0 %4976, %v5287_v42  }
  0x49   : > { %2087 = vperm.xlu1 %4969, %v5258_v36  }
  0x4c   : > { %4978 = vset.pattern.permute.xlu0 %v5145_v45 }
  0x4d   : > { %4972 = vset.pattern.permute.xlu1 %v5141_v40  ;;  %2345 = vperm.xlu0 %4978, %v5229_v10  }
  0x4e   : > { %1511 = vperm.xlu1 %4972, %v5266_v39  }
  0x51   : > { %2353 = vperm.xlu0 %4978, %v5266_v39  }
  0x52   : > { %4973 = vset.pattern.permute.xlu1 %v5145_v45 }
  0x53   : > { %2341 = vperm.xlu1 %4973, %v5258_v36  }
  0x55   : > { %4981 = vset.pattern.permute.xlu0 %v5146_v46 }
  0x56   : > { %2595 = vperm.xlu0 %4981, %v5258_v36  }
  0x57   : > { %4974 = vset.pattern.permute.xlu1 %v5146_v46 }
  0x58   : > { %2599 = vperm.xlu1 %4974, %v5229_v10   ;;  %v4726_v10 = vld [vmem:[%s9062_s2 + $0x3] ss:$8 sm:$0xf] }
  0x59   : > { %v5415_v16 = vor.u32 %v4727_v11, %v4726_v10 }
  0x5b   : > { %v5427_v19 = vrot.slane %v5415_v16, %v5328_v53  ;;  %v5431_v20 = vrot.slane %v5415_v16, %v5331_v54  ;;  %v5451_v25 = vrot.slane %v5415_v16, %v5342_v57  ;;  %v5455_v26 = vrot.slane %v5415_v16, %v5345_v58 }
  0x5c   : > { %4975 = vset.pattern.permute.xlu1 %v5143_v43  ;;  %v5459_v27 = vrot.slane %v5415_v16, %v5348_v59  ;;  %v5463_v28 = vrot.slane %v5415_v16, %v5351_v60 }
  0x5d   : > { %1660 = vperm.xlu1 %4975, %v5287_v42   ;;  %9522 = vst [vmem:[#allocation22_spill] sm:$0xff] %v5427_v19  ;;  %9523 = vst [vmem:[#allocation23_spill] sm:$0xff] %v5431_v20 }
  0x5e   : > { %9528 = vst [vmem:[#allocation28_spill] sm:$0xff] %v5451_v25  ;;  %9529 = vst [vmem:[#allocation29_spill] sm:$0xff] %v5455_v26 }
  0x5f   : > { %9530 = vst [vmem:[#allocation30_spill] sm:$0xff] %v5459_v27  ;;  %9531 = vst [vmem:[#allocation31_spill] sm:$0xff] %v5463_v28 }
  0x61   : > { %4977 = vset.pattern.permute.xlu1 %v5142_v41 }
  0x62   : > { %1841 = vperm.xlu1 %4977, %v5287_v42  }
  0x66   : > { %1845 = vperm.xlu1 %4977, %v5266_v39  }
  0x6a   : > { %4979 = vset.pattern.permute.xlu1 %v5144_v44 }
  0x6b   : > { %2099 = vperm.xlu1 %4979, %v5266_v39  }
  0x6f   : > { %4980 = vset.pattern.permute.xlu1 %v5145_v45 }
  0x70   : > { %2349 = vperm.xlu1 %4980, %v5287_v42  }
  0x74   : > { %4982 = vset.pattern.permute.xlu1 %v9066_v0 }
  0x75   : > { %2754 = vperm.xlu1 %4982, %v212_v47  }
  0x79   : > { %4983 = vset.pattern.permute.xlu1 %v5146_v46 }
  0x89   : > { %v5465_v29 = vpop.permute.xlu1 %275  ;;  %v5467_v30 = vpop.permute.xlu0 %265 }
  0x8a   : > { %9532 = vst [vmem:[#allocation32_spill] sm:$0xff] %v5465_v29  ;;  %9533 = vst [vmem:[#allocation33_spill] sm:$0xff] %v5467_v30 }
  0x8d   : > { %v5471_v35 = vpop.permute.xlu1 %280 }
  0x8e   : > { %9534 = vst [vmem:[#allocation34_spill] sm:$0xff] %v5471_v35 }
  0x91   : > { %v5473_v44 = vpop.permute.xlu1 %771 }
  0x92   : > { %9535 = vst [vmem:[#allocation35_spill] sm:$0xff] %v5473_v44 }
  0x97   : > { %v5481_v50 = vpop.permute.xlu1 %995 }
  0x98   : > { %9536 = vst [vmem:[#allocation36_spill] sm:$0xff] %v5481_v50 }
  0x9d   : > { %v5490_v10 = vpop.permute.xlu1 %1245 }
  0x9e   : > { %9538 = vst [vmem:[#allocation38_spill] sm:$0xff] %v5490_v10 }
  0xd8   : > { %v324_v31 = vpop.f32.mrf.mxu0 }
  0xd9   : > { %v325_v32 = vadd.f32 %v324_v31, %v5467_v30  ;;  %v377_v33 = vpop.f32.mrf.mxu1 }
  0xda   : > { %v378_v34 = vadd.f32 %v377_v33, %v5467_v30  ;;  %v326_v49 = vpop.f32.mrf.mxu0  ;;  %v5502_v33 = vpop.permute.xlu1 %1499 }
  0xdb   : > { %v502_v37 = vadd.f32 3.0, %v325_v32  ;;  %v327_v1 = vadd.f32 %v326_v49, %v5467_v30  ;;  %9540 = vst [vmem:[#allocation40_spill] sm:$0xff] %v5502_v33 }
  0xdc   : > { %v504_v38 = vadd.f32 3.0, %v378_v34  ;;  %v328_v31 = vpop.f32.mrf.mxu0 }
  0xdd   : > { %v534_v40 = vmax.f32 %v502_v37, 0.0  ;;  %v503_v6 = vadd.f32 3.0, %v327_v1 }
  0xde   : > { %v536_v43 = vmax.f32 %v504_v38, 0.0 }
  0xdf   : > { %v566_v41 = vmin.f32 %v534_v40, 6.0  ;;  %v535_v11 = vmax.f32 %v503_v6, 0.0 }
  0xe0   : > { %v568_v47 = vmin.f32 %v536_v43, 6.0  ;;  %v5511_v43 = vpop.permute.xlu1 %1503 }
  0xe1   : > { %v598_v45 = vmul.f32 %v566_v41, %v325_v32  ;;  %v5500_v32 = vpop.permute.xlu0 %270  ;;  %v5509_v41 = vpop.f32.mrf.mxu1  ;;  %9541 = vst [vmem:[#allocation41_spill] sm:$0xff] %v5511_v43 }
  0xe2   : > { %v600_v63 = vmul.f32 %v568_v47, %v378_v34  ;;  %9539 = vst [vmem:[#allocation39_spill] sm:$0xff] %v5500_v32  ;;  %v567_v34 = vmin.f32 %v535_v11, 6.0  ;;  %v329_v37 = vadd.f32 %v328_v31, %v5500_v32 }
  0xe3   : > { %v5475_v46 = vmul.f32 0.16666667, %v598_v45  ;;  %v381_v49 = vpop.f32.mrf.mxu1 }
  0xe4   : > { %v5488_v5 = vmul.f32 0.16666667, %v600_v63  ;;  %v599_v38 = vmul.f32 %v567_v34, %v327_v1  ;;  %v510_v40 = vadd.f32 3.0, %v329_v37  ;;  %v5523_v63 = vpop.permute.xlu1 %781  ;;  %v382_v6 = vadd.f32 %v381_v49, %v5500_v32  ;;  %v330_v49 = vpop.f32.mrf.mxu0 }
  0xe5   : > { %1143 = vrot.lane.b32.xlu1 %v5475_v46, %s5147_s17  ;;  %662 = vrot.lane.b32.xlu0 %v5475_v46, %s5148_s18  ;;  %9543 = vst [vmem:[#allocation43_spill] sm:$0xff] %v5523_v63  ;;  %v5546_v48 = vpop.permute.xlu0 %991 }
  0xe6   : > { %9537 = vst [vmem:[#allocation37_spill] sm:$0xff] %v5488_v5  ;;  %v5517_v45 = vmul.f32 0.16666667, %v599_v38  ;;  %v542_v47 = vmax.f32 %v510_v40, 0.0  ;;  %v512_v31 = vadd.f32 3.0, %v382_v6  ;;  %9547 = vst [vmem:[#allocation47_spill] sm:$0xff] %v5546_v48 }
  0xe8   : > { %9542 = vst [vmem:[#allocation42_spill] sm:$0xff] %v5517_v45  ;;  %v574_v1 = vmin.f32 %v542_v47, 6.0  ;;  %v5530_v34 = vpop.permute.xlu1 %999  ;;  %v544_v40 = vmax.f32 %v512_v31, 0.0  ;;  %v331_v31 = vadd.f32 %v330_v49, %v5500_v32 }
  0xe9   : > { %1397 = vrot.lane.b32.xlu1 %v5475_v46, %s5149_s19  ;;  %889 = vrot.lane.b32.xlu0 %v5475_v46, %s5150_s20  ;;  %9544 = vst [vmem:[#allocation44_spill] sm:$0xff] %v5530_v34 }
  0xea   : > { %v606_v11 = vmul.f32 %v574_v1, %v329_v37  ;;  %v576_v47 = vmin.f32 %v544_v40, 6.0  ;;  %v5544_v1 = vpop.f32.mrf.mxu1  ;;  %v5561_v40 = vpop.permute.xlu0 %1003  ;;  %v511_v28 = vadd.f32 3.0, %v331_v31 }
  0xeb   : > { %9549 = vst [vmem:[#allocation49_spill] sm:$0xff] %v5561_v40 }
  0xec   : > { %v5536_v38 = vmul.f32 0.16666667, %v606_v11  ;;  %v5542_v37 = vpop.permute.xlu1 %1656  ;;  %v608_v11 = vmul.f32 %v576_v47, %v382_v6  ;;  %v5553_v0 = vpop.f32.mrf.mxu1  ;;  %v543_v47 = vmax.f32 %v511_v28, 0.0 }
  0xed   : > { %1731 = vrot.lane.b32.xlu1 %v5475_v46, %s5151_s22  ;;  %1747 = vrot.lane.b32.xlu0 %v5488_v5, %s5151_s22  ;;  %9546 = vst [vmem:[#allocation46_spill] sm:$0xff] %v5542_v37  ;;  %v334_v6 = vpop.f32.mrf.mxu0 }
  0xee   : > { %9545 = vst [vmem:[#allocation45_spill] sm:$0xff] %v5536_v38  ;;  %v5563_v59 = vmul.f32 0.16666667, %v608_v11  ;;  %v5565_v27 = vpop.f32.mrf.mxu1  ;;  %v335_v49 = vadd.f32 %v334_v6, %v5465_v29  ;;  %v5576_v18 = vpop.permute.xlu0 %1837  ;;  %v575_v11 = vmin.f32 %v543_v47, 6.0 }
  0xef   : > { %9552 = vst [vmem:[#allocation52_spill] sm:$0xff] %v5576_v18  ;;  %v336_v28 = vpop.f32.mrf.mxu0 }
  0xf0   : > { %v5555_v60 = vpop.permute.xlu1 %1833  ;;  %9550 = vst [vmem:[#allocation50_spill] sm:$0xff] %v5563_v59  ;;  %v5574_v24 = vpop.f32.mrf.mxu1  ;;  %v518_v3 = vadd.f32 3.0, %v335_v49  ;;  %v607_v58 = vmul.f32 %v575_v11, %v331_v31  ;;  %v337_v26 = vadd.f32 %v336_v28, %v5465_v29 }
  0xf1   : > { %2255 = vrot.lane.b32.xlu1 %v5488_v5, %s5152_s23  ;;  %2001 = vrot.lane.b32.xlu0 %v5488_v5, %s5153_s24  ;;  %9548 = vst [vmem:[#allocation48_spill] sm:$0xff] %v5555_v60  ;;  %v338_v28 = vpop.f32.mrf.mxu0 }
  0xf2   : > { %v5582_v2 = vpop.f32.mrf.mxu1  ;;  %v5590_v6 = vpop.permute.xlu0 %1249  ;;  %v550_v57 = vmax.f32 %v518_v3, 0.0  ;;  %v5599_v47 = vmul.f32 0.16666667, %v607_v58  ;;  %v519_v21 = vadd.f32 3.0, %v337_v26  ;;  %v339_v54 = vadd.f32 %v338_v28, %v5471_v35 }
  0xf3   : > { %9554 = vst [vmem:[#allocation54_spill] sm:$0xff] %v5590_v6 }
  0xf4   : > { %v5572_v23 = vpop.permute.xlu1 %1257  ;;  %v5593_v25 = vpop.f32.mrf.mxu1  ;;  %v582_v22 = vmin.f32 %v550_v57, 6.0  ;;  %v551_v31 = vmax.f32 %v519_v21, 0.0  ;;  %v526_v53 = vadd.f32 3.0, %v339_v54 }
  0xf5   : > { %2239 = vrot.lane.b32.xlu1 %v5475_v46, %s5152_s23  ;;  %1985 = vrot.lane.b32.xlu0 %v5475_v46, %s5153_s24  ;;  %9551 = vst [vmem:[#allocation51_spill] sm:$0xff] %v5572_v23  ;;  %9555 = vst [vmem:[#allocation55_spill] sm:$0xff] %v5593_v25  ;;  %v340_v21 = vpop.f32.mrf.mxu0 }
  0xf6   : > { %v485_v14 = vpop.f32.mrf.mxu1  ;;  %v5603_v62 = vpop.permute.xlu0 %1253  ;;  %v614_v3 = vmul.f32 %v582_v22, %v335_v49  ;;  %v583_v25 = vmin.f32 %v551_v31, 6.0  ;;  %v341_v49 = vadd.f32 %v340_v21, %v5471_v35  ;;  %v558_v8 = vmax.f32 %v526_v53, 0.0 }
  0xf7   : > { %9557 = vst [vmem:[#allocation57_spill] sm:$0xff] %v5603_v62  ;;  %v486_v21 = vadd.f32 %v485_v14, %v5467_v30 }
  0xf8   : > { %v5584_v17 = vpop.permute.xlu1 %2087  ;;  %v5609_v11 = vpop.f32.mrf.mxu1  ;;  %v5619_v61 = vmul.f32 0.16666667, %v614_v3  ;;  %v527_v28 = vadd.f32 3.0, %v341_v49  ;;  %v590_v7 = vmin.f32 %v558_v8, 6.0 }
  0xf9   : > { %2493 = vrot.lane.b32.xlu1 %v5475_v46, %s5154_s25  ;;  %2509 = vrot.lane.b32.xlu0 %v5488_v5, %s5154_s25  ;;  %9553 = vst [vmem:[#allocation53_spill] sm:$0xff] %v5584_v17  ;;  %9558 = vst [vmem:[#allocation58_spill] sm:$0xff] %v5609_v11  ;;  %v615_v11 = vmul.f32 %v583_v25, %v337_v26  ;;  %v509_v40 = vadd.f32 3.0, %v486_v21 }
  0xfa   : > { %v5617_v57 = vpop.permute.xlu0 %1507  ;;  %9561 = vst [vmem:[#allocation61_spill] sm:$0xff] %v5619_v61  ;;  %v5622_v22 = vpop.f32.mrf.mxu1 }
  0xfb   : > { %9560 = vst [vmem:[#allocation60_spill] sm:$0xff] %v5617_v57  ;;  %v5639_v56 = vmul.f32 0.16666667, %v615_v11 }
  0xfc   : > { %v5601_v15 = vpop.permute.xlu1 %1511  ;;  %v5631_v3 = vpop.f32.mrf.mxu1 }
  0xfd   : > { %1405 = vrot.lane.b32.xlu1 %v5517_v45, %s5149_s19  ;;  %670 = vrot.lane.b32.xlu0 %v5517_v45, %s5148_s18  ;;  %9556 = vst [vmem:[#allocation56_spill] sm:$0xff] %v5601_v15  ;;  %9563 = vst [vmem:[#allocation63_spill] sm:$0xff] %v5631_v3  ;;  %v559_v3 = vmax.f32 %v527_v28, 0.0 }
  0xfe   : > { %v5633_v31 = vpop.permute.xlu0 %1652  ;;  %9565 = vst [vmem:[#allocation65_spill] sm:$0xff] %v5639_v56  ;;  %v495_v25 = vpop.f32.mrf.mxu1 }
  0xff   : > { %9564 = vst [vmem:[#allocation64_spill] sm:$0xff] %v5633_v31  ;;  %v591_v11 = vmin.f32 %v559_v3, 6.0  ;;  %v496_v15 = vadd.f32 %v495_v25, %v5465_v29 }
 0x100   : > { %v5611_v58 = vpop.permute.xlu1 %2341  ;;  %v5650_v57 = vpop.f32.mrf.mxu1 }
 0x101   : > { %2247 = vrot.lane.b32.xlu1 %v5517_v45, %s5152_s23  ;;  %897 = vrot.lane.b32.xlu0 %v5517_v45, %s5150_s20  ;;  %9559 = vst [vmem:[#allocation59_spill] sm:$0xff] %v5611_v58  ;;  %9568 = vst [vmem:[#allocation68_spill] sm:$0xff] %v5650_v57  ;;  %v623_v8 = vmul.f32 %v591_v11, %v341_v49  ;;  %v525_v23 = vadd.f32 3.0, %v496_v15 }
 0x102   : > { %v5644_v55 = vpop.permute.xlu0 %1664  ;;  %v499_v28 = vpop.f32.mrf.mxu1 }
 0x103   : > { %9567 = vst [vmem:[#allocation67_spill] sm:$0xff] %v5644_v55  ;;  %v541_v55 = vmax.f32 %v509_v40, 0.0  ;;  %v557_v49 = vmax.f32 %v525_v23, 0.0 }
 0x104   : > { %v5629_v20 = vpop.permute.xlu1 %2599 }
 0x105   : > { %2501 = vrot.lane.b32.xlu1 %v5517_v45, %s5154_s25  ;;  %1151 = vrot.lane.b32.xlu0 %v5517_v45, %s5147_s17  ;;  %9562 = vst [vmem:[#allocation62_spill] sm:$0xff] %v5629_v20  ;;  %v573_v19 = vmin.f32 %v541_v55, 6.0  ;;  %v589_v11 = vmin.f32 %v557_v49, 6.0 }
 0x106   : > { %v5658_v14 = vpop.permute.xlu0 %2091 }
 0x107   : > { %9570 = vst [vmem:[#allocation70_spill] sm:$0xff] %v5658_v14  ;;  %v605_v40 = vmul.f32 %v573_v19, %v486_v21  ;;  %v392_v19 = vadd.f32 %v5574_v24, %v5471_v35  ;;  %v621_v23 = vmul.f32 %v589_v11, %v496_v15 }
 0x108   : > { %v5642_v26 = vpop.permute.xlu1 %1660 }
 0x109   : > { %664 = vrot.lane.b32.xlu1 %v5536_v38, %s5148_s18  ;;  %1739 = vrot.lane.b32.xlu0 %v5517_v45, %s5151_s22  ;;  %9566 = vst [vmem:[#allocation66_spill] sm:$0xff] %v5642_v26  ;;  %v622_v26 = vmul.f32 %v590_v7, %v339_v54  ;;  %v5676_v7 = vmul.f32 0.16666667, %v623_v8  ;;  %v5702_v49 = vmul.f32 0.16666667, %v621_v23 }
 0x10a   : > { %v5670_v54 = vpop.permute.xlu0 %2095 }
 0x10b   : > { %v5665_v57 = vmul.f32 0.16666667, %v622_v26  ;;  %9573 = vst [vmem:[#allocation73_spill] sm:$0xff] %v5670_v54  ;;  %9574 = vst [vmem:[#allocation74_spill] sm:$0xff] %v5676_v7  ;;  %v5686_v26 = vmul.f32 0.16666667, %v605_v40 }
 0x10c   : > { %v5656_v53 = vpop.permute.xlu1 %1841  ;;  %v528_v40 = vadd.f32 3.0, %v392_v19  ;;  %9580 = vst [vmem:[#allocation80_spill] sm:$0xff] %v5702_v49 }
 0x10d   : > { %891 = vrot.lane.b32.xlu1 %v5536_v38, %s5150_s20  ;;  %1993 = vrot.lane.b32.xlu0 %v5517_v45, %s5153_s24  ;;  %9569 = vst [vmem:[#allocation69_spill] sm:$0xff] %v5656_v53  ;;  %9571 = vst [vmem:[#allocation71_spill] sm:$0xff] %v5665_v57  ;;  %v500_v53 = vadd.f32 %v499_v28, %v5471_v35 }
 0x10e   : > { %v5684_v25 = vpop.permute.xlu0 %2345  ;;  %9577 = vst [vmem:[#allocation77_spill] sm:$0xff] %v5686_v26  ;;  %v560_v11 = vmax.f32 %v528_v40, 0.0 }
 0x10f   : > { %v533_v3 = vadd.f32 3.0, %v500_v53  ;;  %9576 = vst [vmem:[#allocation76_spill] sm:$0xff] %v5684_v25 }
 0x110   : > { %v5668_v13 = vpop.permute.xlu1 %1845 }
 0x111   : > { %1145 = vrot.lane.b32.xlu1 %v5536_v38, %s5147_s17  ;;  %1399 = vrot.lane.b32.xlu0 %v5536_v38, %s5149_s19  ;;  %9572 = vst [vmem:[#allocation72_spill] sm:$0xff] %v5668_v13  ;;  %v565_v28 = vmax.f32 %v533_v3, 0.0 }
 0x112   : > { %v5696_v54 = vpop.permute.xlu0 %2353 }
 0x113   : > { %v597_v21 = vmin.f32 %v565_v28, 6.0  ;;  %9579 = vst [vmem:[#allocation79_spill] sm:$0xff] %v5696_v54  ;;  %v490_v28 = vadd.f32 %v5622_v22, %v5500_v32 }
 0x114   : > { %v5682_v55 = vpop.permute.xlu1 %2099 }
 0x115   : > { %1749 = vrot.lane.b32.xlu1 %v5563_v59, %s5151_s22  ;;  %1733 = vrot.lane.b32.xlu0 %v5536_v38, %s5151_s22  ;;  %9575 = vst [vmem:[#allocation75_spill] sm:$0xff] %v5682_v55  ;;  %v629_v3 = vmul.f32 %v597_v21, %v500_v53  ;;  %v592_v53 = vmin.f32 %v560_v11, 6.0  ;;  %v517_v23 = vadd.f32 3.0, %v490_v28 }
 0x116   : > { %v5710_v24 = vpop.permute.xlu0 %2595 }
 0x117   : > { %9582 = vst [vmem:[#allocation82_spill] sm:$0xff] %v5710_v24  ;;  %v5714_v54 = vmul.f32 0.16666667, %v629_v3  ;;  %v624_v22 = vmul.f32 %v592_v53, %v392_v19  ;;  %v549_v40 = vmax.f32 %v517_v23, 0.0 }
 0x118   : > { %v5694_v8 = vpop.permute.xlu1 %2349 }
 0x119   : > { %2003 = vrot.lane.b32.xlu1 %v5563_v59, %s5153_s24  ;;  %2257 = vrot.lane.b32.xlu0 %v5563_v59, %s5152_s23  ;;  %9578 = vst [vmem:[#allocation78_spill] sm:$0xff] %v5694_v8  ;;  %9583 = vst [vmem:[#allocation83_spill] sm:$0xff] %v5714_v54  ;;  %v5736_v11 = vmul.f32 0.16666667, %v624_v22  ;;  %v581_v13 = vmin.f32 %v549_v40, 6.0  ;;  %v388_v22 = vadd.f32 %v5553_v0, %v5465_v29 }
 0x11b   : > { %9588 = vst [vmem:[#allocation88_spill] sm:$0xff] %v5736_v11  ;;  %v613_v19 = vmul.f32 %v581_v13, %v490_v28  ;;  %v9596_v13 = vmov 0   ;;  %v520_v28 = vadd.f32 3.0, %v388_v22 }
 0x11c   : > { %v5708_v15 = vpop.permute.xlu1 %2754 }
 0x11d   : > { %1987 = vrot.lane.b32.xlu1 %v5536_v38, %s5153_s24  ;;  %2241 = vrot.lane.b32.xlu0 %v5536_v38, %s5152_s23  ;;  %9581 = vst [vmem:[#allocation81_spill] sm:$0xff] %v5708_v15  ;;  %v5755_v40 = vmul.f32 0.16666667, %v613_v19  ;;  %v552_v0 = vmax.f32 %v520_v28, 0.0 }
 0x11f   : > { %9593 = vst [vmem:[#allocation93_spill] sm:$0xff] %v5755_v40 }
 0x121   : > { %2511 = vrot.lane.b32.xlu1 %v5563_v59, %s5154_s25  ;;  %2495 = vrot.lane.b32.xlu0 %v5536_v38, %s5154_s25 }
 0x125   : > { %672 = vrot.lane.b32.xlu1 %v5599_v47, %s5148_s18  ;;  %1407 = vrot.lane.b32.xlu0 %v5599_v47, %s5149_s19 }
 0x129   : > { %899 = vrot.lane.b32.xlu1 %v5599_v47, %s5150_s20  ;;  %2249 = vrot.lane.b32.xlu0 %v5599_v47, %s5152_s23 }
 0x12d   : > { %1153 = vrot.lane.b32.xlu1 %v5599_v47, %s5147_s17  ;;  %893 = vrot.lane.b32.xlu0 %v5619_v61, %s5150_s20 }
 0x131   : > { %1741 = vrot.lane.b32.xlu1 %v5599_v47, %s5151_s22  ;;  %1401 = vrot.lane.b32.xlu0 %v5619_v61, %s5149_s19 }
 0x135   : > { %1995 = vrot.lane.b32.xlu1 %v5599_v47, %s5153_s24  ;;  %674 = vrot.lane.b32.xlu0 %v5639_v56, %s5148_s18 }
 0x139   : > { %2503 = vrot.lane.b32.xlu1 %v5599_v47, %s5154_s25  ;;  %901 = vrot.lane.b32.xlu0 %v5639_v56, %s5150_s20 }
 0x13d   : > { %666 = vrot.lane.b32.xlu1 %v5619_v61, %s5148_s18  ;;  %1409 = vrot.lane.b32.xlu0 %v5639_v56, %s5149_s19 }
 0x141   : > { %1147 = vrot.lane.b32.xlu1 %v5619_v61, %s5147_s17  ;;  %1149 = vrot.lane.b32.xlu0 %v5665_v57, %s5147_s17 }
 0x145   : > { %1155 = vrot.lane.b32.xlu1 %v5639_v56, %s5147_s17  ;;  %1157 = vrot.lane.b32.xlu0 %v5676_v7, %s5147_s17 }
 0x149   : > { %668 = vrot.lane.b32.xlu1 %v5665_v57, %s5148_s18  ;;  %718 = vrot.lane.b32.xlu0 %v5686_v26, %s5148_s18 }
 0x14d   : > { %895 = vrot.lane.b32.xlu1 %v5665_v57, %s5150_s20  ;;  %945 = vrot.lane.b32.xlu0 %v5686_v26, %s5150_s20 }
 0x151   : > { %1403 = vrot.lane.b32.xlu1 %v5665_v57, %s5149_s19  ;;  %1203 = vrot.lane.b32.xlu0 %v5702_v49, %s5147_s17 }
 0x155   : > { %676 = vrot.lane.b32.xlu1 %v5676_v7, %s5148_s18  ;;  %724 = vrot.lane.b32.xlu0 %v5714_v54, %s5148_s18 }
 0x157   : > { %v5720_v21 = vpop.permute.xlu1 %1143  ;;  %v5722_v55 = vpop.permute.xlu0 %662 }
 0x158   : > { %9584 = vst [vmem:[#allocation84_spill] sm:$0xff] %v5720_v21  ;;  %9585 = vst [vmem:[#allocation85_spill] sm:$0xff] %v5722_v55 }
 0x159   : > { %903 = vrot.lane.b32.xlu1 %v5676_v7, %s5150_s20  ;;  %951 = vrot.lane.b32.xlu0 %v5714_v54, %s5150_s20 }
 0x15b   : > { %v5728_v3 = vpop.permute.xlu1 %1397  ;;  %v5730_v8 = vpop.permute.xlu0 %889 }
 0x15c   : > { %9586 = vst [vmem:[#allocation86_spill] sm:$0xff] %v5728_v3  ;;  %9587 = vst [vmem:[#allocation87_spill] sm:$0xff] %v5730_v8 }
 0x15d   : > { %1411 = vrot.lane.b32.xlu1 %v5676_v7, %s5149_s19  ;;  %1745 = vrot.lane.b32.xlu0 %v5676_v7, %s5151_s22 }
 0x15f   : > { %v5738_v63 = vpop.permute.xlu1 %1731  ;;  %v5740_v12 = vpop.permute.xlu0 %1747 }
 0x160   : > { %9589 = vst [vmem:[#allocation89_spill] sm:$0xff] %v5738_v63  ;;  %9590 = vst [vmem:[#allocation90_spill] sm:$0xff] %v5740_v12  ;;  %v2959_v63 = vld [vmem:[%s9063_s3] sm:$0xff] }
 0x161   : > { %1199 = vrot.lane.b32.xlu1 %v5686_v26, %s5147_s17  ;;  %1753 = vrot.lane.b32.xlu0 %v5736_v11, %s5151_s22 }
 0x163   : > { %v5746_v53 = vpop.permute.xlu1 %2255  ;;  %v5748_v23 = vpop.permute.xlu0 %2001 }
 0x164   : > { %9591 = vst [vmem:[#allocation91_spill] sm:$0xff] %v5746_v53  ;;  %9592 = vst [vmem:[#allocation92_spill] sm:$0xff] %v5748_v23 }
 0x165   : > { %1453 = vrot.lane.b32.xlu1 %v5686_v26, %s5149_s19  ;;  %2607 = vperm.xlu0 %4981, %v5266_v39  }
 0x167   : > { %v5757_v62 = vpop.permute.xlu1 %2239  ;;  %v5759_v34 = vpop.permute.xlu0 %1985 }
 0x168   : > { %9594 = vst [vmem:[#allocation94_spill] sm:$0xff] %v5757_v62  ;;  %9595 = vst [vmem:[#allocation95_spill] sm:$0xff] %v5759_v34 }
 0x169   : > { %720 = vrot.lane.b32.xlu1 %v5755_v40, %s5148_s18  ;;  %1459 = vrot.lane.b32.xlu0 %v5714_v54, %s5149_s19 }
 0x16a   : > { %4984 = vset.pattern.permute.xlu0 %v9596_v13 }
 0x16b   : > { %v5766_v26 = vpop.permute.xlu1 %2493  ;;  %v5768_v39 = vpop.permute.xlu0 %2509 }
 0x16c   : > { %9597 = vst [vmem:[#allocation96_spill] sm:$0xff] %v5766_v26  ;;  %9598 = vst [vmem:[#allocation97_spill] sm:$0xff] %v5768_v39  ;;  %v211_v26 = vld [vmem:[%s9061_s1 + $0x60] sm:$0xff]  ;;  %v584_v39 = vmin.f32 %v552_v0, 6.0 }
 0x16d   : > { %947 = vrot.lane.b32.xlu1 %v5755_v40, %s5150_s20  ;;  %766 = vperm.xlu0 %4984, %v5258_v36  }
 0x16e   : > { %v616_v36 = vmul.f32 %v584_v39, %v388_v22  ;;  %v2966_v22 = vld [vmem:[%s9063_s3 + $0x38] sm:$0xff] }
 0x16f   : > { %v5773_v19 = vpop.permute.xlu1 %1405  ;;  %v5775_v62 = vpop.permute.xlu0 %670 }
 0x170   : > { %9599 = vst [vmem:[#allocation98_spill] sm:$0xff] %v5773_v19  ;;  %9600 = vst [vmem:[#allocation99_spill] sm:$0xff] %v5775_v62  ;;  %v5797_v0 = vmul.f32 0.16666667, %v616_v36  ;;  %v2963_v36 = vld [vmem:[%s9063_s3 + $0x20] sm:$0xff] }
 0x171   : > { %1201 = vrot.lane.b32.xlu1 %v5755_v40, %s5147_s17  ;;  %776 = vperm.xlu0 %4984, %v5287_v42  }
 0x172   : > { %9605 = vst [vmem:[#allocation104_spill] sm:$0xff] %v5797_v0 }
 0x173   : > { %v5783_v53 = vpop.permute.xlu1 %2247  ;;  %v5785_v24 = vpop.permute.xlu0 %897 }
 0x174   : > { %9601 = vst [vmem:[#allocation100_spill] sm:$0xff] %v5783_v53  ;;  %9602 = vst [vmem:[#allocation101_spill] sm:$0xff] %v5785_v24  ;;  %v4730_v24 = vld [vmem:[%s9062_s2 + $0x6] ss:$8 sm:$0xf] }
 0x175   : > { %1455 = vrot.lane.b32.xlu1 %v5755_v40, %s5149_s19  ;;  %2749 = vperm.xlu0 %4984, %v211_v26   ;;  %v2964_v26 = vld [vmem:[%s9063_s3 + $0x28] sm:$0xff]  ;;  %v2965_v40 = vld [vmem:[%s9063_s3 + $0x30] sm:$0xff] }
 0x176   : > { %v5813_v39 = vpack.c.bf16 %v2966_v22, %v2964_v26  ;;  %v5825_v23 = vpack.c.bf16 %v2965_v40, %v2963_v36  ;;  %v2962_v40 = vld [vmem:[%s9063_s3 + $0x18] sm:$0xff] }
 0x177   : > { %v5789_v28 = vpop.permute.xlu1 %2501  ;;  %v5791_v15 = vpop.permute.xlu0 %1151 }
 0x178   : > { %9603 = vst [vmem:[#allocation102_spill] sm:$0xff] %v5789_v28  ;;  %9604 = vst [vmem:[#allocation103_spill] sm:$0xff] %v5791_v15  ;;  %3041 = vmatprep.subr.bf16.mxu0 %v5813_v39 }
 0x179   : > { %722 = vrot.lane.b32.xlu1 %v5702_v49, %s5148_s18  ;;  %1997 = vrot.lane.b32.xlu0 %v5639_v56, %s5153_s24  ;;  %9607 = vst [vmem:[#allocation106_spill] sm:$0xff] %v5813_v39  ;;  %9609 = vst [vmem:[#allocation108_spill] sm:$0xff] %v5825_v23 }
 0x17a   : > { %3042 = vmatpush1.bf16.xpose.msra.mxu0 %v5825_v23 }
 0x17b   : > { %v5799_v53 = vpop.permute.xlu1 %664  ;;  %v5801_v45 = vpop.permute.xlu0 %1739 }
 0x17c   : > { %9606 = vst [vmem:[#allocation105_spill] sm:$0xff] %v5801_v45  ;;  %v380_v45 = vadd.f32 %v5509_v41, %v5467_v30  ;;  %v213_v41 = vld [vmem:[%s9061_s1 + $0x70] sm:$0xff] }
 0x17d   : > { %949 = vrot.lane.b32.xlu1 %v5702_v49, %s5150_s20  ;;  %2005 = vrot.lane.b32.xlu0 %v5797_v0, %s5153_s24 }
 0x17f   : > { %v5821_v28 = vpop.permute.xlu1 %891  ;;  %v5823_v34 = vpop.permute.xlu0 %1993 }
 0x180   : > { %9608 = vst [vmem:[#allocation107_spill] sm:$0xff] %v5823_v34  ;;  %v2960_v34 = vld [vmem:[%s9063_s3 + $0x8] sm:$0xff] }
 0x181   : > { %1457 = vrot.lane.b32.xlu1 %v5702_v49, %s5149_s19  ;;  %1989 = vrot.lane.b32.xlu0 %v5619_v61, %s5153_s24  ;;  %v5843_v36 = vpack.c.bf16 %v2962_v40, %v2960_v34  ;;  %v2961_v34 = vld [vmem:[%s9063_s3 + $0x10] sm:$0xff] }
 0x182   : > { %v5864_v40 = vpack.c.bf16 %v2961_v34, %v2959_v63  ;;  %v505_v34 = vadd.f32 3.0, %v380_v45 }
 0x183   : > { %v5833_v26 = vpop.permute.xlu1 %1145  ;;  %v5835_v22 = vpop.permute.xlu0 %1399  ;;  %9612 = vst [vmem:[#allocation111_spill] sm:$0xff] %v5843_v36  ;;  %3043 = vmatprep.subr.bf16.mxu0 %v5843_v36 }
 0x184   : > { %9610 = vst [vmem:[#allocation109_spill] sm:$0xff] %v5833_v26  ;;  %9611 = vst [vmem:[#allocation110_spill] sm:$0xff] %v5835_v22  ;;  %3044 = vmatpush1.bf16.xpose.msra.mxu0 %v5864_v40 }
 0x185   : > { %1205 = vrot.lane.b32.xlu1 %v5714_v54, %s5147_s17  ;;  %2251 = vrot.lane.b32.xlu0 %v5639_v56, %s5152_s23  ;;  %9615 = vst [vmem:[#allocation114_spill] sm:$0xff] %v5864_v40 }
 0x186   : > { %3343 = vmatprep.subr.bf16.mxu0 %v5813_v39 }
 0x187   : > { %v5850_v49 = vpop.permute.xlu1 %1749  ;;  %v5852_v23 = vpop.permute.xlu0 %1733 }
 0x188   : > { %9613 = vst [vmem:[#allocation112_spill] sm:$0xff] %v5850_v49  ;;  %9614 = vst [vmem:[#allocation113_spill] sm:$0xff] %v5852_v23 }
 0x189   : > { %1743 = vrot.lane.b32.xlu1 %v5639_v56, %s5151_s22  ;;  %2259 = vrot.lane.b32.xlu0 %v5797_v0, %s5152_s23 }
 0x18b   : > { %v5866_v54 = vpop.permute.xlu1 %2003  ;;  %v5868_v36 = vpop.permute.xlu0 %2257 }
 0x18c   : > { %9616 = vst [vmem:[#allocation115_spill] sm:$0xff] %v5866_v54  ;;  %9617 = vst [vmem:[#allocation116_spill] sm:$0xff] %v5868_v36 }
 0x18d   : > { %1751 = vrot.lane.b32.xlu1 %v5797_v0, %s5151_s22  ;;  %2243 = vrot.lane.b32.xlu0 %v5619_v61, %s5152_s23 }
 0x18f   : > { %v5878_v12 = vpop.permute.xlu1 %1987  ;;  %v5880_v63 = vpop.permute.xlu0 %2241 }
 0x190   : > { %9618 = vst [vmem:[#allocation117_spill] sm:$0xff] %v5878_v12  ;;  %9619 = vst [vmem:[#allocation118_spill] sm:$0xff] %v5880_v63 }
 0x191   : > { %2603 = vperm.xlu1 %4983, %v5287_v42   ;;  %2505 = vrot.lane.b32.xlu0 %v5639_v56, %s5154_s25  ;;  %v537_v42 = vmax.f32 %v505_v34, 0.0 }
 0x193   : > { %v5885_v39 = vpop.permute.xlu1 %2511  ;;  %v5887_v40 = vpop.permute.xlu0 %2495 }
 0x194   : > { %9620 = vst [vmem:[#allocation119_spill] sm:$0xff] %v5885_v39  ;;  %9621 = vst [vmem:[#allocation120_spill] sm:$0xff] %v5887_v40  ;;  %v569_v40 = vmin.f32 %v537_v42, 6.0 }
 0x195   : > { %1735 = vrot.lane.b32.xlu1 %v5619_v61, %s5151_s22  ;;  %2513 = vrot.lane.b32.xlu0 %v5797_v0, %s5154_s25 }
 0x196   : > { %4985 = vset.pattern.permute.xlu1 %v9596_v13  ;;  %v601_v34 = vmul.f32 %v569_v40, %v380_v45 }
 0x197   : > { %v5897_v63 = vpop.permute.xlu1 %672  ;;  %v5899_v56 = vpop.permute.xlu0 %1407 }
 0x198   : > { %9622 = vst [vmem:[#allocation121_spill] sm:$0xff] %v5897_v63  ;;  %9623 = vst [vmem:[#allocation122_spill] sm:$0xff] %v5899_v56 }
 0x199   : > { %1737 = vrot.lane.b32.xlu1 %v5665_v57, %s5151_s22  ;;  %2759 = vperm.xlu0 %4984, %v213_v41   ;;  %v5919_v41 = vmul.f32 0.16666667, %v601_v34 }
 0x19b   : > { %v5903_v3 = vpop.permute.xlu1 %899  ;;  %v5905_v19 = vpop.permute.xlu0 %2249  ;;  %9627 = vst [vmem:[#allocation126_spill] sm:$0xff] %v5919_v41 }
 0x19c   : > { %9624 = vst [vmem:[#allocation123_spill] sm:$0xff] %v5903_v3 }
 0x19d   : > { %1999 = vrot.lane.b32.xlu1 %v5676_v7, %s5153_s24  ;;  %2499 = vrot.lane.b32.xlu0 %v5665_v57, %s5154_s25 }
 0x19f   : > { %v5911_v13 = vpop.permute.xlu1 %1153  ;;  %v5913_v12 = vpop.permute.xlu0 %893 }
 0x1a0   : > { %9625 = vst [vmem:[#allocation124_spill] sm:$0xff] %v5911_v13  ;;  %9626 = vst [vmem:[#allocation125_spill] sm:$0xff] %v5913_v12 }
 0x1a1   : > { %2007 = vrot.lane.b32.xlu1 %v5736_v11, %s5153_s24  ;;  %678 = vrot.lane.b32.xlu0 %v5488_v5, %s5148_s18 }
 0x1a3   : > { %v5921_v42 = vpop.permute.xlu1 %1741  ;;  %v5923_v23 = vpop.permute.xlu0 %1401 }
 0x1a4   : > { %9628 = vst [vmem:[#allocation127_spill] sm:$0xff] %v5923_v23 }
 0x1a5   : > { %1991 = vrot.lane.b32.xlu1 %v5665_v57, %s5153_s24  ;;  %686 = vrot.lane.b32.xlu0 %v5919_v41, %s5148_s18 }
 0x1a7   : > { %v5929_v45 = vpop.permute.xlu1 %1995  ;;  %v5931_v40 = vpop.permute.xlu0 %674 }
 0x1a8   : > { %9629 = vst [vmem:[#allocation128_spill] sm:$0xff] %v5931_v40  ;;  %v390_v40 = vadd.f32 %v5565_v27, %v5465_v29  ;;  %v384_v27 = vadd.f32 %v5544_v1, %v5500_v32 }
 0x1a9   : > { %2253 = vrot.lane.b32.xlu1 %v5676_v7, %s5152_s23  ;;  %905 = vrot.lane.b32.xlu0 %v5488_v5, %s5150_s20 }
 0x1aa   : > { %v521_v21 = vadd.f32 3.0, %v390_v40 }
 0x1ab   : > { %v5937_v34 = vpop.permute.xlu1 %2503  ;;  %v5939_v12 = vpop.permute.xlu0 %901 }
 0x1ac   : > { %9630 = vst [vmem:[#allocation129_spill] sm:$0xff] %v5937_v34  ;;  %9631 = vst [vmem:[#allocation130_spill] sm:$0xff] %v5939_v12 }
 0x1ad   : > { %2261 = vrot.lane.b32.xlu1 %v5736_v11, %s5152_s23  ;;  %913 = vrot.lane.b32.xlu0 %v5919_v41, %s5150_s20 }
 0x1af   : > { %v5945_v23 = vpop.permute.xlu1 %666  ;;  %v5947_v39 = vpop.permute.xlu0 %1409 }
 0x1b0   : > { %9632 = vst [vmem:[#allocation131_spill] sm:$0xff] %v5945_v23  ;;  %9633 = vst [vmem:[#allocation132_spill] sm:$0xff] %v5947_v39  ;;  %v553_v23 = vmax.f32 %v521_v21, 0.0 }
 0x1b1   : > { %2245 = vrot.lane.b32.xlu1 %v5665_v57, %s5152_s23  ;;  %1159 = vrot.lane.b32.xlu0 %v5488_v5, %s5147_s17 }
 0x1b2   : > { %v585_v1 = vmin.f32 %v553_v23, 6.0  ;;  %v216_v23 = vld [vmem:[%s9061_s1 + $0x88] sm:$0xff] }
 0x1b3   : > { %v5955_v12 = vpop.permute.xlu1 %1147  ;;  %v5957_v34 = vpop.permute.xlu0 %1149 }
 0x1b4   : > { %9634 = vst [vmem:[#allocation133_spill] sm:$0xff] %v5955_v12  ;;  %9635 = vst [vmem:[#allocation134_spill] sm:$0xff] %v5957_v34  ;;  %v214_v34 = vld [vmem:[%s9061_s1 + $0x78] sm:$0xff] }
 0x1b5   : > { %2507 = vrot.lane.b32.xlu1 %v5676_v7, %s5154_s25  ;;  %1167 = vrot.lane.b32.xlu0 %v5919_v41, %s5147_s17  ;;  %v513_v7 = vadd.f32 3.0, %v384_v27 }
 0x1b7   : > { %v5965_v39 = vpop.permute.xlu1 %1155  ;;  %v5967_v57 = vpop.permute.xlu0 %1157  ;;  %v545_v21 = vmax.f32 %v513_v7, 0.0 }
 0x1b8   : > { %9636 = vst [vmem:[#allocation135_spill] sm:$0xff] %v5965_v39  ;;  %9637 = vst [vmem:[#allocation136_spill] sm:$0xff] %v5967_v57  ;;  %v430_v39 = vpop.f32.mrf.mxu0 }
 0x1b9   : > { %2515 = vrot.lane.b32.xlu1 %v5736_v11, %s5154_s25  ;;  %1413 = vrot.lane.b32.xlu0 %v5488_v5, %s5149_s19  ;;  %v617_v5 = vmul.f32 %v585_v1, %v390_v40  ;;  %v431_v38 = vadd.f32 %v430_v39, %v5467_v30 }
 0x1bb   : > { %v5976_v12 = vpop.permute.xlu1 %668  ;;  %v5978_v15 = vpop.permute.xlu0 %718  ;;  %v5996_v7 = vmul.f32 0.16666667, %v617_v5  ;;  %v9647_v5 = vlaneseq }
 0x1bc   : > { %9638 = vst [vmem:[#allocation137_spill] sm:$0xff] %v5976_v12  ;;  %9639 = vst [vmem:[#allocation138_spill] sm:$0xff] %v5978_v15 }
 0x1bd   : > { %2764 = vperm.xlu1 %4985, %v214_v34   ;;  %1421 = vrot.lane.b32.xlu0 %v5919_v41, %s5149_s19  ;;  %v577_v34 = vmin.f32 %v545_v21, 6.0  ;;  %9643 = vst [vmem:[#allocation142_spill] sm:$0xff] %v5996_v7  ;;  %v6009_v21 = vpop.f32.mrf.mxu0 }
 0x1be   : > { %9646 = vst [vmem:[#allocation145_spill] sm:$0xff] %v6009_v21 }
 0x1bf   : > { %v5982_v57 = vpop.permute.xlu1 %895  ;;  %v5984_v11 = vpop.permute.xlu0 %945  ;;  %v609_v39 = vmul.f32 %v577_v34, %v384_v27  ;;  %v6025_v27 = vsub.s32 0, %v5323_v51 }
 0x1c0   : > { %9640 = vst [vmem:[#allocation139_spill] sm:$0xff] %v5982_v57  ;;  %9641 = vst [vmem:[#allocation140_spill] sm:$0xff] %v5984_v11  ;;  %v506_v57 = vadd.f32 3.0, %v431_v38 }
 0x1c1   : > { %2497 = vrot.lane.b32.xlu1 %v5619_v61, %s5154_s25  ;;  %682 = vrot.lane.b32.xlu0 %v5797_v0, %s5148_s18  ;;  %v6005_v61 = vsub.s32 1, %v5323_v51  ;;  %v434_v51 = vpop.f32.mrf.mxu0  ;;  %v6070_v30 = vrot.slane %v5325_v52, %v6025_v27 }
 0x1c2   : > { %v538_v1 = vmax.f32 %v506_v57, 0.0  ;;  %v6022_v57 = vmul.f32 0.16666667, %v609_v39 }
 0x1c3   : > { %v5994_v12 = vpop.permute.xlu1 %1403  ;;  %v5998_v15 = vpop.permute.xlu0 %1203  ;;  %9652 = vst [vmem:[#allocation150_spill] sm:$0xff] %v6070_v30 }
 0x1c4   : > { %9642 = vst [vmem:[#allocation141_spill] sm:$0xff] %v5994_v12  ;;  %9644 = vst [vmem:[#allocation143_spill] sm:$0xff] %v5998_v15  ;;  %v6012_v12 = vand.u32 127, %v9647_v5  ;;  %v6032_v5 = vrot.slane %v5325_v52, %v6005_v61 }
 0x1c5   : > { %3127 = vperm.xlu1 %4985, %v216_v23   ;;  %690 = vrot.lane.b32.xlu0 %v5996_v7, %s5148_s18  ;;  %v6016_v23 = vrot.slane %v5375_v4, %v6005_v61 }
 0x1c6   : > { %vm953_vm1 = vcmp.lt.s32.totalorder %v6012_v12, 16  ;;  %9650 = vst [vmem:[#allocation148_spill] sm:$0xff] %v6032_v5  ;;  %vm728_vm2 = vcmp.lt.s32.totalorder %v6012_v12, 17  ;;  %vm1207_vm3 = vcmp.lt.s32.totalorder %v6012_v12, 15  ;;  %v834_v55 = vmul.f32 %v6032_v5, %v5473_v44 }
 0x1c7   : > { %v6002_v40 = vpop.permute.xlu1 %676  ;;  %v6018_v15 = vpop.permute.xlu0 %724  ;;  %v979_v39 = vsel %vm953_vm1, %v5821_v28, %v5903_v3  ;;  %v4728_v3 = vld [vmem:[%s9062_s2 + $0x5] ss:$8 sm:$0xf]  ;;  %v1233_v21 = vsel %vm1207_vm3, %v5833_v26, %v5911_v13  ;;  %v6096_v26 = vrot.slane %v5415_v16, %v6005_v61  ;;  %vm1461_vm4 = vcmp.lt.s32.totalorder %v6012_v12, 1  ;;  %vm2993_vm14 = vmxor %vm5157_vm13, %vm953_vm1 }
 0x1c8   : > { %9645 = vst [vmem:[#allocation144_spill] sm:$0xff] %v6002_v40  ;;  %9648 = vst [vmem:[#allocation146_spill] sm:$0xff] %v6018_v15  ;;  %v570_v40 = vmin.f32 %v538_v1, 6.0  ;;  %v6036_v15 = vadd.f32 %v5582_v2, %v5471_v35  ;;  %v6048_v1 = vrot.slane %v5391_v9, %v6005_v61  ;;  %v1056_v2 = vmul.f32 %v6016_v23, %v5481_v50 }
 0x1c9   : > { %680 = vrot.lane.b32.xlu1 %v5563_v59, %s5148_s18  ;;  %909 = vrot.lane.b32.xlu0 %v5797_v0, %s5150_s20  ;;  %v754_v35 = vsel %vm728_vm2, %v5799_v53, %v5897_v63  ;;  %v4731_v63 = vld [vmem:[%s9062_s2 + $0x6] ss:$8 sm:$0xf0]  ;;  %9656 = vst [vmem:[#allocation154_spill] sm:$0xff] %v6096_v26  ;;  %vm1795_vm5 = vcmp.lt.s32.totalorder %v6012_v12, 127  ;;  %vm2049_vm6 = vcmp.lt.s32.totalorder %v6012_v12, 113  ;;  %vm3001_vm15 = vmxor %vm2993_vm14, %vm5157_vm13 }
 0x1ca   : > { %9651 = vst [vmem:[#allocation149_spill] sm:$0xff] %v6048_v1  ;;  %v602_v8 = vmul.f32 %v570_v40, %v431_v38  ;;  %v1088_v62 = vmul.f32 %v1056_v2, %v979_v39  ;;  %v1310_v13 = vmul.f32 %v6048_v1, %v5590_v6  ;;  %v6088_v38 = vadd.f32 %v434_v51, %v5500_v32  ;;  %v6092_v40 = vpop.f32.mrf.mxu0  ;;  %v4732_v51 = vld [vmem:[%s9062_s2 + $0x7] ss:$8 sm:$0xf]  ;;  %vm3005_vm0 = vmxor %vm953_vm1, %vm5157_vm13 }
 0x1cb   : > { %v6027_v34 = vpop.permute.xlu1 %903  ;;  %v6084_v52 = vpop.permute.xlu0 %951  ;;  %9655 = vst [vmem:[#allocation153_spill] sm:$0xff] %v6092_v40  ;;  %v866_v2 = vmul.f32 %v834_v55, %v754_v35  ;;  %v4733_v32 = vld [vmem:[%s9062_s2 + $0x7] ss:$8 sm:$0xf0]  ;;  %v6110_v40 = vmul.f32 %v6048_v1, %v5490_v10  ;;  %v6118_v35 = vmul.f32 %v6070_v30, %v5473_v44  ;;  %v6140_v1 = vrot.slane %v5391_v9, %v6025_v27 }
 0x1cc   : > { %9649 = vst [vmem:[#allocation147_spill] sm:$0xff] %v6027_v34  ;;  %v4729_v34 = vld [vmem:[%s9062_s2 + $0x5] ss:$8 sm:$0xf0]  ;;  %9654 = vst [vmem:[#allocation152_spill] sm:$0xff] %v6084_v52  ;;  %v1342_v5 = vmul.f32 %v1310_v13, %v1233_v21  ;;  %v6112_v52 = vor.u32 %v4731_v63, %v4730_v24  ;;  %v514_v63 = vadd.f32 3.0, %v6088_v38  ;;  %v6156_v9 = vrot.slane %v5415_v16, %v6025_v27 }
 0x1cd   : > { %688 = vrot.lane.b32.xlu1 %v6022_v57, %s5148_s18  ;;  %917 = vrot.lane.b32.xlu0 %v5996_v7, %s5150_s20  ;;  %v6098_v39 = vor.u32 %v4729_v34, %v4728_v3  ;;  %9658 = vst [vmem:[#allocation156_spill] sm:$0xff] %v6110_v40  ;;  %v6120_v55 = vmul.f32 0.16666667, %v602_v8  ;;  %v4734_v13 = vld [vmem:[%s9062_s2 + $0x40] ss:$8 sm:$0xf]  ;;  %v1120_v21 = vadd.f32 %v1088_v62, %v866_v2  ;;  %v440_v62 = vpop.f32.mrf.mxu0 }
 0x1ce   : > { %9659 = vst [vmem:[#allocation157_spill] sm:$0xff] %v6112_v52  ;;  %v6128_v34 = vrot.slane %v5375_v4, %v6025_v27  ;;  %v4735_v44 = vld [vmem:[%s9062_s2 + $0x40] ss:$8 sm:$0xf0]  ;;  %v1487_v8 = vsel %vm1461_vm4, %v5835_v22, %v5899_v56  ;;  %9662 = vst [vmem:[#allocation160_spill] sm:$0xff] %v6140_v1  ;;  %v6160_v56 = vmul.f32 %v6096_v26, %v5502_v33  ;;  %vm2303_vm7 = vcmp.lt.s32.totalorder %v6012_v12, 112 }
 0x1cf   : > { %v6072_v11 = vpop.permute.xlu1 %1411  ;;  %9657 = vst [vmem:[#allocation155_spill] sm:$0xff] %v6098_v39  ;;  %9661 = vst [vmem:[#allocation159_spill] sm:$0xff] %v6120_v55  ;;  %v6146_v4 = vrot.slane %v6098_v39, %v6025_v27  ;;  %v1374_v2 = vadd.f32 %v1342_v5, %v1120_v21  ;;  %v6150_v40 = vpop.permute.xlu0 %1745  ;;  %v6166_v30 = vrot.slane %v6098_v39, %v6005_v61  ;;  %vm2557_vm8 = vcmp.lt.s32.totalorder %v6012_v12, 111 }
 0x1d0   : > { %9653 = vst [vmem:[#allocation151_spill] sm:$0xff] %v6072_v11  ;;  %v529_v11 = vadd.f32 3.0, %v6036_v15  ;;  %9664 = vst [vmem:[#allocation162_spill] sm:$0xff] %v6150_v40  ;;  %v6170_v5 = vrot.slane %v6112_v52, %v6025_v27  ;;  %v6174_v40 = vor.u32 %v4735_v44, %v4734_v13  ;;  %v6178_v16 = vrot.slane %v6112_v52, %v6005_v61 }
 0x1d1   : > { %907 = vrot.lane.b32.xlu1 %v5563_v59, %s5150_s20  ;;  %1755 = vrot.lane.b32.xlu0 %v5919_v41, %s5151_s22  ;;  %9663 = vst [vmem:[#allocation161_spill] sm:$0xff] %v6146_v4  ;;  %9665 = vst [vmem:[#allocation163_spill] sm:$0xff] %v6156_v9  ;;  %v6183_v39 = vadd.f32 %v440_v62, %v5465_v29  ;;  %v6187_v22 = vmul.f32 %v6140_v1, %v5490_v10 }
 0x1d2   : > { %v561_v24 = vmax.f32 %v529_v11, 0.0  ;;  %v1564_v11 = vmul.f32 %v6096_v26, %v5511_v43  ;;  %9666 = vst [vmem:[#allocation164_spill] sm:$0xff] %v6160_v56  ;;  %9668 = vst [vmem:[#allocation166_spill] sm:$0xff] %v6166_v30  ;;  %v546_v56 = vmax.f32 %v514_v63, 0.0  ;;  %v6193_v44 = vmul.f32 %v6146_v4, %v5555_v60 }
 0x1d3   : > { %v6114_v3 = vpop.permute.xlu1 %1199  ;;  %9670 = vst [vmem:[#allocation168_spill] sm:$0xff] %v6174_v40  ;;  %9671 = vst [vmem:[#allocation169_spill] sm:$0xff] %v6178_v16  ;;  %v1676_v52 = vmul.f32 %v5542_v37, %v5599_v47 }
 0x1d4   : > { %9660 = vst [vmem:[#allocation158_spill] sm:$0xff] %v6114_v3  ;;  %v6162_v3 = vor.u32 %v4733_v32, %v4732_v51  ;;  %v1596_v26 = vmul.f32 %v1564_v11, %v1487_v8  ;;  %v1055_v32 = vmul.f32 %v6128_v34, %v5481_v50  ;;  %v593_v51 = vmin.f32 %v561_v24, 6.0 }
 0x1d5   : > { %915 = vrot.lane.b32.xlu1 %v6022_v57, %s5150_s20  ;;  %1763 = vrot.lane.b32.xlu0 %v6120_v55, %s5151_s22  ;;  %v6197_v8 = vmul.f32 %v6156_v9, %v5502_v33  ;;  %v6203_v24 = vmul.f32 %v6156_v9, %v5511_v43  ;;  %v6219_v11 = vmul.f32 %v6170_v5, %v5584_v17  ;;  %v578_v29 = vmin.f32 %v546_v56, 6.0 }
 0x1d6   : > { %9667 = vst [vmem:[#allocation165_spill] sm:$0xff] %v6162_v3  ;;  %v1628_v13 = vadd.f32 %v1596_v26, %v1374_v2  ;;  %v6207_v63 = vrot.slane %v6162_v3, %v6025_v27  ;;  %v6211_v62 = vrot.slane %v6162_v3, %v6005_v61  ;;  %v6215_v26 = vmul.f32 %v6166_v30, %v5555_v60  ;;  %v6234_v60 = vpop.permute.xlu0 %1753 }
 0x1d7   : > { %v6172_v21 = vpop.permute.xlu1 %1453  ;;  %v6225_v43 = vrot.slane %v6174_v40, %v6025_v27  ;;  %v6230_v3 = vmul.f32 %v6178_v16, %v5584_v17  ;;  %9676 = vst [vmem:[#allocation174_spill] sm:$0xff] %v6234_v60  ;;  %v625_v50 = vmul.f32 %v593_v51, %v6036_v15  ;;  %v6238_v9 = vadd.f32 3.0, %v6183_v39 }
 0x1d8   : > { %9669 = vst [vmem:[#allocation167_spill] sm:$0xff] %v6172_v21  ;;  %9672 = vst [vmem:[#allocation170_spill] sm:$0xff] %v6207_v63  ;;  %v1817_v27 = vsel %vm1795_vm5, %v5921_v42, %v5850_v49  ;;  %v6248_v17 = vrot.slane %v6174_v40, %v6005_v61  ;;  %v1898_v56 = vmul.f32 %v6166_v30, %v5576_v18 }
 0x1d9   : > { %1161 = vrot.lane.b32.xlu1 %v5563_v59, %s5147_s17  ;;  %1163 = vrot.lane.b32.xlu0 %v5797_v0, %s5147_s17  ;;  %9673 = vst [vmem:[#allocation171_spill] sm:$0xff] %v6211_v62  ;;  %9675 = vst [vmem:[#allocation173_spill] sm:$0xff] %v6225_v43  ;;  %v1708_v47 = vadd.f32 %v1676_v52, %v1628_v13  ;;  %v6257_v15 = vmul.f32 %v6207_v63, %v5611_v58  ;;  %v6285_v33 = vmul.f32 0.16666667, %v625_v50 }
 0x1da   : > { %v6261_v51 = vmul.f32 %v6211_v62, %v5611_v58  ;;  %v6265_v61 = vmul.f32 %v6016_v23, %v5546_v48  ;;  %v2071_v52 = vsel %vm2049_vm6, %v5929_v45, %v5866_v54  ;;  %v6275_v49 = vmul.f32 %v5633_v31, %v5475_v46 }
 0x1db   : > { %v6221_v2 = vpop.permute.xlu1 %720  ;;  %v1930_v40 = vmul.f32 %v1898_v56, %v1817_v27  ;;  %v2152_v58 = vmul.f32 %v6178_v16, %v5658_v14  ;;  %v6288_v54 = vmul.f32 %v578_v29, %v6088_v38  ;;  %v6303_v29 = vmul.f32 %v6207_v63, %v5684_v25 }
 0x1dc   : > { %9674 = vst [vmem:[#allocation172_spill] sm:$0xff] %v6221_v2  ;;  %v758_v50 = vsel %vm728_vm2, %v6221_v2, %v5799_v53  ;;  %v2325_v53 = vsel %vm2303_vm7, %v5905_v19, %v5868_v36  ;;  %v1897_v56 = vmul.f32 %v6146_v4, %v5576_v18  ;;  %v2660_v10 = vmul.f32 %v6248_v17, %v5629_v20  ;;  %v9683_v18 = vld [vmem:[#allocation85_spill] sm:$0xff] }
 0x1dd   : > { %1169 = vrot.lane.b32.xlu1 %v6022_v57, %s5147_s17  ;;  %1171 = vrot.lane.b32.xlu0 %v5996_v7, %s5147_s17  ;;  %v1962_v46 = vadd.f32 %v1930_v40, %v1708_v47  ;;  %v2184_v27 = vmul.f32 %v2152_v58, %v2071_v52  ;;  %v1309_v40 = vmul.f32 %v6140_v1, %v5590_v6  ;;  %v9680_v52 = vld [vmem:[#allocation109_spill] sm:$0xff]  ;;  %v9700_v1 = vld [vmem:[#allocation138_spill] sm:$0xff] }
 0x1de   : > { %v6319_v47 = vmul.f32 %v6225_v43, %v5629_v20  ;;  %v865_v2 = vmul.f32 %v6118_v35, %v758_v50  ;;  %v9687_v50 = vld [vmem:[#allocation103_spill] sm:$0xff] }
 0x1df   : > { %v6271_v13 = vpop.permute.xlu1 %947  ;;  %v2216_v20 = vadd.f32 %v2184_v27, %v1962_v46  ;;  %v9692_v46 = vld [vmem:[#allocation113_spill] sm:$0xff] }
 0x1e0   : > { %9677 = vst [vmem:[#allocation175_spill] sm:$0xff] %v6271_v13  ;;  %v983_v60 = vsel %vm953_vm1, %v6271_v13, %v5821_v28  ;;  %v6283_v30 = vpop.permute.xlu0 %2607  ;;  %v2406_v28 = vmul.f32 %v6211_v62, %v5684_v25  ;;  %v1047_v13 = vmul.f32 %v6128_v34, %v5546_v48  ;;  %v9682_v25 = vld [vmem:[#allocation99_spill] sm:$0xff]  ;;  %v1821_v27 = vsel %vm1795_vm5, %v9692_v46, %v5921_v42  ;;  %v9697_v46 = vld [vmem:[#allocation150_spill] sm:$0xff]  ;;  %v9699_v62 = vld [vmem:[#allocation88_spill] sm:$0xff] }
 0x1e1   : > { %9678 = vst [vmem:[#allocation176_spill] sm:$0xff] %v6283_v30  ;;  %1415 = vrot.lane.b32.xlu1 %v5563_v59, %s5149_s19  ;;  %2009 = vrot.lane.b32.xlu0 %v5919_v41, %s5153_s24  ;;  %v1087_v38 = vmul.f32 %v1055_v32, %v983_v60  ;;  %v753_v59 = vsel %vm728_vm2, %v9683_v18, %v9682_v25  ;;  %v9686_v30 = vld [vmem:[#allocation45_spill] sm:$0xff] }
 0x1e2   : > { %v1675_v35 = vmul.f32 %v5542_v37, %v9686_v30  ;;  %v2438_v63 = vmul.f32 %v2406_v28, %v2325_v53  ;;  %v9690_v25 = vld [vmem:[#allocation129_spill] sm:$0xff]  ;;  %v9694_v28 = vld [vmem:[#allocation140_spill] sm:$0xff] }
 0x1e3   : > { %v6309_v58 = vpop.permute.xlu1 %1201  ;;  %v1119_v16 = vadd.f32 %v1087_v38, %v865_v2  ;;  %v9693_v30 = vld [vmem:[#allocation117_spill] sm:$0xff] }
 0x1e4   : > { %9679 = vst [vmem:[#allocation177_spill] sm:$0xff] %v6309_v58  ;;  %v1237_v60 = vsel %vm1207_vm3, %v6309_v58, %v9680_v52  ;;  %v6325_v32 = vpop.permute.xlu0 %1459  ;;  %v9684_v52 = vld [vmem:[#allocation101_spill] sm:$0xff]  ;;  %v9685_v58 = vld [vmem:[#allocation87_spill] sm:$0xff]  ;;  %v2075_v37 = vsel %vm2049_vm6, %v9693_v30, %v5929_v45  ;;  %v9698_v45 = vld [vmem:[#allocation148_spill] sm:$0xff] }
 0x1e5   : > { %9681 = vst [vmem:[#allocation109_spill] sm:$0xff] %v6325_v32  ;;  %v1341_v36 = vmul.f32 %v1309_v40, %v1237_v60  ;;  %1423 = vrot.lane.b32.xlu1 %v6022_v57, %s5149_s19  ;;  %v978_v6 = vsel %vm953_vm1, %v9685_v58, %v9684_v52  ;;  %2017 = vrot.lane.b32.xlu0 %v6120_v55, %s5153_s24  ;;  %v9688_v40 = vld [vmem:[#allocation84_spill] sm:$0xff]  ;;  %v9689_v32 = vld [vmem:[#allocation119_spill] sm:$0xff] }
 0x1e6   : > { %v1232_v60 = vsel %vm1207_vm3, %v9688_v40, %v9687_v50  ;;  %v2579_v48 = vsel %vm2557_vm8, %v9690_v25, %v9689_v32  ;;  %v982_v53 = vsel %vm953_vm1, %v9694_v28, %v9685_v58  ;;  %v9695_v50 = vld [vmem:[#allocation110_spill] sm:$0xff]  ;;  %v2470_v58 = vadd.f32 %v2438_v63, %v2216_v20 }
 0x1e7   : > { %v6354_v52 = vpop.permute.xlu1 %1455  ;;  %v1373_v32 = vadd.f32 %v1341_v36, %v1119_v16  ;;  %v2692_v28 = vmul.f32 %v2660_v10, %v2579_v48  ;;  %v9701_v36 = vld [vmem:[#allocation158_spill] sm:$0xff] }
 0x1e8   : > { %9691 = vst [vmem:[#allocation85_spill] sm:$0xff] %v6354_v52  ;;  %v1491_v2 = vsel %vm1461_vm4, %v6354_v52, %v9695_v50  ;;  %v6372_v38 = vpop.permute.xlu0 %766  ;;  %v757_v50 = vsel %vm728_vm2, %v9700_v1, %v9683_v18  ;;  %v1236_v16 = vsel %vm1207_vm3, %v9701_v36, %v9688_v40  ;;  %v9703_v48 = vld [vmem:[#allocation98_spill] sm:$0xff]  ;;  %v1080_v18 = vmul.f32 %v6265_v61, %v978_v6 }
 0x1e9   : > { %9696 = vst [vmem:[#allocation87_spill] sm:$0xff] %v6372_v38  ;;  %v1595_v42 = vmul.f32 %v6203_v24, %v1491_v2  ;;  %v825_v4 = vmul.f32 %v9697_v46, %v6372_v38  ;;  %v826_v30 = vmul.f32 %v9698_v45, %v6372_v38  ;;  %684 = vrot.lane.b32.xlu1 %v9699_v62, %s5148_s18  ;;  %v9704_v10 = vld [vmem:[#allocation86_spill] sm:$0xff] }
 0x1ea   : > { %1417 = vrot.lane.b32.xlu0 %v5797_v0, %s5149_s19  ;;  %v1079_v24 = vmul.f32 %v1047_v13, %v982_v53  ;;  %v1486_v63 = vsel %vm1461_vm4, %v9704_v10, %v9703_v48  ;;  %v2151_v1 = vmul.f32 %v6170_v5, %v5658_v14  ;;  %v1490_v13 = vsel %vm1461_vm4, %v6172_v21, %v9704_v10  ;;  %v9706_v53 = vld [vmem:[#allocation156_spill] sm:$0xff]  ;;  %v9707_v61 = vld [vmem:[#allocation118_spill] sm:$0xff]  ;;  %v9753_v21 = vld [vmem:[#allocation111_spill] sm:$0xff] }
 0x1eb   : > { %v1627_v2 = vadd.f32 %v1595_v42, %v1373_v32  ;;  %v857_v52 = vmul.f32 %v825_v4, %v757_v50  ;;  %v6391_v38 = vpop.permute.xlu1 %722  ;;  %v858_v20 = vmul.f32 %v826_v30, %v753_v59  ;;  %v1929_v4 = vmul.f32 %v1897_v56, %v1821_v27  ;;  %v9708_v27 = vld [vmem:[#allocation164_spill] sm:$0xff]  ;;  %v9754_v14 = vld [vmem:[#allocation135_spill] sm:$0xff]  ;;  %v9755_v0 = vld [vmem:[#allocation133_spill] sm:$0xff] }
 0x1ec   : > { %9702 = vst [vmem:[#allocation45_spill] sm:$0xff] %v6391_v38  ;;  %v6404_v32 = vpop.permute.xlu0 %776  ;;  %v1333_v59 = vmul.f32 %v6187_v22, %v1236_v16  ;;  %v1334_v6 = vmul.f32 %v9706_v53, %v1232_v60  ;;  %v2329_v42 = vsel %vm2303_vm7, %v9707_v61, %v5905_v19  ;;  %v2183_v50 = vmul.f32 %v2151_v1, %v2075_v37  ;;  %v9711_v53 = vld [vmem:[#allocation120_spill] sm:$0xff] }
 0x1ed   : > { %9705 = vst [vmem:[#allocation84_spill] sm:$0xff] %v6404_v32  ;;  %v1707_v40 = vadd.f32 %v1675_v35, %v1627_v2  ;;  %v1111_v30 = vadd.f32 %v1079_v24, %v857_v52  ;;  %692 = vrot.lane.b32.xlu1 %v6285_v33, %s5148_s18  ;;  %v1112_v10 = vadd.f32 %v1080_v18, %v858_v20  ;;  %v9709_v24 = vld [vmem:[#allocation90_spill] sm:$0xff]  ;;  %v9710_v2 = vld [vmem:[#allocation105_spill] sm:$0xff]  ;;  %v9722_v61 = vld [vmem:[#allocation100_spill] sm:$0xff] }
 0x1ee   : > { %1425 = vrot.lane.b32.xlu0 %v5996_v7, %s5149_s19  ;;  %v2724_v56 = vadd.f32 %v2692_v28, %v2470_v58  ;;  %v1587_v22 = vmul.f32 %v6197_v8, %v1490_v13  ;;  %v1588_v16 = vmul.f32 %v9708_v27, %v1486_v63  ;;  %v1816_v60 = vsel %vm1795_vm5, %v9710_v2, %v9709_v24  ;;  %v9714_v8 = vld [vmem:[#allocation89_spill] sm:$0xff]  ;;  %v9715_v13 = vld [vmem:[#allocation92_spill] sm:$0xff] }
 0x1ef   : > { %v1961_v35 = vadd.f32 %v1929_v4, %v1707_v40  ;;  %v1365_v52 = vadd.f32 %v1333_v59, %v1111_v30  ;;  %v2583_v37 = vsel %vm2557_vm8, %v9711_v53, %v9690_v25  ;;  %v6426_v19 = vpop.permute.xlu1 %949  ;;  %v1366_v28 = vadd.f32 %v1334_v6, %v1112_v10  ;;  %v9716_v4 = vld [vmem:[#allocation107_spill] sm:$0xff]  ;;  %v9719_v10 = vld [vmem:[#allocation81_spill] sm:$0xff] }
 0x1f0   : > { %9712 = vst [vmem:[#allocation129_spill] sm:$0xff] %v6426_v19  ;;  %v6428_v1 = vpop.permute.xlu0 %2749  ;;  %v1820_v58 = vsel %vm1795_vm5, %v9714_v8, %v9710_v2  ;;  %v2437_v20 = vmul.f32 %v6303_v29, %v2329_v42  ;;  %v2070_v25 = vsel %vm2049_vm6, %v9716_v4, %v9715_v13  ;;  %v9717_v59 = vld [vmem:[#allocation95_spill] sm:$0xff]  ;;  %v9718_v29 = vld [vmem:[#allocation42_spill] sm:$0xff]  ;;  %v2691_v42 = vmul.f32 %v6319_v47, %v2583_v37 }
 0x1f1   : > { %9713 = vst [vmem:[#allocation110_spill] sm:$0xff] %v6428_v1  ;;  %v2215_v63 = vadd.f32 %v2183_v50, %v1961_v35  ;;  %911 = vrot.lane.b32.xlu1 %v9699_v62, %s5150_s20  ;;  %v1619_v18 = vadd.f32 %v1587_v22, %v1365_v52  ;;  %v2074_v40 = vsel %vm2049_vm6, %v9717_v59, %v9716_v4  ;;  %v9720_v52 = vld [vmem:[#allocation82_spill] sm:$0xff] }
 0x1f2   : > { %2263 = vrot.lane.b32.xlu0 %v5919_v41, %s5152_s23  ;;  %v1620_v30 = vadd.f32 %v1588_v16, %v1366_v28  ;;  %v1668_v6 = vmul.f32 %v5633_v31, %v9718_v29  ;;  %v2776_v22 = vadd.f32 %v9719_v10, %v2724_v56  ;;  %v2651_v27 = vmul.f32 %v6225_v43, %v9720_v52  ;;  %v9721_v28 = vld [vmem:[#allocation91_spill] sm:$0xff]  ;;  %v9723_v37 = vld [vmem:[#allocation94_spill] sm:$0xff]  ;;  %v9727_v29 = vld [vmem:[#allocation96_spill] sm:$0xff] }
 0x1f3   : > { %v2469_v50 = vadd.f32 %v2437_v20, %v2215_v63  ;;  %v1699_v35 = vadd.f32 %v6275_v49, %v1619_v18  ;;  %v1921_v2 = vmul.f32 %v6193_v44, %v1820_v58  ;;  %v1922_v4 = vmul.f32 %v6215_v26, %v1816_v60  ;;  %v6472_v60 = vpop.permute.xlu1 %1457  ;;  %v9725_v18 = vld [vmem:[#allocation97_spill] sm:$0xff]  ;;  %v9776_v31 = vld [vmem:[#allocation160_spill] sm:$0xff]  ;;  %v9796_v43 = vld [vmem:[#allocation171_spill] sm:$0xff] }
 0x1f4   : > { %v6456_v53 = vpop.permute.xlu0 %1997  ;;  %v1700_v16 = vadd.f32 %v1668_v6, %v1620_v30  ;;  %v2324_v47 = vsel %vm2303_vm7, %v9722_v61, %v9721_v28  ;;  %v2328_v49 = vsel %vm2303_vm7, %v9723_v37, %v9722_v61  ;;  %v2652_v56 = vmul.f32 %v6248_v17, %v9720_v52  ;;  %9724 = vst [vmem:[#allocation150_spill] sm:$0xff] %v6472_v60  ;;  %v9726_v61 = vld [vmem:[#allocation102_spill] sm:$0xff]  ;;  %v9759_v28 = vld [vmem:[#allocation16_spill] sm:$0xff] }
 0x1f5   : > { %v2723_v20 = vadd.f32 %v2691_v42, %v2469_v50  ;;  %919 = vrot.lane.b32.xlu1 %v6285_v33, %s5150_s20  ;;  %v2175_v44 = vmul.f32 %v6219_v11, %v2074_v40  ;;  %v2176_v26 = vmul.f32 %v6230_v3, %v2070_v25  ;;  %v1953_v63 = vadd.f32 %v1921_v2, %v1699_v35  ;;  %v9758_v52 = vld [vmem:[#allocation38_spill] sm:$0xff] }
 0x1f6   : > { %2271 = vrot.lane.b32.xlu0 %v6120_v55, %s5152_s23  ;;  %v1954_v58 = vadd.f32 %v1922_v4, %v1700_v16  ;;  %v2578_v30 = vsel %vm2557_vm8, %v9726_v61, %v9725_v18  ;;  %v2582_v6 = vsel %vm2557_vm8, %v9727_v29, %v9726_v61  ;;  %v2808_v11 = vadd.f32 3.0, %v2776_v22 }
 0x1f7   : > { %v2775_v3 = vadd.f32 %v9719_v10, %v2723_v20  ;;  %v2429_v25 = vmul.f32 %v6257_v15, %v2328_v49  ;;  %v2430_v40 = vmul.f32 %v6261_v51, %v2324_v47  ;;  %v2207_v35 = vadd.f32 %v2175_v44, %v1953_v63  ;;  %v6496_v15 = vpop.f32.mrf.mxu0  ;;  %v6500_v44 = vpop.permute.xlu1 %1205 }
 0x1f8   : > { %v6487_v42 = vpop.permute.xlu0 %2005  ;;  %v2208_v50 = vadd.f32 %v2176_v26, %v1954_v58  ;;  %v2683_v4 = vmul.f32 %v2651_v27, %v2582_v6  ;;  %v2684_v16 = vmul.f32 %v2652_v56, %v2578_v30  ;;  %v6494_v20 = vmul.f32 0.16666667, %v6288_v54  ;;  %9730 = vst [vmem:[#allocation156_spill] sm:$0xff] %v6496_v15  ;;  %9732 = vst [vmem:[#allocation164_spill] sm:$0xff] %v6500_v44  ;;  %v9780_v15 = vld [vmem:[#allocation139_spill] sm:$0xff] }
 0x1f9   : > { %9728 = vst [vmem:[#allocation148_spill] sm:$0xff] %v6487_v42  ;;  %1757 = vrot.lane.b32.xlu1 %v6022_v57, %s5151_s22  ;;  %v2807_v2 = vadd.f32 3.0, %v2775_v3  ;;  %v2461_v29 = vadd.f32 %v2429_v25, %v2207_v35  ;;  %v2840_v51 = vmax.f32 %v2808_v11, 0.0  ;;  %v9731_v47 = vmax.f32 %v6238_v9, 0.0  ;;  %v444_v6 = vpop.f32.mrf.mxu0 }
 0x1fa   : > { %2517 = vrot.lane.b32.xlu0 %v5919_v41, %s5154_s25  ;;  %v2462_v61 = vadd.f32 %v2430_v40, %v2208_v50  ;;  %9729 = vst [vmem:[#allocation86_spill] sm:$0xff] %v6494_v20 }
 0x1fb   : > { %v586_v49 = vmin.f32 %v9731_v47, 6.0  ;;  %v2715_v56 = vadd.f32 %v2683_v4, %v2461_v29  ;;  %v2839_v58 = vmax.f32 %v2807_v2, 0.0  ;;  %v2872_v30 = vmin.f32 %v2840_v51, 6.0  ;;  %v6515_v50 = vpop.permute.xlu1 %1743  ;;  %v9735_v4 = vld [vmem:[#allocation33_spill] sm:$0xff] }
 0x1fc   : > { %v6502_v26 = vpop.permute.xlu0 %1989  ;;  %v2716_v27 = vadd.f32 %v2684_v16, %v2462_v61  ;;  %9734 = vst [vmem:[#allocation107_spill] sm:$0xff] %v6515_v50  ;;  %v9736_v16 = vld [vmem:[#allocation145_spill] sm:$0xff] }
 0x1fd   : > { %9733 = vst [vmem:[#allocation105_spill] sm:$0xff] %v6502_v26  ;;  %1765 = vrot.lane.b32.xlu1 %v6494_v20, %s5151_s22  ;;  %v2767_v63 = vadd.f32 %v6428_v1, %v2715_v56  ;;  %v618_v9 = vmul.f32 %v586_v49, %v6183_v39  ;;  %v2871_v29 = vmin.f32 %v2839_v58, 6.0  ;;  %v433_v61 = vadd.f32 %v9736_v16, %v9735_v4  ;;  %v9737_v39 = vld [vmem:[#allocation34_spill] sm:$0xff]  ;;  %v9772_v4 = vld [vmem:[#allocation127_spill] sm:$0xff] }
 0x1fe   : > { %2525 = vrot.lane.b32.xlu0 %v6120_v55, %s5154_s25  ;;  %v2768_v54 = vadd.f32 %v6428_v1, %v2716_v27  ;;  %v445_v51 = vadd.f32 %v444_v6, %v9737_v39  ;;  %v2904_v47 = vmul.f32 %v2872_v30, %v2776_v22  ;;  %v9784_v55 = vld [vmem:[#allocation144_spill] sm:$0xff] }
 0x1ff   : > { %v2799_v40 = vadd.f32 3.0, %v2767_v63  ;;  %v6522_v49 = vmul.f32 0.16666667, %v618_v9  ;;  %v2903_v1 = vmul.f32 %v2871_v29, %v2775_v3  ;;  %v507_v10 = vadd.f32 3.0, %v433_v61  ;;  %v6532_v22 = vpop.permute.xlu1 %1751 }
 0x200   : > { %v6511_v11 = vpop.permute.xlu0 %2251  ;;  %v2800_v25 = vadd.f32 3.0, %v2768_v54  ;;  %v530_v16 = vadd.f32 3.0, %v445_v51  ;;  %v6530_v37 = vmul.f32 0.16666667, %v2904_v47  ;;  %9740 = vst [vmem:[#allocation102_spill] sm:$0xff] %v6532_v22 }
 0x201   : > { %1165 = vrot.lane.b32.xlu1 %v9699_v62, %s5147_s17  ;;  %v2831_v2 = vmax.f32 %v2799_v40, 0.0  ;;  %9738 = vst [vmem:[#allocation42_spill] sm:$0xff] %v6522_v49  ;;  %v6540_v3 = vmul.f32 0.16666667, %v2903_v1  ;;  %v539_v29 = vmax.f32 %v507_v10, 0.0  ;;  %v9749_v10 = vld [vmem:[#allocation131_spill] sm:$0xff] }
 0x202   : > { %1759 = vrot.lane.b32.xlu0 %v5996_v7, %s5151_s22  ;;  %v2832_v35 = vmax.f32 %v2800_v25, 0.0  ;;  %9739 = vst [vmem:[#allocation100_spill] sm:$0xff] %v6530_v37 }
 0x203   : > { %v2863_v58 = vmin.f32 %v2831_v2, 6.0  ;;  %9744 = vst [vmem:[#allocation180_spill] sm:$0xff] %v6540_v3  ;;  %v562_v2 = vmax.f32 %v530_v16, 0.0  ;;  %v571_v16 = vmin.f32 %v539_v29, 6.0  ;;  %v1234_v29 = vsel %vm1207_vm3, %v9755_v0, %v9754_v14 }
 0x204   : > { %v6524_v27 = vpop.permute.xlu0 %2259  ;;  %v2864_v56 = vmin.f32 %v2832_v35, 6.0  ;;  %v842_v35 = vmul.f32 %v9698_v45, %v6404_v32 }
 0x205   : > { %1173 = vrot.lane.b32.xlu1 %v6285_v33, %s5147_s17  ;;  %v2895_v40 = vmul.f32 %v2863_v58, %v2767_v63  ;;  %v9747_v58 = vld [vmem:[#allocation125_spill] sm:$0xff] }
 0x206   : > { %1767 = vrot.lane.b32.xlu0 %v6522_v49, %s5151_s22  ;;  %v2896_v25 = vmul.f32 %v2864_v56, %v2768_v54  ;;  %v9746_v56 = vld [vmem:[#allocation130_spill] sm:$0xff] }
 0x207   : > { %v6538_v6 = vmul.f32 0.16666667, %v2895_v40  ;;  %v9748_v40 = vld [vmem:[#allocation128_spill] sm:$0xff] }
 0x208   : > { %v6534_v30 = vpop.permute.xlu0 %2243  ;;  %v6536_v9 = vmul.f32 0.16666667, %v2896_v25  ;;  %v980_v25 = vsel %vm953_vm1, %v9747_v58, %v9746_v56 }
 0x209   : > { %9741 = vst [vmem:[#allocation145_spill] sm:$0xff] %v6534_v30  ;;  %9743 = vst [vmem:[#allocation179_spill] sm:$0xff] %v6538_v6  ;;  %2011 = vrot.lane.b32.xlu1 %v6022_v57, %s5153_s24  ;;  %v3025_v63 = vpack.c.bf16 %v6540_v3, %v6538_v6  ;;  %v594_v6 = vmin.f32 %v562_v2, 6.0  ;;  %v9757_v2 = vld [vmem:[#allocation149_spill] sm:$0xff] }
 0x20a   : > { %9742 = vst [vmem:[#allocation178_spill] sm:$0xff] %v6536_v9  ;;  %2013 = vrot.lane.b32.xlu0 %v5996_v7, %s5153_s24  ;;  %v3026_v54 = vpack.c.bf16 %v6530_v37, %v6536_v9  ;;  %v755_v37 = vsel %vm728_vm2, %v9749_v10, %v9748_v40  ;;  %v9751_v9 = vld [vmem:[#allocation108_spill] sm:$0xff]  ;;  %v9779_v40 = vld [vmem:[#allocation147_spill] sm:$0xff] }
 0x20b   : > { %v874_v3 = vmul.f32 %v842_v35, %v755_v37  ;;  %v603_v37 = vmul.f32 %v571_v16, %v433_v61  ;;  %v9756_v35 = vld [vmem:[#allocation57_spill] sm:$0xff]  ;;  %v981_v30 = vsel %vm953_vm1, %v9780_v15, %v9779_v40 }
 0x20c   : > { %3061 = vmatprep.mubr.bf16.mxu0 %v3026_v54  ;;  %v6552_v1 = vpop.permute.xlu1 %2603  ;;  %v6554_v47 = vpop.permute.xlu0 %2505  ;;  %v9750_v54 = vld [vmem:[#allocation44_spill] sm:$0xff]  ;;  %v9765_v16 = vld [vmem:[#allocation17_spill] sm:$0xff] }
 0x20d   : > { %9745 = vst [vmem:[#allocation181_spill] sm:$0xff] %v6552_v1  ;;  %3062 = vmatmul.mubr.bf16.vlgmr.msra.gmra.mxu0 %v3025_v63  ;;  %2019 = vrot.lane.b32.xlu1 %v6494_v20, %s5153_s24  ;;  %v1064_v63 = vmul.f32 %v6016_v23, %v9750_v54  ;;  %v9785_v40 = vld [vmem:[#allocation137_spill] sm:$0xff] }
 0x20e   : > { %2021 = vrot.lane.b32.xlu0 %v6522_v49, %s5153_s24  ;;  %3344 = vmatpush1.bf16.msra.mxu0 %v9751_v9  ;;  %v1318_v9 = vmul.f32 %v9757_v2, %v9756_v35 }
 0x20f   : > { %3345 = vmatprep.subr.bf16.mxu0 %v9753_v21  ;;  %v1096_v36 = vmul.f32 %v1064_v63, %v980_v25  ;;  %v6588_v21 = vmul.f32 %v9759_v28, %v9758_v52  ;;  %v9761_v25 = vld [vmem:[#allocation114_spill] sm:$0xff]  ;;  %v626_v63 = vmul.f32 %v594_v6, %v445_v51  ;;  %v9767_v28 = vld [vmem:[#allocation51_spill] sm:$0xff]  ;;  %v1063_v51 = vmul.f32 %v6128_v34, %v9750_v54  ;;  %v9778_v54 = vld [vmem:[#allocation60_spill] sm:$0xff] }
 0x210   : > { %v6571_v59 = vpop.permute.xlu1 %1735  ;;  %v6573_v8 = vpop.permute.xlu0 %2513  ;;  %v1326_v41 = vmul.f32 %v9757_v2, %v9767_v28  ;;  %v9769_v6 = vld [vmem:[#allocation22_spill] sm:$0xff]  ;;  %v9775_v2 = vld [vmem:[#allocation163_spill] sm:$0xff]  ;;  %v6627_v56 = vmul.f32 %v9776_v31, %v9767_v28  ;;  %v6643_v28 = vmul.f32 %v9776_v31, %v9756_v35  ;;  %v9788_v35 = vld [vmem:[#allocation72_spill] sm:$0xff] }
 0x211   : > { %9752 = vst [vmem:[#allocation125_spill] sm:$0xff] %v6571_v59  ;;  %1419 = vrot.lane.b32.xlu1 %v9699_v62, %s5149_s19  ;;  %v1128_v18 = vadd.f32 %v1096_v36, %v874_v3  ;;  %9760 = vst [vmem:[#allocation131_spill] sm:$0xff] %v6588_v21  ;;  %v9762_v62 = vld [vmem:[#allocation43_spill] sm:$0xff]  ;;  %v6601_v36 = vmul.f32 %v9765_v16, %v9758_v52  ;;  %v1350_v3 = vmul.f32 %v1318_v9, %v1234_v29  ;;  %v9773_v16 = vld [vmem:[#allocation56_spill] sm:$0xff] }
 0x212   : > { %2267 = vrot.lane.b32.xlu0 %v5996_v7, %s5152_s23  ;;  %3346 = vmatpush1.bf16.msra.mxu0 %v9761_v25  ;;  %v850_v39 = vmul.f32 %v9698_v45, %v9762_v62  ;;  %v849_v13 = vmul.f32 %v9697_v46, %v9762_v62  ;;  %v9768_v45 = vld [vmem:[#allocation40_spill] sm:$0xff]  ;;  %v9774_v9 = vld [vmem:[#allocation154_spill] sm:$0xff]  ;;  %v6623_v24 = vmul.f32 %v9775_v2, %v9773_v16 }
 0x213   : > { %9766 = vst [vmem:[#allocation182_spill] sm:$0xff] %v6601_v36  ;;  %v6611_v25 = vmul.f32 %v9769_v6, %v9768_v45  ;;  %v9771_v62 = vld [vmem:[#allocation132_spill] sm:$0xff]  ;;  %v6619_v29 = vmul.f32 %v9774_v9, %v9773_v16  ;;  %v6631_v6 = vmul.f32 0.16666667, %v603_v37  ;;  %v1382_v45 = vadd.f32 %v1350_v3, %v1128_v18  ;;  %v9787_v3 = vld [vmem:[#allocation67_spill] sm:$0xff]  ;;  %v9789_v36 = vld [vmem:[#allocation166_spill] sm:$0xff] }
 0x214   : > { %v6595_v14 = vpop.permute.xlu1 %1737  ;;  %v6597_v61 = vpop.permute.xlu0 %2759  ;;  %v1488_v52 = vsel %vm1461_vm4, %v9772_v4, %v9771_v62  ;;  %v1572_v62 = vmul.f32 %v9774_v9, %v9778_v54  ;;  %v6639_v16 = vmul.f32 0.16666667, %v626_v63  ;;  %v756_v18 = vsel %vm728_vm2, %v9785_v40, %v9784_v55  ;;  %v9786_v63 = vld [vmem:[#allocation74_spill] sm:$0xff]  ;;  %v9793_v55 = vld [vmem:[#allocation152_spill] sm:$0xff] }
 0x215   : > { %9763 = vst [vmem:[#allocation133_spill] sm:$0xff] %v6595_v14  ;;  %9764 = vst [vmem:[#allocation149_spill] sm:$0xff] %v6597_v61  ;;  %1427 = vrot.lane.b32.xlu1 %v6285_v33, %s5149_s19  ;;  %v6659_v31 = vmul.f32 %v9787_v3, %v9786_v63  ;;  %v1818_v63 = vsel %vm1795_vm5, %v6515_v50, %v6532_v22  ;;  %v9795_v61 = vld [vmem:[#allocation78_spill] sm:$0xff]  ;;  %v9797_v59 = vld [vmem:[#allocation136_spill] sm:$0xff]  ;;  %v882_v50 = vmul.f32 %v850_v39, %v756_v18 }
 0x216   : > { %9770 = vst [vmem:[#allocation183_spill] sm:$0xff] %v6611_v25  ;;  %2275 = vrot.lane.b32.xlu0 %v6522_v49, %s5152_s23  ;;  %9777 = vst [vmem:[#allocation127_spill] sm:$0xff] %v6631_v6  ;;  %v9782_v25 = vld [vmem:[#allocation49_spill] sm:$0xff]  ;;  %v1604_v26 = vmul.f32 %v1572_v62, %v1488_v52  ;;  %v6669_v62 = vmul.f32 %v9775_v2, %v9778_v54  ;;  %v9798_v21 = vld [vmem:[#allocation134_spill] sm:$0xff]  ;;  %v984_v39 = vsel %vm953_vm1, %v6426_v19, %v9747_v58 }
 0x217   : > { %9781 = vst [vmem:[#allocation154_spill] sm:$0xff] %v6639_v16  ;;  %v1072_v48 = vmul.f32 %v6016_v23, %v9782_v25  ;;  %v1071_v37 = vmul.f32 %v6128_v34, %v9782_v25  ;;  %v6663_v23 = vmul.f32 %v9789_v36, %v9788_v35  ;;  %v9791_v52 = vld [vmem:[#allocation65_spill] sm:$0xff]  ;;  %v9792_v25 = vld [vmem:[#allocation66_spill] sm:$0xff]  ;;  %v1235_v22 = vsel %vm1207_vm3, %v9798_v21, %v9797_v59 }
 0x218   : > { %v6649_v6 = vpop.permute.xlu1 %1999  ;;  %v6651_v9 = vpop.permute.xlu0 %2499  ;;  %v1636_v54 = vadd.f32 %v1604_v26, %v1382_v45  ;;  %v9800_v16 = vld [vmem:[#allocation161_spill] sm:$0xff]  ;;  %v1358_v58 = vmul.f32 %v1326_v41, %v1235_v22  ;;  %v1095_v19 = vmul.f32 %v1063_v51, %v984_v39  ;;  %v2072_v41 = vsel %vm2049_vm6, %v6456_v53, %v6487_v42 }
 0x219   : > { %9783 = vst [vmem:[#allocation163_spill] sm:$0xff] %v6651_v9  ;;  %9790 = vst [vmem:[#allocation160_spill] sm:$0xff] %v6663_v23  ;;  %2265 = vrot.lane.b32.xlu1 %v6022_v57, %s5152_s23  ;;  %v1104_v34 = vmul.f32 %v1072_v48, %v981_v30  ;;  %v1684_v9 = vmul.f32 %v9792_v25, %v9791_v52  ;;  %v985_v48 = vsel %vm953_vm1, %v9793_v55, %v9780_v15  ;;  %v9794_v30 = vld [vmem:[#allocation69_spill] sm:$0xff] }
 0x21a   : > { %2521 = vrot.lane.b32.xlu0 %v5996_v7, %s5154_s25  ;;  %v1906_v2 = vmul.f32 %v9789_v36, %v9794_v30  ;;  %v2414_v52 = vmul.f32 %v9796_v43, %v9795_v61  ;;  %v9799_v23 = vld [vmem:[#allocation61_spill] sm:$0xff]  ;;  %v6697_v15 = vmul.f32 %v9800_v16, %v9794_v30  ;;  %v9802_v36 = vld [vmem:[#allocation146_spill] sm:$0xff]  ;;  %v841_v61 = vmul.f32 %v9697_v46, %v6404_v32 }
 0x21b   : > { %v6693_v7 = vmul.f32 %v9792_v25, %v9799_v23  ;;  %v760_v45 = vsel %vm728_vm2, %v9802_v36, %v9785_v40  ;;  %v9803_v23 = vld [vmem:[#allocation71_spill] sm:$0xff]  ;;  %v1136_v30 = vadd.f32 %v1104_v34, %v882_v50  ;;  %v1103_v25 = vmul.f32 %v1071_v37, %v985_v48  ;;  %v225_v50 = vld [vmem:[%s9061_s1 + $0xd0] sm:$0xff]  ;;  %v9807_v34 = vld [vmem:[#allocation14_spill] sm:$0xff] }
 0x21c   : > { %v6699_v55 = vpop.permute.xlu1 %2007  ;;  %v679_v26 = vpop.permute.xlu0 %678  ;;  %v1938_v18 = vmul.f32 %v1906_v2, %v1818_v63  ;;  %v6711_v59 = vmul.f32 %v9787_v3, %v9803_v23  ;;  %v6719_v40 = vmul.f32 %v9800_v16, %v9788_v35  ;;  %v1716_v63 = vadd.f32 %v1684_v9, %v1636_v54  ;;  %v9804_v2 = vld [vmem:[#allocation75_spill] sm:$0xff]  ;;  %v9805_v23 = vld [vmem:[#allocation169_spill] sm:$0xff] }
 0x21d   : > { %9801 = vst [vmem:[#allocation139_spill] sm:$0xff] %v6699_v55  ;;  %2273 = vrot.lane.b32.xlu1 %v6494_v20, %s5152_s23  ;;  %v6725_v36 = vmul.f32 %v9805_v23, %v9804_v2  ;;  %v9806_v37 = vld [vmem:[#allocation47_spill] sm:$0xff]  ;;  %v881_v48 = vmul.f32 %v849_v13, %v760_v45  ;;  %v1239_v16 = vsel %vm1207_vm3, %v6500_v44, %v9798_v21  ;;  %v9811_v35 = vld [vmem:[#allocation141_spill] sm:$0xff] }
 0x21e   : > { %2529 = vrot.lane.b32.xlu0 %v6522_v49, %s5154_s25  ;;  %v1049_v46 = vmul.f32 %v9807_v34, %v9806_v37  ;;  %v9810_v9 = vld [vmem:[#allocation151_spill] sm:$0xff]  ;;  %v759_v51 = vsel %vm728_vm2, %v6391_v38, %v9749_v10  ;;  %v9812_v21 = vld [vmem:[#allocation73_spill] sm:$0xff]  ;;  %v1970_v39 = vadd.f32 %v1938_v18, %v1716_v63  ;;  %v1390_v49 = vadd.f32 %v1358_v58, %v1136_v30 }
 0x21f   : > { %v1489_v13 = vsel %vm1461_vm4, %v9811_v35, %v9810_v9  ;;  %v2160_v45 = vmul.f32 %v9805_v23, %v9812_v21  ;;  %v9813_v44 = vld [vmem:[#allocation143_spill] sm:$0xff]  ;;  %v1135_v42 = vadd.f32 %v1103_v25, %v881_v48  ;;  %v873_v9 = vmul.f32 %v841_v61, %v759_v51  ;;  %v9815_v61 = vld [vmem:[#allocation109_spill] sm:$0xff]  ;;  %v9817_v23 = vld [vmem:[#allocation4_spill] sm:$0xff] }
 0x220   : > { %v6740_v22 = vpop.permute.xlu1 %1991  ;;  %v6742_v54 = vpop.permute.xlu0 %686  ;;  %v1238_v3 = vsel %vm1207_vm3, %v9813_v44, %v9755_v0  ;;  %v1357_v34 = vmul.f32 %v6627_v56, %v1239_v16  ;;  %v2326_v10 = vsel %vm2303_vm7, %v6511_v11, %v6524_v27  ;;  %v9814_v18 = vld [vmem:[#allocation99_spill] sm:$0xff]  ;;  %v227_v0 = vld [vmem:[%s9061_s1 + $0xe0] sm:$0xff]  ;;  %v1612_v25 = vmul.f32 %v6619_v29, %v1489_v13  ;;  %v9818_v13 = vld [vmem:[#allocation101_spill] sm:$0xff] }
 0x221   : > { %9808 = vst [vmem:[#allocation137_spill] sm:$0xff] %v6740_v22  ;;  %9809 = vst [vmem:[#allocation74_spill] sm:$0xff] %v6742_v54  ;;  %2519 = vrot.lane.b32.xlu1 %v6022_v57, %s5154_s25  ;;  %v2192_v32 = vmul.f32 %v2160_v45, %v2072_v41  ;;  %v749_v63 = vsel %vm728_vm2, %v9814_v18, %v679_v26  ;;  %v1493_v56 = vsel %vm1461_vm4, %v9815_v61, %v9811_v35  ;;  %v9816_v58 = vld [vmem:[#allocation87_spill] sm:$0xff] }
 0x222   : > { %3139 = vperm.xlu0 %4984, %v225_v50   ;;  %v1127_v30 = vadd.f32 %v1095_v19, %v873_v9  ;;  %v827_v50 = vmul.f32 %v9817_v23, %v9816_v58  ;;  %v1492_v41 = vsel %vm1461_vm4, %v6472_v60, %v9772_v4  ;;  %v2580_v29 = vsel %vm2557_vm8, %v6554_v47, %v6573_v8  ;;  %v9819_v61 = vld [vmem:[#allocation15_spill] sm:$0xff] }
 0x223   : > { %v2224_v51 = vadd.f32 %v2192_v32, %v1970_v39  ;;  %v2446_v35 = vmul.f32 %v2414_v52, %v2326_v10  ;;  %v2668_v9 = vmul.f32 %v6248_v17, %v6552_v1  ;;  %v1349_v32 = vmul.f32 %v6643_v28, %v1238_v3  ;;  %v229_v52 = vld [vmem:[%s9061_s1 + $0xf0] sm:$0xff]  ;;  %v9870_v38 = vld [vmem:[#allocation35_spill] sm:$0xff] }
 0x224   : > { %v2254_v48 = vpop.permute.xlu1 %2253  ;;  %v906_v16 = vpop.permute.xlu0 %905  ;;  %v859_v45 = vmul.f32 %v827_v50, %v749_v63  ;;  %v1389_v4 = vadd.f32 %v1357_v34, %v1135_v42  ;;  %v745_v39 = vsel %vm728_vm2, %v679_v26, %v6742_v54  ;;  %v1644_v10 = vadd.f32 %v1612_v25, %v1390_v49  ;;  %v9820_v63 = vld [vmem:[#allocation5_spill] sm:$0xff]  ;;  %v9823_v25 = vld [vmem:[#allocation162_spill] sm:$0xff] }
 0x225   : > { %v974_v19 = vsel %vm953_vm1, %v9818_v13, %v906_v16  ;;  %2527 = vrot.lane.b32.xlu1 %v6494_v20, %s5154_s25  ;;  %v1050_v13 = vmul.f32 %v9819_v61, %v9806_v37  ;;  %v2700_v60 = vmul.f32 %v2668_v9, %v2580_v29  ;;  %v1611_v42 = vmul.f32 %v6623_v24, %v1493_v56  ;;  %v9824_v24 = vld [vmem:[#allocation174_spill] sm:$0xff] }
 0x226   : > { %v1081_v18 = vmul.f32 %v1049_v46, %v974_v19  ;;  %3149 = vperm.xlu0 %4984, %v227_v0   ;;  %v828_v46 = vmul.f32 %v9820_v63, %v9816_v58  ;;  %v1381_v3 = vadd.f32 %v1349_v32, %v1127_v30  ;;  %v1603_v26 = vmul.f32 %v6669_v62, %v1492_v41  ;;  %v9826_v32 = vld [vmem:[#allocation170_spill] sm:$0xff] }
 0x227   : > { %v2478_v49 = vadd.f32 %v2446_v35, %v2224_v51  ;;  %v1823_v29 = vsel %vm1795_vm5, %v6595_v14, %v9823_v25  ;;  %v1819_v62 = vsel %vm1795_vm5, %v9823_v25, %v9824_v24  ;;  %v1643_v56 = vadd.f32 %v1611_v42, %v1389_v4  ;;  %v231_v51 = vld [vmem:[%s9061_s1 + $0x100] sm:$0xff]  ;;  %v9835_v14 = vld [vmem:[#allocation173_spill] sm:$0xff] }
 0x228   : > { %v1113_v0 = vadd.f32 %v1081_v18, %v859_v45  ;;  %v6804_v50 = vpop.permute.xlu1 %2261  ;;  %v6806_v28 = vpop.permute.xlu0 %913  ;;  %v860_v19 = vmul.f32 %v828_v46, %v745_v39  ;;  %v2167_v30 = vmul.f32 %v6170_v5, %v9804_v2  ;;  %v2077_v45 = vsel %vm2049_vm6, %v6740_v22, %v6649_v6  ;;  %v9828_v46 = vld [vmem:[#allocation103_spill] sm:$0xff] }
 0x229   : > { %9821 = vst [vmem:[#allocation166_spill] sm:$0xff] %v6804_v50  ;;  %9822 = vst [vmem:[#allocation65_spill] sm:$0xff] %v6806_v28  ;;  %v970_v34 = vsel %vm953_vm1, %v906_v16, %v6806_v28  ;;  %1761 = vrot.lane.b32.xlu1 %v6285_v33, %s5151_s22  ;;  %v9825_v16 = vld [vmem:[#allocation79_spill] sm:$0xff]  ;;  %v2732_v35 = vadd.f32 %v2700_v60, %v2478_v49  ;;  %v2073_v60 = vsel %vm2049_vm6, %v6649_v6, %v6699_v55  ;;  %v9830_v49 = vld [vmem:[#allocation160_spill] sm:$0xff] }
 0x22a   : > { %v1082_v9 = vmul.f32 %v1050_v13, %v970_v34  ;;  %3159 = vperm.xlu0 %4984, %v229_v52   ;;  %v2422_v41 = vmul.f32 %v9796_v43, %v9825_v16  ;;  %v2421_v4 = vmul.f32 %v9826_v32, %v9825_v16  ;;  %v1724_v52 = vadd.f32 %v6659_v31, %v1644_v10  ;;  %v9829_v34 = vld [vmem:[#allocation154_spill] sm:$0xff]  ;;  %v9915_v16 = vld [vmem:[#allocation91_spill] sm:$0xff] }
 0x22b   : > { %v1945_v43 = vmul.f32 %v6719_v40, %v1823_v29  ;;  %v1946_v25 = vmul.f32 %v9830_v49, %v1819_v62  ;;  %v9831_v40 = vld [vmem:[#allocation131_spill] sm:$0xff]  ;;  %v2199_v22 = vmul.f32 %v2167_v30, %v2077_v45  ;;  %v2327_v62 = vsel %vm2303_vm7, %v2254_v48, %v6804_v50  ;;  %v9839_v45 = vld [vmem:[#allocation182_spill] sm:$0xff] }
 0x22c   : > { %v1114_v18 = vadd.f32 %v1082_v9, %v860_v19  ;;  %v6836_v39 = vpop.permute.xlu1 %2245  ;;  %v1160_v13 = vpop.permute.xlu0 %1159  ;;  %v1635_v19 = vadd.f32 %v1603_v26, %v1381_v3  ;;  %v9832_v29 = vld [vmem:[#allocation107_spill] sm:$0xff]  ;;  %v9833_v9 = vld [vmem:[#allocation125_spill] sm:$0xff]  ;;  %v2200_v3 = vmul.f32 %v6725_v36, %v2073_v60  ;;  %v2454_v30 = vmul.f32 %v2422_v41, %v2327_v62 }
 0x22d   : > { %9827 = vst [vmem:[#allocation171_spill] sm:$0xff] %v6836_v39  ;;  %v1228_v42 = vsel %vm1207_vm3, %v9828_v46, %v1160_v13  ;;  %1769 = vrot.lane.b32.xlu1 %v9829_v34, %s5151_s22  ;;  %v2331_v31 = vsel %vm2303_vm7, %v6836_v39, %v2254_v48  ;;  %v1822_v6 = vsel %vm1795_vm5, %v9833_v9, %v9832_v29  ;;  %v9834_v39 = vld [vmem:[#allocation176_spill] sm:$0xff]  ;;  %v9914_v50 = vld [vmem:[#allocation147_spill] sm:$0xff] }
 0x22e   : > { %v1335_v10 = vmul.f32 %v9831_v40, %v1228_v42  ;;  %3169 = vperm.xlu0 %4984, %v231_v51   ;;  %v1723_v46 = vadd.f32 %v6711_v59, %v1643_v56  ;;  %v2675_v42 = vmul.f32 %v9835_v14, %v9834_v39  ;;  %v9837_v40 = vld [vmem:[#allocation149_spill] sm:$0xff]  ;;  %v2453_v9 = vmul.f32 %v2421_v4, %v2331_v31  ;;  %v9838_v59 = vld [vmem:[#allocation163_spill] sm:$0xff] }
 0x22f   : > { %v6868_v44 = vadd.f32 %v9837_v40, %v2732_v35  ;;  %v1978_v48 = vadd.f32 %v1946_v25, %v1724_v52  ;;  %v1715_v4 = vadd.f32 %v6693_v7, %v1635_v19  ;;  %v2159_v7 = vmul.f32 %v6170_v5, %v9812_v21  ;;  %v9843_v19 = vld [vmem:[#allocation98_spill] sm:$0xff] }
 0x230   : > { %v1367_v26 = vadd.f32 %v1335_v10, %v1113_v0  ;;  %v2508_v49 = vpop.permute.xlu1 %2507  ;;  %v6865_v51 = vpop.permute.xlu0 %1167  ;;  %v1977_v29 = vadd.f32 %v1945_v43, %v1723_v46  ;;  %v1937_v0 = vmul.f32 %v6697_v15, %v1822_v6  ;;  %v9840_v43 = vld [vmem:[#allocation159_spill] sm:$0xff]  ;;  %v2676_v10 = vmul.f32 %v6248_v17, %v9834_v39  ;;  %v9880_v39 = vld [vmem:[#allocation90_spill] sm:$0xff] }
 0x231   : > { %9836 = vst [vmem:[#allocation134_spill] sm:$0xff] %v6865_v51  ;;  %v2585_v56 = vsel %vm2557_vm8, %v9838_v59, %v2508_v49  ;;  %v1224_v36 = vsel %vm1207_vm3, %v1160_v13, %v6865_v51  ;;  %2015 = vrot.lane.b32.xlu1 %v6285_v33, %s5153_s24  ;;  %v9841_v13 = vld [vmem:[#allocation105_spill] sm:$0xff]  ;;  %v2232_v25 = vadd.f32 %v2200_v3, %v1978_v48  ;;  %v2816_v46 = vadd.f32 3.0, %v6868_v44  ;;  %v9847_v48 = vld [vmem:[#allocation23_spill] sm:$0xff] }
 0x232   : > { %v1336_v35 = vmul.f32 %v9839_v45, %v1224_v36  ;;  %694 = vrot.lane.b32.xlu0 %v9840_v43, %s5148_s18  ;;  %v2231_v60 = vadd.f32 %v2199_v22, %v1977_v29  ;;  %v2707_v31 = vmul.f32 %v2675_v42, %v2585_v56  ;;  %v2076_v52 = vsel %vm2049_vm6, %v9841_v13, %v6456_v53  ;;  %v9844_v42 = vld [vmem:[#allocation183_spill] sm:$0xff]  ;;  %v9846_v36 = vld [vmem:[#allocation40_spill] sm:$0xff]  ;;  %v9848_v45 = vld [vmem:[#allocation145_spill] sm:$0xff] }
 0x233   : > { %v1969_v53 = vadd.f32 %v1937_v0, %v1715_v4  ;;  %v9845_v56 = vld [vmem:[#allocation127_spill] sm:$0xff]  ;;  %v2191_v5 = vmul.f32 %v2159_v7, %v2076_v52  ;;  %v2848_v4 = vmax.f32 %v2816_v46, 0.0  ;;  %v9865_v59 = vld [vmem:[#allocation153_spill] sm:$0xff] }
 0x234   : > { %v1368_v15 = vadd.f32 %v1336_v35, %v1114_v18  ;;  %v6889_v41 = vpop.permute.xlu1 %2515  ;;  %v1414_v6 = vpop.permute.xlu0 %1413  ;;  %v2485_v22 = vadd.f32 %v2453_v9, %v2231_v60  ;;  %v2486_v18 = vadd.f32 %v2454_v30, %v2232_v25  ;;  %v2330_v35 = vsel %vm2303_vm7, %v9848_v45, %v6511_v11 }
 0x235   : > { %9842 = vst [vmem:[#allocation61_spill] sm:$0xff] %v6889_v41  ;;  %v2581_v17 = vsel %vm2557_vm8, %v2508_v49, %v6889_v41  ;;  %v1482_v62 = vsel %vm1461_vm4, %v9843_v19, %v1414_v6  ;;  %2023 = vrot.lane.b32.xlu1 %v9829_v34, %s5153_s24  ;;  %v1558_v49 = vmul.f32 %v9847_v48, %v9846_v36  ;;  %v9876_v36 = vld [vmem:[#allocation48_spill] sm:$0xff] }
 0x236   : > { %v2708_v3 = vmul.f32 %v2676_v10, %v2581_v17  ;;  %v1589_v29 = vmul.f32 %v9844_v42, %v1482_v62  ;;  %702 = vrot.lane.b32.xlu0 %v9845_v56, %s5148_s18  ;;  %v2739_v9 = vadd.f32 %v2707_v31, %v2485_v22  ;;  %v9851_v10 = vld [vmem:[#allocation78_spill] sm:$0xff]  ;;  %v2223_v25 = vadd.f32 %v2191_v5, %v1969_v53  ;;  %v9854_v5 = vld [vmem:[#allocation156_spill] sm:$0xff] }
 0x237   : > { %v2413_v52 = vmul.f32 %v9826_v32, %v9851_v10  ;;  %v2667_v32 = vmul.f32 %v9835_v14, %v6552_v1 }
 0x238   : > { %v2740_v60 = vadd.f32 %v2708_v3, %v2486_v18  ;;  %v6911_v19 = vadd.f32 %v1589_v29, %v1367_v26  ;;  %v6913_v0 = vpop.permute.xlu1 %2764  ;;  %v6915_v30 = vpop.permute.xlu0 %1421  ;;  %v2880_v18 = vmin.f32 %v2848_v4, 6.0 }
 0x239   : > { %9849 = vst [vmem:[#allocation161_spill] sm:$0xff] %v6913_v0  ;;  %9850 = vst [vmem:[#allocation71_spill] sm:$0xff] %v6915_v30  ;;  %v1478_v31 = vsel %vm1461_vm4, %v1414_v6, %v6915_v30  ;;  %2269 = vrot.lane.b32.xlu1 %v6285_v33, %s5152_s23  ;;  %v2791_v11 = vadd.f32 %v6913_v0, %v2739_v9  ;;  %v2445_v46 = vmul.f32 %v2413_v52, %v2330_v35 }
 0x23a   : > { %v1590_v26 = vmul.f32 %v1558_v49, %v1478_v31  ;;  %921 = vrot.lane.b32.xlu0 %v9840_v43, %s5150_s20  ;;  %v2792_v7 = vadd.f32 %v6913_v0, %v2740_v60 }
 0x23b   : > { %v2823_v3 = vadd.f32 3.0, %v2791_v11  ;;  %v2477_v42 = vadd.f32 %v2445_v46, %v2223_v25  ;;  %v9857_v46 = vld [vmem:[#allocation84_spill] sm:$0xff] }
 0x23c   : > { %v6930_v22 = vadd.f32 %v1590_v26, %v1368_v15  ;;  %v6932_v17 = vpop.permute.xlu1 %2497  ;;  %v683_v6 = vpop.permute.xlu0 %682  ;;  %v2824_v62 = vadd.f32 3.0, %v2792_v7  ;;  %v9853_v15 = vld [vmem:[#allocation32_spill] sm:$0xff] }
 0x23d   : > { %9852 = vst [vmem:[#allocation169_spill] sm:$0xff] %v6932_v17  ;;  %v2584_v53 = vsel %vm2557_vm8, %v6932_v17, %v6554_v47  ;;  %2277 = vrot.lane.b32.xlu1 %v9829_v34, %s5152_s23  ;;  %v6944_v9 = vadd.f32 %v9854_v5, %v9853_v15  ;;  %v2912_v47 = vmul.f32 %v2880_v18, %v6868_v44  ;;  %v2855_v52 = vmax.f32 %v2823_v3, 0.0  ;;  %v9859_v44 = vld [vmem:[#allocation44_spill] sm:$0xff]  ;;  %v9860_v18 = vld [vmem:[#allocation14_spill] sm:$0xff] }
 0x23e   : > { %v2699_v29 = vmul.f32 %v2667_v32, %v2584_v53  ;;  %929 = vrot.lane.b32.xlu0 %v9845_v56, %s5150_s20  ;;  %v2856_v14 = vmax.f32 %v2824_v62, 0.0  ;;  %v843_v32 = vmul.f32 %v9817_v23, %v9857_v46  ;;  %v9858_v62 = vld [vmem:[#allocation128_spill] sm:$0xff]  ;;  %v1065_v3 = vmul.f32 %v9860_v18, %v9859_v44 }
 0x23f   : > { %v523_v26 = vadd.f32 3.0, %v6944_v9  ;;  %v751_v53 = vsel %vm728_vm2, %v9858_v62, %v683_v6  ;;  %v1066_v62 = vmul.f32 %v9819_v61, %v9859_v44  ;;  %v835_v44 = vmul.f32 %v9817_v23, %v9870_v38 }
 0x240   : > { %v2731_v49 = vadd.f32 %v2699_v29, %v2477_v42  ;;  %v6946_v35 = vpop.permute.xlu1 %3127  ;;  %v6948_v60 = vpop.permute.xlu0 %690  ;;  %v2888_v4 = vmin.f32 %v2856_v14, 6.0  ;;  %v6964_v14 = vmul.f32 0.16666667, %v2912_v47  ;;  %v875_v0 = vmul.f32 %v843_v32, %v751_v53  ;;  %v9866_v32 = vld [vmem:[#allocation2_spill] sm:$0xff]  ;;  %v9867_v53 = vld [vmem:[#allocation155_spill] sm:$0xff] }
 0x241   : > { %9855 = vst [vmem:[#allocation141_spill] sm:$0xff] %v6946_v35  ;;  %9856 = vst [vmem:[#allocation73_spill] sm:$0xff] %v6948_v60  ;;  %2523 = vrot.lane.b32.xlu1 %v6285_v33, %s5154_s25  ;;  %v555_v45 = vmax.f32 %v523_v26, 0.0 }
 0x242   : > { %1175 = vrot.lane.b32.xlu0 %v9840_v43, %s5147_s17  ;;  %v2920_v31 = vmul.f32 %v2888_v4, %v2792_v7  ;;  %v2783_v25 = vadd.f32 %v9837_v40, %v2731_v49  ;;  %9861 = vst [vmem:[#allocation99_spill] sm:$0xff] %v6964_v14  ;;  %v2887_v49 = vmin.f32 %v2855_v52, 6.0  ;;  %v9863_v4 = vld [vmem:[#allocation130_spill] sm:$0xff]  ;;  %v226_v52 = vld [vmem:[%s9061_s1 + $0xd8] sm:$0xff] }
 0x244   : > { %v681_v42 = vpop.permute.xlu1 %680  ;;  %v910_v29 = vpop.permute.xlu0 %909  ;;  %v6966_v5 = vmul.f32 0.16666667, %v2920_v31  ;;  %v2815_v7 = vadd.f32 3.0, %v2783_v25  ;;  %v2919_v26 = vmul.f32 %v2887_v49, %v2791_v11  ;;  %v228_v11 = vld [vmem:[%s9061_s1 + $0xe8] sm:$0xff] }
 0x245   : > { %v976_v40 = vsel %vm953_vm1, %v9863_v4, %v910_v29  ;;  %2531 = vrot.lane.b32.xlu1 %v9829_v34, %s5154_s25  ;;  %v9864_v4 = vld [vmem:[#allocation39_spill] sm:$0xff] }
 0x246   : > { %9862 = vst [vmem:[#allocation4_spill] sm:$0xff] %v6966_v5  ;;  %v1097_v35 = vmul.f32 %v1065_v3, %v976_v40  ;;  %1183 = vrot.lane.b32.xlu0 %v9845_v56, %s5147_s17  ;;  %v3028_v47 = vpack.c.bf16 %v6966_v5, %v6964_v14  ;;  %v2847_v31 = vmax.f32 %v2815_v7, 0.0  ;;  %v6984_v17 = vadd.f32 %v9865_v59, %v9864_v4  ;;  %v9872_v49 = vld [vmem:[#allocation3_spill] sm:$0xff] }
 0x247   : > { %v747_v40 = vsel %vm728_vm2, %v683_v6, %v6948_v60  ;;  %v6991_v3 = vrot.slane %v9867_v53, %v9866_v32  ;;  %v844_v5 = vmul.f32 %v9820_v63, %v9857_v46  ;;  %v836_v6 = vmul.f32 %v9820_v63, %v9870_v38 }
 0x248   : > { %v6995_v14 = vadd.f32 %v1097_v35, %v875_v0  ;;  %v6997_v13 = vpop.permute.xlu1 %688  ;;  %v6999_v7 = vpop.permute.xlu0 %917  ;;  %3069 = vmatprep.mubr.bf16.mxu0 %v3028_v47  ;;  %v2879_v59 = vmin.f32 %v2847_v31, 6.0  ;;  %v9871_v0 = vld [vmem:[#allocation36_spill] sm:$0xff]  ;;  %v7017_v47 = vrot.slane %v9867_v53, %v9872_v49 }
 0x249   : > { %9868 = vst [vmem:[#allocation101_spill] sm:$0xff] %v6997_v13  ;;  %9869 = vst [vmem:[#allocation15_spill] sm:$0xff] %v6999_v7  ;;  %v972_v60 = vsel %vm953_vm1, %v910_v29, %v6999_v7  ;;  %3144 = vperm.xlu1 %4985, %v226_v52   ;;  %v1057_v35 = vmul.f32 %v9860_v18, %v9871_v0  ;;  %v876_v46 = vmul.f32 %v844_v5, %v747_v40  ;;  %v9873_v7 = vld [vmem:[#allocation121_spill] sm:$0xff] }
 0x24a   : > { %v1098_v30 = vmul.f32 %v1066_v62, %v972_v60  ;;  %1429 = vrot.lane.b32.xlu0 %v9840_v43, %s5149_s19  ;;  %v2911_v31 = vmul.f32 %v2879_v59, %v2783_v25  ;;  %v515_v29 = vadd.f32 3.0, %v6984_v17  ;;  %v587_v52 = vmin.f32 %v555_v45, 6.0  ;;  %v9874_v60 = vld [vmem:[#allocation37_spill] sm:$0xff]  ;;  %v9875_v62 = vld [vmem:[#allocation64_spill] sm:$0xff]  ;;  %v9879_v59 = vld [vmem:[#allocation123_spill] sm:$0xff] }
 0x24b   : > { %v750_v5 = vsel %vm728_vm2, %v9873_v7, %v681_v42  ;;  %v1669_v40 = vmul.f32 %v9875_v62, %v9874_v60  ;;  %v1891_v51 = vmul.f32 %v6991_v3, %v9876_v36  ;;  %v7031_v25 = vmul.f32 0.16666667, %v2919_v26 }
 0x24c   : > { %v7025_v43 = vadd.f32 %v1098_v30, %v876_v46  ;;  %v908_v38 = vpop.permute.xlu1 %907  ;;  %v1756_v41 = vpop.permute.xlu0 %1755  ;;  %v7029_v53 = vmul.f32 0.16666667, %v2911_v31  ;;  %v1058_v46 = vmul.f32 %v9819_v61, %v9871_v0  ;;  %v867_v60 = vmul.f32 %v835_v44, %v750_v5 }
 0x24d   : > { %9878 = vst [vmem:[#allocation162_spill] sm:$0xff] %v7031_v25  ;;  %v975_v45 = vsel %vm953_vm1, %v9879_v59, %v908_v38  ;;  %v1701_v7 = vadd.f32 %v1669_v40, %v6911_v19  ;;  %v1812_v30 = vsel %vm1795_vm5, %v9880_v39, %v1756_v41  ;;  %3154 = vperm.xlu1 %4985, %v228_v11   ;;  %v230_v19 = vld [vmem:[%s9061_s1 + $0xf8] sm:$0xff]  ;;  %v9882_v59 = vld [vmem:[#allocation55_spill] sm:$0xff]  ;;  %v547_v11 = vmax.f32 %v515_v29, 0.0 }
 0x24e   : > { %9877 = vst [vmem:[#allocation5_spill] sm:$0xff] %v7029_v53  ;;  %v1089_v28 = vmul.f32 %v1057_v35, %v975_v45  ;;  %v1923_v31 = vmul.f32 %v1891_v51, %v1812_v30  ;;  %1437 = vrot.lane.b32.xlu0 %v9845_v56, %s5149_s19  ;;  %v3027_v26 = vpack.c.bf16 %v7031_v25, %v7029_v53  ;;  %v9881_v40 = vld [vmem:[#allocation33_spill] sm:$0xff]  ;;  %v9884_v45 = vld [vmem:[#allocation126_spill] sm:$0xff] }
 0x24f   : > { %v7051_v39 = vadd.f32 %v9882_v59, %v9881_v40  ;;  %v619_v0 = vmul.f32 %v587_v52, %v6944_v9  ;;  %v746_v51 = vsel %vm728_vm2, %v681_v42, %v6997_v13  ;;  %v1670_v30 = vmul.f32 %v9875_v62, %v9884_v45  ;;  %v9888_v53 = vld [vmem:[#allocation54_spill] sm:$0xff]  ;;  %v9913_v13 = vld [vmem:[#allocation59_spill] sm:$0xff] }
 0x250   : > { %v1121_v44 = vadd.f32 %v1089_v28, %v867_v60  ;;  %v7057_v35 = vadd.f32 %v1923_v31, %v1701_v7  ;;  %v7059_v5 = vpop.permute.xlu1 %915  ;;  %v1892_v25 = vmul.f32 %v7017_v47, %v9876_v36  ;;  %v7065_v40 = vpop.permute.xlu0 %1763  ;;  %3070 = vmatmul.mubr.bf16.gmra.mxu0 %v3027_v26  ;;  %v9886_v42 = vmov 0   ;;  %v9887_v31 = vld [vmem:[#allocation42_spill] sm:$0xff]  ;;  %v232_v26 = vld [vmem:[%s9061_s1 + $0x108] sm:$0xff] }
 0x251   : > { %9883 = vst [vmem:[#allocation174_spill] sm:$0xff] %v7059_v5  ;;  %9885 = vst [vmem:[#allocation170_spill] sm:$0xff] %v7065_v40  ;;  %v971_v9 = vsel %vm953_vm1, %v908_v38, %v7059_v5  ;;  %v1808_v28 = vsel %vm1795_vm5, %v1756_v41, %v7065_v40  ;;  %3164 = vperm.xlu1 %4985, %v230_v19   ;;  %3363 = vmatprep.mubr.bf16.mxu0 %v9886_v42  ;;  %v508_v38 = vadd.f32 3.0, %v7051_v39  ;;  %v9892_v42 = vld [vmem:[#allocation135_spill] sm:$0xff] }
 0x252   : > { %v868_v29 = vmul.f32 %v836_v6, %v746_v51  ;;  %v1090_v52 = vmul.f32 %v1058_v46, %v971_v9  ;;  %v1702_v7 = vadd.f32 %v1670_v30, %v6930_v22  ;;  %v1924_v60 = vmul.f32 %v1892_v25, %v1808_v28  ;;  %698 = vrot.lane.b32.xlu0 %v9887_v31, %s5148_s18  ;;  %v9889_v6 = vld [vmem:[#allocation16_spill] sm:$0xff]  ;;  %v9890_v22 = vld [vmem:[#allocation57_spill] sm:$0xff] }
 0x253   : > { %v579_v59 = vmin.f32 %v547_v11, 6.0  ;;  %v7081_v45 = vmul.f32 0.16666667, %v619_v0  ;;  %v1311_v46 = vmul.f32 %v9889_v6, %v9888_v53  ;;  %v1319_v25 = vmul.f32 %v9889_v6, %v9890_v22  ;;  %v9891_v9 = vld [vmem:[#allocation124_spill] sm:$0xff] }
 0x254   : > { %v1122_v41 = vadd.f32 %v1090_v52, %v868_v29  ;;  %v1956_v19 = vadd.f32 %v1924_v60, %v1702_v7  ;;  %v1162_v51 = vpop.permute.xlu1 %1161  ;;  %v1164_v30 = vpop.permute.xlu0 %1163  ;;  %v540_v52 = vmax.f32 %v508_v38, 0.0  ;;  %v9893_v60 = vld [vmem:[#allocation17_spill] sm:$0xff] }
 0x255   : > { %v1229_v28 = vsel %vm1207_vm3, %v9891_v9, %v1162_v51  ;;  %v1230_v11 = vsel %vm1207_vm3, %v9892_v42, %v1164_v30  ;;  %3174 = vperm.xlu1 %4985, %v232_v26   ;;  %v611_v7 = vmul.f32 %v579_v59, %v6984_v17  ;;  %v1312_v40 = vmul.f32 %v9893_v60, %v9888_v53  ;;  %v9899_v53 = vld [vmem:[#allocation53_spill] sm:$0xff] }
 0x256   : > { %v1343_v0 = vmul.f32 %v1311_v46, %v1229_v28  ;;  %v1351_v29 = vmul.f32 %v1319_v25, %v1230_v11  ;;  %706 = vrot.lane.b32.xlu0 %v7081_v45, %s5148_s18  ;;  %v1320_v42 = vmul.f32 %v9893_v60, %v9890_v22  ;;  %v9896_v46 = vld [vmem:[#allocation157_spill] sm:$0xff]  ;;  %v572_v59 = vmin.f32 %v540_v52, 6.0 }
 0x257   : > { %v7107_v25 = vrot.slane %v9896_v46, %v9866_v32  ;;  %v7119_v28 = vmul.f32 0.16666667, %v611_v7  ;;  %v9897_v11 = vld [vmem:[#allocation41_spill] sm:$0xff]  ;;  %v9901_v7 = vld [vmem:[#allocation92_spill] sm:$0xff] }
 0x258   : > { %v1375_v36 = vadd.f32 %v1343_v0, %v1121_v44  ;;  %v1383_v62 = vadd.f32 %v1351_v29, %v6995_v14  ;;  %v7099_v9 = vpop.permute.xlu1 %1169  ;;  %v7103_v26 = vpop.permute.xlu0 %1171  ;;  %v9898_v0 = vld [vmem:[#allocation22_spill] sm:$0xff] }
 0x259   : > { %9894 = vst [vmem:[#allocation103_spill] sm:$0xff] %v7099_v9  ;;  %9895 = vst [vmem:[#allocation160_spill] sm:$0xff] %v7103_v26  ;;  %v1225_v17 = vsel %vm1207_vm3, %v1162_v51, %v7099_v9  ;;  %v1226_v44 = vsel %vm1207_vm3, %v1164_v30, %v7103_v26  ;;  %696 = vrot.lane.b32.xlu1 %v6494_v20, %s5148_s18  ;;  %v1565_v29 = vmul.f32 %v9898_v0, %v9897_v11 }
 0x25a   : > { %v1344_v14 = vmul.f32 %v1312_v40, %v1225_v17  ;;  %v1352_v38 = vmul.f32 %v1320_v42, %v1226_v44  ;;  %925 = vrot.lane.b32.xlu0 %v9887_v31, %s5150_s20  ;;  %v2145_v30 = vmul.f32 %v7107_v25, %v9899_v53  ;;  %v7128_v40 = vrot.slane %v9896_v46, %v9872_v49  ;;  %v9900_v42 = vld [vmem:[#allocation122_spill] sm:$0xff] }
 0x25b   : > { %v1566_v44 = vmul.f32 %v9847_v48, %v9897_v11  ;;  %v9912_v11 = vld [vmem:[#allocation49_spill] sm:$0xff] }
 0x25c   : > { %v1376_v22 = vadd.f32 %v1344_v14, %v1122_v41  ;;  %v1384_v51 = vadd.f32 %v1352_v38, %v7025_v43  ;;  %v1416_v9 = vpop.permute.xlu1 %1415  ;;  %v2010_v26 = vpop.permute.xlu0 %2009  ;;  %v604_v14 = vmul.f32 %v572_v59, %v7051_v39  ;;  %v1074_v55 = vmul.f32 %v9819_v61, %v9912_v11 }
 0x25d   : > { %v1483_v52 = vsel %vm1461_vm4, %v9900_v42, %v1416_v9  ;;  %v2066_v17 = vsel %vm2049_vm6, %v9901_v7, %v2010_v26  ;;  %704 = vrot.lane.b32.xlu1 %v7119_v28, %s5148_s18  ;;  %v2146_v7 = vmul.f32 %v7128_v40, %v9899_v53 }
 0x25e   : > { %v1597_v43 = vmul.f32 %v1565_v29, %v1483_v52  ;;  %v2177_v41 = vmul.f32 %v2145_v30, %v2066_v17  ;;  %933 = vrot.lane.b32.xlu0 %v7081_v45, %s5150_s20  ;;  %v7162_v59 = vmul.f32 0.16666667, %v604_v14  ;;  %v9907_v14 = vld [vmem:[#allocation34_spill] sm:$0xff] }
 0x260   : > { %v7143_v38 = vadd.f32 %v1597_v43, %v1375_v36  ;;  %v2209_v42 = vadd.f32 %v2177_v41, %v7057_v35  ;;  %v7146_v46 = vpop.permute.xlu1 %1423  ;;  %v7150_v5 = vpop.permute.xlu0 %2017  ;;  %9904 = vst [vmem:[#allocation173_spill] sm:$0xff] %v7162_v59 }
 0x261   : > { %9902 = vst [vmem:[#allocation131_spill] sm:$0xff] %v7146_v46  ;;  %9903 = vst [vmem:[#allocation107_spill] sm:$0xff] %v7150_v5  ;;  %v1479_v29 = vsel %vm1461_vm4, %v1416_v9, %v7146_v46  ;;  %v2062_v30 = vsel %vm2049_vm6, %v2010_v26, %v7150_v5  ;;  %923 = vrot.lane.b32.xlu1 %v6494_v20, %s5150_s20  ;;  %v446_v35 = vpop.f32.mrf.mxu0  ;;  %v9905_v9 = vld [vmem:[#allocation60_spill] sm:$0xff] }
 0x262   : > { %v1598_v36 = vmul.f32 %v1566_v44, %v1479_v29  ;;  %v2178_v39 = vmul.f32 %v2146_v7, %v2062_v30  ;;  %1771 = vrot.lane.b32.xlu0 %v9845_v56, %s5151_s22  ;;  %v1573_v41 = vmul.f32 %v9898_v0, %v9905_v9  ;;  %v9906_v26 = vld [vmem:[#allocation132_spill] sm:$0xff]  ;;  %v1574_v29 = vmul.f32 %v9847_v48, %v9905_v9 }
 0x264   : > { %v7164_v52 = vadd.f32 %v1598_v36, %v1376_v22  ;;  %v2210_v17 = vadd.f32 %v2178_v39, %v1956_v19  ;;  %v685_v43 = vpop.permute.xlu1 %684  ;;  %v1418_v53 = vpop.permute.xlu0 %1417  ;;  %v447_v22 = vadd.f32 %v446_v35, %v9907_v14  ;;  %v9909_v36 = vld [vmem:[#allocation165_spill] sm:$0xff] }
 0x265   : > { %v1484_v5 = vsel %vm1461_vm4, %v9906_v26, %v1418_v53  ;;  %931 = vrot.lane.b32.xlu1 %v7119_v28, %s5150_s20  ;;  %v7186_v39 = vrot.slane %v9909_v36, %v9866_v32  ;;  %v7208_v37 = vrot.slane %v9909_v36, %v9872_v49 }
 0x266   : > { %v1605_v44 = vmul.f32 %v1573_v41, %v1484_v5  ;;  %1779 = vrot.lane.b32.xlu0 %v7162_v59, %s5151_s22  ;;  %v531_v35 = vadd.f32 3.0, %v447_v22  ;;  %v9910_v41 = vld [vmem:[#allocation43_spill] sm:$0xff] }
 0x267   : > { %v851_v26 = vmul.f32 %v9817_v23, %v9910_v41  ;;  %v852_v36 = vmul.f32 %v9820_v63, %v9910_v41 }
 0x268   : > { %v7176_v7 = vadd.f32 %v1605_v44, %v1383_v62  ;;  %v7178_v19 = vpop.permute.xlu1 %692  ;;  %v7182_v30 = vpop.permute.xlu0 %1425  ;;  %v9911_v44 = vld [vmem:[#allocation144_spill] sm:$0xff]  ;;  %v563_v54 = vmax.f32 %v531_v35, 0.0 }
 0x269   : > { %9908 = vst [vmem:[#allocation182_spill] sm:$0xff] %v7182_v30  ;;  %v1480_v5 = vsel %vm1461_vm4, %v1418_v53, %v7182_v30  ;;  %1177 = vrot.lane.b32.xlu1 %v6494_v20, %s5147_s17  ;;  %v752_v9 = vsel %vm728_vm2, %v9911_v44, %v685_v43  ;;  %v1073_v53 = vmul.f32 %v9860_v18, %v9912_v11 }
 0x26a   : > { %v1606_v62 = vmul.f32 %v1574_v29, %v1480_v5  ;;  %1179 = vrot.lane.b32.xlu0 %v9887_v31, %s5147_s17  ;;  %v2399_v29 = vmul.f32 %v7186_v39, %v9913_v13  ;;  %v883_v18 = vmul.f32 %v851_v26, %v752_v9  ;;  %v2400_v26 = vmul.f32 %v7208_v37, %v9913_v13 }
 0x26c   : > { %v7200_v46 = vadd.f32 %v1606_v62, %v1384_v51  ;;  %v912_v30 = vpop.permute.xlu1 %911  ;;  %v2264_v5 = vpop.permute.xlu0 %2263 }
 0x26d   : > { %v977_v23 = vsel %vm953_vm1, %v9914_v50, %v912_v30  ;;  %v2320_v51 = vsel %vm2303_vm7, %v9915_v16, %v2264_v5  ;;  %1185 = vrot.lane.b32.xlu1 %v7119_v28, %s5147_s17  ;;  %v748_v50 = vsel %vm728_vm2, %v685_v43, %v7178_v19 }
 0x26e   : > { %v1105_v62 = vmul.f32 %v1073_v53, %v977_v23  ;;  %v2431_v44 = vmul.f32 %v2399_v29, %v2320_v51  ;;  %1187 = vrot.lane.b32.xlu0 %v7081_v45, %s5147_s17  ;;  %v9918_v29 = vld [vmem:[#allocation168_spill] sm:$0xff]  ;;  %v595_v51 = vmin.f32 %v563_v54, 6.0 }
 0x26f   : > { %v7247_v23 = vrot.slane %v9918_v29, %v9866_v32 }
 0x270   : > { %v7225_v58 = vadd.f32 %v1105_v62, %v883_v18  ;;  %v2463_v16 = vadd.f32 %v2431_v44, %v2209_v42  ;;  %v7229_v9 = vpop.permute.xlu1 %919  ;;  %v7233_v53 = vpop.permute.xlu0 %2271  ;;  %v884_v42 = vmul.f32 %v852_v36, %v748_v50  ;;  %v9919_v18 = vld [vmem:[#allocation50_spill] sm:$0xff]  ;;  %v627_v13 = vmul.f32 %v595_v51, %v447_v22 }
 0x271   : > { %9916 = vst [vmem:[#allocation98_spill] sm:$0xff] %v7229_v9  ;;  %9917 = vst [vmem:[#allocation183_spill] sm:$0xff] %v7233_v53  ;;  %v973_v63 = vsel %vm953_vm1, %v912_v30, %v7229_v9  ;;  %v2316_v43 = vsel %vm2303_vm7, %v2264_v5, %v7233_v53  ;;  %1431 = vrot.lane.b32.xlu1 %v6494_v20, %s5149_s19  ;;  %v9920_v30 = vld [vmem:[#allocation46_spill] sm:$0xff]  ;;  %v9921_v53 = vld [vmem:[#allocation52_spill] sm:$0xff] }
 0x272   : > { %v1106_v61 = vmul.f32 %v1074_v55, %v973_v63  ;;  %v2432_v35 = vmul.f32 %v2400_v26, %v2316_v43  ;;  %2025 = vrot.lane.b32.xlu0 %v9845_v56, %s5153_s24  ;;  %v1677_v62 = vmul.f32 %v9920_v30, %v9919_v18  ;;  %v1899_v20 = vmul.f32 %v6991_v3, %v9921_v53  ;;  %v9922_v55 = vld [vmem:[#allocation82_spill] sm:$0xff]  ;;  %v9923_v63 = vld [vmem:[#allocation112_spill] sm:$0xff]  ;;  %v9924_v43 = vld [vmem:[#allocation97_spill] sm:$0xff] }
 0x273   : > { %v2653_v50 = vmul.f32 %v7247_v23, %v9922_v55  ;;  %v9925_v18 = vld [vmem:[#allocation58_spill] sm:$0xff] }
 0x274   : > { %v7251_v44 = vadd.f32 %v1106_v61, %v884_v42  ;;  %v2464_v5 = vadd.f32 %v2432_v35, %v2210_v17  ;;  %v1758_v36 = vpop.permute.xlu1 %1757  ;;  %v2518_v26 = vpop.permute.xlu0 %2517  ;;  %v1709_v17 = vadd.f32 %v1677_v62, %v7143_v38  ;;  %v7270_v35 = vrot.slane %v9918_v29, %v9872_v49 }
 0x275   : > { %v1813_v32 = vsel %vm1795_vm5, %v9923_v63, %v1758_v36  ;;  %v2574_v54 = vsel %vm2557_vm8, %v9924_v43, %v2518_v26  ;;  %1439 = vrot.lane.b32.xlu1 %v7119_v28, %s5149_s19  ;;  %v488_v63 = vadd.f32 %v9925_v18, %v9864_v4  ;;  %v1678_v43 = vmul.f32 %v9920_v30, %v6022_v57  ;;  %v9932_v18 = vld [vmem:[#allocation66_spill] sm:$0xff] }
 0x276   : > { %v1931_v42 = vmul.f32 %v1899_v20, %v1813_v32  ;;  %v2685_v61 = vmul.f32 %v2653_v50, %v2574_v54  ;;  %2033 = vrot.lane.b32.xlu0 %v7162_v59, %s5153_s24  ;;  %v1900_v20 = vmul.f32 %v7017_v47, %v9921_v53  ;;  %v2654_v62 = vmul.f32 %v7270_v35, %v9922_v55  ;;  %v9929_v54 = vld [vmem:[#allocation51_spill] sm:$0xff] }
 0x277   : > { %v1710_v22 = vadd.f32 %v1678_v43, %v7164_v52  ;;  %v516_v50 = vadd.f32 3.0, %v488_v63  ;;  %v7297_v32 = vmul.f32 0.16666667, %v627_v13  ;;  %v9935_v13 = vld [vmem:[#allocation102_spill] sm:$0xff] }
 0x278   : > { %v1963_v9 = vadd.f32 %v1931_v42, %v1709_v17  ;;  %v7276_v11 = vadd.f32 %v2685_v61, %v2463_v16  ;;  %v7280_v38 = vpop.permute.xlu1 %1765  ;;  %v7284_v49 = vpop.permute.xlu0 %2525  ;;  %v9931_v61 = vld [vmem:[#allocation104_spill] sm:$0xff] }
 0x279   : > { %9927 = vst [vmem:[#allocation23_spill] sm:$0xff] %v7284_v49  ;;  %v1809_v4 = vsel %vm1795_vm5, %v1758_v36, %v7280_v38  ;;  %v2570_v57 = vsel %vm2557_vm8, %v2518_v26, %v7284_v49  ;;  %700 = vrot.lane.b32.xlu1 %v9829_v34, %s5148_s18  ;;  %9928 = vst [vmem:[#allocation78_spill] sm:$0xff] %v7297_v32  ;;  %v1327_v36 = vmul.f32 %v9889_v6, %v9929_v54  ;;  %v9933_v49 = vld [vmem:[#allocation69_spill] sm:$0xff] }
 0x27a   : > { %9926 = vst [vmem:[#allocation127_spill] sm:$0xff] %v7276_v11  ;;  %v1932_v16 = vmul.f32 %v1900_v20, %v1809_v4  ;;  %v2686_v51 = vmul.f32 %v2654_v62, %v2570_v57  ;;  %1433 = vrot.lane.b32.xlu0 %v9887_v31, %s5149_s19  ;;  %v1685_v11 = vmul.f32 %v9932_v18, %v9931_v61  ;;  %v9934_v20 = vld [vmem:[#allocation136_spill] sm:$0xff]  ;;  %v9937_v31 = vld [vmem:[#allocation142_spill] sm:$0xff] }
 0x27b   : > { %v1907_v52 = vmul.f32 %v6991_v3, %v9933_v49  ;;  %v1328_v61 = vmul.f32 %v9893_v60, %v9929_v54 }
 0x27c   : > { %v1964_v17 = vadd.f32 %v1932_v16, %v1710_v22  ;;  %v7301_v42 = vadd.f32 %v2686_v51, %v2464_v5  ;;  %v1166_v26 = vpop.permute.xlu1 %1165  ;;  %v1760_v43 = vpop.permute.xlu0 %1759  ;;  %v1717_v5 = vadd.f32 %v1685_v11, %v7176_v7  ;;  %v548_v22 = vmax.f32 %v516_v50, 0.0  ;;  %v9936_v16 = vld [vmem:[#allocation63_spill] sm:$0xff] }
 0x27d   : > { %v1231_v62 = vsel %vm1207_vm3, %v9934_v20, %v1166_v26  ;;  %v1814_v4 = vsel %vm1795_vm5, %v9935_v13, %v1760_v43  ;;  %708 = vrot.lane.b32.xlu1 %v7297_v32, %s5148_s18  ;;  %v494_v51 = vadd.f32 %v9936_v16, %v9853_v15  ;;  %v1908_v11 = vmul.f32 %v7017_v47, %v9933_v49 }
 0x27e   : > { %9930 = vst [vmem:[#allocation32_spill] sm:$0xff] %v7301_v42  ;;  %v1359_v6 = vmul.f32 %v1327_v36, %v1231_v62  ;;  %v1939_v57 = vmul.f32 %v1907_v52, %v1814_v4  ;;  %1441 = vrot.lane.b32.xlu0 %v7081_v45, %s5149_s19  ;;  %v1686_v36 = vmul.f32 %v9932_v18, %v9937_v31  ;;  %v580_v52 = vmin.f32 %v548_v22, 6.0 }
 0x27f   : > { %v524_v62 = vadd.f32 3.0, %v494_v51 }
 0x280   : > { %v1391_v20 = vadd.f32 %v1359_v6, %v7225_v58  ;;  %v1971_v13 = vadd.f32 %v1939_v57, %v1717_v5  ;;  %v7323_v42 = vpop.permute.xlu1 %1173  ;;  %v7329_v7 = vpop.permute.xlu0 %1767  ;;  %v1718_v50 = vadd.f32 %v1686_v36, %v7200_v46  ;;  %v9941_v36 = vld [vmem:[#allocation148_spill] sm:$0xff] }
 0x281   : > { %9938 = vst [vmem:[#allocation156_spill] sm:$0xff] %v7329_v7  ;;  %v1227_v15 = vsel %vm1207_vm3, %v1166_v26, %v7323_v42  ;;  %v1810_v60 = vsel %vm1795_vm5, %v1760_v43, %v7329_v7  ;;  %927 = vrot.lane.b32.xlu1 %v9829_v34, %s5150_s20  ;;  %v9939_v26 = vld [vmem:[#allocation70_spill] sm:$0xff]  ;;  %v2161_v43 = vmul.f32 %v7107_v25, %v9812_v21 }
 0x282   : > { %v1360_v58 = vmul.f32 %v1328_v61, %v1227_v15  ;;  %v1940_v31 = vmul.f32 %v1908_v11, %v1810_v60  ;;  %2279 = vrot.lane.b32.xlu0 %v9845_v56, %s5152_s23  ;;  %v2153_v5 = vmul.f32 %v7107_v25, %v9939_v26  ;;  %v9940_v61 = vld [vmem:[#allocation115_spill] sm:$0xff]  ;;  %v612_v15 = vmul.f32 %v580_v52, %v488_v63 }
 0x283   : > { %v556_v60 = vmax.f32 %v524_v62, 0.0 }
 0x284   : > { %v1392_v4 = vadd.f32 %v1360_v58, %v7251_v44  ;;  %v1972_v6 = vadd.f32 %v1940_v31, %v1718_v50  ;;  %v2012_v57 = vpop.permute.xlu1 %2011  ;;  %v2014_v16 = vpop.permute.xlu0 %2013  ;;  %v2154_v31 = vmul.f32 %v7128_v40, %v9939_v26  ;;  %v7375_v52 = vmul.f32 0.16666667, %v612_v15 }
 0x285   : > { %v2067_v46 = vsel %vm2049_vm6, %v9940_v61, %v2012_v57  ;;  %v2068_v22 = vsel %vm2049_vm6, %v9941_v36, %v2014_v16  ;;  %935 = vrot.lane.b32.xlu1 %v7297_v32, %s5150_s20  ;;  %v2162_v36 = vmul.f32 %v7128_v40, %v9812_v21  ;;  %v588_v62 = vmin.f32 %v556_v60, 6.0 }
 0x286   : > { %v2185_v44 = vmul.f32 %v2153_v5, %v2067_v46  ;;  %v2193_v11 = vmul.f32 %v2161_v43, %v2068_v22  ;;  %2287 = vrot.lane.b32.xlu0 %v7162_v59, %s5152_s23  ;;  %9943 = vst [vmem:[#allocation14_spill] sm:$0xff] %v7375_v52  ;;  %v9944_v22 = vld [vmem:[#allocation56_spill] sm:$0xff] }
 0x288   : > { %v2217_v58 = vadd.f32 %v2185_v44, %v1963_v9  ;;  %v2225_v50 = vadd.f32 %v2193_v11, %v1971_v13  ;;  %v7359_v61 = vpop.permute.xlu1 %2019  ;;  %v7363_v7 = vpop.permute.xlu0 %2021 }
 0x289   : > { %9942 = vst [vmem:[#allocation128_spill] sm:$0xff] %v7363_v7  ;;  %v2063_v5 = vsel %vm2049_vm6, %v2012_v57, %v7359_v61  ;;  %v2064_v63 = vsel %vm2049_vm6, %v2014_v16, %v7363_v7  ;;  %1773 = vrot.lane.b32.xlu1 %v7119_v28, %s5151_s22  ;;  %v1581_v57 = vmul.f32 %v9898_v0, %v9944_v22  ;;  %v9945_v7 = vld [vmem:[#allocation151_spill] sm:$0xff] }
 0x28a   : > { %v2186_v9 = vmul.f32 %v2154_v31, %v2063_v5  ;;  %v2194_v13 = vmul.f32 %v2162_v36, %v2064_v63  ;;  %2533 = vrot.lane.b32.xlu0 %v9845_v56, %s5154_s25  ;;  %v2415_v16 = vmul.f32 %v7186_v39, %v9851_v10  ;;  %v620_v0 = vmul.f32 %v588_v62, %v494_v51 }
 0x28b   : > { %v1582_v5 = vmul.f32 %v9847_v48, %v9944_v22 }
 0x28c   : > { %v2218_v43 = vadd.f32 %v2186_v9, %v1964_v17  ;;  %v2226_v46 = vadd.f32 %v2194_v13, %v1972_v6  ;;  %v1420_v44 = vpop.permute.xlu1 %1419  ;;  %v2268_v11 = vpop.permute.xlu0 %2267 }
 0x28d   : > { %v1485_v31 = vsel %vm1461_vm4, %v9945_v7, %v1420_v44  ;;  %v2322_v15 = vsel %vm2303_vm7, %v6524_v27, %v2268_v11  ;;  %1781 = vrot.lane.b32.xlu1 %v7375_v52, %s5151_s22  ;;  %v2416_v27 = vmul.f32 %v7208_v37, %v9851_v10 }
 0x28e   : > { %v1613_v17 = vmul.f32 %v1581_v57, %v1485_v31  ;;  %v2447_v6 = vmul.f32 %v2415_v16, %v2322_v15  ;;  %2541 = vrot.lane.b32.xlu0 %v7162_v59, %s5154_s25  ;;  %v9947_v57 = vld [vmem:[#allocation76_spill] sm:$0xff] }
 0x28f   : > { %v9948_v15 = vld [vmem:[#allocation116_spill] sm:$0xff] }
 0x290   : > { %v7391_v60 = vadd.f32 %v1613_v17, %v1391_v20  ;;  %v2479_v36 = vadd.f32 %v2447_v6, %v2225_v50  ;;  %v7395_v7 = vpop.permute.xlu1 %1427  ;;  %v7399_v63 = vpop.permute.xlu0 %2275  ;;  %v7411_v50 = vmul.f32 0.16666667, %v620_v0 }
 0x291   : > { %v1481_v9 = vsel %vm1461_vm4, %v1420_v44, %v7395_v7  ;;  %v2318_v51 = vsel %vm2303_vm7, %v2268_v11, %v7399_v63  ;;  %1181 = vrot.lane.b32.xlu1 %v9829_v34, %s5147_s17  ;;  %v2407_v44 = vmul.f32 %v7186_v39, %v9947_v57  ;;  %v2669_v11 = vmul.f32 %v7247_v23, %v6552_v1 }
 0x292   : > { %v1614_v20 = vmul.f32 %v1582_v5, %v1481_v9  ;;  %v2448_v48 = vmul.f32 %v2416_v27, %v2318_v51  ;;  %1775 = vrot.lane.b32.xlu0 %v7081_v45, %s5151_s22  ;;  %9946 = vst [vmem:[#allocation130_spill] sm:$0xff] %v7411_v50  ;;  %v2408_v27 = vmul.f32 %v7208_v37, %v9947_v57 }
 0x293   : > { %v2670_v51 = vmul.f32 %v7270_v35, %v6552_v1 }
 0x294   : > { %v7413_v13 = vadd.f32 %v1614_v20, %v1392_v4  ;;  %v2480_v62 = vadd.f32 %v2448_v48, %v2226_v46  ;;  %v2266_v16 = vpop.permute.xlu1 %2265  ;;  %v2522_v31 = vpop.permute.xlu0 %2521 }
 0x295   : > { %v2321_v17 = vsel %vm2303_vm7, %v9948_v15, %v2266_v16  ;;  %v2576_v6 = vsel %vm2557_vm8, %v6573_v8, %v2522_v31  ;;  %1189 = vrot.lane.b32.xlu1 %v7297_v32, %s5147_s17 }
 0x296   : > { %v2439_v4 = vmul.f32 %v2407_v44, %v2321_v17  ;;  %v2701_v46 = vmul.f32 %v2669_v11, %v2576_v6  ;;  %1783 = vrot.lane.b32.xlu0 %v7411_v50, %s5151_s22  ;;  %v9389_v44 = vmov 0.0   ;;  %v9953_v17 = vld [vmem:[#allocation62_spill] sm:$0xff] }
 0x297   : > { %4852 = vmatprep.subr.bf16.mxu1 %v9389_v44  ;;  %4856 = vmatprep.mubr.msk.bf16.mxu1 %vm5156_vm9, %v9389_v44 }
 0x298   : > { %v2471_v0 = vadd.f32 %v2439_v4, %v2217_v58  ;;  %v7429_v5 = vadd.f32 %v2701_v46, %v2479_v36  ;;  %v7433_v9 = vpop.permute.xlu1 %2273  ;;  %v7437_v8 = vpop.permute.xlu0 %2529  ;;  %v9954_v4 = vld [vmem:[#allocation119_spill] sm:$0xff] }
 0x299   : > { %9950 = vst [vmem:[#allocation153_spill] sm:$0xff] %v7433_v9  ;;  %9951 = vst [vmem:[#allocation2_spill] sm:$0xff] %v7437_v8  ;;  %v2317_v20 = vsel %vm2303_vm7, %v2266_v16, %v7433_v9  ;;  %v2572_v58 = vsel %vm2557_vm8, %v2522_v31, %v7437_v8  ;;  %2027 = vrot.lane.b32.xlu1 %v7119_v28, %s5153_s24  ;;  %v2661_v16 = vmul.f32 %v7247_v23, %v9953_v17  ;;  %v10020_v8 = vld [vmem:[#allocation170_spill] sm:$0xff] }
 0x29a   : > { %9949 = vst [vmem:[#allocation39_spill] sm:$0xff] %v7429_v5  ;;  %v2440_v36 = vmul.f32 %v2408_v27, %v2317_v20  ;;  %v2702_v48 = vmul.f32 %v2670_v51, %v2572_v58  ;;  %2029 = vrot.lane.b32.xlu0 %v7081_v45, %s5153_s24 }
 0x29c   : > { %v2472_v11 = vadd.f32 %v2440_v36, %v2218_v43  ;;  %v7450_v15 = vadd.f32 %v2702_v48, %v2480_v62  ;;  %v2520_v6 = vpop.permute.xlu1 %2519  ;;  %v2662_v62 = vmul.f32 %v7270_v35, %v9953_v17  ;;  %v9960_v48 = vld [vmem:[#allocation88_spill] sm:$0xff] }
 0x29d   : > { %v2575_v31 = vsel %vm2557_vm8, %v9954_v4, %v2520_v6  ;;  %v7457_v46 = vpop.permute.xlu0 %3139  ;;  %2035 = vrot.lane.b32.xlu1 %v7375_v52, %s5153_s24 }
 0x29e   : > { %9952 = vst [vmem:[#allocation3_spill] sm:$0xff] %v7450_v15  ;;  %9955 = vst [vmem:[#allocation121_spill] sm:$0xff] %v7457_v46  ;;  %v2693_v27 = vmul.f32 %v2661_v16, %v2575_v31  ;;  %2037 = vrot.lane.b32.xlu0 %v7411_v50, %s5153_s24  ;;  %v9961_v16 = vld [vmem:[#allocation67_spill] sm:$0xff]  ;;  %v9962_v31 = vld [vmem:[#allocation72_spill] sm:$0xff] }
 0x29f   : > { %v1693_v4 = vmul.f32 %v9961_v16, %v9960_v48 }
 0x2a0   : > { %v7463_v43 = vadd.f32 %v2693_v27, %v2471_v0  ;;  %v7467_v51 = vpop.permute.xlu1 %2527 }
 0x2a1   : > { %9957 = vst [vmem:[#allocation123_spill] sm:$0xff] %v7467_v51  ;;  %v2571_v20 = vsel %vm2557_vm8, %v2520_v6, %v7467_v51  ;;  %v7472_v58 = vpop.permute.xlu0 %3149  ;;  %1435 = vrot.lane.b32.xlu1 %v9829_v34, %s5149_s19  ;;  %v1915_v6 = vmul.f32 %v6991_v3, %v9962_v31  ;;  %v1725_v44 = vadd.f32 %v1693_v4, %v7391_v60  ;;  %v9987_v34 = vld [vmem:[#allocation134_spill] sm:$0xff]  ;;  %v10018_v51 = vld [vmem:[#allocation64_spill] sm:$0xff] }
 0x2a2   : > { %9956 = vst [vmem:[#allocation37_spill] sm:$0xff] %v7463_v43  ;;  %9958 = vst [vmem:[#allocation90_spill] sm:$0xff] %v7472_v58  ;;  %v2694_v36 = vmul.f32 %v2662_v62, %v2571_v20  ;;  %2283 = vrot.lane.b32.xlu0 %v7081_v45, %s5152_s23  ;;  %v1694_v58 = vmul.f32 %v9961_v16, %v6285_v33 }
 0x2a4   : > { %v7480_v0 = vadd.f32 %v2694_v36, %v2472_v11  ;;  %v1762_v27 = vpop.permute.xlu1 %1761  ;;  %v9964_v36 = vld [vmem:[#allocation68_spill] sm:$0xff] }
 0x2a5   : > { %v1815_v62 = vsel %vm1795_vm5, %v9824_v24, %v1762_v27  ;;  %v7489_v20 = vpop.permute.xlu0 %3159  ;;  %1443 = vrot.lane.b32.xlu1 %v7297_v32, %s5149_s19  ;;  %v498_v48 = vadd.f32 %v9964_v36, %v9907_v14  ;;  %v1916_v24 = vmul.f32 %v7017_v47, %v9962_v31  ;;  %v1726_v14 = vadd.f32 %v1694_v58, %v7413_v13  ;;  %v9968_v36 = vld [vmem:[#allocation87_spill] sm:$0xff]  ;;  %v9970_v58 = vld [vmem:[#allocation74_spill] sm:$0xff]  ;;  %v9978_v31 = vld [vmem:[#allocation65_spill] sm:$0xff] }
 0x2a6   : > { %9959 = vst [vmem:[#allocation33_spill] sm:$0xff] %v7480_v0  ;;  %9963 = vst [vmem:[#allocation55_spill] sm:$0xff] %v7489_v20  ;;  %v1947_v11 = vmul.f32 %v1915_v6, %v1815_v62  ;;  %2291 = vrot.lane.b32.xlu0 %v7411_v50, %s5152_s23  ;;  %v2169_v47 = vmul.f32 %v7107_v25, %v9804_v2  ;;  %v9975_v0 = vld [vmem:[#allocation166_spill] sm:$0xff] }
 0x2a7   : > { %v532_v33 = vadd.f32 3.0, %v498_v48 }
 0x2a8   : > { %v1979_v3 = vadd.f32 %v1947_v11, %v1725_v44  ;;  %v7502_v20 = vpop.permute.xlu1 %1769  ;;  %v9967_v11 = vld [vmem:[#allocation139_spill] sm:$0xff] }
 0x2a9   : > { %9965 = vst [vmem:[#allocation126_spill] sm:$0xff] %v7502_v20  ;;  %v1811_v60 = vsel %vm1795_vm5, %v1762_v27, %v7502_v20  ;;  %v7507_v4 = vpop.permute.xlu0 %3169  ;;  %2281 = vrot.lane.b32.xlu1 %v7119_v28, %s5152_s23  ;;  %v564_v25 = vmax.f32 %v532_v33, 0.0 }
 0x2aa   : > { %9966 = vst [vmem:[#allocation16_spill] sm:$0xff] %v7507_v4  ;;  %v1948_v44 = vmul.f32 %v1916_v24, %v1811_v60  ;;  %2537 = vrot.lane.b32.xlu0 %v7081_v45, %s5154_s25  ;;  %v9969_v4 = vld [vmem:[#allocation10_spill] sm:$0xff] }
 0x2ab   : > { %v829_v46 = vmul.f32 %v9969_v4, %v9968_v36 }
 0x2ac   : > { %v1980_v6 = vadd.f32 %v1948_v44, %v1726_v14  ;;  %v2016_v62 = vpop.permute.xlu1 %2015  ;;  %v2170_v44 = vmul.f32 %v7128_v40, %v9804_v2  ;;  %v596_v40 = vmin.f32 %v564_v25, 6.0  ;;  %v9976_v2 = vld [vmem:[#allocation47_spill] sm:$0xff] }
 0x2ad   : > { %v2069_v27 = vsel %vm2049_vm6, %v9967_v11, %v2016_v62  ;;  %v695_v5 = vpop.permute.xlu0 %694  ;;  %2289 = vrot.lane.b32.xlu1 %v7375_v52, %s5152_s23 }
 0x2ae   : > { %v2201_v13 = vmul.f32 %v2169_v47, %v2069_v27  ;;  %v741_v24 = vsel %vm728_vm2, %v9970_v58, %v695_v5  ;;  %2545 = vrot.lane.b32.xlu0 %v7411_v50, %s5154_s25  ;;  %v9972_v47 = vld [vmem:[#allocation11_spill] sm:$0xff] }
 0x2af   : > { %v861_v60 = vmul.f32 %v829_v46, %v741_v24  ;;  %v830_v27 = vmul.f32 %v9972_v47, %v9968_v36 }
 0x2b0   : > { %v2233_v14 = vadd.f32 %v2201_v13, %v1979_v3  ;;  %v7530_v11 = vpop.permute.xlu1 %2023 }
 0x2b1   : > { %9971 = vst [vmem:[#allocation124_spill] sm:$0xff] %v7530_v11  ;;  %v2065_v15 = vsel %vm2049_vm6, %v2016_v62, %v7530_v11  ;;  %v7537_v43 = vpop.permute.xlu0 %702  ;;  %2535 = vrot.lane.b32.xlu1 %v7119_v28, %s5154_s25  ;;  %v9974_v62 = vld [vmem:[#allocation79_spill] sm:$0xff] }
 0x2b2   : > { %9973 = vst [vmem:[#allocation135_spill] sm:$0xff] %v7537_v43  ;;  %v2202_v33 = vmul.f32 %v2170_v44, %v2065_v15  ;;  %v737_v46 = vsel %vm728_vm2, %v695_v5, %v7537_v43  ;;  %710 = vrot.lane.b32.xlu0 %v7162_v59, %s5148_s18  ;;  %v2423_v58 = vmul.f32 %v7186_v39, %v9974_v62  ;;  %v9977_v15 = vld [vmem:[#allocation18_spill] sm:$0xff] }
 0x2b3   : > { %v862_v3 = vmul.f32 %v830_v27, %v737_v46  ;;  %v1051_v44 = vmul.f32 %v9977_v15, %v9976_v2  ;;  %v628_v39 = vmul.f32 %v596_v40, %v498_v48  ;;  %v10016_v43 = vld [vmem:[#allocation174_spill] sm:$0xff] }
 0x2b4   : > { %v2234_v13 = vadd.f32 %v2202_v33, %v1980_v6  ;;  %v2270_v24 = vpop.permute.xlu1 %2269 }
 0x2b5   : > { %v2323_v11 = vsel %vm2303_vm7, %v9975_v0, %v2270_v24  ;;  %v922_v20 = vpop.permute.xlu0 %921  ;;  %2543 = vrot.lane.b32.xlu1 %v7375_v52, %s5154_s25  ;;  %v2424_v0 = vmul.f32 %v7208_v37, %v9974_v62 }
 0x2b6   : > { %v2455_v5 = vmul.f32 %v2423_v58, %v2323_v11  ;;  %v966_v6 = vsel %vm953_vm1, %v9978_v31, %v922_v20  ;;  %937 = vrot.lane.b32.xlu0 %v7162_v59, %s5150_s20  ;;  %v9980_v58 = vld [vmem:[#allocation19_spill] sm:$0xff] }
 0x2b7   : > { %v1083_v25 = vmul.f32 %v1051_v44, %v966_v6  ;;  %v1052_v16 = vmul.f32 %v9980_v58, %v9976_v2  ;;  %v9983_v44 = vld [vmem:[#allocation176_spill] sm:$0xff] }
 0x2b8   : > { %v2487_v27 = vadd.f32 %v2455_v5, %v2233_v14  ;;  %v7562_v33 = vpop.permute.xlu1 %2277  ;;  %v2677_v5 = vmul.f32 %v7247_v23, %v9983_v44 }
 0x2b9   : > { %9979 = vst [vmem:[#allocation17_spill] sm:$0xff] %v7562_v33  ;;  %v1115_v46 = vadd.f32 %v1083_v25, %v861_v60  ;;  %v2319_v11 = vsel %vm2303_vm7, %v2270_v24, %v7562_v33  ;;  %v7569_v31 = vpop.permute.xlu0 %929  ;;  %1777 = vrot.lane.b32.xlu1 %v7297_v32, %s5151_s22  ;;  %v7578_v60 = vmul.f32 0.16666667, %v628_v39  ;;  %v9984_v25 = vld [vmem:[#allocation61_spill] sm:$0xff]  ;;  %v9986_v33 = vld [vmem:[#allocation24_spill] sm:$0xff] }
 0x2ba   : > { %9981 = vst [vmem:[#allocation22_spill] sm:$0xff] %v7569_v31  ;;  %v2456_v48 = vmul.f32 %v2424_v0, %v2319_v11  ;;  %v962_v37 = vsel %vm953_vm1, %v922_v20, %v7569_v31  ;;  %1191 = vrot.lane.b32.xlu0 %v7162_v59, %s5147_s17  ;;  %v9985_v11 = vld [vmem:[#allocation38_spill] sm:$0xff] }
 0x2bb   : > { %9982 = vst [vmem:[#allocation122_spill] sm:$0xff] %v7578_v60  ;;  %v1084_v14 = vmul.f32 %v1052_v16, %v962_v37  ;;  %v1305_v62 = vmul.f32 %v9986_v33, %v9985_v11 }
 0x2bc   : > { %v2488_v40 = vadd.f32 %v2456_v48, %v2234_v13  ;;  %v2524_v24 = vpop.permute.xlu1 %2523  ;;  %v2678_v48 = vmul.f32 %v7270_v35, %v9983_v44 }
 0x2bd   : > { %v1116_v6 = vadd.f32 %v1084_v14, %v862_v3  ;;  %v2577_v0 = vsel %vm2557_vm8, %v9984_v25, %v2524_v24  ;;  %v1176_v20 = vpop.permute.xlu0 %1175  ;;  %1785 = vrot.lane.b32.xlu1 %v7578_v60, %s5151_s22 }
 0x2be   : > { %v2709_v39 = vmul.f32 %v2677_v5, %v2577_v0  ;;  %v1220_v16 = vsel %vm1207_vm3, %v9987_v34, %v1176_v20  ;;  %1445 = vrot.lane.b32.xlu0 %v7162_v59, %s5149_s19  ;;  %v9990_v5 = vld [vmem:[#allocation25_spill] sm:$0xff] }
 0x2bf   : > { %v1337_v23 = vmul.f32 %v1305_v62, %v1220_v16  ;;  %v1306_v25 = vmul.f32 %v9990_v5, %v9985_v11  ;;  %v9995_v16 = vld [vmem:[#allocation28_spill] sm:$0xff] }
 0x2c0   : > { %v7594_v3 = vadd.f32 %v2709_v39, %v2487_v27  ;;  %v7596_v13 = vpop.permute.xlu1 %2531  ;;  %v9994_v39 = vld [vmem:[#allocation40_spill] sm:$0xff] }
 0x2c1   : > { %9989 = vst [vmem:[#allocation132_spill] sm:$0xff] %v7596_v13  ;;  %v1369_v37 = vadd.f32 %v1337_v23, %v1115_v46  ;;  %v2573_v14 = vsel %vm2557_vm8, %v2524_v24, %v7596_v13  ;;  %v7605_v34 = vpop.permute.xlu0 %1183  ;;  %2031 = vrot.lane.b32.xlu1 %v7297_v32, %s5153_s24  ;;  %v1559_v23 = vmul.f32 %v9995_v16, %v9994_v39  ;;  %v10003_v13 = vld [vmem:[#allocation73_spill] sm:$0xff] }
 0x2c2   : > { %9988 = vst [vmem:[#allocation92_spill] sm:$0xff] %v7594_v3  ;;  %9991 = vst [vmem:[#allocation34_spill] sm:$0xff] %v7605_v34  ;;  %v2710_v62 = vmul.f32 %v2678_v48, %v2573_v14  ;;  %v1216_v27 = vsel %vm1207_vm3, %v1176_v20, %v7605_v34  ;;  %714 = vrot.lane.b32.xlu0 %v7411_v50, %s5148_s18  ;;  %v9996_v48 = vld [vmem:[#allocation71_spill] sm:$0xff] }
 0x2c3   : > { %v1338_v35 = vmul.f32 %v1306_v25, %v1216_v27 }
 0x2c4   : > { %v7614_v46 = vadd.f32 %v2710_v62, %v2488_v40  ;;  %v7616_v24 = vpop.permute.xlu1 %3144 }
 0x2c5   : > { %9993 = vst [vmem:[#allocation147_spill] sm:$0xff] %v7616_v24  ;;  %v1370_v0 = vadd.f32 %v1338_v35, %v1116_v6  ;;  %v1430_v3 = vpop.permute.xlu0 %1429  ;;  %2039 = vrot.lane.b32.xlu1 %v7578_v60, %s5153_s24  ;;  %v9998_v6 = vld [vmem:[#allocation29_spill] sm:$0xff] }
 0x2c6   : > { %9992 = vst [vmem:[#allocation144_spill] sm:$0xff] %v7614_v46  ;;  %v1474_v20 = vsel %vm1461_vm4, %v9996_v48, %v1430_v3  ;;  %941 = vrot.lane.b32.xlu0 %v7411_v50, %s5150_s20  ;;  %v1560_v62 = vmul.f32 %v9998_v6, %v9994_v39  ;;  %v10000_v48 = vld [vmem:[#allocation77_spill] sm:$0xff] }
 0x2c7   : > { %v1591_v14 = vmul.f32 %v1559_v23, %v1474_v20 }
 0x2c8   : > { %v7627_v40 = vpop.permute.xlu1 %3154 }
 0x2c9   : > { %9997 = vst [vmem:[#allocation91_spill] sm:$0xff] %v7627_v40  ;;  %v1623_v25 = vadd.f32 %v1591_v14, %v1369_v37  ;;  %v7631_v27 = vpop.permute.xlu0 %1437  ;;  %2285 = vrot.lane.b32.xlu1 %v7297_v32, %s5152_s23  ;;  %v10002_v37 = vld [vmem:[#allocation84_spill] sm:$0xff] }
 0x2ca   : > { %9999 = vst [vmem:[#allocation168_spill] sm:$0xff] %v7631_v27  ;;  %v1470_v35 = vsel %vm1461_vm4, %v1430_v3, %v7631_v27  ;;  %1787 = vrot.lane.b32.xlu0 %v10000_v48, %s5151_s22  ;;  %v845_v14 = vmul.f32 %v9969_v4, %v10002_v37  ;;  %v10007_v27 = vld [vmem:[#allocation101_spill] sm:$0xff] }
 0x2cb   : > { %v1592_v24 = vmul.f32 %v1560_v62, %v1470_v35 }
 0x2cc   : > { %v7640_v23 = vpop.permute.xlu1 %3164 }
 0x2cd   : > { %10001 = vst [vmem:[#allocation50_spill] sm:$0xff] %v7640_v23  ;;  %v7642_v20 = vadd.f32 %v1592_v24, %v1370_v0  ;;  %v699_v40 = vpop.permute.xlu0 %698  ;;  %v7646_v46 = vpop.f32.mrf.mxu0  ;;  %2293 = vrot.lane.b32.xlu1 %v7578_v60, %s5152_s23  ;;  %v846_v0 = vmul.f32 %v9972_v47, %v10002_v37 }
 0x2ce   : > { %v743_v3 = vsel %vm728_vm2, %v10003_v13, %v699_v40  ;;  %1195 = vrot.lane.b32.xlu0 %v7411_v50, %s5147_s17 }
 0x2cf   : > { %v877_v62 = vmul.f32 %v845_v14, %v743_v3  ;;  %v3065_v35 = vpop.f32.mrf.mxu0 }
 0x2d0   : > { %v7655_v24 = vpop.permute.xlu1 %3174 }
 0x2d1   : > { %10004 = vst [vmem:[#allocation46_spill] sm:$0xff] %v7655_v24  ;;  %v7659_v23 = vpop.permute.xlu0 %706  ;;  %v7661_v44 = vpop.f32.mrf.mxu0  ;;  %2539 = vrot.lane.b32.xlu1 %v7297_v32, %s5154_s25  ;;  %v10006_v24 = vld [vmem:[#allocation35_spill] sm:$0xff]  ;;  %v10008_v32 = vld [vmem:[#allocation44_spill] sm:$0xff] }
 0x2d2   : > { %10005 = vst [vmem:[#allocation82_spill] sm:$0xff] %v7659_v23  ;;  %v739_v13 = vsel %vm728_vm2, %v699_v40, %v7659_v23  ;;  %2041 = vrot.lane.b32.xlu0 %v10000_v48, %s5153_s24  ;;  %v837_v59 = vmul.f32 %v9969_v4, %v10006_v24  ;;  %v1067_v34 = vmul.f32 %v9977_v15, %v10008_v32  ;;  %v10009_v23 = vld [vmem:[#allocation15_spill] sm:$0xff] }
 0x2d3   : > { %v878_v3 = vmul.f32 %v846_v0, %v739_v13  ;;  %v3068_v35 = vpop.f32.mrf.mxu0 }
 0x2d4   : > { %v697_v37 = vpop.permute.xlu1 %696  ;;  %v838_v35 = vmul.f32 %v9972_v47, %v10006_v24 }
 0x2d5   : > { %v742_v39 = vsel %vm728_vm2, %v10007_v27, %v697_v37  ;;  %v926_v40 = vpop.permute.xlu0 %925  ;;  %2547 = vrot.lane.b32.xlu1 %v7578_v60, %s5154_s25 }
 0x2d6   : > { %v869_v14 = vmul.f32 %v837_v59, %v742_v39  ;;  %v968_v0 = vsel %vm953_vm1, %v10009_v23, %v926_v40  ;;  %1449 = vrot.lane.b32.xlu0 %v7411_v50, %s5149_s19  ;;  %v1068_v59 = vmul.f32 %v9980_v58, %v10008_v32  ;;  %v10012_v23 = vld [vmem:[#allocation6_spill] sm:$0xff]  ;;  %v10015_v32 = vld [vmem:[#allocation7_spill] sm:$0xff] }
 0x2d7   : > { %v1099_v13 = vmul.f32 %v1067_v34, %v968_v0  ;;  %v10013_v34 = vld [vmem:[#allocation155_spill] sm:$0xff] }
 0x2d8   : > { %v7688_v27 = vpop.permute.xlu1 %704  ;;  %v7701_v0 = vrot.slane %v10013_v34, %v10012_v23  ;;  %v7712_v36 = vrot.slane %v10013_v34, %v10015_v32 }
 0x2d9   : > { %10010 = vst [vmem:[#allocation112_spill] sm:$0xff] %v7688_v27  ;;  %v1131_v11 = vadd.f32 %v1099_v13, %v877_v62  ;;  %v738_v31 = vsel %vm728_vm2, %v697_v37, %v7688_v27  ;;  %v7695_v39 = vpop.permute.xlu0 %933  ;;  %712 = vrot.lane.b32.xlu1 %v7375_v52, %s5148_s18  ;;  %v10014_v13 = vld [vmem:[#allocation36_spill] sm:$0xff] }
 0x2da   : > { %10011 = vst [vmem:[#allocation97_spill] sm:$0xff] %v7695_v39  ;;  %v870_v50 = vmul.f32 %v838_v35, %v738_v31  ;;  %v964_v62 = vsel %vm953_vm1, %v926_v40, %v7695_v39  ;;  %2295 = vrot.lane.b32.xlu0 %v10000_v48, %s5152_s23  ;;  %v1059_v27 = vmul.f32 %v9977_v15, %v10014_v13  ;;  %v10017_v35 = vld [vmem:[#allocation159_spill] sm:$0xff]  ;;  %v10019_v39 = vld [vmem:[#allocation48_spill] sm:$0xff] }
 0x2db   : > { %v1100_v37 = vmul.f32 %v1068_v59, %v964_v62  ;;  %v1671_v40 = vmul.f32 %v10018_v51, %v10017_v35  ;;  %v1893_v17 = vmul.f32 %v7701_v0, %v10019_v39  ;;  %v1060_v35 = vmul.f32 %v9980_v58, %v10014_v13 }
 0x2dc   : > { %v924_v24 = vpop.permute.xlu1 %923 }
 0x2dd   : > { %v1132_v2 = vadd.f32 %v1100_v37, %v878_v3  ;;  %v967_v31 = vsel %vm953_vm1, %v10016_v43, %v924_v24  ;;  %v1772_v59 = vpop.permute.xlu0 %1771  ;;  %939 = vrot.lane.b32.xlu1 %v7375_v52, %s5150_s20  ;;  %v1703_v3 = vadd.f32 %v1671_v40, %v1623_v25  ;;  %v10024_v40 = vld [vmem:[#allocation54_spill] sm:$0xff] }
 0x2de   : > { %v1091_v62 = vmul.f32 %v1059_v27, %v967_v31  ;;  %v1804_v34 = vsel %vm1795_vm5, %v10020_v8, %v1772_v59  ;;  %2549 = vrot.lane.b32.xlu0 %v10000_v48, %s5154_s25  ;;  %v1672_v31 = vmul.f32 %v10018_v51, %v9845_v56  ;;  %v1894_v8 = vmul.f32 %v7712_v36, %v10019_v39 }
 0x2df   : > { %v1925_v43 = vmul.f32 %v1893_v17, %v1804_v34 }
 0x2e0   : > { %v1123_v37 = vadd.f32 %v1091_v62, %v869_v14  ;;  %v7730_v1 = vpop.permute.xlu1 %931  ;;  %v10023_v14 = vld [vmem:[#allocation80_spill] sm:$0xff]  ;;  %v1313_v62 = vmul.f32 %v9986_v33, %v10024_v40 }
 0x2e1   : > { %10021 = vst [vmem:[#allocation58_spill] sm:$0xff] %v7730_v1  ;;  %v1957_v9 = vadd.f32 %v1925_v43, %v1703_v3  ;;  %v963_v27 = vsel %vm953_vm1, %v924_v24, %v7730_v1  ;;  %v7739_v48 = vpop.permute.xlu0 %1779  ;;  %1193 = vrot.lane.b32.xlu1 %v7375_v52, %s5147_s17  ;;  %v1704_v24 = vadd.f32 %v1672_v31, %v7642_v20  ;;  %v10025_v1 = vld [vmem:[#allocation103_spill] sm:$0xff]  ;;  %v10027_v20 = vld [vmem:[#allocation160_spill] sm:$0xff] }
 0x2e2   : > { %10022 = vst [vmem:[#allocation104_spill] sm:$0xff] %v7739_v48  ;;  %v1092_v17 = vmul.f32 %v1060_v35, %v963_v27  ;;  %v1800_v25 = vsel %vm1795_vm5, %v1772_v59, %v7739_v48  ;;  %1791 = vrot.lane.b32.xlu0 %v10023_v14, %s5151_s22  ;;  %v10026_v27 = vld [vmem:[#allocation57_spill] sm:$0xff] }
 0x2e3   : > { %v1926_v34 = vmul.f32 %v1894_v8, %v1800_v25  ;;  %v1321_v13 = vmul.f32 %v9986_v33, %v10026_v27 }
 0x2e4   : > { %v1124_v56 = vadd.f32 %v1092_v17, %v870_v50  ;;  %v1178_v3 = vpop.permute.xlu1 %1177 }
 0x2e5   : > { %v1958_v43 = vadd.f32 %v1926_v34, %v1704_v24  ;;  %v1221_v35 = vsel %vm1207_vm3, %v10025_v1, %v1178_v3  ;;  %v1180_v59 = vpop.permute.xlu0 %1179  ;;  %1447 = vrot.lane.b32.xlu1 %v7375_v52, %s5149_s19  ;;  %v1314_v1 = vmul.f32 %v9990_v5, %v10024_v40  ;;  %v1322_v34 = vmul.f32 %v9990_v5, %v10026_v27  ;;  %v10033_v27 = vld [vmem:[#allocation53_spill] sm:$0xff] }
 0x2e6   : > { %v1345_v48 = vmul.f32 %v1313_v62, %v1221_v35  ;;  %v1222_v50 = vsel %vm1207_vm3, %v10027_v20, %v1180_v59  ;;  %2045 = vrot.lane.b32.xlu0 %v10023_v14, %s5153_s24  ;;  %v10031_v20 = vld [vmem:[#allocation41_spill] sm:$0xff] }
 0x2e7   : > { %v1353_v31 = vmul.f32 %v1321_v13, %v1222_v50  ;;  %v1567_v50 = vmul.f32 %v9995_v16, %v10031_v20 }
 0x2e8   : > { %v1377_v8 = vadd.f32 %v1345_v48, %v1123_v37  ;;  %v7765_v17 = vpop.permute.xlu1 %1185  ;;  %v10030_v48 = vld [vmem:[#allocation157_spill] sm:$0xff] }
 0x2e9   : > { %10028 = vst [vmem:[#allocation66_spill] sm:$0xff] %v7765_v17  ;;  %v1385_v25 = vadd.f32 %v1353_v31, %v1131_v11  ;;  %v1217_v24 = vsel %vm1207_vm3, %v1178_v3, %v7765_v17  ;;  %v7772_v62 = vpop.permute.xlu0 %1187  ;;  %716 = vrot.lane.b32.xlu1 %v7578_v60, %s5148_s18  ;;  %v7778_v13 = vrot.slane %v10030_v48, %v10012_v23  ;;  %v10032_v17 = vld [vmem:[#allocation131_spill] sm:$0xff] }
 0x2ea   : > { %10029 = vst [vmem:[#allocation69_spill] sm:$0xff] %v7772_v62  ;;  %v1346_v37 = vmul.f32 %v1314_v1, %v1217_v24  ;;  %v1218_v11 = vsel %vm1207_vm3, %v1180_v59, %v7772_v62  ;;  %2299 = vrot.lane.b32.xlu0 %v10023_v14, %s5152_s23  ;;  %v7796_v59 = vrot.slane %v10030_v48, %v10015_v32 }
 0x2eb   : > { %v1354_v3 = vmul.f32 %v1322_v34, %v1218_v11  ;;  %v2147_v1 = vmul.f32 %v7778_v13, %v10033_v27  ;;  %v10034_v34 = vld [vmem:[#allocation107_spill] sm:$0xff] }
 0x2ec   : > { %v1378_v35 = vadd.f32 %v1346_v37, %v1124_v56  ;;  %v1432_v31 = vpop.permute.xlu1 %1431  ;;  %v235_v37 = vld [vmem:[%s9061_s1 + $0x120] sm:$0xff] }
 0x2ed   : > { %v1386_v52 = vadd.f32 %v1354_v3, %v1132_v2  ;;  %v1475_v40 = vsel %vm1461_vm4, %v10032_v17, %v1432_v31  ;;  %v2026_v24 = vpop.permute.xlu0 %2025  ;;  %943 = vrot.lane.b32.xlu1 %v7578_v60, %s5150_s20  ;;  %v1568_v3 = vmul.f32 %v9998_v6, %v10031_v20 }
 0x2ee   : > { %v1599_v56 = vmul.f32 %v1567_v50, %v1475_v40  ;;  %v2058_v2 = vsel %vm2049_vm6, %v10034_v34, %v2026_v24  ;;  %2553 = vrot.lane.b32.xlu0 %v10023_v14, %s5154_s25  ;;  %v2148_v34 = vmul.f32 %v7796_v59, %v10033_v27  ;;  %v10038_v27 = vld [vmem:[#allocation60_spill] sm:$0xff] }
 0x2ef   : > { %v2179_v17 = vmul.f32 %v2147_v1, %v2058_v2  ;;  %v10037_v2 = vld [vmem:[#allocation93_spill] sm:$0xff] }
 0x2f0   : > { %v7806_v11 = vadd.f32 %v1599_v56, %v1377_v8  ;;  %v7810_v62 = vpop.permute.xlu1 %1439 }
 0x2f1   : > { %10035 = vst [vmem:[#allocation136_spill] sm:$0xff] %v7810_v62  ;;  %v2211_v40 = vadd.f32 %v2179_v17, %v1957_v9  ;;  %v1471_v50 = vsel %vm1461_vm4, %v1432_v31, %v7810_v62  ;;  %v7817_v1 = vpop.permute.xlu0 %2033  ;;  %1789 = vrot.lane.b32.xlu1 %v10037_v2, %s5151_s22  ;;  %v853_v31 = vmul.f32 %v9969_v4, %v9910_v41 }
 0x2f2   : > { %10036 = vst [vmem:[#allocation102_spill] sm:$0xff] %v7817_v1  ;;  %v1600_v8 = vmul.f32 %v1568_v3, %v1471_v50  ;;  %v2054_v56 = vsel %vm2049_vm6, %v2026_v24, %v7817_v1  ;;  %4435 = vperm.xlu0 %4984, %v235_v37   ;;  %v1575_v3 = vmul.f32 %v9995_v16, %v10038_v27  ;;  %v10039_v37 = vld [vmem:[#allocation182_spill] sm:$0xff] }
 0x2f3   : > { %v2180_v14 = vmul.f32 %v2148_v34, %v2054_v56  ;;  %v854_v4 = vmul.f32 %v9972_v47, %v9910_v41  ;;  %v10042_v56 = vld [vmem:[#allocation165_spill] sm:$0xff] }
 0x2f4   : > { %v7824_v9 = vadd.f32 %v1600_v8, %v1378_v35  ;;  %v701_v17 = vpop.permute.xlu1 %700  ;;  %v1576_v8 = vmul.f32 %v9998_v6, %v10038_v27  ;;  %v10045_v27 = vld [vmem:[#allocation59_spill] sm:$0xff] }
 0x2f5   : > { %v2212_v62 = vadd.f32 %v2180_v14, %v1958_v43  ;;  %v744_v20 = vsel %vm728_vm2, %v7178_v19, %v701_v17  ;;  %v1434_v50 = vpop.permute.xlu0 %1433  ;;  %1197 = vrot.lane.b32.xlu1 %v7578_v60, %s5147_s17 }
 0x2f6   : > { %v885_v24 = vmul.f32 %v853_v31, %v744_v20  ;;  %v1476_v35 = vsel %vm1461_vm4, %v10039_v37, %v1434_v50  ;;  %v7855_v31 = vrot.slane %v10042_v56, %v10012_v23  ;;  %v10043_v37 = vld [vmem:[#allocation49_spill] sm:$0xff] }
 0x2f7   : > { %v1607_v34 = vmul.f32 %v1575_v3, %v1476_v35 }
 0x2f8   : > { %v7840_v14 = vpop.permute.xlu1 %708  ;;  %v2401_v1 = vmul.f32 %v7855_v31, %v10045_v27 }
 0x2f9   : > { %10040 = vst [vmem:[#allocation63_spill] sm:$0xff] %v7840_v14  ;;  %v7842_v43 = vadd.f32 %v1607_v34, %v1385_v25  ;;  %v740_v19 = vsel %vm728_vm2, %v701_v17, %v7840_v14  ;;  %v7849_v20 = vpop.permute.xlu0 %1441  ;;  %2043 = vrot.lane.b32.xlu1 %v10037_v2, %s5153_s24  ;;  %v1075_v17 = vmul.f32 %v9977_v15, %v10043_v37  ;;  %v10044_v14 = vld [vmem:[#allocation98_spill] sm:$0xff]  ;;  %v10046_v15 = vld [vmem:[#allocation183_spill] sm:$0xff] }
 0x2fa   : > { %10041 = vst [vmem:[#allocation142_spill] sm:$0xff] %v7849_v20  ;;  %v886_v47 = vmul.f32 %v854_v4, %v740_v19  ;;  %v1472_v25 = vsel %vm1461_vm4, %v1434_v50, %v7849_v20  ;;  %v7873_v50 = vrot.slane %v10042_v56, %v10015_v32 }
 0x2fb   : > { %v1608_v3 = vmul.f32 %v1576_v8, %v1472_v25 }
 0x2fc   : > { %v928_v35 = vpop.permute.xlu1 %927  ;;  %v2402_v20 = vmul.f32 %v7873_v50, %v10045_v27 }
 0x2fd   : > { %v7862_v34 = vadd.f32 %v1608_v3, %v1386_v52  ;;  %v969_v41 = vsel %vm953_vm1, %v10044_v14, %v928_v35  ;;  %v2280_v48 = vpop.permute.xlu0 %2279  ;;  %1451 = vrot.lane.b32.xlu1 %v7578_v60, %s5149_s19  ;;  %v1076_v14 = vmul.f32 %v9980_v58, %v10043_v37 }
 0x2fe   : > { %v1107_v4 = vmul.f32 %v1075_v17, %v969_v41  ;;  %v2312_v52 = vsel %vm2303_vm7, %v10046_v15, %v2280_v48  ;;  %v1901_v15 = vmul.f32 %v7701_v0, %v9921_v53 }
 0x2ff   : > { %v2433_v19 = vmul.f32 %v2401_v1, %v2312_v52 }
 0x300   : > { %v1139_v8 = vadd.f32 %v1107_v4, %v885_v24  ;;  %v7880_v25 = vpop.permute.xlu1 %935 }
 0x301   : > { %10047 = vst [vmem:[#allocation115_spill] sm:$0xff] %v7880_v25  ;;  %v2465_v3 = vadd.f32 %v2433_v19, %v2211_v40  ;;  %v965_v60 = vsel %vm953_vm1, %v928_v35, %v7880_v25  ;;  %v7887_v41 = vpop.permute.xlu0 %2287  ;;  %2297 = vrot.lane.b32.xlu1 %v10037_v2, %s5152_s23  ;;  %v7896_v40 = vrot.slane %v9918_v29, %v10012_v23  ;;  %v10048_v35 = vld [vmem:[#allocation86_spill] sm:$0xff] }
 0x302   : > { %v1108_v1 = vmul.f32 %v1076_v14, %v965_v60  ;;  %v2308_v58 = vsel %vm2303_vm7, %v2280_v48, %v7887_v41  ;;  %v1679_v4 = vmul.f32 %v9920_v30, %v10048_v35  ;;  %v10049_v14 = vld [vmem:[#allocation23_spill] sm:$0xff]  ;;  %v1902_v35 = vmul.f32 %v7712_v36, %v9921_v53 }
 0x303   : > { %v2434_v24 = vmul.f32 %v2402_v20, %v2308_v58  ;;  %v2655_v48 = vmul.f32 %v7896_v40, %v9922_v55 }
 0x304   : > { %v1140_v17 = vadd.f32 %v1108_v1, %v886_v47  ;;  %v1774_v52 = vpop.permute.xlu1 %1773  ;;  %v1711_v23 = vadd.f32 %v1679_v4, %v7806_v11 }
 0x305   : > { %v2466_v19 = vadd.f32 %v2434_v24, %v2212_v62  ;;  %v1805_v60 = vsel %vm1795_vm5, %v7280_v38, %v1774_v52  ;;  %v2534_v20 = vpop.permute.xlu0 %2533  ;;  %2551 = vrot.lane.b32.xlu1 %v10037_v2, %s5154_s25  ;;  %v7915_v62 = vrot.slane %v9918_v29, %v10015_v32  ;;  %v1680_v24 = vmul.f32 %v9920_v30, %v7119_v28 }
 0x306   : > { %v1933_v47 = vmul.f32 %v1901_v15, %v1805_v60  ;;  %v2566_v1 = vsel %vm2557_vm8, %v10049_v14, %v2534_v20  ;;  %v10052_v60 = vld [vmem:[#allocation83_spill] sm:$0xff] }
 0x307   : > { %v2687_v58 = vmul.f32 %v2655_v48, %v2566_v1  ;;  %v2656_v15 = vmul.f32 %v7915_v62, %v9922_v55  ;;  %v1712_v28 = vadd.f32 %v1680_v24, %v7824_v9  ;;  %v1909_v24 = vmul.f32 %v7701_v0, %v9933_v49 }
 0x308   : > { %v1965_v38 = vadd.f32 %v1933_v47, %v1711_v23  ;;  %v7921_v25 = vpop.permute.xlu1 %1781 }
 0x309   : > { %10050 = vst [vmem:[#allocation148_spill] sm:$0xff] %v7921_v25  ;;  %v7923_v11 = vadd.f32 %v2687_v58, %v2465_v3  ;;  %v1801_v4 = vsel %vm1795_vm5, %v1774_v52, %v7921_v25  ;;  %v7930_v32 = vpop.permute.xlu0 %2541  ;;  %1793 = vrot.lane.b32.xlu1 %v10052_v60, %s5151_s22  ;;  %v1329_v52 = vmul.f32 %v9986_v33, %v9929_v54 }
 0x30a   : > { %v1934_v48 = vmul.f32 %v1902_v35, %v1801_v4  ;;  %v2562_v3 = vsel %vm2557_vm8, %v2534_v20, %v7930_v32  ;;  %v10055_v4 = vld [vmem:[#allocation156_spill] sm:$0xff] }
 0x30b   : > { %10051 = vst [vmem:[#allocation151_spill] sm:$0xff] %v7923_v11  ;;  %v2688_v23 = vmul.f32 %v2656_v15, %v2562_v3  ;;  %v10054_v11 = vld [vmem:[#allocation42_spill] sm:$0xff] }
 0x30c   : > { %v1966_v47 = vadd.f32 %v1934_v48, %v1712_v28  ;;  %v1182_v14 = vpop.permute.xlu1 %1181  ;;  %v1687_v9 = vmul.f32 %v9932_v18, %v10054_v11 }
 0x30d   : > { %v7940_v1 = vadd.f32 %v2688_v23, %v2466_v19  ;;  %v1223_v58 = vsel %vm1207_vm3, %v7323_v42, %v1182_v14  ;;  %v1776_v35 = vpop.permute.xlu0 %1775  ;;  %2047 = vrot.lane.b32.xlu1 %v10052_v60, %s5153_s24  ;;  %v1330_v42 = vmul.f32 %v9990_v5, %v9929_v54 }
 0x30e   : > { %v1361_v20 = vmul.f32 %v1329_v52, %v1223_v58  ;;  %v1806_v33 = vsel %vm1795_vm5, %v10055_v4, %v1776_v35  ;;  %v1719_v19 = vadd.f32 %v1687_v9, %v7842_v43  ;;  %v1688_v52 = vmul.f32 %v9932_v18, %v7081_v45 }
 0x30f   : > { %10053 = vst [vmem:[#allocation116_spill] sm:$0xff] %v7940_v1  ;;  %v1941_v15 = vmul.f32 %v1909_v24, %v1806_v33  ;;  %v1910_v58 = vmul.f32 %v7712_v36, %v9933_v49  ;;  %v2155_v45 = vmul.f32 %v7778_v13, %v9939_v26  ;;  %v10080_v1 = vld [vmem:[#allocation13_spill] sm:$0xff] }
 0x310   : > { %v1393_v28 = vadd.f32 %v1361_v20, %v1139_v8  ;;  %v7957_v11 = vpop.permute.xlu1 %1189  ;;  %v3071_v48 = vpop.f32.mrf.mxu0  ;;  %v1720_v24 = vadd.f32 %v1688_v52, %v7862_v34 }
 0x311   : > { %10056 = vst [vmem:[#allocation119_spill] sm:$0xff] %v7957_v11  ;;  %v1973_v3 = vadd.f32 %v1941_v15, %v1719_v19  ;;  %v1219_v23 = vsel %vm1207_vm3, %v1182_v14, %v7957_v11  ;;  %v7966_v43 = vpop.permute.xlu0 %1783  ;;  %2301 = vrot.lane.b32.xlu1 %v10052_v60, %s5152_s23  ;;  %s8978_s23 = scalar_lea.vmem %s9064_s4, %s4818_s21 }
 0x312   : > { %v1362_v5 = vmul.f32 %v1330_v42, %v1219_v23  ;;  %v1802_v8 = vsel %vm1795_vm5, %v1776_v35, %v7966_v43  ;;  %v3073_v9 = vpop.f32.mrf.mxu0  ;;  %v2163_v42 = vmul.f32 %v7778_v13, %v9812_v21 }
 0x313   : > { %v1942_v14 = vmul.f32 %v1910_v58, %v1802_v8  ;;  %v2156_v9 = vmul.f32 %v7796_v59, %v9939_v26 }
 0x314   : > { %v1394_v20 = vadd.f32 %v1362_v5, %v1140_v17  ;;  %v2028_v4 = vpop.permute.xlu1 %2027  ;;  %v3074_v33 = vpop.f32.mrf.mxu0  ;;  %v10057_v17 = vld [vmem:[#allocation128_spill] sm:$0xff]  ;;  %v236_v5 = vld [vmem:[%s9061_s1 + $0x128] sm:$0xff] }
 0x315   : > { %v1974_v19 = vadd.f32 %v1942_v14, %v1720_v24  ;;  %v2059_v15 = vsel %vm2049_vm6, %v7359_v61, %v2028_v4  ;;  %v2030_v23 = vpop.permute.xlu0 %2029  ;;  %v3079_v35 = vpack.c.bf16 %v3074_v33, %v3071_v48  ;;  %2555 = vrot.lane.b32.xlu1 %v10052_v60, %s5154_s25  ;;  %v215_v61 = vld [vmem:[%s9061_s1 + $0x80] sm:$0xff]  ;;  %v10059_v14 = vmov 0.0  }
 0x316   : > { %v2187_v34 = vmul.f32 %v2155_v45, %v2059_v15  ;;  %v2060_v52 = vsel %vm2049_vm6, %v10057_v17, %v2030_v23  ;;  %v3076_v58 = vpop.f32.mrf.mxu0  ;;  %v2164_v15 = vmul.f32 %v7796_v59, %v9812_v21  ;;  %v10083_v60 = vld [vmem:[#allocation22_spill] sm:$0xff] }
 0x317   : > { %v2195_v8 = vmul.f32 %v2163_v42, %v2060_v52  ;;  %4853 = vmatpush3.bf16.msra.mxu1 %v3079_v35  ;;  %v1583_v52 = vmul.f32 %v9995_v16, %v9944_v22 }
 0x318   : > { %v2219_v48 = vadd.f32 %v2187_v34, %v1965_v38  ;;  %v7994_v24 = vpop.permute.xlu1 %2035  ;;  %4854 = vmatprep.subr.bf16.mxu1 %v10059_v14  ;;  %v8007_v34 = vpack.c.bf16 %v215_v61, %v215_v61 }
 0x319   : > { %10058 = vst [vmem:[#allocation88_spill] sm:$0xff] %v7994_v24  ;;  %v2227_v45 = vadd.f32 %v2195_v8, %v1973_v3  ;;  %v2055_v33 = vsel %vm2049_vm6, %v2028_v4, %v7994_v24  ;;  %v8002_v42 = vpop.permute.xlu0 %2037  ;;  %4440 = vperm.xlu1 %4985, %v236_v5   ;;  %v10061_v3 = vpack.c.bf16 %v7661_v44, %v7646_v46 }
 0x31a   : > { %v2188_v35 = vmul.f32 %v2156_v9, %v2055_v33  ;;  %v2056_v38 = vsel %vm2049_vm6, %v2030_v23, %v8002_v42  ;;  %10060 = vst [vmem:[#allocation68_spill] sm:$0xff] %v8007_v34  ;;  %v2417_v23 = vmul.f32 %v7855_v31, %v9851_v10 }
 0x31b   : > { %v2196_v17 = vmul.f32 %v2164_v15, %v2056_v38  ;;  %4855 = vmatpush3.bf16.msra.mxu1 %v10061_v3  ;;  %v2418_v15 = vmul.f32 %v7873_v50, %v9851_v10 }
 0x31c   : > { %v2220_v4 = vadd.f32 %v2188_v35, %v1966_v47  ;;  %v1436_v58 = vpop.permute.xlu1 %1435  ;;  %v1584_v47 = vmul.f32 %v9998_v6, %v9944_v22  ;;  %v2409_v6 = vmul.f32 %v7855_v31, %v9947_v57 }
 0x31d   : > { %v2228_v8 = vadd.f32 %v2196_v17, %v1974_v19  ;;  %v1477_v5 = vsel %vm1461_vm4, %v7395_v7, %v1436_v58  ;;  %v2284_v61 = vpop.permute.xlu0 %2283 }
 0x31e   : > { %v1615_v9 = vmul.f32 %v1583_v52, %v1477_v5  ;;  %v2314_v44 = vsel %vm2303_vm7, %v7399_v63, %v2284_v61  ;;  %4857 = vmatmul.mubr.msk.bf16.vlgmr.msra.gmra.mxu1 %vm3080_vm10, %v8007_v34  ;;  %v10063_v52 = vld [vmem:[#allocation153_spill] sm:$0xff] }
 0x31f   : > { %v2449_v46 = vmul.f32 %v2417_v23, %v2314_v44  ;;  %v10064_v5 = vld [vmem:[#allocation181_spill] sm:$0xff] }
 0x320   : > { %v8024_v16 = vadd.f32 %v1615_v9, %v1393_v28  ;;  %v8028_v19 = vpop.permute.xlu1 %1443  ;;  %v2671_v23 = vmul.f32 %v7896_v40, %v10064_v5 }
 0x321   : > { %10062 = vst [vmem:[#allocation139_spill] sm:$0xff] %v8028_v19  ;;  %v2481_v7 = vadd.f32 %v2449_v46, %v2227_v45  ;;  %v1473_v33 = vsel %vm1461_vm4, %v1436_v58, %v8028_v19  ;;  %v8035_v63 = vpop.permute.xlu0 %2291  ;;  %v10065_v46 = vld [vmem:[#allocation2_spill] sm:$0xff] }
 0x322   : > { %v1616_v35 = vmul.f32 %v1584_v47, %v1473_v33  ;;  %v2310_v28 = vsel %vm2303_vm7, %v2284_v61, %v8035_v63  ;;  %v2410_v33 = vmul.f32 %v7873_v50, %v9947_v57 }
 0x323   : > { %v2450_v38 = vmul.f32 %v2418_v15, %v2310_v28  ;;  %v2672_v28 = vmul.f32 %v7915_v62, %v10064_v5 }
 0x324   : > { %v8040_v17 = vadd.f32 %v1616_v35, %v1394_v20  ;;  %v2282_v45 = vpop.permute.xlu1 %2281 }
 0x325   : > { %v2482_v3 = vadd.f32 %v2450_v38, %v2228_v8  ;;  %v2313_v58 = vsel %vm2303_vm7, %v10063_v52, %v2282_v45  ;;  %v2538_v9 = vpop.permute.xlu0 %2537 }
 0x326   : > { %v2441_v44 = vmul.f32 %v2409_v6, %v2313_v58  ;;  %v2568_v61 = vsel %vm2557_vm8, %v10065_v46, %v2538_v9 }
 0x327   : > { %v2703_v20 = vmul.f32 %v2671_v23, %v2568_v61  ;;  %v10069_v23 = vld [vmem:[#allocation62_spill] sm:$0xff]  ;;  %v10071_v61 = vld [vmem:[#allocation123_spill] sm:$0xff] }
 0x328   : > { %v2473_v47 = vadd.f32 %v2441_v44, %v2219_v48  ;;  %v8054_v15 = vpop.permute.xlu1 %2289 }
 0x329   : > { %10066 = vst [vmem:[#allocation10_spill] sm:$0xff] %v8054_v15  ;;  %v8056_v8 = vadd.f32 %v2703_v20, %v2481_v7  ;;  %v2309_v35 = vsel %vm2303_vm7, %v2282_v45, %v8054_v15  ;;  %v8063_v38 = vpop.permute.xlu0 %2545  ;;  %v2663_v7 = vmul.f32 %v7896_v40, %v10069_v23 }
 0x32a   : > { %10068 = vst [vmem:[#allocation11_spill] sm:$0xff] %v8063_v38  ;;  %v2442_v6 = vmul.f32 %v2410_v33, %v2309_v35  ;;  %v2564_v48 = vsel %vm2557_vm8, %v2538_v9, %v8063_v38  ;;  %v2664_v33 = vmul.f32 %v7915_v62, %v10069_v23  ;;  %v10073_v9 = vld [vmem:[#allocation138_spill] sm:$0xff] }
 0x32b   : > { %10067 = vst [vmem:[#allocation74_spill] sm:$0xff] %v8056_v8  ;;  %v2704_v52 = vmul.f32 %v2672_v28, %v2564_v48  ;;  %v10074_v28 = vld [vmem:[#allocation135_spill] sm:$0xff] }
 0x32c   : > { %v2474_v58 = vadd.f32 %v2442_v6, %v2220_v4  ;;  %v2536_v44 = vpop.permute.xlu1 %2535  ;;  %v10076_v48 = vld [vmem:[#allocation47_spill] sm:$0xff] }
 0x32d   : > { %v8070_v46 = vadd.f32 %v2704_v52, %v2482_v3  ;;  %v2567_v45 = vsel %vm2557_vm8, %v10071_v61, %v2536_v44  ;;  %v711_v20 = vpop.permute.xlu0 %710  ;;  %v10077_v52 = vld [vmem:[#allocation20_spill] sm:$0xff] }
 0x32e   : > { %v2695_v8 = vmul.f32 %v2663_v7, %v2567_v45  ;;  %v729_v4 = vsel %vm728_vm2, %v711_v20, %v10073_v9  ;;  %v733_v3 = vsel %vm728_vm2, %v10074_v28, %v711_v20  ;;  %v1053_v61 = vmul.f32 %v10077_v52, %v10076_v48  ;;  %v10079_v7 = vld [vmem:[#allocation12_spill] sm:$0xff]  ;;  %v10081_v9 = vld [vmem:[#allocation21_spill] sm:$0xff] }
 0x32f   : > { %10070 = vst [vmem:[#allocation166_spill] sm:$0xff] %v8070_v46  ;;  %v10078_v46 = vld [vmem:[#allocation87_spill] sm:$0xff]  ;;  %v10082_v28 = vld [vmem:[#allocation140_spill] sm:$0xff] }
 0x330   : > { %v8077_v35 = vadd.f32 %v2695_v8, %v2473_v47  ;;  %v8085_v6 = vpop.permute.xlu1 %2543  ;;  %v831_v45 = vmul.f32 %v10079_v7, %v10078_v46  ;;  %v832_v47 = vmul.f32 %v10080_v1, %v10078_v46 }
 0x331   : > { %10075 = vst [vmem:[#allocation65_spill] sm:$0xff] %v8085_v6  ;;  %v2563_v8 = vsel %vm2557_vm8, %v2536_v44, %v8085_v6  ;;  %v938_v34 = vpop.permute.xlu0 %937  ;;  %v10085_v44 = vld [vmem:[#allocation154_spill] sm:$0xff]  ;;  %v10086_v6 = vld [vmem:[#allocation67_spill] sm:$0xff] }
 0x332   : > { %10072 = vst [vmem:[#allocation18_spill] sm:$0xff] %v8077_v35  ;;  %v1054_v35 = vmul.f32 %v10081_v9, %v10076_v48  ;;  %v2696_v20 = vmul.f32 %v2664_v33, %v2563_v8  ;;  %v954_v14 = vsel %vm953_vm1, %v938_v34, %v10082_v28  ;;  %v958_v23 = vsel %vm953_vm1, %v10083_v60, %v938_v34  ;;  %v10087_v48 = vld [vmem:[#allocation72_spill] sm:$0xff]  ;;  %v10088_v28 = vld [vmem:[#allocation126_spill] sm:$0xff]  ;;  %v10090_v34 = vld [vmem:[#allocation27_spill] sm:$0xff] }
 0x333   : > { %v863_v15 = vmul.f32 %v831_v45, %v733_v3  ;;  %v864_v57 = vmul.f32 %v832_v47, %v729_v4  ;;  %v1085_v46 = vmul.f32 %v1053_v61, %v958_v23  ;;  %v1695_v24 = vmul.f32 %v10086_v6, %v10085_v44  ;;  %v10089_v60 = vld [vmem:[#allocation38_spill] sm:$0xff] }
 0x334   : > { %v1086_v19 = vmul.f32 %v1054_v35, %v954_v14  ;;  %v8104_v22 = vadd.f32 %v2696_v20, %v2474_v58  ;;  %v1917_v33 = vmul.f32 %v7701_v0, %v10087_v48  ;;  %v1778_v8 = vpop.permute.xlu1 %1777  ;;  %v1308_v4 = vmul.f32 %v10090_v34, %v10089_v60  ;;  %v10091_v35 = vld [vmem:[#allocation26_spill] sm:$0xff] }
 0x335   : > { %v1117_v26 = vadd.f32 %v1085_v46, %v863_v15  ;;  %v1807_v54 = vsel %vm1795_vm5, %v10088_v28, %v1778_v8  ;;  %v1192_v23 = vpop.permute.xlu0 %1191  ;;  %v1727_v14 = vadd.f32 %v1695_v24, %v8024_v16  ;;  %v1307_v3 = vmul.f32 %v10091_v35, %v10089_v60  ;;  %v10092_v61 = vld [vmem:[#allocation158_spill] sm:$0xff] }
 0x336   : > { %10084 = vst [vmem:[#allocation19_spill] sm:$0xff] %v8104_v22  ;;  %v1118_v11 = vadd.f32 %v1086_v19, %v864_v57  ;;  %v1949_v58 = vmul.f32 %v1917_v33, %v1807_v54  ;;  %v1208_v0 = vsel %vm1207_vm3, %v1192_v23, %v10092_v61  ;;  %v10093_v15 = vld [vmem:[#allocation34_spill] sm:$0xff]  ;;  %v1918_v54 = vmul.f32 %v7712_v36, %v10087_v48  ;;  %v10096_v33 = vld [vmem:[#allocation40_spill] sm:$0xff] }
 0x337   : > { %v1212_v57 = vsel %vm1207_vm3, %v10093_v15, %v1192_v23  ;;  %v1340_v19 = vmul.f32 %v1308_v4, %v1208_v0  ;;  %v10094_v20 = vld [vmem:[#allocation78_spill] sm:$0xff]  ;;  %v10098_v4 = vld [vmem:[#allocation31_spill] sm:$0xff] }
 0x338   : > { %v1981_v45 = vadd.f32 %v1949_v58, %v1727_v14  ;;  %v1339_v47 = vmul.f32 %v1307_v3, %v1212_v57  ;;  %v1696_v46 = vmul.f32 %v10086_v6, %v10094_v20  ;;  %v8128_v24 = vpop.permute.xlu1 %1785  ;;  %v10097_v28 = vld [vmem:[#allocation30_spill] sm:$0xff]  ;;  %v1562_v23 = vmul.f32 %v10098_v4, %v10096_v33  ;;  %v10099_v0 = vld [vmem:[#allocation167_spill] sm:$0xff] }
 0x339   : > { %10095 = vst [vmem:[#allocation61_spill] sm:$0xff] %v8128_v24  ;;  %v1372_v16 = vadd.f32 %v1340_v19, %v1118_v11  ;;  %v1803_v44 = vsel %vm1795_vm5, %v1778_v8, %v8128_v24  ;;  %v1561_v60 = vmul.f32 %v10097_v28, %v10096_v33  ;;  %v1446_v14 = vpop.permute.xlu0 %1445  ;;  %v10100_v11 = vld [vmem:[#allocation168_spill] sm:$0xff]  ;;  %v10101_v20 = vld [vmem:[#allocation75_spill] sm:$0xff] }
 0x33a   : > { %v1371_v58 = vadd.f32 %v1339_v47, %v1117_v26  ;;  %v1728_v3 = vadd.f32 %v1696_v46, %v8040_v17  ;;  %v1950_v61 = vmul.f32 %v1918_v54, %v1803_v44  ;;  %v1462_v36 = vsel %vm1461_vm4, %v1446_v14, %v10099_v0  ;;  %v10102_v26 = vld [vmem:[#allocation124_spill] sm:$0xff] }
 0x33b   : > { %v1466_v15 = vsel %vm1461_vm4, %v10100_v11, %v1446_v14  ;;  %v1594_v8 = vmul.f32 %v1562_v23, %v1462_v36  ;;  %v2171_v22 = vmul.f32 %v7778_v13, %v10101_v20  ;;  %v2172_v44 = vmul.f32 %v7796_v59, %v10101_v20  ;;  %v10103_v0 = vld [vmem:[#allocation44_spill] sm:$0xff]  ;;  %v10104_v13 = vld [vmem:[#allocation45_spill] sm:$0xff]  ;;  %v10108_v36 = vld [vmem:[#allocation155_spill] sm:$0xff] }
 0x33c   : > { %v1982_v57 = vadd.f32 %v1950_v61, %v1728_v3  ;;  %v1593_v19 = vmul.f32 %v1561_v60, %v1466_v15  ;;  %v2032_v33 = vpop.permute.xlu1 %2031  ;;  %v1069_v23 = vmul.f32 %v10077_v52, %v10103_v0  ;;  %v1070_v60 = vmul.f32 %v10081_v9, %v10103_v0  ;;  %v10105_v3 = vld [vmem:[#allocation82_spill] sm:$0xff]  ;;  %v10109_v11 = vld [vmem:[#allocation84_spill] sm:$0xff]  ;;  %v10113_v20 = vld [vmem:[#allocation79_spill] sm:$0xff] }
 0x33d   : > { %v1626_v24 = vadd.f32 %v1594_v8, %v1372_v16  ;;  %v2061_v17 = vsel %vm2049_vm6, %v10102_v26, %v2032_v33  ;;  %v715_v47 = vpop.permute.xlu0 %714  ;;  %v847_v15 = vmul.f32 %v10079_v7, %v10109_v11  ;;  %v10110_v26 = vld [vmem:[#allocation9_spill] sm:$0xff] }
 0x33e   : > { %v1625_v46 = vadd.f32 %v1593_v19, %v1371_v58  ;;  %v2203_v54 = vmul.f32 %v2171_v22, %v2061_v17  ;;  %v731_v16 = vsel %vm728_vm2, %v715_v47, %v10104_v13  ;;  %v735_v61 = vsel %vm728_vm2, %v10105_v3, %v715_v47  ;;  %v10107_v22 = vld [vmem:[#allocation8_spill] sm:$0xff]  ;;  %v10112_v13 = vld [vmem:[#allocation97_spill] sm:$0xff] }
 0x33f   : > { %v8165_v59 = vrot.slane %v10108_v36, %v10107_v22  ;;  %v8176_v17 = vrot.slane %v10108_v36, %v10110_v26  ;;  %v879_v48 = vmul.f32 %v847_v15, %v735_v61  ;;  %v10114_v36 = vld [vmem:[#allocation173_spill] sm:$0xff] }
 0x340   : > { %v2235_v14 = vadd.f32 %v2203_v54, %v1981_v45  ;;  %v8161_v58 = vpop.permute.xlu1 %2039  ;;  %v848_v45 = vmul.f32 %v10080_v1, %v10109_v11  ;;  %v10111_v54 = vld [vmem:[#allocation129_spill] sm:$0xff]  ;;  %v2425_v11 = vmul.f32 %v7855_v31, %v10113_v20 }
 0x341   : > { %10106 = vst [vmem:[#allocation24_spill] sm:$0xff] %v8161_v58  ;;  %v2057_v8 = vsel %vm2049_vm6, %v2032_v33, %v8161_v58  ;;  %v942_v19 = vpop.permute.xlu0 %941  ;;  %v10118_v15 = vld [vmem:[#allocation89_spill] sm:$0xff] }
 0x342   : > { %v2204_v47 = vmul.f32 %v2172_v44, %v2057_v8  ;;  %v956_v0 = vsel %vm953_vm1, %v942_v19, %v10111_v54  ;;  %v960_v3 = vsel %vm953_vm1, %v10112_v13, %v942_v19  ;;  %v880_v6 = vmul.f32 %v848_v45, %v731_v16  ;;  %v10115_v8 = vld [vmem:[#allocation77_spill] sm:$0xff]  ;;  %v10117_v16 = vld [vmem:[#allocation104_spill] sm:$0xff] }
 0x343   : > { %v1101_v33 = vmul.f32 %v1069_v23, %v960_v3  ;;  %v1102_v58 = vmul.f32 %v1070_v60, %v956_v0  ;;  %v1673_v44 = vmul.f32 %v10018_v51, %v10114_v36  ;;  %v1674_v38 = vmul.f32 %v10018_v51, %v10115_v8  ;;  %v10116_v13 = vld [vmem:[#allocation17_spill] sm:$0xff] }
 0x344   : > { %v2236_v25 = vadd.f32 %v2204_v47, %v1982_v57  ;;  %v2286_v53 = vpop.permute.xlu1 %2285  ;;  %v1895_v54 = vmul.f32 %v8165_v59, %v10019_v39  ;;  %v1896_v23 = vmul.f32 %v8176_v17, %v10019_v39  ;;  %v10119_v45 = vld [vmem:[#allocation57_spill] sm:$0xff]  ;;  %v2426_v39 = vmul.f32 %v7873_v50, %v10113_v20 }
 0x345   : > { %v1133_v5 = vadd.f32 %v1101_v33, %v879_v48  ;;  %v1134_v19 = vadd.f32 %v1102_v58, %v880_v6  ;;  %v2315_v31 = vsel %vm2303_vm7, %v10116_v13, %v2286_v53  ;;  %v1788_v57 = vpop.permute.xlu0 %1787  ;;  %v1323_v6 = vmul.f32 %v10091_v35, %v10119_v45  ;;  %v10120_v36 = vld [vmem:[#allocation157_spill] sm:$0xff] }
 0x346   : > { %v2457_v60 = vmul.f32 %v2425_v11, %v2315_v31  ;;  %v1796_v61 = vsel %vm1795_vm5, %v10117_v16, %v1788_v57  ;;  %v1824_v51 = vsel %vm1795_vm5, %v1788_v57, %v10118_v15  ;;  %v1705_v48 = vadd.f32 %v1673_v44, %v1625_v46  ;;  %v10123_v15 = vld [vmem:[#allocation176_spill] sm:$0xff] }
 0x347   : > { %v1706_v58 = vadd.f32 %v1674_v38, %v1626_v24  ;;  %v1927_v47 = vmul.f32 %v1895_v54, %v1796_v61  ;;  %v1928_v0 = vmul.f32 %v1896_v23, %v1824_v51  ;;  %v1324_v33 = vmul.f32 %v10090_v34, %v10119_v45  ;;  %v10122_v54 = vld [vmem:[#allocation69_spill] sm:$0xff] }
 0x348   : > { %v2489_v3 = vadd.f32 %v2457_v60, %v2235_v14  ;;  %v8207_v11 = vpop.permute.xlu1 %2293  ;;  %v8213_v8 = vrot.slane %v10120_v36, %v10107_v22  ;;  %v8220_v46 = vrot.slane %v10120_v36, %v10110_v26  ;;  %v10121_v14 = vld [vmem:[#allocation143_spill] sm:$0xff]  ;;  %v10124_v51 = vld [vmem:[#allocation53_spill] sm:$0xff] }
 0x349   : > { %v1959_v13 = vadd.f32 %v1927_v47, %v1705_v48  ;;  %v1960_v31 = vadd.f32 %v1928_v0, %v1706_v58  ;;  %v2311_v38 = vsel %vm2303_vm7, %v2286_v53, %v8207_v11  ;;  %v1196_v24 = vpop.permute.xlu0 %1195  ;;  %v2679_v53 = vmul.f32 %v7896_v40, %v10123_v15  ;;  %v10125_v47 = vld [vmem:[#allocation132_spill] sm:$0xff] }
 0x34a   : > { %v2458_v50 = vmul.f32 %v2426_v39, %v2311_v38  ;;  %v1210_v44 = vsel %vm1207_vm3, %v1196_v24, %v10121_v14  ;;  %v1214_v23 = vsel %vm1207_vm3, %v10122_v54, %v1196_v24  ;;  %v2149_v45 = vmul.f32 %v8213_v8, %v10124_v51  ;;  %v10127_v38 = vld [vmem:[#allocation95_spill] sm:$0xff] }
 0x34b   : > { %v1355_v57 = vmul.f32 %v1323_v6, %v1214_v23  ;;  %v1356_v60 = vmul.f32 %v1324_v33, %v1210_v44  ;;  %v2150_v39 = vmul.f32 %v8220_v46, %v10124_v51  ;;  %v10126_v33 = vld [vmem:[#allocation102_spill] sm:$0xff]  ;;  %v2680_v54 = vmul.f32 %v7915_v62, %v10123_v15  ;;  %v10130_v23 = vld [vmem:[#allocation60_spill] sm:$0xff] }
 0x34c   : > { %v2490_v16 = vadd.f32 %v2458_v50, %v2236_v25  ;;  %v2540_v61 = vpop.permute.xlu1 %2539 }
 0x34d   : > { %v1387_v48 = vadd.f32 %v1355_v57, %v1133_v5  ;;  %v1388_v58 = vadd.f32 %v1356_v60, %v1134_v19  ;;  %v2569_v0 = vsel %vm2557_vm8, %v10125_v47, %v2540_v61  ;;  %v2042_v36 = vpop.permute.xlu0 %2041  ;;  %v10128_v19 = vld [vmem:[#allocation35_spill] sm:$0xff]  ;;  %v1577_v57 = vmul.f32 %v10097_v28, %v10130_v23 }
 0x34e   : > { %v2711_v6 = vmul.f32 %v2679_v53, %v2569_v0  ;;  %v2050_v25 = vsel %vm2049_vm6, %v10126_v33, %v2042_v36  ;;  %v2078_v40 = vsel %vm2049_vm6, %v2042_v36, %v10127_v38  ;;  %v839_v50 = vmul.f32 %v10079_v7, %v10128_v19  ;;  %v10132_v36 = vld [vmem:[#allocation142_spill] sm:$0xff] }
 0x34f   : > { %v2181_v24 = vmul.f32 %v2149_v45, %v2050_v25  ;;  %v2182_v5 = vmul.f32 %v2150_v39, %v2078_v40  ;;  %v1578_v60 = vmul.f32 %v10098_v4, %v10130_v23  ;;  %v10131_v39 = vld [vmem:[#allocation150_spill] sm:$0xff]  ;;  %v840_v33 = vmul.f32 %v10080_v1, %v10128_v19  ;;  %v10133_v25 = vld [vmem:[#allocation36_spill] sm:$0xff] }
 0x350   : > { %v8245_v14 = vadd.f32 %v2711_v6, %v2489_v3  ;;  %v8247_v44 = vpop.permute.xlu1 %2547  ;;  %v8260_v3 = vrot.slane %v10042_v56, %v10107_v22  ;;  %v1061_v38 = vmul.f32 %v10077_v52, %v10133_v25 }
 0x351   : > { %v2213_v53 = vadd.f32 %v2181_v24, %v1959_v13  ;;  %v2214_v51 = vadd.f32 %v2182_v5, %v1960_v31  ;;  %v2565_v45 = vsel %vm2557_vm8, %v2540_v61, %v8247_v44  ;;  %v1450_v47 = vpop.permute.xlu0 %1449  ;;  %v8270_v13 = vrot.slane %v10042_v56, %v10110_v26  ;;  %v10134_v56 = vld [vmem:[#allocation41_spill] sm:$0xff] }
 0x352   : > { %10129 = vst [vmem:[#allocation134_spill] sm:$0xff] %v8245_v14  ;;  %v2712_v0 = vmul.f32 %v2680_v54, %v2565_v45  ;;  %v1464_v62 = vsel %vm1461_vm4, %v1450_v47, %v10131_v39  ;;  %v1468_v6 = vsel %vm1461_vm4, %v10132_v36, %v1450_v47  ;;  %v1062_v5 = vmul.f32 %v10081_v9, %v10133_v25  ;;  %v10135_v45 = vld [vmem:[#allocation112_spill] sm:$0xff]  ;;  %v10139_v14 = vld [vmem:[#allocation175_spill] sm:$0xff] }
 0x353   : > { %v1609_v31 = vmul.f32 %v1577_v57, %v1468_v6  ;;  %v1610_v61 = vmul.f32 %v1578_v60, %v1464_v62  ;;  %v8282_v54 = vrot.slane %v9918_v29, %v10107_v22  ;;  %v1569_v23 = vmul.f32 %v10097_v28, %v10134_v56  ;;  %v10137_v62 = vld [vmem:[#allocation94_spill] sm:$0xff] }
 0x354   : > { %v8276_v40 = vadd.f32 %v2712_v0, %v2490_v16  ;;  %v713_v24 = vpop.permute.xlu1 %712  ;;  %v2403_v16 = vmul.f32 %v8260_v3, %v10045_v27  ;;  %v10136_v0 = vld [vmem:[#allocation172_spill] sm:$0xff]  ;;  %v2404_v22 = vmul.f32 %v8270_v13, %v10045_v27 }
 0x355   : > { %v1641_v57 = vadd.f32 %v1609_v31, %v1387_v48  ;;  %v1642_v60 = vadd.f32 %v1610_v61, %v1388_v58  ;;  %v734_v19 = vsel %vm728_vm2, %v10135_v45, %v713_v24  ;;  %v2296_v47 = vpop.permute.xlu0 %2295  ;;  %v730_v39 = vsel %vm728_vm2, %v713_v24, %v10136_v0  ;;  %v10138_v31 = vld [vmem:[#allocation54_spill] sm:$0xff] }
 0x356   : > { %v2304_v48 = vsel %vm2303_vm7, %v7887_v41, %v2296_v47  ;;  %v8301_v58 = vrot.slane %v9918_v29, %v10110_v26  ;;  %v2332_v36 = vsel %vm2303_vm7, %v2296_v47, %v10137_v62  ;;  %v1315_v61 = vmul.f32 %v10091_v35, %v10138_v31  ;;  %v10140_v47 = vld [vmem:[#allocation58_spill] sm:$0xff] }
 0x357   : > { %v2435_v6 = vmul.f32 %v2403_v16, %v2304_v48  ;;  %v1316_v25 = vmul.f32 %v10090_v34, %v10138_v31  ;;  %v871_v27 = vmul.f32 %v839_v50, %v734_v19  ;;  %v2436_v24 = vmul.f32 %v2404_v22, %v2332_v36  ;;  %v10141_v31 = vld [vmem:[#allocation96_spill] sm:$0xff] }
 0x358   : > { %v940_v45 = vpop.permute.xlu1 %939  ;;  %v2657_v41 = vmul.f32 %v8282_v54, %v9922_v55  ;;  %v2658_v29 = vmul.f32 %v8301_v58, %v9922_v55  ;;  %v872_v26 = vmul.f32 %v840_v33, %v730_v39  ;;  %v10142_v33 = vld [vmem:[#allocation130_spill] sm:$0xff]  ;;  %v10143_v39 = vld [vmem:[#allocation80_spill] sm:$0xff] }
 0x359   : > { %v2467_v0 = vadd.f32 %v2435_v6, %v2213_v53  ;;  %v955_v16 = vsel %vm953_vm1, %v940_v45, %v10139_v14  ;;  %v959_v48 = vsel %vm953_vm1, %v10140_v47, %v940_v45  ;;  %v2550_v62 = vpop.permute.xlu0 %2549  ;;  %v2468_v50 = vadd.f32 %v2436_v24, %v2214_v51 }
 0x35a   : > { %v1093_v19 = vmul.f32 %v1061_v38, %v959_v48  ;;  %v1094_v22 = vmul.f32 %v1062_v5, %v955_v16  ;;  %v2558_v36 = vsel %vm2557_vm8, %v7930_v32, %v2550_v62  ;;  %v2586_v55 = vsel %vm2557_vm8, %v2550_v62, %v10141_v31  ;;  %v10145_v32 = vld [vmem:[#allocation177_spill] sm:$0xff] }
 0x35b   : > { %v2689_v53 = vmul.f32 %v2657_v41, %v2558_v36  ;;  %v1689_v14 = vmul.f32 %v9932_v18, %v10142_v33  ;;  %v1690_v6 = vmul.f32 %v9932_v18, %v10143_v39  ;;  %v2690_v51 = vmul.f32 %v2658_v29, %v2586_v55  ;;  %v10146_v41 = vld [vmem:[#allocation66_spill] sm:$0xff] }
 0x35c   : > { %v1125_v45 = vadd.f32 %v1093_v19, %v871_v27  ;;  %v1126_v47 = vadd.f32 %v1094_v22, %v872_v26  ;;  %v1194_v38 = vpop.permute.xlu1 %1193  ;;  %v1911_v5 = vmul.f32 %v8165_v59, %v9933_v49  ;;  %v1912_v18 = vmul.f32 %v8176_v17, %v9933_v49  ;;  %v10147_v22 = vld [vmem:[#allocation125_spill] sm:$0xff] }
 0x35d   : > { %v8332_v24 = vadd.f32 %v2689_v53, %v2467_v0  ;;  %v1209_v16 = vsel %vm1207_vm3, %v1194_v38, %v10145_v32  ;;  %v1213_v48 = vsel %vm1207_vm3, %v10146_v41, %v1194_v38  ;;  %v1792_v27 = vpop.permute.xlu0 %1791  ;;  %v8342_v26 = vadd.f32 %v2690_v51, %v2468_v50 }
 0x35e   : > { %v1347_v29 = vmul.f32 %v1315_v61, %v1213_v48  ;;  %v1348_v62 = vmul.f32 %v1316_v25, %v1209_v16  ;;  %v1798_v0 = vsel %vm1795_vm5, %v7966_v43, %v1792_v27  ;;  %v1721_v19 = vadd.f32 %v1689_v14, %v1641_v57  ;;  %v10148_v25 = vld [vmem:[#allocation85_spill] sm:$0xff]  ;;  %v10149_v43 = vld [vmem:[#allocation136_spill] sm:$0xff]  ;;  %v10151_v16 = vld [vmem:[#allocation43_spill] sm:$0xff] }
 0x35f   : > { %10144 = vst [vmem:[#allocation25_spill] sm:$0xff] %v8332_v24  ;;  %v1826_v36 = vsel %vm1795_vm5, %v1792_v27, %v10147_v22  ;;  %v1943_v31 = vmul.f32 %v1911_v5, %v1798_v0  ;;  %v1570_v55 = vmul.f32 %v10098_v4, %v10134_v56  ;;  %v1722_v33 = vadd.f32 %v1690_v6, %v1642_v60 }
 0x360   : > { %v1379_v53 = vadd.f32 %v1347_v29, %v1125_v45  ;;  %v1380_v49 = vadd.f32 %v1348_v62, %v1126_v47  ;;  %v1944_v50 = vmul.f32 %v1912_v18, %v1826_v36  ;;  %v1448_v39 = vpop.permute.xlu1 %1447  ;;  %v2165_v14 = vmul.f32 %v8213_v8, %v9812_v21  ;;  %v10150_v47 = vld [vmem:[#allocation105_spill] sm:$0xff]  ;;  %v10152_v36 = vld [vmem:[#allocation146_spill] sm:$0xff] }
 0x361   : > { %v1975_v61 = vadd.f32 %v1943_v31, %v1721_v19  ;;  %v1463_v51 = vsel %vm1461_vm4, %v1448_v39, %v10148_v25  ;;  %v1467_v57 = vsel %vm1461_vm4, %v10149_v43, %v1448_v39  ;;  %v2046_v38 = vpop.permute.xlu0 %2045  ;;  %v2166_v60 = vmul.f32 %v8220_v46, %v9812_v21  ;;  %v10156_v25 = vld [vmem:[#allocation181_spill] sm:$0xff] }
 0x362   : > { %v1976_v5 = vadd.f32 %v1944_v50, %v1722_v33  ;;  %v1601_v56 = vmul.f32 %v1569_v23, %v1467_v57  ;;  %v1602_v45 = vmul.f32 %v1570_v55, %v1463_v51  ;;  %v2052_v6 = vsel %vm2049_vm6, %v8002_v42, %v2046_v38  ;;  %v10153_v55 = vld [vmem:[#allocation63_spill] sm:$0xff]  ;;  %v10155_v33 = vld [vmem:[#allocation14_spill] sm:$0xff] }
 0x363   : > { %v2080_v32 = vsel %vm2049_vm6, %v2046_v38, %v10150_v47  ;;  %v855_v41 = vmul.f32 %v10079_v7, %v10151_v16  ;;  %v856_v48 = vmul.f32 %v10080_v1, %v10151_v16  ;;  %v2197_v27 = vmul.f32 %v2165_v14, %v2052_v6  ;;  %v10157_v14 = vld [vmem:[#allocation152_spill] sm:$0xff]  ;;  %v10159_v47 = vld [vmem:[#allocation11_spill] sm:$0xff]  ;;  %v10160_v16 = vld [vmem:[#allocation169_spill] sm:$0xff] }
 0x364   : > { %v1633_v18 = vadd.f32 %v1601_v56, %v1379_v53  ;;  %v1634_v23 = vadd.f32 %v1602_v45, %v1380_v49  ;;  %v2198_v29 = vmul.f32 %v2166_v60, %v2080_v32  ;;  %v717_v62 = vpop.permute.xlu1 %716  ;;  %v2419_v21 = vmul.f32 %v8260_v3, %v9851_v10  ;;  %v10154_v49 = vld [vmem:[#allocation145_spill] sm:$0xff] }
 0x365   : > { %v2420_v42 = vmul.f32 %v8270_v13, %v9851_v10  ;;  %v2300_v0 = vpop.permute.xlu0 %2299  ;;  %v1077_v19 = vmul.f32 %v10077_v52, %v10043_v37  ;;  %v1078_v7 = vmul.f32 %v10081_v9, %v10043_v37  ;;  %v2229_v22 = vadd.f32 %v2197_v27, %v1975_v61 }
 0x366   : > { %v2230_v1 = vadd.f32 %v2198_v29, %v1976_v5  ;;  %v732_v31 = vsel %vm728_vm2, %v717_v62, %v10152_v36  ;;  %v736_v53 = vsel %vm728_vm2, %v10153_v55, %v717_v62  ;;  %v2306_v10 = vsel %vm2303_vm7, %v8035_v63, %v2300_v0  ;;  %v10158_v5 = vld [vmem:[#allocation115_spill] sm:$0xff] }
 0x367   : > { %v2334_v52 = vsel %vm2303_vm7, %v2300_v0, %v10154_v49  ;;  %v1681_v37 = vmul.f32 %v9920_v30, %v10155_v33  ;;  %v1682_v9 = vmul.f32 %v9920_v30, %v10037_v2  ;;  %v2451_v50 = vmul.f32 %v2419_v21, %v2306_v10 }
 0x368   : > { %v2452_v39 = vmul.f32 %v2420_v42, %v2334_v52  ;;  %v944_v61 = vpop.permute.xlu1 %943  ;;  %v2673_v51 = vmul.f32 %v8282_v54, %v10156_v25  ;;  %v2674_v43 = vmul.f32 %v8301_v58, %v10156_v25  ;;  %v887_v63 = vmul.f32 %v855_v41, %v736_v53  ;;  %v10167_v25 = vld [vmem:[#allocation164_spill] sm:$0xff] }
 0x369   : > { %v888_v57 = vmul.f32 %v856_v48, %v732_v31  ;;  %v957_v38 = vsel %vm953_vm1, %v944_v61, %v10157_v14  ;;  %v961_v56 = vsel %vm953_vm1, %v10158_v5, %v944_v61  ;;  %v2554_v30 = vpop.permute.xlu0 %2553  ;;  %v2483_v2 = vadd.f32 %v2451_v50, %v2229_v22  ;;  %v10161_v48 = vld [vmem:[#allocation52_spill] sm:$0xff]  ;;  %v10163_v31 = vld [vmem:[#allocation113_spill] sm:$0xff]  ;;  %v10169_v5 = vld [vmem:[#allocation70_spill] sm:$0xff] }
 0x36a   : > { %v2484_v45 = vadd.f32 %v2452_v39, %v2230_v1  ;;  %v1109_v60 = vmul.f32 %v1077_v19, %v961_v56  ;;  %v1110_v6 = vmul.f32 %v1078_v7, %v957_v38  ;;  %v2560_v32 = vsel %vm2557_vm8, %v10159_v47, %v2554_v30  ;;  %v10162_v1 = vld [vmem:[#allocation148_spill] sm:$0xff]  ;;  %v10166_v39 = vld [vmem:[#allocation51_spill] sm:$0xff]  ;;  %v218_v61 = vld [vmem:[%s9061_s1 + $0x98] sm:$0xff] }
 0x36b   : > { %v2588_v41 = vsel %vm2557_vm8, %v2554_v30, %v10160_v16  ;;  %v1903_v27 = vmul.f32 %v8165_v59, %v10161_v48  ;;  %v1904_v29 = vmul.f32 %v8176_v17, %v10161_v48  ;;  %v2705_v42 = vmul.f32 %v2673_v51, %v2560_v32 }
 0x36c   : > { %v1141_v62 = vadd.f32 %v1109_v60, %v887_v63  ;;  %v1142_v21 = vadd.f32 %v1110_v6, %v888_v57  ;;  %v2706_v0 = vmul.f32 %v2674_v43, %v2588_v41  ;;  %v1790_v19 = vpop.permute.xlu1 %1789  ;;  %v1713_v7 = vadd.f32 %v1681_v37, %v1633_v18  ;;  %v10168_v43 = vld [vmem:[#allocation119_spill] sm:$0xff]  ;;  %v10171_v6 = vld [vmem:[#allocation117_spill] sm:$0xff] }
 0x36d   : > { %v1714_v22 = vadd.f32 %v1682_v9, %v1634_v23  ;;  %v1797_v36 = vsel %vm1795_vm5, %v10162_v1, %v1790_v19  ;;  %v1825_v55 = vsel %vm1795_vm5, %v1790_v19, %v10163_v31  ;;  %v8422_v53 = vadd.f32 %v2705_v42, %v2483_v2  ;;  %v217_v9 = vld [vmem:[%s9061_s1 + $0x90] sm:$0xff]  ;;  %v10173_v42 = vld [vmem:[#allocation109_spill] sm:$0xff]  ;;  %v10174_v19 = vld [vmem:[#allocation139_spill] sm:$0xff] }
 0x36e   : > { %v8424_v10 = vadd.f32 %v2706_v0, %v2484_v45  ;;  %v1935_v49 = vmul.f32 %v1903_v27, %v1797_v36  ;;  %v1936_v52 = vmul.f32 %v1904_v29, %v1825_v55  ;;  %v1331_v18 = vmul.f32 %v10091_v35, %v10166_v39  ;;  %v10170_v45 = vld [vmem:[#allocation88_spill] sm:$0xff] }
 0x36f   : > { %10164 = vst [vmem:[#allocation28_spill] sm:$0xff] %v8422_v53  ;;  %v1332_v23 = vmul.f32 %v10090_v34, %v10166_v39  ;;  %v8442_v63 = vpack.c.bf16 %v218_v61, %v217_v9  ;;  %v2157_v56 = vmul.f32 %v8213_v8, %v10169_v5  ;;  %v2158_v30 = vmul.f32 %v8220_v46, %v10169_v5  ;;  %v10172_v27 = vld [vmem:[#allocation56_spill] sm:$0xff]  ;;  %v10178_v61 = vld [vmem:[#allocation62_spill] sm:$0xff] }
 0x370   : > { %10165 = vst [vmem:[#allocation71_spill] sm:$0xff] %v8424_v10  ;;  %v1967_v33 = vadd.f32 %v1935_v49, %v1713_v7  ;;  %v1968_v50 = vadd.f32 %v1936_v52, %v1714_v22  ;;  %v1198_v37 = vpop.permute.xlu1 %1197  ;;  %v1585_v29 = vmul.f32 %v10097_v28, %v10172_v27  ;;  %v10175_v55 = vld [vmem:[#allocation76_spill] sm:$0xff]  ;;  %v10176_v52 = vld [vmem:[#allocation10_spill] sm:$0xff] }
 0x371   : > { %v1211_v51 = vsel %vm1207_vm3, %v1198_v37, %v10167_v25  ;;  %v1215_v35 = vsel %vm1207_vm3, %v10168_v43, %v1198_v37  ;;  %4862 = vmatprep.mubr.msk.bf16.mxu1 %vm3177_vm11, %v8442_v63  ;;  %v2411_v49 = vmul.f32 %v8260_v3, %v10175_v55  ;;  %v2412_v28 = vmul.f32 %v8270_v13, %v10175_v55  ;;  %v10187_v55 = vld [vmem:[#allocation75_spill] sm:$0xff]  ;;  %v10243_v10 = vld [vmem:[#allocation180_spill] sm:$0xff] }
 0x372   : > { %v1363_v34 = vmul.f32 %v1331_v18, %v1215_v35  ;;  %v1364_v57 = vmul.f32 %v1332_v23, %v1211_v51  ;;  %v2665_v25 = vmul.f32 %v8282_v54, %v10178_v61  ;;  %v2666_v51 = vmul.f32 %v8301_v58, %v10178_v61  ;;  %v10179_v35 = vld [vmem:[#allocation65_spill] sm:$0xff] }
 0x374   : > { %v1395_v14 = vadd.f32 %v1363_v34, %v1141_v62  ;;  %v1396_v38 = vadd.f32 %v1364_v57, %v1142_v21  ;;  %v2044_v2 = vpop.permute.xlu1 %2043  ;;  %v1586_v62 = vmul.f32 %v10098_v4, %v10172_v27  ;;  %v10180_v57 = vld [vmem:[#allocation120_spill] sm:$0xff]  ;;  %v10185_v27 = vld [vmem:[#allocation61_spill] sm:$0xff] }
 0x375   : > { %v2051_v60 = vsel %vm2049_vm6, %v10170_v45, %v2044_v2  ;;  %v2079_v47 = vsel %vm2049_vm6, %v2044_v2, %v10171_v6  ;;  %v10183_v45 = vld [vmem:[#allocation83_spill] sm:$0xff] }
 0x376   : > { %v2189_v32 = vmul.f32 %v2157_v56, %v2051_v60  ;;  %v2190_v16 = vmul.f32 %v2158_v30, %v2079_v47  ;;  %v10181_v56 = vld [vmem:[#allocation122_spill] sm:$0xff]  ;;  %v10182_v30 = vld [vmem:[#allocation67_spill] sm:$0xff] }
 0x377   : > { %v1697_v2 = vmul.f32 %v10182_v30, %v10181_v56  ;;  %v1698_v60 = vmul.f32 %v10182_v30, %v10183_v45 }
 0x378   : > { %v2221_v41 = vadd.f32 %v2189_v32, %v1967_v33  ;;  %v2222_v48 = vadd.f32 %v2190_v16, %v1968_v50  ;;  %v1452_v21 = vpop.permute.xlu1 %1451  ;;  %v10177_v50 = vld [vmem:[#allocation118_spill] sm:$0xff]  ;;  %v10184_v32 = vld [vmem:[#allocation72_spill] sm:$0xff] }
 0x379   : > { %v1465_v0 = vsel %vm1461_vm4, %v1452_v21, %v10173_v42  ;;  %v1469_v7 = vsel %vm1461_vm4, %v10174_v19, %v1452_v21  ;;  %v1919_v16 = vmul.f32 %v8165_v59, %v10184_v32  ;;  %v2173_v59 = vmul.f32 %v8213_v8, %v10187_v55 }
 0x37a   : > { %v1617_v22 = vmul.f32 %v1585_v29, %v1469_v7  ;;  %v1618_v1 = vmul.f32 %v1586_v62, %v1465_v0  ;;  %v10186_v62 = vld [vmem:[#allocation133_spill] sm:$0xff]  ;;  %v2428_v8 = vmul.f32 %v8270_v13, %v10113_v20 }
 0x37c   : > { %v1649_v36 = vadd.f32 %v1617_v22, %v1395_v14  ;;  %v1650_v31 = vadd.f32 %v1618_v1, %v1396_v38  ;;  %v2298_v4 = vpop.permute.xlu1 %2297 }
 0x37d   : > { %v2305_v33 = vsel %vm2303_vm7, %v10176_v52, %v2298_v4  ;;  %v2333_v39 = vsel %vm2303_vm7, %v2298_v4, %v10177_v50  ;;  %v10189_v52 = vld [vmem:[#allocation137_spill] sm:$0xff] }
 0x37e   : > { %v2443_v18 = vmul.f32 %v2411_v49, %v2305_v33  ;;  %v2444_v23 = vmul.f32 %v2412_v28, %v2333_v39  ;;  %v1729_v42 = vadd.f32 %v1697_v2, %v1649_v36  ;;  %v1730_v0 = vadd.f32 %v1698_v60, %v1650_v31  ;;  %v10188_v28 = vld [vmem:[#allocation24_spill] sm:$0xff]  ;;  %v10194_v2 = vld [vmem:[#allocation141_spill] sm:$0xff] }
 0x37f   : > { %v10196_v60 = vld [vmem:[#allocation81_spill] sm:$0xff] }
 0x380   : > { %v2475_v37 = vadd.f32 %v2443_v18, %v2221_v41  ;;  %v2476_v9 = vadd.f32 %v2444_v23, %v2222_v48  ;;  %v2552_v43 = vpop.permute.xlu1 %2551  ;;  %v1920_v41 = vmul.f32 %v8176_v17, %v10184_v32  ;;  %v2174_v17 = vmul.f32 %v8220_v46, %v10187_v55  ;;  %v10201_v55 = vld [vmem:[#allocation161_spill] sm:$0xff] }
 0x381   : > { %v2559_v34 = vsel %vm2557_vm8, %v10179_v35, %v2552_v43  ;;  %v2587_v14 = vsel %vm2557_vm8, %v2552_v43, %v10180_v57  ;;  %v2427_v18 = vmul.f32 %v8260_v3, %v10113_v20  ;;  %v2681_v3 = vmul.f32 %v8282_v54, %v10123_v15 }
 0x382   : > { %v2697_v38 = vmul.f32 %v2665_v25, %v2559_v34  ;;  %v2698_v5 = vmul.f32 %v2666_v51, %v2587_v14  ;;  %v2682_v20 = vmul.f32 %v8301_v58, %v10123_v15  ;;  %v10195_v58 = vld [vmem:[#allocation33_spill] sm:$0xff] }
 0x383   : > { %v2778_v32 = vadd.f32 %v10196_v60, %v10195_v58 }
 0x384   : > { %v8490_v6 = vadd.f32 %v2697_v38, %v2475_v37  ;;  %v8492_v47 = vadd.f32 %v2698_v5, %v2476_v9  ;;  %v1794_v48 = vpop.permute.xlu1 %1793  ;;  %v10190_v37 = vld [vmem:[#allocation171_spill] sm:$0xff] }
 0x385   : > { %v1799_v29 = vsel %vm1795_vm5, %v10185_v27, %v1794_v48  ;;  %v1827_v21 = vsel %vm1795_vm5, %v1794_v48, %v10186_v62  ;;  %v10198_v48 = vld [vmem:[#allocation110_spill] sm:$0xff]  ;;  %v2810_v62 = vadd.f32 3.0, %v2778_v32 }
 0x386   : > { %v1951_v19 = vmul.f32 %v1919_v16, %v1799_v29  ;;  %v1952_v7 = vmul.f32 %v1920_v41, %v1827_v21  ;;  %v10197_v41 = vld [vmem:[#allocation32_spill] sm:$0xff] }
 0x387   : > { %v2770_v27 = vadd.f32 %v10198_v48, %v10197_v41 }
 0x388   : > { %v1983_v22 = vadd.f32 %v1951_v19, %v1729_v42  ;;  %v1984_v1 = vadd.f32 %v1952_v7, %v1730_v0  ;;  %v2048_v49 = vpop.permute.xlu1 %2047  ;;  %v10199_v0 = vld [vmem:[#allocation37_spill] sm:$0xff] }
 0x389   : > { %v2053_v4 = vsel %vm2049_vm6, %v10188_v28, %v2048_v49  ;;  %v2081_v36 = vsel %vm2049_vm6, %v2048_v49, %v10189_v52  ;;  %v2802_v42 = vadd.f32 3.0, %v2770_v27  ;;  %v2777_v19 = vadd.f32 %v10196_v60, %v10199_v0  ;;  %v220_v52 = vld [vmem:[%s9061_s1 + $0xa8] sm:$0xff] }
 0x38a   : > { %v2205_v31 = vmul.f32 %v2173_v59, %v2053_v4  ;;  %v2206_v33 = vmul.f32 %v2174_v17, %v2081_v36  ;;  %v10202_v17 = vld [vmem:[#allocation127_spill] sm:$0xff]  ;;  %v219_v4 = vld [vmem:[%s9061_s1 + $0xa0] sm:$0xff] }
 0x38b   : > { %v2769_v49 = vadd.f32 %v10198_v48, %v10202_v17  ;;  %v2834_v36 = vmax.f32 %v2802_v42, 0.0 }
 0x38c   : > { %v2237_v50 = vadd.f32 %v2205_v31, %v1983_v22  ;;  %v2238_v39 = vadd.f32 %v2206_v33, %v1984_v1  ;;  %v2302_v46 = vpop.permute.xlu1 %2301  ;;  %v2842_v22 = vmax.f32 %v2810_v62, 0.0  ;;  %v10200_v1 = vld [vmem:[#allocation144_spill] sm:$0xff]  ;;  %v10203_v31 = vld [vmem:[#allocation3_spill] sm:$0xff]  ;;  %v10204_v33 = vld [vmem:[#allocation149_spill] sm:$0xff] }
 0x38d   : > { %v2307_v23 = vsel %vm2303_vm7, %v8207_v11, %v2302_v46  ;;  %v2335_v9 = vsel %vm2303_vm7, %v2302_v46, %v10190_v37  ;;  %v10191_v11 = vld [vmem:[#allocation163_spill] sm:$0xff]  ;;  %v2794_v59 = vadd.f32 %v10201_v55, %v10200_v1  ;;  %v222_v46 = vld [vmem:[%s9061_s1 + $0xb8] sm:$0xff] }
 0x38e   : > { %v2459_v61 = vmul.f32 %v2427_v18, %v2307_v23  ;;  %v2460_v25 = vmul.f32 %v2428_v8, %v2335_v9  ;;  %v221_v8 = vld [vmem:[%s9061_s1 + $0xb0] sm:$0xff]  ;;  %v2874_v23 = vmin.f32 %v2842_v22, 6.0  ;;  %v2801_v9 = vadd.f32 3.0, %v2769_v49 }
 0x38f   : > { %v2826_v37 = vadd.f32 3.0, %v2794_v59 }
 0x390   : > { %v2491_v51 = vadd.f32 %v2459_v61, %v2237_v50  ;;  %v2492_v43 = vadd.f32 %v2460_v25, %v2238_v39  ;;  %v2556_v35 = vpop.permute.xlu1 %2555  ;;  %v2786_v50 = vadd.f32 %v10204_v33, %v10203_v31  ;;  %v2809_v39 = vadd.f32 3.0, %v2777_v19 }
 0x391   : > { %v2561_v13 = vsel %vm2557_vm8, %v8247_v44, %v2556_v35  ;;  %v2589_v34 = vsel %vm2557_vm8, %v2556_v35, %v10191_v11  ;;  %v8565_v25 = vpack.c.bf16 %v220_v52, %v219_v4 }
 0x392   : > { %v2713_v57 = vmul.f32 %v2681_v3, %v2561_v13  ;;  %v2714_v14 = vmul.f32 %v2682_v20, %v2589_v34  ;;  %v2818_v35 = vadd.f32 3.0, %v2786_v50  ;;  %v2841_v3 = vmax.f32 %v2809_v39, 0.0  ;;  %v10207_v20 = vld [vmem:[#allocation106_spill] sm:$0xff]  ;;  %v10208_v13 = vld [vmem:[#allocation92_spill] sm:$0xff] }
 0x393   : > { %10205 = vst [vmem:[#allocation101_spill] sm:$0xff] %v8565_v25  ;;  %v2793_v11 = vadd.f32 %v10201_v55, %v10208_v13  ;;  %v2906_v34 = vmul.f32 %v2874_v23, %v2778_v32 }
 0x394   : > { %v8534_v38 = vadd.f32 %v2713_v57, %v2491_v51  ;;  %v8536_v5 = vadd.f32 %v2714_v14, %v2492_v43  ;;  %v8567_v51 = vpack.c.bf16 %v222_v46, %v221_v8  ;;  %v2866_v43 = vmin.f32 %v2834_v36, 6.0  ;;  %v10214_v36 = vld [vmem:[#allocation114_spill] sm:$0xff] }
 0x395   : > { %v2858_v57 = vmax.f32 %v2826_v37, 0.0  ;;  %v2833_v14 = vmax.f32 %v2801_v9, 0.0  ;;  %v2850_v32 = vmax.f32 %v2818_v35, 0.0  ;;  %v2825_v41 = vadd.f32 3.0, %v2793_v11 }
 0x396   : > { %10192 = vst [vmem:[#allocation29_spill] sm:$0xff] %v8534_v38  ;;  %10193 = vst [vmem:[#allocation73_spill] sm:$0xff] %v8536_v5  ;;  %v2898_v58 = vmul.f32 %v2866_v43, %v2770_v27  ;;  %v10216_v8 = vmov 0.0   ;;  %v10246_v5 = vld [vmem:[#allocation100_spill] sm:$0xff] }
 0x397   : > { %10206 = vst [vmem:[#allocation15_spill] sm:$0xff] %v8567_v51  ;;  %v2890_v62 = vmin.f32 %v2858_v57, 6.0  ;;  %v2882_v22 = vmin.f32 %v2850_v32, 6.0  ;;  %v2857_v17 = vmax.f32 %v2825_v41, 0.0 }
 0x399   : > { %v2914_v31 = vmul.f32 %v2882_v22, %v2786_v50 }
 0x3de   : > { %v3118_v56 = vpop.f32.mrf.mxu1 }
 0x3df   : > { %v3124_v30 = vmul.f32 0.0625, %v3118_v56  ;;  %v10209_v56 = vld [vmem:[#allocation39_spill] sm:$0xff] }
 0x3e0   : > { %v4858_v54 = vpop.f32.mrf.mxu1 }
 0x3e1   : > { %v3130_v45 = vadd.f32 %v10194_v2, %v3124_v30  ;;  %v2785_v30 = vadd.f32 %v10204_v33, %v10209_v56  ;;  %v10210_v54 = vld [vmem:[#allocation108_spill] sm:$0xff] }
 0x3e2   : > { %v3121_v15 = vpop.f32.mrf.mxu1 }
 0x3e3   : > { %v3131_v44 = vadd.f32 3.0, %v3130_v45  ;;  %v224_v15 = vld [vmem:[%s9061_s1 + $0xc8] sm:$0xff]  ;;  %v2817_v0 = vadd.f32 3.0, %v2785_v30 }
 0x3e4   : > { %v4859_v16 = vpop.f32.mrf.mxu1 }
 0x3e5   : > { %v3132_v29 = vmax.f32 %v3131_v44, 0.0  ;;  %v2873_v44 = vmin.f32 %v2841_v3, 6.0  ;;  %v10211_v16 = vld [vmem:[#allocation111_spill] sm:$0xff]  ;;  %v2849_v52 = vmax.f32 %v2817_v0, 0.0 }
 0x3e7   : > { %v3133_v21 = vmin.f32 %v3132_v29, 6.0  ;;  %v8586_v29 = vmul.f32 0.16666667, %v2906_v34  ;;  %v2905_v1 = vmul.f32 %v2873_v44, %v2777_v19  ;;  %v2881_v23 = vmin.f32 %v2849_v52, 6.0  ;;  %v10225_v44 = vld [vmem:[#allocation147_spill] sm:$0xff] }
 0x3e9   : > { %v3134_v7 = vmul.f32 %v3133_v21, %v3130_v45  ;;  %v223_v45 = vld [vmem:[%s9061_s1 + $0xc0] sm:$0xff]  ;;  %10212 = vst [vmem:[#allocation6_spill] sm:$0xff] %v8586_v29  ;;  %v2865_v21 = vmin.f32 %v2833_v14, 6.0  ;;  %v8597_v39 = vmul.f32 0.16666667, %v2905_v1  ;;  %v2913_v50 = vmul.f32 %v2881_v23, %v2785_v30 }
 0x3ea   : > { %v8588_v42 = vpack.c.bf16 %v224_v15, %v223_v45  ;;  %v10223_v14 = vld [vmem:[#allocation90_spill] sm:$0xff]  ;;  %v10224_v45 = vld [vmem:[#allocation91_spill] sm:$0xff] }
 0x3eb   : > { %v3135_v28 = vmul.f32 0.16666667, %v3134_v7  ;;  %v8590_v7 = vmul.f32 0.16666667, %v2898_v58  ;;  %v2897_v4 = vmul.f32 %v2865_v21, %v2769_v49  ;;  %10215 = vst [vmem:[#allocation174_spill] sm:$0xff] %v8597_v39 }
 0x3ec   : > { %v8612_v43 = vmul.f32 0.16666667, %v2913_v50 }
 0x3ed   : > { %v3136_v18 = vpack.c.bf16 %v3135_v28, %v3135_v28  ;;  %10213 = vst [vmem:[#allocation7_spill] sm:$0xff] %v8590_v7  ;;  %v3421_v27 = vpack.c.bf16 %v8586_v29, %v8590_v7  ;;  %v2922_v28 = vmul.f32 %v2890_v62, %v2794_v59  ;;  %v8602_v46 = vmul.f32 0.16666667, %v2897_v4  ;;  %v10227_v4 = vld [vmem:[#allocation50_spill] sm:$0xff] }
 0x3ee   : > { %v8604_v59 = vmul.f32 0.16666667, %v2914_v31  ;;  %10221 = vst [vmem:[#allocation103_spill] sm:$0xff] %v8612_v43 }
 0x3ef   : > { %4924 = vmatprep.subr.msk.bf16.mxu1 %vm3190_vm12, %v3136_v18  ;;  %v3192_v61 = vsel %vm3190_vm12, %v3136_v18, 0  ;;  %v2889_v18 = vmin.f32 %v2857_v17, 6.0  ;;  %v8600_v19 = vmul.f32 0.16666667, %v2922_v28  ;;  %10218 = vst [vmem:[#allocation64_spill] sm:$0xff] %v8602_v46  ;;  %v3420_v49 = vpack.c.bf16 %v8597_v39, %v8602_v46  ;;  %v10226_v17 = vld [vmem:[#allocation55_spill] sm:$0xff] }
 0x3f0   : > { %4861 = vmatpush3.bf16.msra.mxu1 %v3192_v61  ;;  %10219 = vst [vmem:[#allocation48_spill] sm:$0xff] %v8604_v59  ;;  %v10237_v39 = vld [vmem:[#allocation134_spill] sm:$0xff] }
 0x3f1   : > { %3436 = vmatprep.subr.bf16.mxu1 %v10207_v20  ;;  %10217 = vst [vmem:[#allocation159_spill] sm:$0xff] %v8600_v19  ;;  %v2921_v37 = vmul.f32 %v2889_v18, %v2793_v11  ;;  %v3423_v9 = vpack.c.bf16 %v8600_v19, %v8604_v59  ;;  %v10222_v11 = vld [vmem:[#allocation121_spill] sm:$0xff] }
 0x3f3   : > { %4863 = vmatmul.mubr.msk.bf16.vlgmr.msra.gmra.mxu1 %vm3177_vm11, %v8565_v25  ;;  %v8610_v61 = vmul.f32 0.16666667, %v2921_v37 }
 0x3f4   : > { %3437 = vmatpush1.bf16.xpose.msra.mxu1 %v10210_v54  ;;  %4866 = vmatprep.mubr.msk.bf16.mxu1 %vm3177_vm11, %v8567_v51 }
 0x3f5   : > { %3438 = vmatprep.subr.bf16.mxu1 %v10211_v16  ;;  %10220 = vst [vmem:[#allocation170_spill] sm:$0xff] %v8610_v61  ;;  %v3422_v35 = vpack.c.bf16 %v8610_v61, %v8612_v43 }
 0x3fb   : > { %4867 = vmatmul.mubr.msk.bf16.gmra.mxu1 %vm3177_vm11, %v8588_v42 }
 0x3fc   : > { %3439 = vmatpush1.bf16.xpose.msra.mxu1 %v10214_v36  ;;  %3456 = vmatprep.mubr.bf16.mxu1 %v3421_v27 }
 0x3fd   : > { %4870 = vmatprep.subr.bf16.mxu1 %v10216_v8 }
 0x403   : > { %3457 = vmatmul.mubr.bf16.vlgmr.msra.gmra.mxu1 %v3420_v49  ;;  %v10228_v49 = vld [vmem:[#allocation46_spill] sm:$0xff] }
 0x404   : > { %3464 = vmatprep.mubr.bf16.mxu1 %v3423_v9 }
 0x40b   : > { %3465 = vmatmul.mubr.bf16.gmra.mxu1 %v3422_v35 }
 0x40c   : > { %4874 = vmatprep.mubr.msk.bf16.mxu1 %vm5156_vm9, %v10216_v8 }
 0x4b3   : > { %v4864_v3 = vpop.f32.mrf.mxu1 }
 0x4b4   : > { %v3237_v56 = vadd.f32 %v4864_v3, %v10223_v14 }
 0x4b5   : > { %v3228_v13 = vpop.f32.mrf.mxu1 }
 0x4b6   : > { %v3229_v34 = vadd.f32 %v3228_v13, %v10222_v11  ;;  %v4751_v21 = vmul.f32 -1.442695, %v3237_v56  ;;  %v10229_v13 = vld [vmem:[#allocation16_spill] sm:$0xff] }
 0x4b7   : > { %v4865_v57 = vpop.f32.mrf.mxu1 }
 0x4b8   : > { %v4749_v30 = vmul.f32 -1.442695, %v3229_v34  ;;  %v3240_v15 = vadd.f32 %v4865_v57, %v10224_v45 }
 0x4b9   : > { %v3231_v58 = vpop.f32.mrf.mxu1 }
 0x4ba   : > { %4986 = vpow2.f32 %v4749_v30  ;;  %v4752_v32 = vmul.f32 -1.442695, %v3240_v15  ;;  %v3232_v41 = vadd.f32 %v3231_v58, %v10225_v44 }
 0x4bb   : > { %v4868_v62 = vpop.f32.mrf.mxu1 }
 0x4bc   : > { %v4750_v0 = vmul.f32 -1.442695, %v3232_v41  ;;  %4988 = vpow2.f32 %v4752_v32  ;;  %v3253_v34 = vadd.f32 %v4868_v62, %v10229_v13 }
 0x4bd   : > { %v3244_v22 = vpop.f32.mrf.mxu1 }
 0x4be   : > { %4990 = vpow2.f32 %v4750_v0  ;;  %v3245_v27 = vadd.f32 %v3244_v22, %v10226_v17  ;;  %v4755_v41 = vmul.f32 -1.442695, %v3253_v34 }
 0x4bf   : > { %v4869_v1 = vpop.f32.mrf.mxu1  ;;  %4992 = vpow2.f32 %v4751_v21 }
 0x4c0   : > { %v4753_v18 = vmul.f32 -1.442695, %v3245_v27  ;;  %v3256_v37 = vadd.f32 %v4869_v1, %v10228_v49 }
 0x4c1   : > { %v3247_v28 = vpop.f32.mrf.mxu1 }
 0x4c2   : > { %v3248_v52 = vadd.f32 %v3247_v28, %v10227_v4  ;;  %v4756_v57 = vmul.f32 -1.442695, %v3256_v37 }
 0x4c3   : > { %v3458_v31 = vpop.f32.mrf.mxu1 }
 0x4c4   : > { %v4754_v23 = vmul.f32 -1.442695, %v3248_v52 }
 0x4c5   : > { %v3460_v9 = vpop.f32.mrf.mxu1 }
 0x4c6   : > { %4994 = vpow2.f32 %v4754_v23 }
 0x4c7   : > { %v4987_v50 = vpop.eup %4986  ;;  %v3461_v35 = vpop.f32.mrf.mxu1  ;;  %4996 = vpow2.f32 %v4753_v18 }
 0x4c8   : > { %v3283_v3 = vadd.f32 1.0, %v4987_v50  ;;  %v3473_v18 = vpack.c.bf16 %v3461_v35, %v3458_v31  ;;  %v10231_v31 = vmov 0  }
 0x4c9   : > { %v3463_v56 = vpop.f32.mrf.mxu1  ;;  %v4989_v30 = vpop.eup %4988 }
 0x4ca   : > { %4998 = vrcp.f32 %v3283_v3  ;;  %v3286_v22 = vadd.f32 1.0, %v4989_v30  ;;  %v10230_v3 = vld [vmem:[#allocation68_spill] sm:$0xff] }
 0x4cb   : > { %v4991_v15 = vpop.eup %4990  ;;  %v3466_v58 = vpop.f32.mrf.mxu1  ;;  %5000 = vpow2.f32 %v4756_v57  ;;  %v8637_v57 = vsel %vm3001_vm15, 1.0, %v10216_v8 }
 0x4cc   : > { %v3284_v32 = vadd.f32 1.0, %v4991_v15  ;;  %v4993_v21 = vpop.eup %4992 }
 0x4cd   : > { %v3468_v0 = vpop.f32.mrf.mxu1  ;;  %v3285_v27 = vadd.f32 1.0, %v4993_v21 }
 0x4ce   : > { %5002 = vrcp.f32 %v3284_v32 }
 0x4cf   : > { %v3469_v1 = vpop.f32.mrf.mxu1  ;;  %5004 = vpow2.f32 %v4755_v41 }
 0x4d0   : > { %v3474_v28 = vpack.c.bf16 %v3469_v1, %v3466_v58  ;;  %5006 = vrcp.f32 %v3286_v22 }
 0x4d1   : > { %v3471_v52 = vpop.f32.mrf.mxu1  ;;  %5008 = vrcp.f32 %v3285_v27 }
 0x4d2   : > { %4871 = vmatpush3.bf16.msra.mxu1 %v3474_v28 }
 0x4d3   : > { %v4995_v62 = vpop.eup %4994  ;;  %4872 = vmatprep.subr.bf16.mxu1 %v10216_v8 }
 0x4d4   : > { %v4997_v23 = vpop.eup %4996  ;;  %v3288_v37 = vadd.f32 1.0, %v4995_v62  ;;  %v8653_v62 = vsel %vm3005_vm0, 1.0, %v10216_v8 }
 0x4d5   : > { %v3287_v9 = vadd.f32 1.0, %v4997_v23 }
 0x4d6   : > { %4873 = vmatpush3.bf16.msra.mxu1 %v3473_v18  ;;  %5010 = vrcp.f32 %v3288_v37 }
 0x4d7   : > { %3675 = vmatprep.subr.bf16.mxu1 %v10207_v20  ;;  %v4999_v50 = vpop.eup %4998  ;;  %5012 = vrcp.f32 %v3287_v9 }
 0x4d8   : > { %v5001_v34 = vpop.eup %5000  ;;  %v3307_v56 = vmul.f32 %v4999_v50, %v8637_v57 }
 0x4d9   : > { %4875 = vmatmul.mubr.msk.bf16.vlgmr.msra.gmra.mxu1 %vm3080_vm10, %v10230_v3  ;;  %v3290_v58 = vadd.f32 1.0, %v5001_v34 }
 0x4da   : > { %3676 = vmatpush1.bf16.msra.mxu1 %v10210_v54  ;;  %3695 = vmatprep.mubr.bf16.mxu1 %v10231_v31 }
 0x4db   : > { %v5003_v35 = vpop.eup %5002  ;;  %3677 = vmatprep.subr.bf16.mxu1 %v10211_v16  ;;  %5014 = vrcp.f32 %v3290_v58 }
 0x4dc   : > { %v3308_v30 = vmul.f32 %v5003_v35, %v8637_v57  ;;  %v5005_v15 = vpop.eup %5004 }
 0x4dd   : > { %v5007_v41 = vpop.eup %5006  ;;  %v3289_v21 = vadd.f32 1.0, %v5005_v15 }
 0x4de   : > { %v3315_v32 = vpack.c.bf16 %v3308_v30, %v3307_v56  ;;  %3678 = vmatpush1.bf16.msra.mxu1 %v10214_v36  ;;  %v5009_v0 = vpop.eup %5008  ;;  %v3310_v22 = vmul.f32 %v5007_v41, %v8637_v57 }
 0x4df   : > { %5016 = vrcp.f32 %v3289_v21  ;;  %v3309_v1 = vmul.f32 %v5009_v0, %v8637_v57 }
 0x4e0   : > { %4757 = vmatmul.mubr.msk.bf16.vlgmr.msra.gmra.mxu0 %vm3080_vm10, %v3315_v32  ;;  %v10232_v32 = vld [vmem:[#allocation19_spill] sm:$0xff] }
 0x4e1   : > { %3373 = vmatprep.mubr.bf16.mxu0 %v10231_v31  ;;  %v3316_v27 = vpack.c.bf16 %v3310_v22, %v3309_v1  ;;  %v2780_v41 = vadd.f32 %v10196_v60, %v10232_v32  ;;  %v10233_v22 = vld [vmem:[#allocation116_spill] sm:$0xff] }
 0x4e2   : > { %v2772_v1 = vadd.f32 %v10198_v48, %v10233_v22 }
 0x4e3   : > { %v5011_v28 = vpop.eup %5010 }
 0x4e4   : > { %v5013_v52 = vpop.eup %5012  ;;  %v3312_v18 = vmul.f32 %v5011_v28, %v8653_v62 }
 0x4e5   : > { %v3311_v23 = vmul.f32 %v5013_v52, %v8653_v62 }
 0x4e7   : > { %v3317_v37 = vpack.c.bf16 %v3312_v18, %v3311_v23  ;;  %v2812_v18 = vadd.f32 3.0, %v2780_v41 }
 0x4e8   : > { %4758 = vmatmul.mubr.msk.bf16.gmra.mxu0 %vm3080_vm10, %v3316_v27  ;;  %v5015_v9 = vpop.eup %5014 }
 0x4e9   : > { %3383 = vmatprep.mubr.bf16.mxu0 %v10231_v31  ;;  %v3314_v12 = vmul.f32 %v5015_v9, %v8653_v62  ;;  %v2804_v9 = vadd.f32 3.0, %v2772_v1 }
 0x4ec   : > { %v5017_v50 = vpop.eup %5016 }
 0x4ed   : > { %v3313_v34 = vmul.f32 %v5017_v50, %v8653_v62  ;;  %v10234_v50 = vld [vmem:[#allocation18_spill] sm:$0xff] }
 0x4ef   : > { %v3318_v35 = vpack.c.bf16 %v3314_v12, %v3313_v34  ;;  %v2779_v12 = vadd.f32 %v10196_v60, %v10234_v50 }
 0x4f0   : > { %4759 = vmatmul.mubr.msk.bf16.gmra.mxu0 %vm3080_vm10, %v3317_v37 }
 0x4f1   : > { %3393 = vmatprep.mubr.bf16.mxu0 %v10231_v31  ;;  %v2811_v19 = vadd.f32 3.0, %v2779_v12 }
 0x4f8   : > { %4760 = vmatmul.mubr.msk.bf16.gmra.mxu0 %vm3080_vm10, %v3318_v35 }
 0x4f9   : > { %4880 = vmatprep.mubr.msk.bf16.mxu0 %vm3177_vm11, %v8442_v63 }
 0x599   : > { %v3509_v56 = vpop.f32.mrf.mxu1 }
 0x59a   : > { %v3515_v30 = vmul.f32 0.0625, %v3509_v56  ;;  %v2796_v56 = vadd.f32 %v10201_v55, %v8276_v40 }
 0x59b   : > { %v4876_v15 = vpop.f32.mrf.mxu1 }
 0x59c   : > { %v3516_v58 = vadd.f32 %v3515_v30, %v10194_v2  ;;  %v2844_v30 = vmax.f32 %v2812_v18, 0.0  ;;  %v10235_v15 = vld [vmem:[#allocation151_spill] sm:$0xff]  ;;  %v2828_v43 = vadd.f32 3.0, %v2796_v56 }
 0x59d   : > { %v3512_v21 = vpop.f32.mrf.mxu1  ;;  %v2771_v32 = vadd.f32 %v10198_v48, %v10235_v15  ;;  %v2843_v15 = vmax.f32 %v2811_v19, 0.0 }
 0x59e   : > { %v3517_v0 = vadd.f32 3.0, %v3516_v58  ;;  %v10236_v21 = vld [vmem:[#allocation166_spill] sm:$0xff]  ;;  %v2876_v50 = vmin.f32 %v2844_v30, 6.0 }
 0x59f   : > { %v4877_v27 = vpop.f32.mrf.mxu1  ;;  %v10238_v30 = vld [vmem:[#allocation74_spill] sm:$0xff]  ;;  %v2875_v19 = vmin.f32 %v2843_v15, 6.0 }
 0x5a0   : > { %v3518_v28 = vmax.f32 %v3517_v0, 0.0  ;;  %v3365_v52 = vpop.f32.mrf.mxu0  ;;  %v2788_v0 = vadd.f32 %v10204_v33, %v10236_v21  ;;  %v2787_v46 = vadd.f32 %v10204_v33, %v10238_v30 }
 0x5a2   : > { %v3519_v23 = vmin.f32 %v3518_v28, 6.0  ;;  %v3367_v37 = vpop.f32.mrf.mxu0  ;;  %v2836_v28 = vmax.f32 %v2804_v9, 0.0  ;;  %v2908_v9 = vmul.f32 %v2876_v50, %v2780_v41  ;;  %v10240_v50 = vld [vmem:[#allocation178_spill] sm:$0xff] }
 0x5a4   : > { %v3520_v34 = vmul.f32 %v3519_v23, %v3516_v58  ;;  %v3369_v35 = vpop.f32.mrf.mxu0  ;;  %v2803_v58 = vadd.f32 3.0, %v2771_v32  ;;  %v2820_v23 = vadd.f32 3.0, %v2788_v0  ;;  %v2868_v18 = vmin.f32 %v2836_v28, 6.0 }
 0x5a5   : > { %v8694_v38 = vmul.f32 0.16666667, %v2908_v9  ;;  %v3406_v24 = vmul.f32 %v3369_v35, %v10243_v10 }
 0x5a6   : > { %v3521_v22 = vmul.f32 0.16666667, %v3520_v34  ;;  %v3371_v27 = vpop.f32.mrf.mxu0  ;;  %v2795_v34 = vadd.f32 %v10201_v55, %v10237_v39  ;;  %v2835_v7 = vmax.f32 %v2803_v58, 0.0  ;;  %v2900_v39 = vmul.f32 %v2868_v18, %v2772_v1 }
 0x5a7   : > { %v3405_v58 = vmul.f32 %v3367_v37, %v10240_v50  ;;  %10242 = vst [vmem:[#allocation131_spill] sm:$0xff] %v8694_v38  ;;  %v2907_v18 = vmul.f32 %v2875_v19, %v2779_v12  ;;  %v3407_v37 = vmul.f32 %v3371_v27, %v10246_v5 }
 0x5a8   : > { %v3522_v61 = vpack.c.bf16 %v3521_v22, %v3521_v22  ;;  %v3375_v59 = vpop.f32.mrf.mxu0  ;;  %v2860_v22 = vmax.f32 %v2828_v43, 0.0  ;;  %v2827_v41 = vadd.f32 3.0, %v2795_v34  ;;  %v8699_v1 = vmul.f32 0.16666667, %v2900_v39 }
 0x5aa   : > { %v3377_v29 = vpop.f32.mrf.mxu0  ;;  %4925 = vmatprep.subr.msk.bf16.mxu0 %vm3190_vm12, %v3522_v61  ;;  %v3524_v40 = vsel %vm3190_vm12, %v3522_v61, 0  ;;  %v2852_v61 = vmax.f32 %v2820_v23, 0.0  ;;  %v2892_v23 = vmin.f32 %v2860_v22, 6.0  ;;  %10245 = vst [vmem:[#allocation93_spill] sm:$0xff] %v8699_v1  ;;  %v2859_v55 = vmax.f32 %v2827_v41, 0.0 }
 0x5ab   : > { %4879 = vmatpush3.bf16.msra.mxu0 %v3524_v40  ;;  %v10239_v40 = vld [vmem:[#allocation179_spill] sm:$0xff]  ;;  %v3753_v9 = vpack.c.bf16 %v8694_v38, %v8699_v1 }
 0x5ac   : > { %v3379_v21 = vpop.f32.mrf.mxu0  ;;  %3768 = vmatprep.subr.bf16.mxu0 %v10207_v20  ;;  %v3404_v28 = vmul.f32 %v3365_v52, %v10239_v40  ;;  %v2819_v52 = vadd.f32 3.0, %v2787_v46  ;;  %v2884_v33 = vmin.f32 %v2852_v61, 6.0  ;;  %v10248_v61 = vld [vmem:[#allocation5_spill] sm:$0xff] }
 0x5ad   : > { %v3408_v39 = vmul.f32 %v3375_v59, %v10248_v61 }
 0x5ae   : > { %v3381_v53 = vpop.f32.mrf.mxu0  ;;  %4881 = vmatmul.mubr.msk.bf16.vlgmr.msra.gmra.mxu0 %vm3177_vm11, %v8565_v25  ;;  %v2867_v25 = vmin.f32 %v2835_v7, 6.0  ;;  %v2924_v7 = vmul.f32 %v2892_v23, %v2796_v56  ;;  %v2916_v10 = vmul.f32 %v2884_v33, %v2788_v0  ;;  %v2851_v35 = vmax.f32 %v2819_v52, 0.0  ;;  %v10251_v56 = vld [vmem:[#allocation99_spill] sm:$0xff] }
 0x5af   : > { %3769 = vmatpush1.bf16.xpose.msra.mxu0 %v10210_v54  ;;  %4884 = vmatprep.mubr.msk.bf16.mxu0 %vm3177_vm11, %v8567_v51 }
 0x5b0   : > { %v3385_v43 = vpop.f32.mrf.mxu0  ;;  %3770 = vmatprep.subr.bf16.mxu0 %v10211_v16  ;;  %v2899_v22 = vmul.f32 %v2867_v25, %v2771_v32  ;;  %v2891_v25 = vmin.f32 %v2859_v55, 6.0  ;;  %v3409_v32 = vmul.f32 %v3377_v29, %v10251_v56  ;;  %v8722_v0 = vmul.f32 0.16666667, %v2924_v7 }
 0x5b1   : > { %v8692_v30 = vmul.f32 %v3404_v28, %v3385_v43  ;;  %v2883_v50 = vmin.f32 %v2851_v35, 6.0  ;;  %v8729_v55 = vmul.f32 0.16666667, %v2916_v10 }
 0x5b2   : > { %v3387_v40 = vpop.f32.mrf.mxu0  ;;  %10252 = vst [vmem:[#allocation98_spill] sm:$0xff] %v8722_v0  ;;  %v8724_v27 = vmul.f32 0.16666667, %v2899_v22 }
 0x5b3   : > { %10241 = vst [vmem:[#allocation160_spill] sm:$0xff] %v8692_v30  ;;  %v8697_v51 = vmul.f32 %v3405_v58, %v3387_v40  ;;  %v10254_v58 = vld [vmem:[#allocation162_spill] sm:$0xff]  ;;  %10255 = vst [vmem:[#allocation183_spill] sm:$0xff] %v8729_v55  ;;  %v3755_v7 = vpack.c.bf16 %v8722_v0, %v8729_v55 }
 0x5b4   : > { %v3389_v15 = vpop.f32.mrf.mxu0  ;;  %10253 = vst [vmem:[#allocation59_spill] sm:$0xff] %v8724_v27  ;;  %v3410_v23 = vmul.f32 %v3379_v21, %v10254_v58  ;;  %v10270_v30 = vld [vmem:[#allocation174_spill] sm:$0xff] }
 0x5b5   : > { %10244 = vst [vmem:[#allocation107_spill] sm:$0xff] %v8697_v51  ;;  %v8702_v28 = vmul.f32 %v3406_v24, %v3389_v15  ;;  %v8714_v24 = vmul.f32 0.16666667, %v2907_v18  ;;  %v2923_v18 = vmul.f32 %v2891_v25, %v2795_v34  ;;  %v10256_v15 = vld [vmem:[#allocation4_spill] sm:$0xff] }
 0x5b6   : > { %v3391_v43 = vpop.f32.mrf.mxu0  ;;  %4885 = vmatmul.mubr.msk.bf16.gmra.mxu0 %vm3177_vm11, %v8588_v42 }
 0x5b7   : > { %10247 = vst [vmem:[#allocation182_spill] sm:$0xff] %v8702_v28  ;;  %v8711_v19 = vmul.f32 %v3407_v37, %v3391_v43  ;;  %3771 = vmatpush1.bf16.xpose.msra.mxu0 %v10214_v36  ;;  %3788 = vmatprep.mubr.bf16.mxu0 %v3753_v9  ;;  %10250 = vst [vmem:[#allocation49_spill] sm:$0xff] %v8714_v24  ;;  %v3752_v29 = vpack.c.bf16 %v8714_v24, %v8724_v27  ;;  %v8742_v35 = vmul.f32 0.16666667, %v2923_v18 }
 0x5b8   : > { %v3395_v5 = vpop.f32.mrf.mxu0  ;;  %4888 = vmatprep.subr.bf16.mxu0 %v10216_v8  ;;  %v3411_v37 = vmul.f32 %v3381_v53, %v10256_v15  ;;  %v2915_v43 = vmul.f32 %v2883_v50, %v2787_v46 }
 0x5b9   : > { %10249 = vst [vmem:[#allocation165_spill] sm:$0xff] %v8711_v19  ;;  %v8720_v59 = vmul.f32 %v3408_v39, %v3395_v5  ;;  %10257 = vst [vmem:[#allocation86_spill] sm:$0xff] %v8742_v35 }
 0x5ba   : > { %v3397_v41 = vpop.f32.mrf.mxu0  ;;  %v8746_v53 = vmul.f32 0.16666667, %v2915_v43 }
 0x5bb   : > { %v8727_v52 = vmul.f32 %v3409_v32, %v3397_v41 }
 0x5bc   : > { %v3399_v40 = vpop.f32.mrf.mxu0  ;;  %10258 = vst [vmem:[#allocation23_spill] sm:$0xff] %v8746_v53  ;;  %v3754_v61 = vpack.c.bf16 %v8742_v35, %v8746_v53  ;;  %v10266_v35 = vld [vmem:[#allocation101_spill] sm:$0xff] }
 0x5bd   : > { %v8734_v9 = vmul.f32 %v3410_v23, %v3399_v40 }
 0x5be   : > { %v3401_v22 = vpop.f32.mrf.mxu0  ;;  %3789 = vmatmul.mubr.bf16.vlgmr.msra.gmra.mxu0 %v3752_v29 }
 0x5bf   : > { %v8740_v10 = vmul.f32 %v3411_v37, %v3401_v22  ;;  %3796 = vmatprep.mubr.bf16.mxu0 %v3755_v7 }
 0x5c6   : > { %3797 = vmatmul.mubr.bf16.gmra.mxu0 %v3754_v61 }
 0x5c7   : > { %4892 = vmatprep.mubr.msk.bf16.mxu0 %vm5156_vm9, %v10216_v8 }
 0x66e   : > { %v4882_v46 = vpop.f32.mrf.mxu0 }
 0x66f   : > { %v3569_v56 = vadd.f32 %v4882_v46, %v10223_v14 }
 0x670   : > { %v3560_v39 = vpop.f32.mrf.mxu0 }
 0x671   : > { %v3561_v5 = vadd.f32 %v3560_v39, %v10222_v11  ;;  %v4768_v40 = vmul.f32 -1.442695, %v3569_v56 }
 0x672   : > { %v4883_v25 = vpop.f32.mrf.mxu0 }
 0x673   : > { %v4766_v32 = vmul.f32 -1.442695, %v3561_v5  ;;  %v3572_v41 = vadd.f32 %v4883_v25, %v10224_v45 }
 0x674   : > { %v3563_v50 = vpop.f32.mrf.mxu0 }
 0x675   : > { %5018 = vpow2.f32 %v4766_v32  ;;  %v4769_v58 = vmul.f32 -1.442695, %v3572_v41  ;;  %v3564_v23 = vadd.f32 %v3563_v50, %v10225_v44 }
 0x676   : > { %v4886_v29 = vpop.f32.mrf.mxu0 }
 0x677   : > { %v4767_v18 = vmul.f32 -1.442695, %v3564_v23  ;;  %5020 = vpow2.f32 %v4769_v58  ;;  %v3585_v50 = vadd.f32 %v4886_v29, %v10229_v13 }
 0x678   : > { %v3576_v15 = vpop.f32.mrf.mxu0 }
 0x679   : > { %5022 = vpow2.f32 %v4767_v18  ;;  %v3577_v7 = vadd.f32 %v3576_v15, %v10226_v17  ;;  %v4772_v12 = vmul.f32 -1.442695, %v3585_v50 }
 0x67a   : > { %v4887_v37 = vpop.f32.mrf.mxu0  ;;  %5024 = vpow2.f32 %v4768_v40 }
 0x67b   : > { %v4770_v46 = vmul.f32 -1.442695, %v3577_v7  ;;  %v3588_v5 = vadd.f32 %v4887_v37, %v10228_v49 }
 0x67c   : > { %v3579_v22 = vpop.f32.mrf.mxu0 }
 0x67d   : > { %v3580_v43 = vadd.f32 %v3579_v22, %v10227_v4  ;;  %v4773_v58 = vmul.f32 -1.442695, %v3588_v5 }
 0x67e   : > { %v3790_v61 = vpop.f32.mrf.mxu0 }
 0x67f   : > { %v4771_v39 = vmul.f32 -1.442695, %v3580_v43 }
 0x680   : > { %v3792_v25 = vpop.f32.mrf.mxu0 }
 0x681   : > { %5026 = vpow2.f32 %v4771_v39 }
 0x682   : > { %v5019_v32 = vpop.eup %5018  ;;  %v3793_v56 = vpop.f32.mrf.mxu0  ;;  %5028 = vpow2.f32 %v4770_v46 }
 0x683   : > { %v3615_v41 = vadd.f32 1.0, %v5019_v32  ;;  %v3805_v46 = vpack.c.bf16 %v3793_v56, %v3790_v61 }
 0x684   : > { %v3795_v23 = vpop.f32.mrf.mxu0  ;;  %v5021_v40 = vpop.eup %5020 }
 0x685   : > { %5030 = vrcp.f32 %v3615_v41  ;;  %v3618_v37 = vadd.f32 1.0, %v5021_v40 }
 0x686   : > { %v5023_v18 = vpop.eup %5022  ;;  %v3798_v15 = vpop.f32.mrf.mxu0  ;;  %5032 = vpow2.f32 %v4773_v58 }
 0x687   : > { %v3616_v22 = vadd.f32 1.0, %v5023_v18  ;;  %v5025_v7 = vpop.eup %5024 }
 0x688   : > { %v3800_v43 = vpop.f32.mrf.mxu0  ;;  %v3617_v25 = vadd.f32 1.0, %v5025_v7 }
 0x689   : > { %5034 = vrcp.f32 %v3616_v22 }
 0x68a   : > { %v3801_v39 = vpop.f32.mrf.mxu0  ;;  %5036 = vpow2.f32 %v4772_v12 }
 0x68b   : > { %v3806_v32 = vpack.c.bf16 %v3801_v39, %v3798_v15  ;;  %5038 = vrcp.f32 %v3618_v37 }
 0x68c   : > { %v3803_v33 = vpop.f32.mrf.mxu0  ;;  %5040 = vrcp.f32 %v3617_v25 }
 0x68d   : > { %4889 = vmatpush3.bf16.msra.mxu0 %v3806_v32 }
 0x68e   : > { %v5027_v29 = vpop.eup %5026  ;;  %4890 = vmatprep.subr.bf16.mxu0 %v10216_v8 }
 0x68f   : > { %v5029_v5 = vpop.eup %5028  ;;  %v3620_v41 = vadd.f32 1.0, %v5027_v29 }
 0x690   : > { %v3619_v50 = vadd.f32 1.0, %v5029_v5 }
 0x691   : > { %4891 = vmatpush3.bf16.msra.mxu0 %v3805_v46  ;;  %5042 = vrcp.f32 %v3620_v41 }
 0x692   : > { %4007 = vmatprep.subr.bf16.mxu0 %v10207_v20  ;;  %v5031_v58 = vpop.eup %5030  ;;  %5044 = vrcp.f32 %v3619_v50 }
 0x693   : > { %v5033_v12 = vpop.eup %5032  ;;  %v3639_v61 = vmul.f32 %v5031_v58, %v8637_v57 }
 0x694   : > { %4893 = vmatmul.mubr.msk.bf16.vlgmr.msra.gmra.mxu0 %vm3080_vm10, %v10230_v3  ;;  %v3622_v40 = vadd.f32 1.0, %v5033_v12 }
 0x695   : > { %4008 = vmatpush1.bf16.msra.mxu0 %v10210_v54  ;;  %4027 = vmatprep.mubr.bf16.mxu0 %v10231_v31 }
 0x696   : > { %v5035_v33 = vpop.eup %5034  ;;  %4009 = vmatprep.subr.bf16.mxu0 %v10211_v16  ;;  %5046 = vrcp.f32 %v3622_v40 }
 0x697   : > { %v3640_v56 = vmul.f32 %v5035_v33, %v8637_v57  ;;  %v5037_v23 = vpop.eup %5036 }
 0x698   : > { %v5039_v15 = vpop.eup %5038  ;;  %v3621_v22 = vadd.f32 1.0, %v5037_v23 }
 0x699   : > { %v3647_v18 = vpack.c.bf16 %v3640_v56, %v3639_v61  ;;  %4010 = vmatpush1.bf16.msra.mxu0 %v10214_v36  ;;  %v5041_v7 = vpop.eup %5040  ;;  %v3642_v43 = vmul.f32 %v5039_v15, %v8637_v57 }
 0x69a   : > { %5048 = vrcp.f32 %v3621_v22  ;;  %v3641_v37 = vmul.f32 %v5041_v7, %v8637_v57  ;;  %v2774_v7 = vadd.f32 %v10198_v48, %v8342_v26  ;;  %v10262_v26 = vld [vmem:[#allocation71_spill] sm:$0xff] }
 0x69b   : > { %4774 = vmatmul.mubr.msk.bf16.vlgmr.msra.gmra.mxu1 %vm3080_vm10, %v3647_v18  ;;  %v2782_v18 = vadd.f32 %v10196_v60, %v8492_v47 }
 0x69c   : > { %3705 = vmatprep.mubr.bf16.mxu1 %v10231_v31  ;;  %v3648_v39 = vpack.c.bf16 %v3642_v43, %v3641_v37 }
 0x69e   : > { %v5043_v25 = vpop.eup %5042 }
 0x69f   : > { %v5045_v32 = vpop.eup %5044  ;;  %v3644_v29 = vmul.f32 %v5043_v25, %v8653_v62  ;;  %v2814_v25 = vadd.f32 3.0, %v2782_v18 }
 0x6a0   : > { %v3643_v46 = vmul.f32 %v5045_v32, %v8653_v62 }
 0x6a2   : > { %v3649_v5 = vpack.c.bf16 %v3644_v29, %v3643_v46  ;;  %v2806_v46 = vadd.f32 3.0, %v2774_v7 }
 0x6a3   : > { %4775 = vmatmul.mubr.msk.bf16.gmra.mxu1 %vm3080_vm10, %v3648_v39  ;;  %v5047_v41 = vpop.eup %5046 }
 0x6a4   : > { %3715 = vmatprep.mubr.bf16.mxu1 %v10231_v31  ;;  %v3646_v58 = vmul.f32 %v5047_v41, %v8653_v62 }
 0x6a7   : > { %v5049_v50 = vpop.eup %5048 }
 0x6a8   : > { %v3645_v12 = vmul.f32 %v5049_v50, %v8653_v62 }
 0x6aa   : > { %v3650_v33 = vpack.c.bf16 %v3646_v58, %v3645_v12  ;;  %v10259_v58 = vld [vmem:[#allocation73_spill] sm:$0xff] }
 0x6ab   : > { %4776 = vmatmul.mubr.msk.bf16.gmra.mxu1 %vm3080_vm10, %v3649_v5  ;;  %v2781_v5 = vadd.f32 %v10196_v60, %v8490_v6  ;;  %v10260_v12 = vld [vmem:[#allocation161_spill] sm:$0xff] }
 0x6ac   : > { %3725 = vmatprep.mubr.bf16.mxu1 %v10231_v31  ;;  %v2798_v47 = vadd.f32 %v10260_v12, %v10259_v58 }
 0x6ad   : > { %v2813_v21 = vadd.f32 3.0, %v2781_v5 }
 0x6ae   : > { %v2830_v24 = vadd.f32 3.0, %v2798_v47 }
 0x6af   : > { %v2845_v58 = vmax.f32 %v2813_v21, 0.0  ;;  %v10268_v21 = vld [vmem:[#allocation15_spill] sm:$0xff] }
 0x6b3   : > { %4777 = vmatmul.mubr.msk.bf16.gmra.mxu1 %vm3080_vm10, %v3650_v33  ;;  %v2846_v33 = vmax.f32 %v2814_v25, 0.0 }
 0x6b4   : > { %4898 = vmatprep.mubr.msk.bf16.mxu1 %vm3177_vm11, %v8442_v63 }
 0x6b5   : > { %v2878_v6 = vmin.f32 %v2846_v33, 6.0  ;;  %v10265_v33 = vld [vmem:[#allocation28_spill] sm:$0xff] }
 0x754   : > { %v3841_v61 = vpop.f32.mrf.mxu0 }
 0x755   : > { %v3847_v56 = vmul.f32 0.0625, %v3841_v61  ;;  %v10261_v61 = vld [vmem:[#allocation25_spill] sm:$0xff] }
 0x756   : > { %v4894_v23 = vpop.f32.mrf.mxu0 }
 0x757   : > { %v3848_v40 = vadd.f32 %v3847_v56, %v10194_v2  ;;  %v2773_v56 = vadd.f32 %v10198_v48, %v10261_v61  ;;  %v10263_v23 = vld [vmem:[#allocation149_spill] sm:$0xff] }
 0x758   : > { %v3844_v15 = vpop.f32.mrf.mxu0  ;;  %v10264_v61 = vld [vmem:[#allocation29_spill] sm:$0xff]  ;;  %v2789_v53 = vadd.f32 %v10263_v23, %v10265_v33 }
 0x759   : > { %v3849_v22 = vadd.f32 3.0, %v3848_v40  ;;  %v2790_v15 = vadd.f32 %v10263_v23, %v10262_v26  ;;  %v2805_v60 = vadd.f32 3.0, %v2773_v56 }
 0x75a   : > { %v4895_v43 = vpop.f32.mrf.mxu0 }
 0x75b   : > { %v3850_v37 = vmax.f32 %v3849_v22, 0.0  ;;  %v3697_v39 = vpop.f32.mrf.mxu1  ;;  %v2837_v1 = vmax.f32 %v2805_v60, 0.0 }
 0x75d   : > { %v3851_v32 = vmin.f32 %v3850_v37, 6.0  ;;  %v3699_v29 = vpop.f32.mrf.mxu1  ;;  %v2838_v37 = vmax.f32 %v2806_v46, 0.0  ;;  %v2910_v46 = vmul.f32 %v2878_v6, %v2782_v18  ;;  %v10269_v6 = vld [vmem:[#allocation7_spill] sm:$0xff]  ;;  %v2869_v0 = vmin.f32 %v2837_v1, 6.0 }
 0x75e   : > { %v3737_v23 = vmul.f32 %v3699_v29, %v10269_v6 }
 0x75f   : > { %v3852_v41 = vmul.f32 %v3851_v32, %v3848_v40  ;;  %v3701_v50 = vpop.f32.mrf.mxu1  ;;  %v2822_v40 = vadd.f32 3.0, %v2790_v15  ;;  %v2870_v48 = vmin.f32 %v2838_v37, 6.0  ;;  %v8815_v33 = vmul.f32 0.16666667, %v2910_v46 }
 0x760   : > { %v3738_v28 = vmul.f32 %v3701_v50, %v10270_v30 }
 0x761   : > { %v3853_v22 = vmul.f32 0.16666667, %v3852_v41  ;;  %v3703_v43 = vpop.f32.mrf.mxu1  ;;  %v2797_v41 = vadd.f32 %v10260_v12, %v10264_v61  ;;  %v2902_v12 = vmul.f32 %v2870_v48, %v2774_v7  ;;  %v2877_v61 = vmin.f32 %v2845_v58, 6.0 }
 0x763   : > { %v3854_v34 = vpack.c.bf16 %v3853_v22, %v3853_v22  ;;  %v3707_v27 = vpop.f32.mrf.mxu1  ;;  %v2862_v22 = vmax.f32 %v2830_v24, 0.0  ;;  %v2829_v18 = vadd.f32 3.0, %v2797_v41  ;;  %v8820_v7 = vmul.f32 0.16666667, %v2902_v12 }
 0x764   : > { %v2909_v48 = vmul.f32 %v2877_v61, %v2781_v5 }
 0x765   : > { %v3709_v32 = vpop.f32.mrf.mxu1  ;;  %4926 = vmatprep.subr.msk.bf16.mxu1 %vm3190_vm12, %v3854_v34  ;;  %v3856_v25 = vsel %vm3190_vm12, %v3854_v34, 0  ;;  %v2854_v34 = vmax.f32 %v2822_v40, 0.0  ;;  %v2894_v40 = vmin.f32 %v2862_v22, 6.0  ;;  %v2861_v19 = vmax.f32 %v2829_v18, 0.0 }
 0x766   : > { %4897 = vmatpush3.bf16.msra.mxu1 %v3856_v25  ;;  %v10267_v25 = vld [vmem:[#allocation64_spill] sm:$0xff]  ;;  %v4085_v46 = vpack.c.bf16 %v8815_v33, %v8820_v7  ;;  %v2901_v22 = vmul.f32 %v2869_v0, %v2773_v56 }
 0x767   : > { %v3711_v26 = vpop.f32.mrf.mxu1  ;;  %4100 = vmatprep.subr.bf16.mxu1 %v10207_v20  ;;  %v3736_v37 = vmul.f32 %v3697_v39, %v10267_v25  ;;  %v2821_v39 = vadd.f32 3.0, %v2789_v53  ;;  %v2886_v55 = vmin.f32 %v2854_v34, 6.0  ;;  %v2926_v1 = vmul.f32 %v2894_v40, %v2798_v47  ;;  %v10272_v34 = vld [vmem:[#allocation103_spill] sm:$0xff]  ;;  %v10273_v56 = vld [vmem:[#allocation48_spill] sm:$0xff] }
 0x768   : > { %v3740_v12 = vmul.f32 %v3707_v27, %v10272_v34  ;;  %v2893_v0 = vmin.f32 %v2861_v19, 6.0 }
 0x769   : > { %v3713_v38 = vpop.f32.mrf.mxu1  ;;  %4899 = vmatmul.mubr.msk.bf16.vlgmr.msra.gmra.mxu1 %vm3177_vm11, %v10266_v35  ;;  %v2918_v30 = vmul.f32 %v2886_v55, %v2790_v15  ;;  %v2853_v50 = vmax.f32 %v2821_v39, 0.0  ;;  %v8843_v15 = vmul.f32 0.16666667, %v2926_v1 }
 0x76a   : > { %4101 = vmatpush1.bf16.xpose.msra.mxu1 %v10210_v54  ;;  %4902 = vmatprep.mubr.msk.bf16.mxu1 %vm3177_vm11, %v10268_v21  ;;  %v10271_v21 = vld [vmem:[#allocation6_spill] sm:$0xff] }
 0x76b   : > { %v3717_v24 = vpop.f32.mrf.mxu1  ;;  %4102 = vmatprep.subr.bf16.mxu1 %v10211_v16  ;;  %v3739_v29 = vmul.f32 %v3703_v43, %v10271_v21  ;;  %v3741_v43 = vmul.f32 %v3709_v32, %v10273_v56  ;;  %v8845_v21 = vmul.f32 0.16666667, %v2901_v22  ;;  %v2885_v6 = vmin.f32 %v2853_v50, 6.0 }
 0x76c   : > { %v8813_v60 = vmul.f32 %v3736_v37, %v3717_v24  ;;  %v8850_v19 = vmul.f32 0.16666667, %v2918_v30 }
 0x76d   : > { %v3719_v25 = vpop.f32.mrf.mxu1 }
 0x76e   : > { %v8818_v51 = vmul.f32 %v3737_v23, %v3719_v25  ;;  %v10274_v23 = vld [vmem:[#allocation170_spill] sm:$0xff]  ;;  %v4087_v1 = vpack.c.bf16 %v8843_v15, %v8850_v19 }
 0x76f   : > { %v3721_v58 = vpop.f32.mrf.mxu1  ;;  %v3742_v40 = vmul.f32 %v3711_v26, %v10274_v23 }
 0x770   : > { %v8823_v37 = vmul.f32 %v3738_v28, %v3721_v58  ;;  %v8835_v28 = vmul.f32 0.16666667, %v2909_v48  ;;  %v2925_v48 = vmul.f32 %v2893_v0, %v2797_v41  ;;  %v10275_v58 = vld [vmem:[#allocation159_spill] sm:$0xff] }
 0x771   : > { %v3723_v24 = vpop.f32.mrf.mxu1  ;;  %4903 = vmatmul.mubr.msk.bf16.gmra.mxu1 %vm3177_vm11, %v8588_v42 }
 0x772   : > { %v8832_v61 = vmul.f32 %v3739_v29, %v3723_v24  ;;  %4103 = vmatpush1.bf16.xpose.msra.mxu1 %v10214_v36  ;;  %4120 = vmatprep.mubr.bf16.mxu1 %v4085_v46  ;;  %v4084_v32 = vpack.c.bf16 %v8835_v28, %v8845_v21  ;;  %v3743_v29 = vmul.f32 %v3713_v38, %v10275_v58  ;;  %v8863_v50 = vmul.f32 0.16666667, %v2925_v48 }
 0x773   : > { %v3727_v47 = vpop.f32.mrf.mxu1  ;;  %4906 = vmatprep.subr.bf16.mxu1 %v10216_v8  ;;  %v2917_v24 = vmul.f32 %v2885_v6, %v2789_v53 }
 0x774   : > { %v8841_v27 = vmul.f32 %v3740_v12, %v3727_v47 }
 0x775   : > { %v3729_v18 = vpop.f32.mrf.mxu1  ;;  %v8867_v38 = vmul.f32 0.16666667, %v2917_v24 }
 0x776   : > { %v8848_v39 = vmul.f32 %v3741_v43, %v3729_v18 }
 0x777   : > { %v3731_v25 = vpop.f32.mrf.mxu1  ;;  %v4086_v34 = vpack.c.bf16 %v8863_v50, %v8867_v38 }
 0x778   : > { %v8855_v46 = vmul.f32 %v3742_v40, %v3731_v25 }
 0x779   : > { %v3733_v22 = vpop.f32.mrf.mxu1  ;;  %4121 = vmatmul.mubr.bf16.vlgmr.msra.gmra.mxu1 %v4084_v32 }
 0x77a   : > { %v4427_v26 = vpack.c.bf16 %v8855_v46, %v8841_v27  ;;  %v8861_v30 = vmul.f32 %v3743_v29, %v3733_v22  ;;  %4128 = vmatprep.mubr.bf16.mxu1 %v4087_v1  ;;  %v10293_v27 = vpack.c.bf16 %v8823_v37, %v8813_v60 }
 0x77c   : > { %v4428_v41 = vpack.c.bf16 %v8861_v30, %v8848_v39  ;;  %v10285_v30 = vld [vmem:[#allocation183_spill] sm:$0xff] }
 0x781   : > { %4129 = vmatmul.mubr.bf16.gmra.mxu1 %v4086_v34 }
 0x782   : > { %4910 = vmatprep.mubr.msk.bf16.mxu1 %vm5156_vm9, %v10216_v8 }
 0x829   : > { %v4900_v53 = vpop.f32.mrf.mxu1 }
 0x82a   : > { %v3901_v56 = vadd.f32 %v4900_v53, %v10223_v14 }
 0x82b   : > { %v3892_v12 = vpop.f32.mrf.mxu1 }
 0x82c   : > { %v3893_v47 = vadd.f32 %v3892_v12, %v10222_v11  ;;  %v4785_v25 = vmul.f32 -1.442695, %v3901_v56 }
 0x82d   : > { %v4901_v0 = vpop.f32.mrf.mxu1 }
 0x82e   : > { %v4783_v43 = vmul.f32 -1.442695, %v3893_v47  ;;  %v3904_v18 = vadd.f32 %v4901_v0, %v10224_v45 }
 0x82f   : > { %v3895_v6 = vpop.f32.mrf.mxu1 }
 0x830   : > { %5050 = vpow2.f32 %v4783_v43  ;;  %v4786_v23 = vmul.f32 -1.442695, %v3904_v18  ;;  %v3896_v40 = vadd.f32 %v3895_v6, %v10225_v44 }
 0x831   : > { %v4904_v32 = vpop.f32.mrf.mxu1 }
 0x832   : > { %v4784_v48 = vmul.f32 -1.442695, %v3896_v40  ;;  %5052 = vpow2.f32 %v4786_v23  ;;  %v3917_v6 = vadd.f32 %v4904_v32, %v10229_v13 }
 0x833   : > { %v3908_v58 = vpop.f32.mrf.mxu1 }
 0x834   : > { %5054 = vpow2.f32 %v4784_v48  ;;  %v3909_v1 = vadd.f32 %v3908_v58, %v10226_v17  ;;  %v4789_v5 = vmul.f32 -1.442695, %v3917_v6 }
 0x835   : > { %v4905_v29 = vpop.f32.mrf.mxu1  ;;  %5056 = vpow2.f32 %v4785_v25 }
 0x836   : > { %v4787_v53 = vmul.f32 -1.442695, %v3909_v1  ;;  %v3920_v47 = vadd.f32 %v4905_v29, %v10228_v49 }
 0x837   : > { %v3911_v22 = vpop.f32.mrf.mxu1 }
 0x838   : > { %v3912_v24 = vadd.f32 %v3911_v22, %v10227_v4  ;;  %v4790_v23 = vmul.f32 -1.442695, %v3920_v47 }
 0x839   : > { %v4122_v34 = vpop.f32.mrf.mxu1 }
 0x83a   : > { %v4788_v12 = vmul.f32 -1.442695, %v3912_v24 }
 0x83b   : > { %v4124_v0 = vpop.f32.mrf.mxu1 }
 0x83c   : > { %5058 = vpow2.f32 %v4788_v12 }
 0x83d   : > { %v5051_v43 = vpop.eup %5050  ;;  %v4125_v56 = vpop.f32.mrf.mxu1  ;;  %5060 = vpow2.f32 %v4787_v53 }
 0x83e   : > { %v3947_v18 = vadd.f32 1.0, %v5051_v43  ;;  %v4137_v53 = vpack.c.bf16 %v4125_v56, %v4122_v34 }
 0x83f   : > { %v4127_v40 = vpop.f32.mrf.mxu1  ;;  %v5053_v25 = vpop.eup %5052 }
 0x840   : > { %5062 = vrcp.f32 %v3947_v18  ;;  %v3950_v29 = vadd.f32 1.0, %v5053_v25 }
 0x841   : > { %v5055_v48 = vpop.eup %5054  ;;  %v4130_v58 = vpop.f32.mrf.mxu1  ;;  %5064 = vpow2.f32 %v4790_v23 }
 0x842   : > { %v3948_v22 = vadd.f32 1.0, %v5055_v48  ;;  %v5057_v1 = vpop.eup %5056 }
 0x843   : > { %v4132_v24 = vpop.f32.mrf.mxu1  ;;  %v3949_v0 = vadd.f32 1.0, %v5057_v1 }
 0x844   : > { %5066 = vrcp.f32 %v3948_v22 }
 0x845   : > { %v4133_v12 = vpop.f32.mrf.mxu1  ;;  %5068 = vpow2.f32 %v4789_v5 }
 0x846   : > { %v4138_v43 = vpack.c.bf16 %v4133_v12, %v4130_v58  ;;  %5070 = vrcp.f32 %v3950_v29 }
 0x847   : > { %v4135_v55 = vpop.f32.mrf.mxu1  ;;  %5072 = vrcp.f32 %v3949_v0 }
 0x848   : > { %4907 = vmatpush3.bf16.msra.mxu1 %v4138_v43 }
 0x849   : > { %v5059_v32 = vpop.eup %5058  ;;  %4908 = vmatprep.subr.bf16.mxu1 %v10216_v8 }
 0x84a   : > { %v5061_v47 = vpop.eup %5060  ;;  %v3952_v18 = vadd.f32 1.0, %v5059_v32 }
 0x84b   : > { %v3951_v6 = vadd.f32 1.0, %v5061_v47 }
 0x84c   : > { %4909 = vmatpush3.bf16.msra.mxu1 %v4137_v53  ;;  %5074 = vrcp.f32 %v3952_v18 }
 0x84d   : > { %4339 = vmatprep.subr.bf16.mxu1 %v10207_v20  ;;  %v5063_v23 = vpop.eup %5062  ;;  %5076 = vrcp.f32 %v3951_v6 }
 0x84e   : > { %v5065_v5 = vpop.eup %5064  ;;  %v3971_v8 = vmul.f32 %v5063_v23, %v8637_v57 }
 0x84f   : > { %4911 = vmatmul.mubr.msk.bf16.vlgmr.msra.gmra.mxu1 %vm3080_vm10, %v10230_v3  ;;  %v3954_v56 = vadd.f32 1.0, %v5065_v5 }
 0x850   : > { %4340 = vmatpush1.bf16.msra.mxu1 %v10210_v54  ;;  %4359 = vmatprep.mubr.bf16.mxu1 %v10231_v31 }
 0x851   : > { %v5067_v55 = vpop.eup %5066  ;;  %4341 = vmatprep.subr.bf16.mxu1 %v10211_v16  ;;  %5078 = vrcp.f32 %v3954_v56 }
 0x852   : > { %v3972_v34 = vmul.f32 %v5067_v55, %v8637_v57  ;;  %v5069_v20 = vpop.eup %5068 }
 0x853   : > { %v5071_v3 = vpop.eup %5070  ;;  %v3953_v25 = vadd.f32 1.0, %v5069_v20 }
 0x854   : > { %v3979_v40 = vpack.c.bf16 %v3972_v34, %v3971_v8  ;;  %4342 = vmatpush1.bf16.msra.mxu1 %v10214_v36  ;;  %v5073_v54 = vpop.eup %5072  ;;  %v3974_v16 = vmul.f32 %v5071_v3, %v8637_v57 }
 0x855   : > { %5080 = vrcp.f32 %v3953_v25  ;;  %v3973_v48 = vmul.f32 %v5073_v54, %v8637_v57 }
 0x856   : > { %4791 = vmatmul.mubr.msk.bf16.vlgmr.msra.gmra.mxu0 %vm3080_vm10, %v3979_v40 }
 0x857   : > { %4037 = vmatprep.mubr.bf16.mxu0 %v10231_v31  ;;  %v3980_v58 = vpack.c.bf16 %v3974_v16, %v3973_v48 }
 0x859   : > { %v5075_v22 = vpop.eup %5074 }
 0x85a   : > { %v5077_v1 = vpop.eup %5076  ;;  %v3976_v36 = vmul.f32 %v5075_v22, %v8653_v62 }
 0x85b   : > { %v3975_v24 = vmul.f32 %v5077_v1, %v8653_v62  ;;  %v10276_v1 = vpack.c.bf16 %v8740_v10, %v8727_v52  ;;  %v10283_v52 = vld [vmem:[#allocation160_spill] sm:$0xff] }
 0x85d   : > { %v3981_v29 = vpack.c.bf16 %v3976_v36, %v3975_v24  ;;  %v10277_v24 = vpack.c.bf16 %v8734_v9, %v8720_v59  ;;  %v233_v9 = vld [vmem:[%s9061_s1 + $0x110] sm:$0xff] }
 0x85e   : > { %4792 = vmatmul.mubr.msk.bf16.gmra.mxu0 %vm3080_vm10, %v3980_v58  ;;  %v5079_v12 = vpop.eup %5078 }
 0x85f   : > { %4047 = vmatprep.mubr.bf16.mxu0 %v10231_v31  ;;  %v3978_v43 = vmul.f32 %v5079_v12, %v8653_v62 }
 0x862   : > { %v5081_v0 = vpop.eup %5080 }
 0x863   : > { %v3977_v32 = vmul.f32 %v5081_v0, %v8653_v62  ;;  %v10279_v0 = vld [vmem:[#allocation165_spill] sm:$0xff] }
 0x865   : > { %v3982_v53 = vpack.c.bf16 %v3978_v43, %v3977_v32  ;;  %v10280_v43 = vld [vmem:[#allocation107_spill] sm:$0xff] }
 0x866   : > { %4793 = vmatmul.mubr.msk.bf16.gmra.mxu0 %vm3080_vm10, %v3981_v29  ;;  %v10278_v29 = vld [vmem:[#allocation15_spill] sm:$0xff]  ;;  %v10281_v32 = vpack.c.bf16 %v10279_v0, %v10280_v43  ;;  %v10291_v0 = vld [vmem:[#allocation93_spill] sm:$0xff] }
 0x867   : > { %4057 = vmatprep.mubr.bf16.mxu0 %v10231_v31 }
 0x86e   : > { %4794 = vmatmul.mubr.msk.bf16.gmra.mxu0 %vm3080_vm10, %v3982_v53 }
 0x86f   : > { %4916 = vmatprep.mubr.msk.bf16.mxu0 %vm3177_vm11, %v8442_v63 }
 0x90f   : > { %v4173_v47 = vpop.f32.mrf.mxu1 }
 0x910   : > { %v4179_v18 = vmul.f32 0.0625, %v4173_v47  ;;  %v10282_v47 = vld [vmem:[#allocation182_spill] sm:$0xff] }
 0x911   : > { %v4912_v6 = vpop.f32.mrf.mxu1  ;;  %v10284_v10 = vpack.c.bf16 %v10282_v47, %v10283_v52 }
 0x912   : > { %v4180_v23 = vadd.f32 %v4179_v18, %v10194_v2 }
 0x913   : > { %v4176_v5 = vpop.f32.mrf.mxu1 }
 0x914   : > { %v4181_v55 = vadd.f32 3.0, %v4180_v23 }
 0x915   : > { %v4913_v8 = vpop.f32.mrf.mxu1 }
 0x916   : > { %v4182_v34 = vmax.f32 %v4181_v55, 0.0  ;;  %v4029_v20 = vpop.f32.mrf.mxu0  ;;  %v10286_v55 = vld [vmem:[#allocation98_spill] sm:$0xff] }
 0x918   : > { %v4183_v56 = vmin.f32 %v4182_v34, 6.0  ;;  %v4031_v40 = vpop.f32.mrf.mxu0  ;;  %v10287_v34 = vld [vmem:[#allocation86_spill] sm:$0xff] }
 0x91a   : > { %v4184_v3 = vmul.f32 %v4183_v56, %v4180_v23  ;;  %v4033_v25 = vpop.f32.mrf.mxu0 }
 0x91c   : > { %v4185_v54 = vmul.f32 0.16666667, %v4184_v3  ;;  %v4035_v16 = vpop.f32.mrf.mxu0 }
 0x91e   : > { %v4186_v48 = vpack.c.bf16 %v4185_v54, %v4185_v54  ;;  %v4039_v58 = vpop.f32.mrf.mxu0 }
 0x920   : > { %v4041_v22 = vpop.f32.mrf.mxu0  ;;  %4927 = vmatprep.subr.msk.bf16.mxu0 %vm3190_vm12, %v4186_v48  ;;  %v4188_v63 = vsel %vm3190_vm12, %v4186_v48, 0  ;;  %v10288_v48 = vld [vmem:[#allocation131_spill] sm:$0xff] }
 0x921   : > { %4915 = vmatpush3.bf16.msra.mxu0 %v4188_v63  ;;  %v4071_v63 = vmul.f32 %v4035_v16, %v10288_v48 }
 0x922   : > { %v4043_v2 = vpop.f32.mrf.mxu0  ;;  %4458 = vmatprep.subr.bf16.mxu0 %v10276_v1  ;;  %v10290_v1 = vld [vmem:[#allocation23_spill] sm:$0xff] }
 0x923   : > { %v4074_v56 = vmul.f32 %v4043_v2, %v10287_v34  ;;  %v4069_v2 = vmul.f32 %v4031_v40, %v10291_v0 }
 0x924   : > { %v4045_v36 = vpop.f32.mrf.mxu0  ;;  %4917 = vmatmul.mubr.msk.bf16.vlgmr.msra.gmra.mxu0 %vm3177_vm11, %v10266_v35  ;;  %v234_v35 = vld [vmem:[%s9061_s1 + $0x118] sm:$0xff] }
 0x925   : > { %4459 = vmatpush1.bf16.msra.mxu0 %v10277_v24  ;;  %4920 = vmatprep.mubr.msk.bf16.mxu0 %vm3177_vm11, %v10278_v29  ;;  %v8937_v5 = vpack.c.bf16 %v234_v35, %v233_v9  ;;  %v4075_v8 = vmul.f32 %v4045_v36, %v10286_v55  ;;  %v4072_v36 = vmul.f32 %v4039_v58, %v10290_v1  ;;  %v8970_v55 = vpop.permute.xlu0 %4435 }
 0x926   : > { %v4049_v12 = vpop.f32.mrf.mxu0  ;;  %4460 = vmatprep.subr.bf16.mxu0 %v10281_v32  ;;  %v10292_v32 = vld [vmem:[#allocation49_spill] sm:$0xff] }
 0x927   : > { %v4070_v47 = vmul.f32 %v4033_v25, %v10292_v32  ;;  %v5116_v32 = vld [vmem:[%s5215_s28 + $0x40] sm:$0xff] }
 0x928   : > { %v4051_v53 = vpop.f32.mrf.mxu0 }
 0x929   : > { %4461 = vmatpush1.bf16.msra.mxu0 %v10284_v10  ;;  %v4077_v46 = vmul.f32 %v4069_v2, %v4051_v53 }
 0x92a   : > { %v4053_v18 = vpop.f32.mrf.mxu0  ;;  %4501 = vmatprep.subr.bf16.mxu0 %v4428_v41  ;;  %v4073_v41 = vmul.f32 %v4041_v22, %v10285_v30  ;;  %v10289_v22 = vpack.c.bf16 %v8832_v61, %v8818_v51 }
 0x92b   : > { %v4078_v51 = vmul.f32 %v4070_v47, %v4053_v18 }
 0x92c   : > { %v4055_v59 = vpop.f32.mrf.mxu0  ;;  %4921 = vmatmul.mubr.msk.bf16.gmra.mxu0 %vm3177_vm11, %v8588_v42 }
 0x92d   : > { %4478 = vmatprep.mubr.bf16.mxu0 %v10231_v31  ;;  %v4079_v43 = vmul.f32 %v4071_v63, %v4055_v59  ;;  %v8983_v63 = vpop.permute.xlu1 %4440 }
 0x92e   : > { %v4059_v6 = vpop.f32.mrf.mxu0 }
 0x92f   : > { %v4080_v52 = vmul.f32 %v4072_v36, %v4059_v6  ;;  %v4422_v10 = vpack.c.bf16 %v4079_v43, %v4077_v46 }
 0x930   : > { %v4061_v23 = vpop.f32.mrf.mxu0 }
 0x931   : > { %v4081_v3 = vmul.f32 %v4073_v41, %v4061_v23 }
 0x932   : > { %v4063_v39 = vpop.f32.mrf.mxu0 }
 0x933   : > { %v4082_v24 = vmul.f32 %v4074_v56, %v4063_v39 }
 0x934   : > { %v4065_v42 = vpop.f32.mrf.mxu0  ;;  %4812 = vmatmul.mubr.msk.bf16.vlgmr.msra.gmra.mxu0 %vm3080_vm10, %v8937_v5 }
 0x935   : > { %v4083_v54 = vmul.f32 %v4075_v8, %v4065_v42  ;;  %4502 = vmatpush1.bf16.msra.mxu0 %v4427_v26  ;;  %4521 = vmatprep.mubr.bf16.mxu0 %v10231_v31  ;;  %v10294_v26 = vld [vmem:[#allocation59_spill] sm:$0xff]  ;;  %v4429_v61 = vpack.c.bf16 %v4082_v24, %v4080_v52 }
 0x936   : > { %4503 = vmatprep.subr.bf16.mxu0 %v10289_v22  ;;  %v4068_v16 = vmul.f32 %v4029_v20, %v10294_v26  ;;  %v5115_v24 = vld [vmem:[%s5215_s28 + $0x8] sm:$0xff] }
 0x937   : > { %v4430_v29 = vpack.c.bf16 %v4083_v54, %v4081_v3 }
 0x938   : > { %v4076_v58 = vmul.f32 %v4068_v16, %v4049_v12  ;;  %v5117_v16 = vld [vmem:[%s5215_s28 + $0x48] sm:$0xff] }
 0x939   : > { %4504 = vmatpush1.bf16.msra.mxu0 %v10293_v27 }
 0x93a   : > { %4544 = vmatprep.subr.bf16.mxu0 %v4430_v29  ;;  %v4421_v40 = vpack.c.bf16 %v4078_v51, %v4076_v58 }
 0x93c   : > { %4813 = vmatmul.mubr.msk.bf16.vlgmr.msra.gmra.mxu0 %vm3080_vm10, %v8937_v5 }
 0x93d   : > { %4545 = vmatpush1.bf16.msra.mxu0 %v4429_v61  ;;  %4564 = vmatprep.mubr.bf16.mxu0 %v10231_v31 }
 0x93e   : > { %4546 = vmatprep.subr.bf16.mxu0 %v4422_v10 }
 0x941   : > { %4547 = vmatpush1.bf16.msra.mxu0 %v4421_v40 }
 0x944   : > { %4814 = vmatmul.mubr.msk.bf16.vlgmr.msra.gmra.mxu0 %vm3080_vm10, %v8937_v5 }
 0x9e4   : > { %v4918_v60 = vpop.f32.mrf.mxu0 }
 0x9e5   : > { %v4233_v53 = vadd.f32 %v4918_v60, %v10223_v14  ;;  %v5118_v60 = vld [vmem:[%s5215_s28 + $0x10] sm:$0xff] }
 0x9e6   : > { %v4224_v37 = vpop.f32.mrf.mxu0 }
 0x9e7   : > { %v4225_v20 = vadd.f32 %v4224_v37, %v10222_v11  ;;  %v4802_v23 = vmul.f32 -1.442695, %v4233_v53 }
 0x9e8   : > { %v4919_v25 = vpop.f32.mrf.mxu0 }
 0x9e9   : > { %v4800_v18 = vmul.f32 -1.442695, %v4225_v20  ;;  %v4236_v59 = vadd.f32 %v4919_v25, %v10224_v45 }
 0x9ea   : > { %v4227_v12 = vpop.f32.mrf.mxu0 }
 0x9eb   : > { %5082 = vpow2.f32 %v4800_v18  ;;  %v4803_v9 = vmul.f32 -1.442695, %v4236_v59  ;;  %v4228_v35 = vadd.f32 %v4227_v12, %v10225_v44  ;;  %v5119_v18 = vld [vmem:[%s5215_s28 + $0x18] sm:$0xff] }
 0x9ec   : > { %v4922_v6 = vpop.f32.mrf.mxu0 }
 0x9ed   : > { %v4801_v39 = vmul.f32 -1.442695, %v4228_v35  ;;  %5084 = vpow2.f32 %v4803_v9  ;;  %v4249_v22 = vadd.f32 %v4922_v6, %v10229_v13  ;;  %v5120_v35 = vld [vmem:[%s5215_s28 + $0x50] sm:$0xff] }
 0x9ee   : > { %v4240_v30 = vpop.f32.mrf.mxu0 }
 0x9ef   : > { %5086 = vpow2.f32 %v4801_v39  ;;  %v4241_v14 = vadd.f32 %v4240_v30, %v10226_v17  ;;  %v4806_v27 = vmul.f32 -1.442695, %v4249_v22 }
 0x9f0   : > { %v4923_v11 = vpop.f32.mrf.mxu0  ;;  %5088 = vpow2.f32 %v4802_v23 }
 0x9f1   : > { %v4804_v42 = vmul.f32 -1.442695, %v4241_v14  ;;  %v4252_v17 = vadd.f32 %v4923_v11, %v10228_v49  ;;  %v5121_v11 = vld [vmem:[%s5215_s28 + $0x58] sm:$0xff] }
 0x9f2   : > { %v4243_v41 = vpop.f32.mrf.mxu0 }
 0x9f3   : > { %v4244_v45 = vadd.f32 %v4243_v41, %v10227_v4  ;;  %v5114_v4 = vld [vmem:[%s5215_s28] sm:$0xff]  ;;  %v4807_v0 = vmul.f32 -1.442695, %v4252_v17 }
 0x9f4   : > { %v4480_v8 = vpop.f32.mrf.mxu0 }
 0x9f5   : > { %v4805_v44 = vmul.f32 -1.442695, %v4244_v45  ;;  %v4481_v34 = vadd.f32 %v4480_v8, %v8970_v55 }
 0x9f6   : > { %v4482_v56 = vpop.f32.mrf.mxu0 }
 0x9f7   : > { %5090 = vpow2.f32 %v4805_v44  ;;  %v4618_v3 = vadd.f32 %v5114_v4, %v4481_v34  ;;  %v4483_v54 = vadd.f32 %v4482_v56, %v8970_v55  ;;  %v5122_v44 = vld [vmem:[%s5215_s28 + $0x20] sm:$0xff] }
 0x9f8   : > { %v5083_v48 = vpop.eup %5082  ;;  %v4484_v1 = vpop.f32.mrf.mxu0  ;;  %5092 = vpow2.f32 %v4804_v42 }
 0x9f9   : > { %v4279_v36 = vadd.f32 1.0, %v5083_v48  ;;  %4634 = vst [vmem:[%s8978_s23] sm:$0xff] %v4618_v3  ;;  %v4619_v49 = vadd.f32 %v5115_v24, %v4483_v54  ;;  %v4485_v29 = vadd.f32 %v4484_v1, %v8983_v63  ;;  %v5123_v3 = vld [vmem:[%s5215_s28 + $0x28] sm:$0xff]  ;;  %v5124_v24 = vld [vmem:[%s5215_s28 + $0x60] sm:$0xff] }
 0x9fa   : > { %v4486_v2 = vpop.f32.mrf.mxu0  ;;  %v5085_v43 = vpop.eup %5084 }
 0x9fb   : > { %4635 = vst [vmem:[%s8978_s23 + $0x8] sm:$0xff] %v4619_v49  ;;  %v4626_v47 = vadd.f32 %v5116_v32, %v4485_v29  ;;  %v4487_v52 = vadd.f32 %v4486_v2, %v8983_v63  ;;  %5094 = vrcp.f32 %v4279_v36  ;;  %v4282_v40 = vadd.f32 1.0, %v5085_v43  ;;  %v5125_v2 = vld [vmem:[%s5215_s28 + $0x68] sm:$0xff] }
 0x9fc   : > { %v5087_v13 = vpop.eup %5086  ;;  %v4523_v46 = vpop.f32.mrf.mxu0  ;;  %5096 = vpow2.f32 %v4807_v0 }
 0x9fd   : > { %v4280_v26 = vadd.f32 1.0, %v5087_v13  ;;  %4642 = vst [vmem:[%s8978_s23 + $0x40] sm:$0xff] %v4626_v47  ;;  %v4627_v51 = vadd.f32 %v5117_v16, %v4487_v52  ;;  %v4524_v61 = vadd.f32 %v4523_v46, %v8970_v55  ;;  %v5089_v10 = vpop.eup %5088 }
 0x9fe   : > { %v4525_v58 = vpop.f32.mrf.mxu0  ;;  %v4281_v53 = vadd.f32 1.0, %v5089_v10 }
 0x9ff   : > { %5098 = vrcp.f32 %v4280_v26  ;;  %4643 = vst [vmem:[%s8978_s23 + $0x48] sm:$0xff] %v4627_v51  ;;  %v4620_v37 = vadd.f32 %v5118_v60, %v4524_v61  ;;  %v4526_v20 = vadd.f32 %v4525_v58, %v8970_v55 }
 0xa00   : > { %v4527_v25 = vpop.f32.mrf.mxu0  ;;  %5100 = vpow2.f32 %v4806_v27 }
 0xa01   : > { %4636 = vst [vmem:[%s8978_s23 + $0x10] sm:$0xff] %v4620_v37  ;;  %v4621_v59 = vadd.f32 %v5119_v18, %v4526_v20  ;;  %v4528_v12 = vadd.f32 %v4527_v25, %v8983_v63  ;;  %5102 = vrcp.f32 %v4282_v40 }
 0xa02   : > { %v4529_v9 = vpop.f32.mrf.mxu0  ;;  %5104 = vrcp.f32 %v4281_v53 }
 0xa03   : > { %4637 = vst [vmem:[%s8978_s23 + $0x18] sm:$0xff] %v4621_v59  ;;  %v4628_v6 = vadd.f32 %v5120_v35, %v4528_v12  ;;  %v4530_v23 = vadd.f32 %v4529_v9, %v8983_v63 }
 0xa04   : > { %v5091_v39 = vpop.eup %5090  ;;  %v4566_v30 = vpop.f32.mrf.mxu0 }
 0xa05   : > { %4644 = vst [vmem:[%s8978_s23 + $0x50] sm:$0xff] %v4628_v6  ;;  %v4629_v14 = vadd.f32 %v5121_v11, %v4530_v23  ;;  %v4567_v41 = vadd.f32 %v4566_v30, %v8970_v55  ;;  %v5093_v45 = vpop.eup %5092  ;;  %v4284_v42 = vadd.f32 1.0, %v5091_v39 }
 0xa06   : > { %v4568_v8 = vpop.f32.mrf.mxu0  ;;  %v4283_v4 = vadd.f32 1.0, %v5093_v45 }
 0xa07   : > { %4645 = vst [vmem:[%s8978_s23 + $0x58] sm:$0xff] %v4629_v14  ;;  %v4622_v34 = vadd.f32 %v5122_v44, %v4567_v41  ;;  %v4569_v17 = vadd.f32 %v4568_v8, %v8970_v55  ;;  %5106 = vrcp.f32 %v4284_v42 }
 0xa08   : > { %v4570_v56 = vpop.f32.mrf.mxu0  ;;  %v5095_v22 = vpop.eup %5094  ;;  %5108 = vrcp.f32 %v4283_v4 }
 0xa09   : > { %4638 = vst [vmem:[%s8978_s23 + $0x20] sm:$0xff] %v4622_v34  ;;  %v4623_v54 = vadd.f32 %v5123_v3, %v4569_v17  ;;  %v4571_v48 = vadd.f32 %v4570_v56, %v8983_v63  ;;  %v5097_v36 = vpop.eup %5096  ;;  %v4303_v32 = vmul.f32 %v5095_v22, %v8637_v57 }
 0xa0a   : > { %v4572_v1 = vpop.f32.mrf.mxu0  ;;  %v4286_v13 = vadd.f32 1.0, %v5097_v36 }
 0xa0b   : > { %4639 = vst [vmem:[%s8978_s23 + $0x28] sm:$0xff] %v4623_v54  ;;  %v4630_v49 = vadd.f32 %v5124_v24, %v4571_v48  ;;  %v4573_v29 = vadd.f32 %v4572_v1, %v8983_v63 }
 0xa0c   : > { %v5099_v0 = vpop.eup %5098  ;;  %5110 = vrcp.f32 %v4286_v13  ;;  %v5127_v13 = vld [vmem:[%s5215_s28 + $0x38] sm:$0xff] }
 0xa0d   : > { %4646 = vst [vmem:[%s8978_s23 + $0x60] sm:$0xff] %v4630_v49  ;;  %v4631_v43 = vadd.f32 %v5125_v2, %v4573_v29  ;;  %v4304_v47 = vmul.f32 %v5099_v0, %v8637_v57  ;;  %v5101_v52 = vpop.eup %5100 }
 0xa0e   : > { %v5103_v46 = vpop.eup %5102  ;;  %v4285_v26 = vadd.f32 1.0, %v5101_v52 }
 0xa0f   : > { %4647 = vst [vmem:[%s8978_s23 + $0x68] sm:$0xff] %v4631_v43  ;;  %v4311_v27 = vpack.c.bf16 %v4304_v47, %v4303_v32  ;;  %v5105_v16 = vpop.eup %5104  ;;  %v4306_v51 = vmul.f32 %v5103_v46, %v8637_v57  ;;  %v5126_v43 = vld [vmem:[%s5215_s28 + $0x30] sm:$0xff] }
 0xa10   : > { %5112 = vrcp.f32 %v4285_v26  ;;  %v4305_v61 = vmul.f32 %v5105_v16, %v8637_v57 }
 0xa11   : > { %4808 = vmatmul.mubr.msk.bf16.vlgmr.msra.gmra.mxu1 %vm3080_vm10, %v4311_v27 }
 0xa12   : > { %4369 = vmatprep.mubr.bf16.mxu1 %v10231_v31  ;;  %v4312_v10 = vpack.c.bf16 %v4306_v51, %v4305_v61  ;;  %v5129_v61 = vld [vmem:[%s5215_s28 + $0x78] sm:$0xff] }
 0xa14   : > { %v5107_v58 = vpop.eup %5106 }
 0xa15   : > { %v5109_v40 = vpop.eup %5108  ;;  %v4308_v60 = vmul.f32 %v5107_v58, %v8653_v62 }
 0xa16   : > { %v4307_v37 = vmul.f32 %v5109_v40, %v8653_v62 }
 0xa18   : > { %v4313_v20 = vpack.c.bf16 %v4308_v60, %v4307_v37 }
 0xa19   : > { %4809 = vmatmul.mubr.msk.bf16.gmra.mxu1 %vm3080_vm10, %v4312_v10  ;;  %v5111_v25 = vpop.eup %5110 }
 0xa1a   : > { %4379 = vmatprep.mubr.bf16.mxu1 %v10231_v31  ;;  %v4310_v57 = vmul.f32 %v5111_v25, %v8653_v62 }
 0xa1d   : > { %v5113_v53 = vpop.eup %5112 }
 0xa1e   : > { %v4309_v18 = vmul.f32 %v5113_v53, %v8653_v62 }
 0xa20   : > { %v4314_v59 = vpack.c.bf16 %v4310_v57, %v4309_v18 }
 0xa21   : > { %4810 = vmatmul.mubr.msk.bf16.gmra.mxu1 %vm3080_vm10, %v4313_v20 }
 0xa22   : > { %4389 = vmatprep.mubr.bf16.mxu1 %v10231_v31 }
 0xa29   : > { %4811 = vmatmul.mubr.msk.bf16.gmra.mxu1 %vm3080_vm10, %v4314_v59 }
 0xa2a   : > { %4607 = vmatprep.mubr.bf16.mxu1 %v10231_v31 }
 0xad1   : > { %v4361_v12 = vpop.f32.mrf.mxu1 }
 0xad3   : > { %v4363_v9 = vpop.f32.mrf.mxu1 }
 0xad4   : > { %v4401_v48 = vmul.f32 %v4363_v9, %v8820_v7 }
 0xad5   : > { %v4365_v35 = vpop.f32.mrf.mxu1 }
 0xad6   : > { %v4402_v24 = vmul.f32 %v4365_v35, %v8835_v28 }
 0xad7   : > { %v4367_v6 = vpop.f32.mrf.mxu1 }
 0xad8   : > { %v4403_v17 = vmul.f32 %v4367_v6, %v8815_v33  ;;  %v4400_v33 = vmul.f32 %v4361_v12, %v8845_v21 }
 0xad9   : > { %v4371_v23 = vpop.f32.mrf.mxu1 }
 0xada   : > { %v4404_v4 = vmul.f32 %v4371_v23, %v8867_v38 }
 0xadb   : > { %v4373_v39 = vpop.f32.mrf.mxu1 }
 0xadc   : > { %v4405_v31 = vmul.f32 %v4373_v39, %v8850_v19 }
 0xadd   : > { %v4375_v30 = vpop.f32.mrf.mxu1 }
 0xade   : > { %v4406_v62 = vmul.f32 %v4375_v30, %v8863_v50 }
 0xadf   : > { %v4377_v11 = vpop.f32.mrf.mxu1 }
 0xae0   : > { %v4407_v56 = vmul.f32 %v4377_v11, %v8843_v15 }
 0xae1   : > { %v4381_v14 = vpop.f32.mrf.mxu1 }
 0xae2   : > { %v4408_v38 = vmul.f32 %v4400_v33, %v4381_v14 }
 0xae3   : > { %v4383_v41 = vpop.f32.mrf.mxu1 }
 0xae4   : > { %v4409_v50 = vmul.f32 %v4401_v48, %v4383_v41 }
 0xae5   : > { %v4385_v45 = vpop.f32.mrf.mxu1 }
 0xae6   : > { %v4410_v19 = vmul.f32 %v4402_v24, %v4385_v45 }
 0xae7   : > { %v4387_v8 = vpop.f32.mrf.mxu1 }
 0xae8   : > { %v4411_v22 = vmul.f32 %v4403_v17, %v4387_v8  ;;  %v4423_v7 = vpack.c.bf16 %v4410_v19, %v4408_v38 }
 0xae9   : > { %v4391_v42 = vpop.f32.mrf.mxu1 }
 0xaea   : > { %v4412_v49 = vmul.f32 %v4404_v4, %v4391_v42  ;;  %v4424_v15 = vpack.c.bf16 %v4411_v22, %v4409_v50 }
 0xaeb   : > { %v4393_v44 = vpop.f32.mrf.mxu1 }
 0xaec   : > { %v4413_v1 = vmul.f32 %v4405_v31, %v4393_v44 }
 0xaed   : > { %v4395_v34 = vpop.f32.mrf.mxu1 }
 0xaee   : > { %v4414_v3 = vmul.f32 %v4406_v62, %v4395_v34 }
 0xaef   : > { %v4397_v54 = vpop.f32.mrf.mxu1 }
 0xaf0   : > { %v4415_v36 = vmul.f32 %v4407_v56, %v4397_v54  ;;  %v4431_v0 = vpack.c.bf16 %v4414_v3, %v4412_v49 }
 0xaf2   : > { %v4432_v29 = vpack.c.bf16 %v4415_v36, %v4413_v1 }
 0xaf4   : > { %4587 = vmatprep.subr.bf16.mxu1 %v4432_v29 }
 0xaf5   : > { %4588 = vmatpush1.bf16.msra.mxu1 %v4431_v0 }
 0xaf6   : > { %4589 = vmatprep.subr.bf16.mxu1 %v4424_v15 }
 0xaf9   : > { %4590 = vmatpush1.bf16.msra.mxu1 %v4423_v7 }
 0xafc   : > { %4815 = vmatmul.mubr.msk.bf16.vlgmr.msra.gmra.mxu1 %vm3080_vm10, %v8937_v5  ;;  %v5128_v5 = vld [vmem:[%s5215_s28 + $0x70] sm:$0xff] }
 0xbbc   : > { %v4609_v28 = vpop.f32.mrf.mxu1 }
 0xbbd   : > { %v4610_v21 = vadd.f32 %v4609_v28, %v8970_v55 }
 0xbbe   : > { %v4611_v2 = vpop.f32.mrf.mxu1 }
 0xbbf   : > { %v4624_v32 = vadd.f32 %v5126_v43, %v4610_v21  ;;  %v4612_v47 = vadd.f32 %v4611_v2, %v8970_v55 }
 0xbc0   : > { %v4613_v52 = vpop.f32.mrf.mxu1 }
 0xbc1   : > { %4640 = vst [vmem:[%s8978_s23 + $0x30] sm:$0xff] %v4624_v32  ;;  %v4625_v27 = vadd.f32 %v5127_v13, %v4612_v47  ;;  %v4614_v46 = vadd.f32 %v4613_v52, %v8983_v63 }
 0xbc2   : > { %v4615_v26 = vpop.f32.mrf.mxu1 }
 0xbc3   : > { %4641 = vst [vmem:[%s8978_s23 + $0x38] sm:$0xff] %v4625_v27  ;;  %v4632_v16 = vadd.f32 %v5128_v5, %v4614_v46  ;;  %v4616_v51 = vadd.f32 %v4615_v26, %v8983_v63 }
 0xbc5   : > { %4648 = vst [vmem:[%s8978_s23 + $0x70] sm:$0xff] %v4632_v16  ;;  %v4633_v10 = vadd.f32 %v5129_v61, %v4616_v51 }
 0xbc7   : > { %4649 = vst [vmem:[%s8978_s23 + $0x78] sm:$0xff] %v4633_v10 }
 0xbc8 PF: > { %s14_s15 = sadd.s32 1, %s5136_s15  }
 0xbc9   : > { %p11_p4 = scmp.ge.s32.totalorder %s14_s15, 4  }
 0xbcb   :  { %13 = sbr.rel (!%p11_p4) target bundleno = 1 (0x1), region = 73 }

</bundles_post_ra>
